<compile_context>
chip_gen: v6e
topology: v6e:2x2x1
jax: 0.10.0
libtpu: 0.0.40
codegen_flags: <defaults>
</compile_context>

<pallas_src>
import jax
import jax.numpy as jnp
from jax.experimental import pallas as pl
from jax.experimental.pallas import tpu as pltpu

TB = 8               # images per grid step (multiple of 8; 8-10 good on v5e,
                     # 16-32 possible on v6e/v7x for large batches)

# conv geometry fixed by fc1 = Linear(64*4*4, 512)  =>  60x60 spatial input
_H_IN = 60
_C1_K, _C1_S, _C1_H = 8, 4, 14
_C2_K, _C2_S, _C2_H = 4, 2, 6
_C3_K, _C3_S, _C3_H = 3, 1, 4


# ----------------------------------------------------------------------------
# Fused Pallas kernel: full Actor forward for TB images per grid step
# ----------------------------------------------------------------------------
def _actor_kernel(x_ref, sel2_ref, w1_ref, w2_ref, w3_ref, wfc1_ref, wh_ref,
                  b1_ref, b2_ref, b3_ref, bfc1_ref, bh_ref, o_ref):
    f32, bf16 = jnp.float32, jnp.bfloat16

    # ---- conv1 (k8 s4).  The strided H gather was done wrapper-side:
    # x_ref[kh] already holds rows h = 4*ho + kh of every image in the block,
    # stacked h-major ((ho, b) row order) -> M = TB*14 rows per weight push.
    acc1 = jnp.zeros((TB * _C1_H, w1_ref.shape[-1]), f32)
    for kh in range(_C1_K):
        acc1 = acc1 + jnp.dot(x_ref[kh], w1_ref[kh],
                              preferred_element_type=f32)
    x1 = jnp.maximum(acc1 + b1_ref[...], 0.0).astype(bf16)     # (TB*14, 14*32)

    # ---- conv2 (k4 s2).  Row gather for ALL kh in one precomputed 0/1
    # matmul (exact in bf16), then 4 banded weight matmuls with M = TB*6.
    r2 = jnp.dot(sel2_ref[...], x1, preferred_element_type=f32).astype(bf16)
    acc2 = jnp.zeros((TB * _C2_H, w2_ref.shape[-1]), f32)
    for kh in range(_C2_K):
        rows = r2[kh * TB * _C2_H:(kh + 1) * TB * _C2_H, :]
        acc2 = acc2 + jnp.dot(rows, w2_ref[kh], preferred_element_type=f32)
    x2 = jnp.maximum(acc2 + b2_ref[...], 0.0).astype(bf16)      # (TB*6, 6*64)

    # ---- conv3 (k3 s1).  Stride 1 + h-major row order => rows for kernel
    # offset kh are a contiguous, 8-aligned static sublane window: no gather.
    acc3 = jnp.zeros((TB * _C3_H, w3_ref.shape[-1]), f32)
    for kh in range(_C3_K):
        rows = x2[kh * TB:kh * TB + TB * _C3_H, :]
        acc3 = acc3 + jnp.dot(rows, w3_ref[kh], preferred_element_type=f32)
    x3 = jnp.maximum(acc3 + b3_ref[...], 0.0).astype(bf16)      # (TB*4, 4*64)

    # ---- fc1 batched: 4 dots of (TB, 256) @ (256, 512); each h-slice is a
    # contiguous static window thanks to the h-major row order.
    acc4 = jnp.zeros((TB, wfc1_ref.shape[-1]), f32)
    for h in range(_C3_H):
        acc4 = acc4 + jnp.dot(x3[h * TB:(h + 1) * TB, :], wfc1_ref[h],
                              preferred_element_type=f32)
    x4 = jnp.maximum(acc4 + bfc1_ref[...], 0.0).astype(bf16)    # (TB, 512)

    # ---- heads fused into one lane-dense 512->128 matmul (cols 3.. zero pad)
    # epilogue: tanh on col 0 (steering), sigmoid elsewhere.
    pre = jnp.dot(x4, wh_ref[...], preferred_element_type=f32) + bh_ref[...]
    col = jax.lax.broadcasted_iota(jnp.int32, pre.shape, 1)
    out = jnp.where(col == 0, jnp.tanh(pre), jax.nn.sigmoid(pre))
    o_ref[...] = out.astype(o_ref.dtype)                        # (TB, 128)


# ----------------------------------------------------------------------------
# Wrapper-side weight preparation (done once, outside the hot path)
# ----------------------------------------------------------------------------
def _banded_conv_weight(w_oihw, w_in, stride):
    """PyTorch (Cout, Cin, k, k) -> (k, W_in*Cin, W_out*Cout) bf16 banded mats.
    M_kh[w*Cin+ci, wo*Cout+co] = W[co, ci, kh, w - stride*wo] if in range."""
    c_out, c_in, k, _ = w_oihw.shape
    w_out = (w_in - k) // stride + 1
    wi = jnp.arange(w_in)[:, None]              # (w_in, 1)
    wo = jnp.arange(w_out)[None, :]             # (1, w_out)
    kw = wi - stride * wo                       # (w_in, w_out)
    valid = (kw >= 0) & (kw < k)
    kw_c = jnp.clip(kw, 0, k - 1)
    g = w_oihw[:, :, :, kw_c]                   # (Cout, Cin, k, w_in, w_out)
    g = jnp.where(valid[None, None, None, :, :], g, 0.0)
    g = g.transpose(2, 3, 1, 4, 0)              # (k, w_in, Cin, w_out, Cout)
    return g.reshape(k, w_in * c_in, w_out * c_out).astype(jnp.bfloat16)


def _conv2_row_select(tb):
    """0/1 gather matrix for conv2's strided H rows (all kh at once).
    Row r = kh*(tb*h_out) + ho*tb + b selects conv1-output row
    (2*ho + kh)*tb + b.  Shape: (k2*tb*h_out2, tb*h_out1), bf16 (exact)."""
    k, s, h_out, h_in = _C2_K, _C2_S, _C2_H, _C1_H
    kh = jnp.arange(k)[:, None, None]
    ho = jnp.arange(h_out)[None, :, None]
    b = jnp.arange(tb)[None, None, :]
    cols = ((s * ho + kh) * tb + b).reshape(k * h_out * tb)
    return jax.nn.one_hot(cols, tb * h_in, dtype=jnp.bfloat16)


def prepare_actor_params(params):
    """Convert PyTorch-layout params to kernel-ready matrices (bf16 weights,
    f32 biases).  Call once; reuse across forward calls."""
    kp = {}
    kp["w1"] = _banded_conv_weight(params["conv1_w"], _H_IN, _C1_S)  # (8,240,448)
    kp["w2"] = _banded_conv_weight(params["conv2_w"], _C1_H, _C2_S)  # (4,448,384)
    kp["w3"] = _banded_conv_weight(params["conv3_w"], _C2_H, _C3_S)  # (3,384,256)
    kp["b1"] = jnp.tile(params["conv1_b"], _C1_H)[None, :].astype(jnp.float32)
    kp["b2"] = jnp.tile(params["conv2_b"], _C2_H)[None, :].astype(jnp.float32)
    kp["b3"] = jnp.tile(params["conv3_b"], _C3_H)[None, :].astype(jnp.float32)
    # fc1 weight columns are PyTorch (C,H,W)-flattened; reorder to our (H,W,C)
    # activation layout and split by H so the kernel sums 4 (TB,256)x(256,512).
    wfc1 = params["fc1_w"].reshape(512, 64, 4, 4).transpose(2, 3, 1, 0)
    kp["wfc1"] = wfc1.reshape(4, 4 * 64, 512).astype(jnp.bfloat16)
    kp["bfc1"] = params["fc1_b"][None, :].astype(jnp.float32)
    # Heads: (512, 3) -> zero-pad to (512, 128) for a lane-dense output store.
    wh = jnp.concatenate([params["steer_w"], params["accel_w"],
                          params["brake_w"]], axis=0).T          # (512, 3)
    kp["wh"] = jnp.pad(wh, ((0, 0), (0, 125))).astype(jnp.bfloat16)
    bh = jnp.concatenate([params["steer_b"], params["accel_b"],
                          params["brake_b"]], axis=0)            # (3,)
    kp["bh"] = jnp.pad(bh, (0, 125))[None, :].astype(jnp.float32)
    kp["sel2"] = _conv2_row_select(TB)                           # (192, 112)
    return kp


# ----------------------------------------------------------------------------
# Actor forward (single fused, batched pallas_call)
# ----------------------------------------------------------------------------
def actor_forward(kparams, s):
    """s: (B, state_size, 60, 60) f32 -> (B, 3) f32."""
    B, C, H, W = s.shape
    nb = -(-B // TB)                     # ceil(B / TB)
    Bp = nb * TB
    if Bp != B:                          # pad batch to a multiple of TB
        s = jnp.pad(s, ((0, Bp - B), (0, 0), (0, 0), (0, 0)))

    # NCHW -> bf16 channels-last rows, then the conv1 H-window gather
    # (im2row along H) and block grouping so each grid step's x_ref[kh] is
    # directly the (TB*14, W*C) matmul LHS in h-major ((ho, b)) row order.
    x = s.astype(jnp.bfloat16).transpose(0, 2, 3, 1).reshape(Bp, H, W * C)
    h_idx = _C1_S * jnp.arange(_C1_H)[None, :] + jnp.arange(_C1_K)[:, None]
    xg = x[:, h_idx, :]                                   # (Bp, 8, 14, W*C)
    xg = xg.reshape(nb, TB, _C1_K, _C1_H, W * C)
    xg = xg.transpose(2, 0, 3, 1, 4)                      # (8, nb, 14, TB, WC)
    xg = xg.reshape(_C1_K, Bp * _C1_H, W * C)

    wc = W * C
    out = pl.pallas_call(
        _actor_kernel,
        out_shape=jax.ShapeDtypeStruct((Bp, 128), jnp.float32),
        grid=(nb,),
        in_specs=[
            pl.BlockSpec((_C1_K, TB * _C1_H, wc), lambda i: (0, i, 0)),  # img
            pl.BlockSpec(kparams["sel2"].shape, lambda i: (0, 0)),
            pl.BlockSpec(kparams["w1"].shape, lambda i: (0, 0, 0)),
            pl.BlockSpec(kparams["w2"].shape, lambda i: (0, 0, 0)),
            pl.BlockSpec(kparams["w3"].shape, lambda i: (0, 0, 0)),
            pl.BlockSpec(kparams["wfc1"].shape, lambda i: (0, 0, 0)),
            pl.BlockSpec(kparams["wh"].shape, lambda i: (0, 0)),
            pl.BlockSpec(kparams["b1"].shape, lambda i: (0, 0)),
            pl.BlockSpec(kparams["b2"].shape, lambda i: (0, 0)),
            pl.BlockSpec(kparams["b3"].shape, lambda i: (0, 0)),
            pl.BlockSpec(kparams["bfc1"].shape, lambda i: (0, 0)),
            pl.BlockSpec(kparams["bh"].shape, lambda i: (0, 0)),
        ],
        out_specs=pl.BlockSpec((TB, 128), lambda i: (i, 0)),
        compiler_params=pltpu.CompilerParams(
            dimension_semantics=("parallel",)),
    )(xg, kparams["sel2"], kparams["w1"], kparams["w2"], kparams["w3"],
      kparams["wfc1"], kparams["wh"], kparams["b1"], kparams["b2"],
      kparams["b3"], kparams["bfc1"], kparams["bh"])
    return out[:B, :3]


# ----------------------------------------------------------------------------
# Parameter init (deterministic, synthetic; PyTorch layouts)
# ----------------------------------------------------------------------------
def init_actor_params(key, state_size):
    ks = jax.random.split(key, 10)

    def conv_w(k, shape):
        fan_in = shape[1] * shape[2] * shape[3]
        return jax.random.normal(k, shape, jnp.float32) * (1.0 / jnp.sqrt(fan_in))

    def lin_w(k, out_f, in_f, scale=None):
        if scale is None:
            scale = 1.0 / jnp.sqrt(in_f)
        return jax.random.normal(k, (out_f, in_f), jnp.float32) * scale

    return {
        "conv1_w": conv_w(ks[0], (32, state_size, 8, 8)),
        "conv1_b": jnp.zeros((32,), jnp.float32),
        "conv2_w": conv_w(ks[1], (64, 32, 4, 4)),
        "conv2_b": jnp.zeros((64,), jnp.float32),
        "conv3_w": conv_w(ks[2], (64, 64, 3, 3)),
        "conv3_b": jnp.zeros((64,), jnp.float32),
        "fc1_w": lin_w(ks[3], 512, 64 * 4 * 4),
        "fc1_b": jnp.zeros((512,), jnp.float32),
        # heads initialized with std 0.0001, as in the PyTorch module
        "steer_w": lin_w(ks[4], 1, 512, scale=0.0001),
        "steer_b": jnp.zeros((1,), jnp.float32),
        "accel_w": lin_w(ks[5], 1, 512, scale=0.0001),
        "accel_b": jnp.zeros((1,), jnp.float32),
        "brake_w": lin_w(ks[6], 1, 512, scale=0.0001),
        "brake_b": jnp.zeros((1,), jnp.float32),
    }


# ----------------------------------------------------------------------------
# Pure-JAX reference (for correctness check)
# ----------------------------------------------------------------------------
def actor_forward_ref(params, s):
    def conv(x, w, b, stride):
        y = jax.lax.conv_general_dilated(
            x, w, window_strides=(stride, stride), padding="VALID",
            dimension_numbers=("NCHW", "OIHW", "NCHW"))
        return jax.nn.relu(y + b[None, :, None, None])

    B = s.shape[0]
    x = conv(s, params["conv1_w"], params["conv1_b"], 4)
    x = conv(x, params["conv2_w"], params["conv2_b"], 2)
    x = conv(x, params["conv3_w"], params["conv3_b"], 1)
    x = x.reshape(B, 64 * 4 * 4)
    x = jax.nn.relu(x @ params["fc1_w"].T + params["fc1_b"])
    steer = jnp.tanh(x @ params["steer_w"].T + params["steer_b"])
    accel = jax.nn.sigmoid(x @ params["accel_w"].T + params["accel_b"])
    brake = jax.nn.sigmoid(x @ params["brake_w"].T + params["brake_b"])
    return jnp.concatenate([steer, accel, brake], axis=1)


if __name__ == "__main__":
    key = jax.random.PRNGKey(0)
    k_param, k_input = jax.random.split(key)

    batch = 2
    state_size = 4
    # spatial 60x60 is required so the conv stack yields 4x4 for fc1(64*4*4)
    s = jax.random.normal(k_input, (batch, state_size, 60, 60), jnp.float32)

    params = init_actor_params(k_param, state_size)
    kparams = prepare_actor_params(params)          # one-time weight prep

    out = jax.jit(actor_forward)(kparams, s)
    out = jax.block_until_ready(out)
    assert out.shape == (batch, 3), out.shape

    ref = jax.jit(actor_forward_ref)(params, s)
    ref = jax.block_until_ready(ref)
    assert jnp.allclose(out, ref, rtol=2e-3, atol=2e-3), (
        float(jnp.max(jnp.abs(out - ref))))

    print("KERNEL_OK")
</pallas_src>

<mosaic_0001>
module attributes {stable_mosaic.version = 11 : i64} {
  func.func @_actor_kernel(%arg0: i32, %arg1: memref<8x112x240xbf16, #tpu.memory_space<vmem>>, %arg2: memref<192x112xbf16, #tpu.memory_space<vmem>>, %arg3: memref<8x240x448xbf16, #tpu.memory_space<vmem>>, %arg4: memref<4x448x384xbf16, #tpu.memory_space<vmem>>, %arg5: memref<3x384x256xbf16, #tpu.memory_space<vmem>>, %arg6: memref<4x256x512xbf16, #tpu.memory_space<vmem>>, %arg7: memref<512x128xbf16, #tpu.memory_space<vmem>>, %arg8: memref<1x448xf32, #tpu.memory_space<vmem>>, %arg9: memref<1x384xf32, #tpu.memory_space<vmem>>, %arg10: memref<1x256xf32, #tpu.memory_space<vmem>>, %arg11: memref<1x512xf32, #tpu.memory_space<vmem>>, %arg12: memref<1x128xf32, #tpu.memory_space<vmem>>, %arg13: memref<8x128xf32, #tpu.memory_space<vmem>>) attributes {dimension_semantics = [#tpu.dimension_semantics<parallel>], iteration_bounds = array<i64: 1>, scalar_prefetch = 0 : i64, scratch_operands = 0 : i64, tpu.core_type = #tpu.core_type<tc>, window_params = [{transform_indices = @transform_0, window_bounds = array<i64: 8, 112, 240>}, {pipeline_mode = #tpu.pipeline_mode<synchronous>, transform_indices = @transform_1, window_bounds = array<i64: 192, 112>}, {pipeline_mode = #tpu.pipeline_mode<synchronous>, transform_indices = @transform_2, window_bounds = array<i64: 8, 240, 448>}, {pipeline_mode = #tpu.pipeline_mode<synchronous>, transform_indices = @transform_3, window_bounds = array<i64: 4, 448, 384>}, {pipeline_mode = #tpu.pipeline_mode<synchronous>, transform_indices = @transform_4, window_bounds = array<i64: 3, 384, 256>}, {pipeline_mode = #tpu.pipeline_mode<synchronous>, transform_indices = @transform_5, window_bounds = array<i64: 4, 256, 512>}, {pipeline_mode = #tpu.pipeline_mode<synchronous>, transform_indices = @transform_6, window_bounds = array<i64: 512, 128>}, {pipeline_mode = #tpu.pipeline_mode<synchronous>, transform_indices = @transform_7, window_bounds = array<i64: 1, 448>}, {pipeline_mode = #tpu.pipeline_mode<synchronous>, transform_indices = @transform_8, window_bounds = array<i64: 1, 384>}, {pipeline_mode = #tpu.pipeline_mode<synchronous>, transform_indices = @transform_9, window_bounds = array<i64: 1, 256>}, {pipeline_mode = #tpu.pipeline_mode<synchronous>, transform_indices = @transform_10, window_bounds = array<i64: 1, 512>}, {pipeline_mode = #tpu.pipeline_mode<synchronous>, transform_indices = @transform_11, window_bounds = array<i64: 1, 128>}, {transform_indices = @transform_12, window_bounds = array<i64: 8, 128>}]} {
    %cst = arith.constant 0.000000e+00 : f32
    %0 = vector.broadcast %cst : f32 to vector<112x448xf32>
    %c0 = arith.constant 0 : index
    %c0_0 = arith.constant 0 : index
    %c0_1 = arith.constant 0 : index
    %1 = vector.load %arg1[%c0, %c0_0, %c0_1] : memref<8x112x240xbf16, #tpu.memory_space<vmem>>, vector<1x112x240xbf16>
    %2 = vector.shape_cast %1 : vector<1x112x240xbf16> to vector<112x240xbf16>
    %c0_2 = arith.constant 0 : index
    %c0_3 = arith.constant 0 : index
    %c0_4 = arith.constant 0 : index
    %3 = vector.load %arg3[%c0_2, %c0_3, %c0_4] : memref<8x240x448xbf16, #tpu.memory_space<vmem>>, vector<1x240x448xbf16>
    %4 = vector.shape_cast %3 : vector<1x240x448xbf16> to vector<240x448xbf16>
    %cst_5 = arith.constant dense<0.000000e+00> : vector<112x448xf32>
    %5 = tpu.matmul %2, %4, %cst_5 {dimension_numbers = #tpu.dot_dimension_numbers<[1], [0], [0], [1], [0, 0, 1, 1], [], []>} : vector<112x240xbf16>, vector<240x448xbf16>, vector<112x448xf32> -> vector<112x448xf32>
    %6 = arith.addf %0, %5 : vector<112x448xf32>
    %c1 = arith.constant 1 : index
    %c0_6 = arith.constant 0 : index
    %c0_7 = arith.constant 0 : index
    %7 = vector.load %arg1[%c1, %c0_6, %c0_7] : memref<8x112x240xbf16, #tpu.memory_space<vmem>>, vector<1x112x240xbf16>
    %8 = vector.shape_cast %7 : vector<1x112x240xbf16> to vector<112x240xbf16>
    %c1_8 = arith.constant 1 : index
    %c0_9 = arith.constant 0 : index
    %c0_10 = arith.constant 0 : index
    %9 = vector.load %arg3[%c1_8, %c0_9, %c0_10] : memref<8x240x448xbf16, #tpu.memory_space<vmem>>, vector<1x240x448xbf16>
    %10 = vector.shape_cast %9 : vector<1x240x448xbf16> to vector<240x448xbf16>
    %cst_11 = arith.constant dense<0.000000e+00> : vector<112x448xf32>
    %11 = tpu.matmul %8, %10, %cst_11 {dimension_numbers = #tpu.dot_dimension_numbers<[1], [0], [0], [1], [0, 0, 1, 1], [], []>} : vector<112x240xbf16>, vector<240x448xbf16>, vector<112x448xf32> -> vector<112x448xf32>
    %12 = arith.addf %6, %11 : vector<112x448xf32>
    %c2 = arith.constant 2 : index
    %c0_12 = arith.constant 0 : index
    %c0_13 = arith.constant 0 : index
    %13 = vector.load %arg1[%c2, %c0_12, %c0_13] : memref<8x112x240xbf16, #tpu.memory_space<vmem>>, vector<1x112x240xbf16>
    %14 = vector.shape_cast %13 : vector<1x112x240xbf16> to vector<112x240xbf16>
    %c2_14 = arith.constant 2 : index
    %c0_15 = arith.constant 0 : index
    %c0_16 = arith.constant 0 : index
    %15 = vector.load %arg3[%c2_14, %c0_15, %c0_16] : memref<8x240x448xbf16, #tpu.memory_space<vmem>>, vector<1x240x448xbf16>
    %16 = vector.shape_cast %15 : vector<1x240x448xbf16> to vector<240x448xbf16>
    %cst_17 = arith.constant dense<0.000000e+00> : vector<112x448xf32>
    %17 = tpu.matmul %14, %16, %cst_17 {dimension_numbers = #tpu.dot_dimension_numbers<[1], [0], [0], [1], [0, 0, 1, 1], [], []>} : vector<112x240xbf16>, vector<240x448xbf16>, vector<112x448xf32> -> vector<112x448xf32>
    %18 = arith.addf %12, %17 : vector<112x448xf32>
    %c3 = arith.constant 3 : index
    %c0_18 = arith.constant 0 : index
    %c0_19 = arith.constant 0 : index
    %19 = vector.load %arg1[%c3, %c0_18, %c0_19] : memref<8x112x240xbf16, #tpu.memory_space<vmem>>, vector<1x112x240xbf16>
    %20 = vector.shape_cast %19 : vector<1x112x240xbf16> to vector<112x240xbf16>
    %c3_20 = arith.constant 3 : index
    %c0_21 = arith.constant 0 : index
    %c0_22 = arith.constant 0 : index
    %21 = vector.load %arg3[%c3_20, %c0_21, %c0_22] : memref<8x240x448xbf16, #tpu.memory_space<vmem>>, vector<1x240x448xbf16>
    %22 = vector.shape_cast %21 : vector<1x240x448xbf16> to vector<240x448xbf16>
    %cst_23 = arith.constant dense<0.000000e+00> : vector<112x448xf32>
    %23 = tpu.matmul %20, %22, %cst_23 {dimension_numbers = #tpu.dot_dimension_numbers<[1], [0], [0], [1], [0, 0, 1, 1], [], []>} : vector<112x240xbf16>, vector<240x448xbf16>, vector<112x448xf32> -> vector<112x448xf32>
    %24 = arith.addf %18, %23 : vector<112x448xf32>
    %c4 = arith.constant 4 : index
    %c0_24 = arith.constant 0 : index
    %c0_25 = arith.constant 0 : index
    %25 = vector.load %arg1[%c4, %c0_24, %c0_25] : memref<8x112x240xbf16, #tpu.memory_space<vmem>>, vector<1x112x240xbf16>
    %26 = vector.shape_cast %25 : vector<1x112x240xbf16> to vector<112x240xbf16>
    %c4_26 = arith.constant 4 : index
    %c0_27 = arith.constant 0 : index
    %c0_28 = arith.constant 0 : index
    %27 = vector.load %arg3[%c4_26, %c0_27, %c0_28] : memref<8x240x448xbf16, #tpu.memory_space<vmem>>, vector<1x240x448xbf16>
    %28 = vector.shape_cast %27 : vector<1x240x448xbf16> to vector<240x448xbf16>
    %cst_29 = arith.constant dense<0.000000e+00> : vector<112x448xf32>
    %29 = tpu.matmul %26, %28, %cst_29 {dimension_numbers = #tpu.dot_dimension_numbers<[1], [0], [0], [1], [0, 0, 1, 1], [], []>} : vector<112x240xbf16>, vector<240x448xbf16>, vector<112x448xf32> -> vector<112x448xf32>
    %30 = arith.addf %24, %29 : vector<112x448xf32>
    %c5 = arith.constant 5 : index
    %c0_30 = arith.constant 0 : index
    %c0_31 = arith.constant 0 : index
    %31 = vector.load %arg1[%c5, %c0_30, %c0_31] : memref<8x112x240xbf16, #tpu.memory_space<vmem>>, vector<1x112x240xbf16>
    %32 = vector.shape_cast %31 : vector<1x112x240xbf16> to vector<112x240xbf16>
    %c5_32 = arith.constant 5 : index
    %c0_33 = arith.constant 0 : index
    %c0_34 = arith.constant 0 : index
    %33 = vector.load %arg3[%c5_32, %c0_33, %c0_34] : memref<8x240x448xbf16, #tpu.memory_space<vmem>>, vector<1x240x448xbf16>
    %34 = vector.shape_cast %33 : vector<1x240x448xbf16> to vector<240x448xbf16>
    %cst_35 = arith.constant dense<0.000000e+00> : vector<112x448xf32>
    %35 = tpu.matmul %32, %34, %cst_35 {dimension_numbers = #tpu.dot_dimension_numbers<[1], [0], [0], [1], [0, 0, 1, 1], [], []>} : vector<112x240xbf16>, vector<240x448xbf16>, vector<112x448xf32> -> vector<112x448xf32>
    %36 = arith.addf %30, %35 : vector<112x448xf32>
    %c6 = arith.constant 6 : index
    %c0_36 = arith.constant 0 : index
    %c0_37 = arith.constant 0 : index
    %37 = vector.load %arg1[%c6, %c0_36, %c0_37] : memref<8x112x240xbf16, #tpu.memory_space<vmem>>, vector<1x112x240xbf16>
    %38 = vector.shape_cast %37 : vector<1x112x240xbf16> to vector<112x240xbf16>
    %c6_38 = arith.constant 6 : index
    %c0_39 = arith.constant 0 : index
    %c0_40 = arith.constant 0 : index
    %39 = vector.load %arg3[%c6_38, %c0_39, %c0_40] : memref<8x240x448xbf16, #tpu.memory_space<vmem>>, vector<1x240x448xbf16>
    %40 = vector.shape_cast %39 : vector<1x240x448xbf16> to vector<240x448xbf16>
    %cst_41 = arith.constant dense<0.000000e+00> : vector<112x448xf32>
    %41 = tpu.matmul %38, %40, %cst_41 {dimension_numbers = #tpu.dot_dimension_numbers<[1], [0], [0], [1], [0, 0, 1, 1], [], []>} : vector<112x240xbf16>, vector<240x448xbf16>, vector<112x448xf32> -> vector<112x448xf32>
    %42 = arith.addf %36, %41 : vector<112x448xf32>
    %c7 = arith.constant 7 : index
    %c0_42 = arith.constant 0 : index
    %c0_43 = arith.constant 0 : index
    %43 = vector.load %arg1[%c7, %c0_42, %c0_43] : memref<8x112x240xbf16, #tpu.memory_space<vmem>>, vector<1x112x240xbf16>
    %44 = vector.shape_cast %43 : vector<1x112x240xbf16> to vector<112x240xbf16>
    %c7_44 = arith.constant 7 : index
    %c0_45 = arith.constant 0 : index
    %c0_46 = arith.constant 0 : index
    %45 = vector.load %arg3[%c7_44, %c0_45, %c0_46] : memref<8x240x448xbf16, #tpu.memory_space<vmem>>, vector<1x240x448xbf16>
    %46 = vector.shape_cast %45 : vector<1x240x448xbf16> to vector<240x448xbf16>
    %cst_47 = arith.constant dense<0.000000e+00> : vector<112x448xf32>
    %47 = tpu.matmul %44, %46, %cst_47 {dimension_numbers = #tpu.dot_dimension_numbers<[1], [0], [0], [1], [0, 0, 1, 1], [], []>} : vector<112x240xbf16>, vector<240x448xbf16>, vector<112x448xf32> -> vector<112x448xf32>
    %48 = arith.addf %42, %47 : vector<112x448xf32>
    %c0_48 = arith.constant 0 : index
    %c0_49 = arith.constant 0 : index
    %49 = vector.load %arg8[%c0_48, %c0_49] : memref<1x448xf32, #tpu.memory_space<vmem>>, vector<1x448xf32>
    %50 = vector.broadcast %49 : vector<1x448xf32> to vector<112x448xf32>
    %51 = arith.addf %48, %50 : vector<112x448xf32>
    %cst_50 = arith.constant 0.000000e+00 : f32
    %52 = vector.broadcast %cst_50 : f32 to vector<112x448xf32>
    %53 = arith.maximumf %51, %52 : vector<112x448xf32>
    %54 = arith.truncf %53 : vector<112x448xf32> to vector<112x448xbf16>
    %c0_51 = arith.constant 0 : index
    %c0_52 = arith.constant 0 : index
    %55 = vector.load %arg2[%c0_51, %c0_52] : memref<192x112xbf16, #tpu.memory_space<vmem>>, vector<192x112xbf16>
    %cst_53 = arith.constant dense<0.000000e+00> : vector<192x448xf32>
    %56 = tpu.matmul %55, %54, %cst_53 {dimension_numbers = #tpu.dot_dimension_numbers<[1], [0], [0], [1], [0, 0, 1, 1], [], []>} : vector<192x112xbf16>, vector<112x448xbf16>, vector<192x448xf32> -> vector<192x448xf32>
    %57 = arith.truncf %56 : vector<192x448xf32> to vector<192x448xbf16>
    %cst_54 = arith.constant 0.000000e+00 : f32
    %58 = vector.broadcast %cst_54 : f32 to vector<48x384xf32>
    %59 = vector.extract_strided_slice %57 {offsets = [0, 0], sizes = [48, 448], strides = [1, 1]} : vector<192x448xbf16> to vector<48x448xbf16>
    %c0_55 = arith.constant 0 : index
    %c0_56 = arith.constant 0 : index
    %c0_57 = arith.constant 0 : index
    %60 = vector.load %arg4[%c0_55, %c0_56, %c0_57] : memref<4x448x384xbf16, #tpu.memory_space<vmem>>, vector<1x448x384xbf16>
    %61 = vector.shape_cast %60 : vector<1x448x384xbf16> to vector<448x384xbf16>
    %cst_58 = arith.constant dense<0.000000e+00> : vector<48x384xf32>
    %62 = tpu.matmul %59, %61, %cst_58 {dimension_numbers = #tpu.dot_dimension_numbers<[1], [0], [0], [1], [0, 0, 1, 1], [], []>} : vector<48x448xbf16>, vector<448x384xbf16>, vector<48x384xf32> -> vector<48x384xf32>
    %63 = arith.addf %58, %62 : vector<48x384xf32>
    %64 = vector.extract_strided_slice %57 {offsets = [48, 0], sizes = [48, 448], strides = [1, 1]} : vector<192x448xbf16> to vector<48x448xbf16>
    %c1_59 = arith.constant 1 : index
    %c0_60 = arith.constant 0 : index
    %c0_61 = arith.constant 0 : index
    %65 = vector.load %arg4[%c1_59, %c0_60, %c0_61] : memref<4x448x384xbf16, #tpu.memory_space<vmem>>, vector<1x448x384xbf16>
    %66 = vector.shape_cast %65 : vector<1x448x384xbf16> to vector<448x384xbf16>
    %cst_62 = arith.constant dense<0.000000e+00> : vector<48x384xf32>
    %67 = tpu.matmul %64, %66, %cst_62 {dimension_numbers = #tpu.dot_dimension_numbers<[1], [0], [0], [1], [0, 0, 1, 1], [], []>} : vector<48x448xbf16>, vector<448x384xbf16>, vector<48x384xf32> -> vector<48x384xf32>
    %68 = arith.addf %63, %67 : vector<48x384xf32>
    %69 = vector.extract_strided_slice %57 {offsets = [96, 0], sizes = [48, 448], strides = [1, 1]} : vector<192x448xbf16> to vector<48x448xbf16>
    %c2_63 = arith.constant 2 : index
    %c0_64 = arith.constant 0 : index
    %c0_65 = arith.constant 0 : index
    %70 = vector.load %arg4[%c2_63, %c0_64, %c0_65] : memref<4x448x384xbf16, #tpu.memory_space<vmem>>, vector<1x448x384xbf16>
    %71 = vector.shape_cast %70 : vector<1x448x384xbf16> to vector<448x384xbf16>
    %cst_66 = arith.constant dense<0.000000e+00> : vector<48x384xf32>
    %72 = tpu.matmul %69, %71, %cst_66 {dimension_numbers = #tpu.dot_dimension_numbers<[1], [0], [0], [1], [0, 0, 1, 1], [], []>} : vector<48x448xbf16>, vector<448x384xbf16>, vector<48x384xf32> -> vector<48x384xf32>
    %73 = arith.addf %68, %72 : vector<48x384xf32>
    %74 = vector.extract_strided_slice %57 {offsets = [144, 0], sizes = [48, 448], strides = [1, 1]} : vector<192x448xbf16> to vector<48x448xbf16>
    %c3_67 = arith.constant 3 : index
    %c0_68 = arith.constant 0 : index
    %c0_69 = arith.constant 0 : index
    %75 = vector.load %arg4[%c3_67, %c0_68, %c0_69] : memref<4x448x384xbf16, #tpu.memory_space<vmem>>, vector<1x448x384xbf16>
    %76 = vector.shape_cast %75 : vector<1x448x384xbf16> to vector<448x384xbf16>
    %cst_70 = arith.constant dense<0.000000e+00> : vector<48x384xf32>
    %77 = tpu.matmul %74, %76, %cst_70 {dimension_numbers = #tpu.dot_dimension_numbers<[1], [0], [0], [1], [0, 0, 1, 1], [], []>} : vector<48x448xbf16>, vector<448x384xbf16>, vector<48x384xf32> -> vector<48x384xf32>
    %78 = arith.addf %73, %77 : vector<48x384xf32>
    %c0_71 = arith.constant 0 : index
    %c0_72 = arith.constant 0 : index
    %79 = vector.load %arg9[%c0_71, %c0_72] : memref<1x384xf32, #tpu.memory_space<vmem>>, vector<1x384xf32>
    %80 = vector.broadcast %79 : vector<1x384xf32> to vector<48x384xf32>
    %81 = arith.addf %78, %80 : vector<48x384xf32>
    %cst_73 = arith.constant 0.000000e+00 : f32
    %82 = vector.broadcast %cst_73 : f32 to vector<48x384xf32>
    %83 = arith.maximumf %81, %82 : vector<48x384xf32>
    %84 = arith.truncf %83 : vector<48x384xf32> to vector<48x384xbf16>
    %cst_74 = arith.constant 0.000000e+00 : f32
    %85 = vector.broadcast %cst_74 : f32 to vector<32x256xf32>
    %86 = vector.extract_strided_slice %84 {offsets = [0, 0], sizes = [32, 384], strides = [1, 1]} : vector<48x384xbf16> to vector<32x384xbf16>
    %c0_75 = arith.constant 0 : index
    %c0_76 = arith.constant 0 : index
    %c0_77 = arith.constant 0 : index
    %87 = vector.load %arg5[%c0_75, %c0_76, %c0_77] : memref<3x384x256xbf16, #tpu.memory_space<vmem>>, vector<1x384x256xbf16>
    %88 = vector.shape_cast %87 : vector<1x384x256xbf16> to vector<384x256xbf16>
    %cst_78 = arith.constant dense<0.000000e+00> : vector<32x256xf32>
    %89 = tpu.matmul %86, %88, %cst_78 {dimension_numbers = #tpu.dot_dimension_numbers<[1], [0], [0], [1], [0, 0, 1, 1], [], []>} : vector<32x384xbf16>, vector<384x256xbf16>, vector<32x256xf32> -> vector<32x256xf32>
    %90 = arith.addf %85, %89 : vector<32x256xf32>
    %91 = vector.extract_strided_slice %84 {offsets = [8, 0], sizes = [32, 384], strides = [1, 1]} : vector<48x384xbf16> to vector<32x384xbf16>
    %c1_79 = arith.constant 1 : index
    %c0_80 = arith.constant 0 : index
    %c0_81 = arith.constant 0 : index
    %92 = vector.load %arg5[%c1_79, %c0_80, %c0_81] : memref<3x384x256xbf16, #tpu.memory_space<vmem>>, vector<1x384x256xbf16>
    %93 = vector.shape_cast %92 : vector<1x384x256xbf16> to vector<384x256xbf16>
    %cst_82 = arith.constant dense<0.000000e+00> : vector<32x256xf32>
    %94 = tpu.matmul %91, %93, %cst_82 {dimension_numbers = #tpu.dot_dimension_numbers<[1], [0], [0], [1], [0, 0, 1, 1], [], []>} : vector<32x384xbf16>, vector<384x256xbf16>, vector<32x256xf32> -> vector<32x256xf32>
    %95 = arith.addf %90, %94 : vector<32x256xf32>
    %96 = vector.extract_strided_slice %84 {offsets = [16, 0], sizes = [32, 384], strides = [1, 1]} : vector<48x384xbf16> to vector<32x384xbf16>
    %c2_83 = arith.constant 2 : index
    %c0_84 = arith.constant 0 : index
    %c0_85 = arith.constant 0 : index
    %97 = vector.load %arg5[%c2_83, %c0_84, %c0_85] : memref<3x384x256xbf16, #tpu.memory_space<vmem>>, vector<1x384x256xbf16>
    %98 = vector.shape_cast %97 : vector<1x384x256xbf16> to vector<384x256xbf16>
    %cst_86 = arith.constant dense<0.000000e+00> : vector<32x256xf32>
    %99 = tpu.matmul %96, %98, %cst_86 {dimension_numbers = #tpu.dot_dimension_numbers<[1], [0], [0], [1], [0, 0, 1, 1], [], []>} : vector<32x384xbf16>, vector<384x256xbf16>, vector<32x256xf32> -> vector<32x256xf32>
    %100 = arith.addf %95, %99 : vector<32x256xf32>
    %c0_87 = arith.constant 0 : index
    %c0_88 = arith.constant 0 : index
    %101 = vector.load %arg10[%c0_87, %c0_88] : memref<1x256xf32, #tpu.memory_space<vmem>>, vector<1x256xf32>
    %102 = vector.broadcast %101 : vector<1x256xf32> to vector<32x256xf32>
    %103 = arith.addf %100, %102 : vector<32x256xf32>
    %cst_89 = arith.constant 0.000000e+00 : f32
    %104 = vector.broadcast %cst_89 : f32 to vector<32x256xf32>
    %105 = arith.maximumf %103, %104 : vector<32x256xf32>
    %106 = arith.truncf %105 : vector<32x256xf32> to vector<32x256xbf16>
    %cst_90 = arith.constant 0.000000e+00 : f32
    %107 = vector.broadcast %cst_90 : f32 to vector<8x512xf32>
    %108 = vector.extract_strided_slice %106 {offsets = [0, 0], sizes = [8, 256], strides = [1, 1]} : vector<32x256xbf16> to vector<8x256xbf16>
    %c0_91 = arith.constant 0 : index
    %c0_92 = arith.constant 0 : index
    %c0_93 = arith.constant 0 : index
    %109 = vector.load %arg6[%c0_91, %c0_92, %c0_93] : memref<4x256x512xbf16, #tpu.memory_space<vmem>>, vector<1x256x512xbf16>
    %110 = vector.shape_cast %109 : vector<1x256x512xbf16> to vector<256x512xbf16>
    %cst_94 = arith.constant dense<0.000000e+00> : vector<8x512xf32>
    %111 = tpu.matmul %108, %110, %cst_94 {dimension_numbers = #tpu.dot_dimension_numbers<[1], [0], [0], [1], [0, 0, 1, 1], [], []>} : vector<8x256xbf16>, vector<256x512xbf16>, vector<8x512xf32> -> vector<8x512xf32>
    %112 = arith.addf %107, %111 : vector<8x512xf32>
    %113 = vector.extract_strided_slice %106 {offsets = [8, 0], sizes = [8, 256], strides = [1, 1]} : vector<32x256xbf16> to vector<8x256xbf16>
    %c1_95 = arith.constant 1 : index
    %c0_96 = arith.constant 0 : index
    %c0_97 = arith.constant 0 : index
    %114 = vector.load %arg6[%c1_95, %c0_96, %c0_97] : memref<4x256x512xbf16, #tpu.memory_space<vmem>>, vector<1x256x512xbf16>
    %115 = vector.shape_cast %114 : vector<1x256x512xbf16> to vector<256x512xbf16>
    %cst_98 = arith.constant dense<0.000000e+00> : vector<8x512xf32>
    %116 = tpu.matmul %113, %115, %cst_98 {dimension_numbers = #tpu.dot_dimension_numbers<[1], [0], [0], [1], [0, 0, 1, 1], [], []>} : vector<8x256xbf16>, vector<256x512xbf16>, vector<8x512xf32> -> vector<8x512xf32>
    %117 = arith.addf %112, %116 : vector<8x512xf32>
    %118 = vector.extract_strided_slice %106 {offsets = [16, 0], sizes = [8, 256], strides = [1, 1]} : vector<32x256xbf16> to vector<8x256xbf16>
    %c2_99 = arith.constant 2 : index
    %c0_100 = arith.constant 0 : index
    %c0_101 = arith.constant 0 : index
    %119 = vector.load %arg6[%c2_99, %c0_100, %c0_101] : memref<4x256x512xbf16, #tpu.memory_space<vmem>>, vector<1x256x512xbf16>
    %120 = vector.shape_cast %119 : vector<1x256x512xbf16> to vector<256x512xbf16>
    %cst_102 = arith.constant dense<0.000000e+00> : vector<8x512xf32>
    %121 = tpu.matmul %118, %120, %cst_102 {dimension_numbers = #tpu.dot_dimension_numbers<[1], [0], [0], [1], [0, 0, 1, 1], [], []>} : vector<8x256xbf16>, vector<256x512xbf16>, vector<8x512xf32> -> vector<8x512xf32>
    %122 = arith.addf %117, %121 : vector<8x512xf32>
    %123 = vector.extract_strided_slice %106 {offsets = [24, 0], sizes = [8, 256], strides = [1, 1]} : vector<32x256xbf16> to vector<8x256xbf16>
    %c3_103 = arith.constant 3 : index
    %c0_104 = arith.constant 0 : index
    %c0_105 = arith.constant 0 : index
    %124 = vector.load %arg6[%c3_103, %c0_104, %c0_105] : memref<4x256x512xbf16, #tpu.memory_space<vmem>>, vector<1x256x512xbf16>
    %125 = vector.shape_cast %124 : vector<1x256x512xbf16> to vector<256x512xbf16>
    %cst_106 = arith.constant dense<0.000000e+00> : vector<8x512xf32>
    %126 = tpu.matmul %123, %125, %cst_106 {dimension_numbers = #tpu.dot_dimension_numbers<[1], [0], [0], [1], [0, 0, 1, 1], [], []>} : vector<8x256xbf16>, vector<256x512xbf16>, vector<8x512xf32> -> vector<8x512xf32>
    %127 = arith.addf %122, %126 : vector<8x512xf32>
    %c0_107 = arith.constant 0 : index
    %c0_108 = arith.constant 0 : index
    %128 = vector.load %arg11[%c0_107, %c0_108] : memref<1x512xf32, #tpu.memory_space<vmem>>, vector<1x512xf32>
    %129 = vector.broadcast %128 : vector<1x512xf32> to vector<8x512xf32>
    %130 = arith.addf %127, %129 : vector<8x512xf32>
    %cst_109 = arith.constant 0.000000e+00 : f32
    %131 = vector.broadcast %cst_109 : f32 to vector<8x512xf32>
    %132 = arith.maximumf %130, %131 : vector<8x512xf32>
    %133 = arith.truncf %132 : vector<8x512xf32> to vector<8x512xbf16>
    %c0_110 = arith.constant 0 : index
    %c0_111 = arith.constant 0 : index
    %134 = vector.load %arg7[%c0_110, %c0_111] : memref<512x128xbf16, #tpu.memory_space<vmem>>, vector<512x128xbf16>
    %cst_112 = arith.constant dense<0.000000e+00> : vector<8x128xf32>
    %135 = tpu.matmul %133, %134, %cst_112 {dimension_numbers = #tpu.dot_dimension_numbers<[1], [0], [0], [1], [0, 0, 1, 1], [], []>} : vector<8x512xbf16>, vector<512x128xbf16>, vector<8x128xf32> -> vector<8x128xf32>
    %c0_113 = arith.constant 0 : index
    %c0_114 = arith.constant 0 : index
    %136 = vector.load %arg12[%c0_113, %c0_114] : memref<1x128xf32, #tpu.memory_space<vmem>>, vector<1x128xf32>
    %137 = vector.broadcast %136 : vector<1x128xf32> to vector<8x128xf32>
    %138 = arith.addf %135, %137 : vector<8x128xf32>
    %139 = tpu.iota {dimensions = array<i32: 1>} : vector<8x128xi32>
    %c0_i32 = arith.constant 0 : i32
    %140 = vector.broadcast %c0_i32 : i32 to vector<8x128xi32>
    %141 = arith.cmpi eq, %139, %140 : vector<8x128xi32>
    %142 = math.tanh %138 : vector<8x128xf32>
    %143 = arith.negf %138 : vector<8x128xf32>
    %144 = math.exp %143 : vector<8x128xf32>
    %cst_115 = arith.constant 1.000000e+00 : f32
    %145 = vector.broadcast %cst_115 : f32 to vector<8x128xf32>
    %146 = arith.addf %145, %144 : vector<8x128xf32>
    %147 = arith.divf %145, %146 : vector<8x128xf32>
    %148 = arith.select %141, %142, %147 : vector<8x128xi1>, vector<8x128xf32>
    %c0_116 = arith.constant 0 : index
    %c0_117 = arith.constant 0 : index
    %149 = vector.load %arg13[%c0_116, %c0_117] : memref<8x128xf32, #tpu.memory_space<vmem>>, vector<8x128xf32>
    tpu.vector_store %arg13[%c0_116, %c0_117], %148 {strides = array<i32>} : memref<8x128xf32, #tpu.memory_space<vmem>>, vector<8x128xf32>,
    return
  }
  func.func @transform_0(%arg0: i32) -> (i32, i32, i32) {
    %c0_i32 = arith.constant 0 : i32
    %c0_i32_0 = arith.constant 0 : i32
    %c0_i32_1 = arith.constant 0 : i32
    return %c0_i32, %arg0, %c0_i32_0 : i32, i32, i32
  }
  func.func @transform_1(%arg0: i32) -> (i32, i32) {
    %c0_i32 = arith.constant 0 : i32
    %c0_i32_0 = arith.constant 0 : i32
    %c0_i32_1 = arith.constant 0 : i32
    return %c0_i32, %c0_i32_0 : i32, i32
  }
  func.func @transform_2(%arg0: i32) -> (i32, i32, i32) {
    %c0_i32 = arith.constant 0 : i32
    %c0_i32_0 = arith.constant 0 : i32
    %c0_i32_1 = arith.constant 0 : i32
    %c0_i32_2 = arith.constant 0 : i32
    return %c0_i32, %c0_i32_0, %c0_i32_1 : i32, i32, i32
  }
  func.func @transform_3(%arg0: i32) -> (i32, i32, i32) {
    %c0_i32 = arith.constant 0 : i32
    %c0_i32_0 = arith.constant 0 : i32
    %c0_i32_1 = arith.constant 0 : i32
    %c0_i32_2 = arith.constant 0 : i32
    return %c0_i32, %c0_i32_0, %c0_i32_1 : i32, i32, i32
  }
  func.func @transform_4(%arg0: i32) -> (i32, i32, i32) {
    %c0_i32 = arith.constant 0 : i32
    %c0_i32_0 = arith.constant 0 : i32
    %c0_i32_1 = arith.constant 0 : i32
    %c0_i32_2 = arith.constant 0 : i32
    return %c0_i32, %c0_i32_0, %c0_i32_1 : i32, i32, i32
  }
  func.func @transform_5(%arg0: i32) -> (i32, i32, i32) {
    %c0_i32 = arith.constant 0 : i32
    %c0_i32_0 = arith.constant 0 : i32
    %c0_i32_1 = arith.constant 0 : i32
    %c0_i32_2 = arith.constant 0 : i32
    return %c0_i32, %c0_i32_0, %c0_i32_1 : i32, i32, i32
  }
  func.func @transform_6(%arg0: i32) -> (i32, i32) {
    %c0_i32 = arith.constant 0 : i32
    %c0_i32_0 = arith.constant 0 : i32
    %c0_i32_1 = arith.constant 0 : i32
    return %c0_i32, %c0_i32_0 : i32, i32
  }
  func.func @transform_7(%arg0: i32) -> (i32, i32) {
    %c0_i32 = arith.constant 0 : i32
    %c0_i32_0 = arith.constant 0 : i32
    %c0_i32_1 = arith.constant 0 : i32
    return %c0_i32, %c0_i32_0 : i32, i32
  }
  func.func @transform_8(%arg0: i32) -> (i32, i32) {
    %c0_i32 = arith.constant 0 : i32
    %c0_i32_0 = arith.constant 0 : i32
    %c0_i32_1 = arith.constant 0 : i32
    return %c0_i32, %c0_i32_0 : i32, i32
  }
  func.func @transform_9(%arg0: i32) -> (i32, i32) {
    %c0_i32 = arith.constant 0 : i32
    %c0_i32_0 = arith.constant 0 : i32
    %c0_i32_1 = arith.constant 0 : i32
    return %c0_i32, %c0_i32_0 : i32, i32
  }
  func.func @transform_10(%arg0: i32) -> (i32, i32) {
    %c0_i32 = arith.constant 0 : i32
    %c0_i32_0 = arith.constant 0 : i32
    %c0_i32_1 = arith.constant 0 : i32
    return %c0_i32, %c0_i32_0 : i32, i32
  }
  func.func @transform_11(%arg0: i32) -> (i32, i32) {
    %c0_i32 = arith.constant 0 : i32
    %c0_i32_0 = arith.constant 0 : i32
    %c0_i32_1 = arith.constant 0 : i32
    return %c0_i32, %c0_i32_0 : i32, i32
  }
  func.func @transform_12(%arg0: i32) -> (i32, i32) {
    %c0_i32 = arith.constant 0 : i32
    %c0_i32_0 = arith.constant 0 : i32
    return %arg0, %c0_i32 : i32, i32
  }
}

</mosaic_0001>

<bundles_post_ra>
// kernel: actor_forward.1
= control target key start
LH: loop header
LB: loop body
LE: loop exit
PB: predicated region body
PF: predicated region fallthrough
CT: control target
= control target key end

     0   :  { %vm555_vm0 = vcmask 916480   ;;  %vm7014_vm1 = vcmask 523264   ;;  %vm9785_vm2 = vcmask 1043456   ;;  %s24485_s2 = inlined_call_operand.vmem [shape: bf16[8,240,448], index: 2, kind: input, shape index: {}]   ;;  %s24486_s0 = inlined_call_operand.vmem [shape: bf16[8,112,240], index: 0, kind: input, shape index: {}]   ;;  %s24487_s1 = inlined_call_operand.vmem [shape: bf16[192,112], index: 1, kind: input, shape index: {}]   ;;  %s24488_s7 = inlined_call_operand.vmem [shape: f32[1,448], index: 7, kind: input, shape index: {}]   ;;  %s24489_s3 = inlined_call_operand.vmem [shape: bf16[4,448,384], index: 3, kind: input, shape index: {}]   ;;  %s24490_s4 = inlined_call_operand.vmem [shape: bf16[3,384,256], index: 4, kind: input, shape index: {}]   ;;  %s24491_s8 = inlined_call_operand.vmem [shape: f32[1,384], index: 8, kind: input, shape index: {}]   ;;  %s24492_s5 = inlined_call_operand.vmem [shape: bf16[4,256,512], index: 5, kind: input, shape index: {}]   ;;  %s24493_s9 = inlined_call_operand.vmem [shape: f32[1,256], index: 9, kind: input, shape index: {}]   ;;  %s24494_s6 = inlined_call_operand.vmem [shape: bf16[512,128], index: 6, kind: input, shape index: {}]   ;;  %s24495_s10 = inlined_call_operand.vmem [shape: f32[1,512], index: 10, kind: input, shape index: {}]   ;;  %s24496_s11 = inlined_call_operand.vmem [shape: f32[1,128], index: 11, kind: input, shape index: {}]   ;;  %s24497_s12 = inlined_call_operand.vmem [shape: f32[8,128], index: 12, kind: output, shape index: {}]  }
   0x1   :  { %v16071_v0 = vld [vmem:[%s24485_s2 + $0x2c4] ss:$16 sps:$4 sm:$0xff]   ;;  %v16073_v1 = vld [vmem:[%s24485_s2 + $0x2cc] ss:$16 sps:$4 sm:$0xff]   ;;  %v16075_v2 = vld [vmem:[%s24485_s2 + $0x2c0] ss:$16 sps:$4 sm:$0xff]  }
   0x2   :  { %577 = vmatprep.subr.bf16.mxu0 %v16071_v0  ;;  %v16076_v3 = vld [vmem:[%s24485_s2 + $0x2c8] ss:$16 sps:$4 sm:$0xff]   ;;  %680 = vmatprep.subr.bf16.mxu1 %v16073_v1  ;;  %v16077_v4 = vld [vmem:[%s24485_s2 + $0x2a4] ss:$16 sps:$4 sm:$0xff]   ;;  %v16079_v5 = vld [vmem:[%s24485_s2 + $0x2ac] ss:$16 sps:$4 sm:$0xff]  }
   0x3   :  { %578 = vmatpush1.bf16.msra.mxu0 %v16075_v2  ;;  %681 = vmatpush1.bf16.msra.mxu1 %v16076_v3  ;;  %v16081_v6 = vld [vmem:[%s24485_s2 + $0x2a0] ss:$16 sps:$4 sm:$0xff]   ;;  %v16082_v7 = vld [vmem:[%s24485_s2 + $0x2a8] ss:$16 sps:$4 sm:$0xff]   ;;  %v16083_v8 = vld [vmem:[%s24485_s2 + $0x284] ss:$16 sps:$4 sm:$0xff]  }
   0x4   :  { %579 = vmatprep.subr.bf16.mxu0 %v16077_v4  ;;  %682 = vmatprep.subr.bf16.mxu1 %v16079_v5  ;;  %v16085_v9 = vld [vmem:[%s24485_s2 + $0x28c] ss:$16 sps:$4 sm:$0xff]   ;;  %v16087_v10 = vld [vmem:[%s24485_s2 + $0x280] ss:$16 sps:$4 sm:$0xff]   ;;  %v16088_v11 = vld [vmem:[%s24485_s2 + $0x288] ss:$16 sps:$4 sm:$0xff]  }
   0x5   :  { %v16089_v12 = vld [vmem:[%s24485_s2 + $0x264] ss:$16 sps:$4 sm:$0xff]   ;;  %v16091_v13 = vld [vmem:[%s24485_s2 + $0x26c] ss:$16 sps:$4 sm:$0xff]   ;;  %v16093_v14 = vld [vmem:[%s24485_s2 + $0x260] ss:$16 sps:$4 sm:$0xff]  }
   0x6   :  { %v16094_v15 = vld [vmem:[%s24485_s2 + $0x268] ss:$16 sps:$4 sm:$0xff]   ;;  %v16095_v16 = vld [vmem:[%s24485_s2 + $0x244] ss:$16 sps:$4 sm:$0xff]   ;;  %v16097_v17 = vld [vmem:[%s24485_s2 + $0x24c] ss:$16 sps:$4 sm:$0xff]  }
   0x7   :  { %580 = vmatpush1.bf16.msra.mxu0 %v16081_v6  ;;  %683 = vmatpush1.bf16.msra.mxu1 %v16082_v7  ;;  %v16099_v18 = vld [vmem:[%s24485_s2 + $0x240] ss:$16 sps:$4 sm:$0xff]   ;;  %v16100_v19 = vld [vmem:[%s24485_s2 + $0x248] ss:$16 sps:$4 sm:$0xff]   ;;  %v16101_v20 = vld [vmem:[%s24485_s2 + $0x224] ss:$16 sps:$4 sm:$0xff]  }
   0x8   :  { %581 = vmatprep.subr.bf16.mxu0 %v16083_v8  ;;  %684 = vmatprep.subr.bf16.mxu1 %v16085_v9  ;;  %v16103_v21 = vld [vmem:[%s24485_s2 + $0x22c] ss:$16 sps:$4 sm:$0xff]   ;;  %v16105_v22 = vld [vmem:[%s24485_s2 + $0x220] ss:$16 sps:$4 sm:$0xff]   ;;  %v16106_v23 = vld [vmem:[%s24485_s2 + $0x228] ss:$16 sps:$4 sm:$0xff]  }
   0x9   :  { %v16107_v24 = vld [vmem:[%s24485_s2 + $0x204] ss:$16 sps:$4 sm:$0xff]   ;;  %v16109_v25 = vld [vmem:[%s24485_s2 + $0x20c] ss:$16 sps:$4 sm:$0xff]   ;;  %v16111_v26 = vld [vmem:[%s24485_s2 + $0x200] ss:$16 sps:$4 sm:$0xff]  }
   0xa   :  { %v16112_v27 = vld [vmem:[%s24485_s2 + $0x208] ss:$16 sps:$4 sm:$0xff]   ;;  %v16113_v28 = vld [vmem:[%s24485_s2 + $0x1e4] ss:$16 sps:$4 sm:$0xff]   ;;  %v16115_v29 = vld [vmem:[%s24485_s2 + $0x1ec] ss:$16 sps:$4 sm:$0xff]  }
   0xb   :  { %582 = vmatpush1.bf16.msra.mxu0 %v16087_v10  ;;  %685 = vmatpush1.bf16.msra.mxu1 %v16088_v11  ;;  %v16117_v30 = vld [vmem:[%s24485_s2 + $0x1e0] ss:$16 sps:$4 sm:$0xff]   ;;  %v16118_v31 = vld [vmem:[%s24485_s2 + $0x1e8] ss:$16 sps:$4 sm:$0xff]   ;;  %v16119_v32 = vld [vmem:[%s24485_s2 + $0x3a4] ss:$16 sps:$4 sm:$0xff]  }
   0xc   :  { %583 = vmatprep.subr.bf16.mxu0 %v16089_v12  ;;  %686 = vmatprep.subr.bf16.mxu1 %v16091_v13  ;;  %v16121_v33 = vld [vmem:[%s24485_s2 + $0x3ac] ss:$16 sps:$4 sm:$0xff]   ;;  %v16123_v34 = vld [vmem:[%s24485_s2 + $0x3a0] ss:$16 sps:$4 sm:$0xff]   ;;  %v16124_v35 = vld [vmem:[%s24485_s2 + $0x3a8] ss:$16 sps:$4 sm:$0xff]  }
   0xd   :  { %v16125_v36 = vld [vmem:[%s24485_s2 + $0x384] ss:$16 sps:$4 sm:$0xff]   ;;  %v16127_v37 = vld [vmem:[%s24485_s2 + $0x38c] ss:$16 sps:$4 sm:$0xff]   ;;  %v16129_v38 = vld [vmem:[%s24485_s2 + $0x380] ss:$16 sps:$4 sm:$0xff]  }
   0xe   :  { %v16130_v39 = vld [vmem:[%s24485_s2 + $0x388] ss:$16 sps:$4 sm:$0xff]   ;;  %v16131_v40 = vld [vmem:[%s24485_s2 + $0x364] ss:$16 sps:$4 sm:$0xff]   ;;  %v16133_v41 = vld [vmem:[%s24485_s2 + $0x36c] ss:$16 sps:$4 sm:$0xff]  }
   0xf   :  { %584 = vmatpush1.bf16.msra.mxu0 %v16093_v14  ;;  %687 = vmatpush1.bf16.msra.mxu1 %v16094_v15  ;;  %v16135_v42 = vld [vmem:[%s24485_s2 + $0x360] ss:$16 sps:$4 sm:$0xff]   ;;  %v16136_v43 = vld [vmem:[%s24485_s2 + $0x368] ss:$16 sps:$4 sm:$0xff]   ;;  %v16137_v44 = vld [vmem:[%s24485_s2 + $0x344] ss:$16 sps:$4 sm:$0xff]  }
  0x10   :  { %585 = vmatprep.subr.bf16.mxu0 %v16095_v16  ;;  %688 = vmatprep.subr.bf16.mxu1 %v16097_v17  ;;  %v16139_v45 = vld [vmem:[%s24485_s2 + $0x34c] ss:$16 sps:$4 sm:$0xff]   ;;  %v16141_v47 = vld [vmem:[%s24485_s2 + $0x340] ss:$16 sps:$4 sm:$0xff]   ;;  %v16142_v48 = vld [vmem:[%s24485_s2 + $0x348] ss:$16 sps:$4 sm:$0xff]  }
  0x11   :  { %v16163_v46 = vld [vmem:[%s24486_s0 + $0x74] ss:$8 sps:$4 sm:$0xff]   ;;  %v16147_v51 = vld [vmem:[%s24485_s2 + $0x320] ss:$16 sps:$4 sm:$0xff]   ;;  %v16148_v52 = vld [vmem:[%s24485_s2 + $0x328] ss:$16 sps:$4 sm:$0xff]  }
  0x12   :  { %13369 = vmatprep.mubr.msk.bf16.mxu1 %vm555_vm0, %v16163_v46  ;;  %13362 = vmatprep.mubr.msk.bf16.mxu0 %vm555_vm0, %v16163_v46  ;;  %v16143_v49 = vld [vmem:[%s24485_s2 + $0x324] ss:$16 sps:$4 sm:$0xff]   ;;  %v16145_v50 = vld [vmem:[%s24485_s2 + $0x32c] ss:$16 sps:$4 sm:$0xff]   ;;  %v16153_v55 = vld [vmem:[%s24485_s2 + $0x300] ss:$16 sps:$4 sm:$0xff]  }
  0x13   :  { %586 = vmatpush1.bf16.msra.mxu0 %v16099_v18  ;;  %689 = vmatpush1.bf16.msra.mxu1 %v16100_v19  ;;  %v16149_v53 = vld [vmem:[%s24485_s2 + $0x304] ss:$16 sps:$4 sm:$0xff]   ;;  %v16151_v54 = vld [vmem:[%s24485_s2 + $0x30c] ss:$16 sps:$4 sm:$0xff]   ;;  %v16154_v56 = vld [vmem:[%s24485_s2 + $0x308] ss:$16 sps:$4 sm:$0xff]  }
  0x14   :  { %587 = vmatprep.subr.bf16.mxu0 %v16101_v20  ;;  %690 = vmatprep.subr.bf16.mxu1 %v16103_v21  ;;  %v16155_v57 = vld [vmem:[%s24485_s2 + $0x2e4] ss:$16 sps:$4 sm:$0xff]   ;;  %v16157_v58 = vld [vmem:[%s24485_s2 + $0x2ec] ss:$16 sps:$4 sm:$0xff]   ;;  %v16159_v59 = vld [vmem:[%s24485_s2 + $0x2e0] ss:$16 sps:$4 sm:$0xff]  }
  0x15   :  { %v16160_v60 = vld [vmem:[%s24485_s2 + $0x2e8] ss:$16 sps:$4 sm:$0xff]   ;;  %v16166_v61 = vld [vmem:[%s24485_s2 + $0xe4] ss:$16 sps:$4 sm:$0xff]   ;;  %v16169_v62 = vld [vmem:[%s24485_s2 + $0xec] ss:$16 sps:$4 sm:$0xff]  }
  0x16   :  { %v16161_v63 = vld [vmem:[%s24486_s0 + $0x70] ss:$8 sps:$4 sm:$0xff]   ;;  %v16172_v2 = vld [vmem:[%s24485_s2 + $0xc4] ss:$16 sps:$4 sm:$0xff]   ;;  %v16175_v3 = vld [vmem:[%s24485_s2 + $0xcc] ss:$16 sps:$4 sm:$0xff]  }
  0x17   :  { %588 = vmatpush1.bf16.msra.mxu0 %v16105_v22  ;;  %691 = vmatpush1.bf16.msra.mxu1 %v16106_v23  ;;  %v16164_v0 = vld [vmem:[%s24485_s2 + $0xe0] ss:$16 sps:$4 sm:$0xff]   ;;  %v16167_v1 = vld [vmem:[%s24485_s2 + $0xe8] ss:$16 sps:$4 sm:$0xff]   ;;  %v16176_v4 = vld [vmem:[%s24486_s0 + $0x84] ss:$8 sps:$4 sm:$0xff]  }
  0x18   :  { %589 = vmatprep.subr.bf16.mxu0 %v16107_v24  ;;  %692 = vmatprep.subr.bf16.mxu1 %v16109_v25  ;;  %v16170_v5 = vld [vmem:[%s24485_s2 + $0xc0] ss:$16 sps:$4 sm:$0xff]   ;;  %v16173_v6 = vld [vmem:[%s24485_s2 + $0xc8] ss:$16 sps:$4 sm:$0xff]   ;;  %v16181_v7 = vld [vmem:[%s24485_s2 + $0xa4] ss:$16 sps:$4 sm:$0xff]  }
  0x19   :  { %v16184_v8 = vld [vmem:[%s24485_s2 + $0xac] ss:$16 sps:$4 sm:$0xff]   ;;  %v16178_v9 = vld [vmem:[%s24486_s0 + $0x80] ss:$8 sps:$4 sm:$0xff]   ;;  %v16187_v12 = vld [vmem:[%s24485_s2 + $0x84] ss:$16 sps:$4 sm:$0xff]  }
  0x1a   :  { %v16179_v10 = vld [vmem:[%s24485_s2 + $0xa0] ss:$16 sps:$4 sm:$0xff]   ;;  %v16182_v11 = vld [vmem:[%s24485_s2 + $0xa8] ss:$16 sps:$4 sm:$0xff]   ;;  %v16190_v13 = vld [vmem:[%s24485_s2 + $0x8c] ss:$16 sps:$4 sm:$0xff]  }
  0x1b   :  { %590 = vmatpush1.bf16.msra.mxu0 %v16111_v26  ;;  %693 = vmatpush1.bf16.msra.mxu1 %v16112_v27  ;;  %v16191_v14 = vld [vmem:[%s24486_s0 + $0x94] ss:$8 sps:$4 sm:$0xff]   ;;  %v16185_v15 = vld [vmem:[%s24485_s2 + $0x80] ss:$16 sps:$4 sm:$0xff]   ;;  %v16188_v16 = vld [vmem:[%s24485_s2 + $0x88] ss:$16 sps:$4 sm:$0xff]  }
  0x1c   :  { %591 = vmatprep.subr.bf16.mxu0 %v16113_v28  ;;  %694 = vmatprep.subr.bf16.mxu1 %v16115_v29  ;;  %v16196_v17 = vld [vmem:[%s24485_s2 + $0x64] ss:$16 sps:$4 sm:$0xff]   ;;  %v16199_v18 = vld [vmem:[%s24485_s2 + $0x6c] ss:$16 sps:$4 sm:$0xff]   ;;  %v16193_v19 = vld [vmem:[%s24486_s0 + $0x90] ss:$8 sps:$4 sm:$0xff]  }
  0x1d   :  { %v16194_v20 = vld [vmem:[%s24485_s2 + $0x60] ss:$16 sps:$4 sm:$0xff]   ;;  %v16197_v21 = vld [vmem:[%s24485_s2 + $0x68] ss:$16 sps:$4 sm:$0xff]   ;;  %v16202_v22 = vld [vmem:[%s24485_s2 + $0x44] ss:$16 sps:$4 sm:$0xff]  }
  0x1e   :  { %v16205_v23 = vld [vmem:[%s24485_s2 + $0x4c] ss:$16 sps:$4 sm:$0xff]   ;;  %v16200_v25 = vld [vmem:[%s24485_s2 + $0x40] ss:$16 sps:$4 sm:$0xff]   ;;  %v16203_v26 = vld [vmem:[%s24485_s2 + $0x48] ss:$16 sps:$4 sm:$0xff]  }
  0x1f   :  { %592 = vmatpush1.bf16.msra.mxu0 %v16117_v30  ;;  %695 = vmatpush1.bf16.msra.mxu1 %v16118_v31  ;;  %v16206_v24 = vld [vmem:[%s24486_s0 + $0xa4] ss:$8 sps:$4 sm:$0xff]   ;;  %v16208_v29 = vld [vmem:[%s24486_s0 + $0xa0] ss:$8 sps:$4 sm:$0xff]  }
  0x20   :  { %595 = vmatprep.subr.bf16.mxu0 %v16119_v32  ;;  %698 = vmatprep.subr.bf16.mxu1 %v16121_v33  ;;  %v16211_v27 = vld [vmem:[%s24485_s2 + $0x24] ss:$16 sps:$4 sm:$0xff]   ;;  %v16214_v28 = vld [vmem:[%s24485_s2 + $0x2c] ss:$16 sps:$4 sm:$0xff]   ;;  %v16209_v30 = vld [vmem:[%s24485_s2 + $0x20] ss:$16 sps:$4 sm:$0xff]  }
  0x21   :  { %v16212_v31 = vld [vmem:[%s24485_s2 + $0x28] ss:$16 sps:$4 sm:$0xff]   ;;  %v16217_v32 = vld [vmem:[%s24485_s2 + $0x4] ss:$16 sps:$4 sm:$0xff]   ;;  %v16220_v33 = vld [vmem:[%s24485_s2 + $0xc] ss:$16 sps:$4 sm:$0xff]  }
  0x22   :  { %v16233_v46 = vld [vmem:[%s24485_s2 + $0x1a8] ss:$16 sps:$4 sm:$0xff]  }
  0x23   :  { %596 = vmatpush2.bf16.msra.mxu0 %v16123_v34  ;;  %699 = vmatpush2.bf16.msra.mxu1 %v16124_v35  ;;  %v16221_v34 = vld [vmem:[%s24486_s0 + $0xb4] ss:$8 sps:$4 sm:$0xff]   ;;  %v16215_v35 = vld [vmem:[%s24485_s2] ss:$16 sps:$4 sm:$0xff]  }
  0x24   :  { %597 = vmatprep.subr.bf16.mxu0 %v16125_v36  ;;  %700 = vmatprep.subr.bf16.mxu1 %v16127_v37  ;;  %v16218_v36 = vld [vmem:[%s24485_s2 + $0x8] ss:$16 sps:$4 sm:$0xff]   ;;  %v16226_v37 = vld [vmem:[%s24485_s2 + $0x1c4] ss:$16 sps:$4 sm:$0xff]  }
  0x27   :  { %598 = vmatpush2.bf16.msra.mxu0 %v16129_v38  ;;  %701 = vmatpush2.bf16.msra.mxu1 %v16130_v39  ;;  %v16229_v38 = vld [vmem:[%s24485_s2 + $0x1cc] ss:$16 sps:$4 sm:$0xff]   ;;  %v16223_v39 = vld [vmem:[%s24486_s0 + $0xb0] ss:$8 sps:$4 sm:$0xff]  }
  0x28   :  { %599 = vmatprep.subr.bf16.mxu0 %v16131_v40  ;;  %702 = vmatprep.subr.bf16.mxu1 %v16133_v41  ;;  %v16224_v40 = vld [vmem:[%s24485_s2 + $0x1c0] ss:$16 sps:$4 sm:$0xff]   ;;  %v16227_v41 = vld [vmem:[%s24485_s2 + $0x1c8] ss:$16 sps:$4 sm:$0xff]  }
  0x2b   :  { %600 = vmatpush2.bf16.msra.mxu0 %v16135_v42  ;;  %703 = vmatpush2.bf16.msra.mxu1 %v16136_v43  ;;  %v16232_v42 = vld [vmem:[%s24485_s2 + $0x1a4] ss:$16 sps:$4 sm:$0xff]   ;;  %v16235_v43 = vld [vmem:[%s24485_s2 + $0x1ac] ss:$16 sps:$4 sm:$0xff]  }
  0x2c   :  { %601 = vmatprep.subr.bf16.mxu0 %v16137_v44  ;;  %704 = vmatprep.subr.bf16.mxu1 %v16139_v45  ;;  %v16236_v44 = vld [vmem:[%s24486_s0 + $0xc4] ss:$8 sps:$4 sm:$0xff]   ;;  %v16230_v45 = vld [vmem:[%s24485_s2 + $0x1a0] ss:$16 sps:$4 sm:$0xff]  }
  0x2f   :  { %602 = vmatpush2.bf16.msra.mxu0 %v16141_v47  ;;  %705 = vmatpush2.bf16.msra.mxu1 %v16142_v48  ;;  %v16241_v47 = vld [vmem:[%s24485_s2 + $0x184] ss:$16 sps:$4 sm:$0xff]   ;;  %v16244_v48 = vld [vmem:[%s24485_s2 + $0x18c] ss:$16 sps:$4 sm:$0xff]  }
  0x30   :  { %603 = vmatprep.subr.bf16.mxu0 %v16143_v49  ;;  %706 = vmatprep.subr.bf16.mxu1 %v16145_v50  ;;  %v16238_v49 = vld [vmem:[%s24486_s0 + $0xc0] ss:$8 sps:$4 sm:$0xff]  }
  0x31   :  { %v16239_v50 = vld [vmem:[%s24485_s2 + $0x180] ss:$16 sps:$4 sm:$0xff]  }
  0x33   :  { %604 = vmatpush2.bf16.msra.mxu0 %v16147_v51  ;;  %707 = vmatpush2.bf16.msra.mxu1 %v16148_v52  ;;  %v16242_v51 = vld [vmem:[%s24485_s2 + $0x188] ss:$16 sps:$4 sm:$0xff]   ;;  %v16247_v52 = vld [vmem:[%s24485_s2 + $0x164] ss:$16 sps:$4 sm:$0xff]  }
  0x34   :  { %605 = vmatprep.subr.bf16.mxu0 %v16149_v53  ;;  %708 = vmatprep.subr.bf16.mxu1 %v16151_v54  ;;  %v16250_v53 = vld [vmem:[%s24485_s2 + $0x16c] ss:$16 sps:$4 sm:$0xff]  }
  0x35   :  { %v16251_v54 = vld [vmem:[%s24486_s0 + $0xd4] ss:$8 sps:$4 sm:$0xff]  }
  0x37   :  { %606 = vmatpush2.bf16.msra.mxu0 %v16153_v55  ;;  %709 = vmatpush2.bf16.msra.mxu1 %v16154_v56  ;;  %v16245_v55 = vld [vmem:[%s24485_s2 + $0x160] ss:$16 sps:$4 sm:$0xff]   ;;  %v16248_v56 = vld [vmem:[%s24485_s2 + $0x168] ss:$16 sps:$4 sm:$0xff]  }
  0x38   :  { %607 = vmatprep.subr.bf16.mxu0 %v16155_v57  ;;  %710 = vmatprep.subr.bf16.mxu1 %v16157_v58  ;;  %v16256_v57 = vld [vmem:[%s24485_s2 + $0x144] ss:$16 sps:$4 sm:$0xff]   ;;  %v16259_v58 = vld [vmem:[%s24485_s2 + $0x14c] ss:$16 sps:$4 sm:$0xff]  }
  0x3b   :  { %608 = vmatpush2.bf16.msra.mxu0 %v16159_v59  ;;  %711 = vmatpush2.bf16.msra.mxu1 %v16160_v60  ;;  %v16253_v59 = vld [vmem:[%s24486_s0 + $0xd0] ss:$8 sps:$4 sm:$0xff]  }
  0x3c   :  { %1167 = vmatprep.subr.bf16.mxu0 %v16166_v61  ;;  %1270 = vmatprep.subr.bf16.mxu1 %v16169_v62  ;;  %v16254_v60 = vld [vmem:[%s24485_s2 + $0x140] ss:$16 sps:$4 sm:$0xff]   ;;  %v16257_v61 = vld [vmem:[%s24485_s2 + $0x148] ss:$16 sps:$4 sm:$0xff]   ;;  %v16262_v62 = vld [vmem:[%s24485_s2 + $0x124] ss:$16 sps:$4 sm:$0xff]  }
  0x3e   :  { %713 = vmatmul.mubr.bf16.vlgmr.msra.gmra.mxu1 %v16161_v63  ;;  %610 = vmatmul.mubr.bf16.vlgmr.msra.gmra.mxu0 %v16161_v63  ;;  %v16265_v63 = vld [vmem:[%s24485_s2 + $0x12c] ss:$16 sps:$4 sm:$0xff]  }
  0x3f   :  { %1168 = vmatpush1.bf16.msra.mxu0 %v16164_v0  ;;  %1271 = vmatpush1.bf16.msra.mxu1 %v16167_v1  ;;  %v16274_v0 = vld [vmem:[%s24486_s0 + $0x4] ss:$8 sps:$4 sm:$0xff]   ;;  %v16260_v1 = vld [vmem:[%s24485_s2 + $0x120] ss:$16 sps:$4 sm:$0xff]  }
  0x40   :  { %1169 = vmatprep.subr.bf16.mxu0 %v16172_v2  ;;  %1272 = vmatprep.subr.bf16.mxu1 %v16175_v3  ;;  %v16263_v2 = vld [vmem:[%s24485_s2 + $0x128] ss:$16 sps:$4 sm:$0xff]   ;;  %v16268_v3 = vld [vmem:[%s24485_s2 + $0x104] ss:$16 sps:$4 sm:$0xff]  }
  0x41   :  { %13370 = vmatprep.mubr.msk.bf16.mxu1 %vm555_vm0, %v16176_v4  ;;  %13363 = vmatprep.mubr.msk.bf16.mxu0 %vm555_vm0, %v16176_v4  ;;  %v16271_v4 = vld [vmem:[%s24485_s2 + $0x10c] ss:$16 sps:$4 sm:$0xff]  }
  0x43   :  { %1170 = vmatpush1.bf16.msra.mxu0 %v16170_v5  ;;  %1273 = vmatpush1.bf16.msra.mxu1 %v16173_v6  ;;  %v16266_v5 = vld [vmem:[%s24485_s2 + $0x100] ss:$16 sps:$4 sm:$0xff]   ;;  %v16269_v6 = vld [vmem:[%s24485_s2 + $0x108] ss:$16 sps:$4 sm:$0xff]  }
  0x44   :  { %1171 = vmatprep.subr.bf16.mxu0 %v16181_v7  ;;  %1274 = vmatprep.subr.bf16.mxu1 %v16184_v8  ;;  %v16277_v7 = vld [vmem:[%s24485_s2 + $0x4a4] ss:$16 sps:$4 sm:$0xff]   ;;  %v16280_v8 = vld [vmem:[%s24485_s2 + $0x4ac] ss:$16 sps:$4 sm:$0xff]  }
  0x46   :  { %723 = vmatmul.mubr.bf16.gmra.mxu1 %v16178_v9  ;;  %620 = vmatmul.mubr.bf16.gmra.mxu0 %v16178_v9  ;;  %v16272_v9 = vld [vmem:[%s24486_s0] ss:$8 sps:$4 sm:$0xff]  }
  0x47   :  { %1172 = vmatpush1.bf16.msra.mxu0 %v16179_v10  ;;  %1275 = vmatpush1.bf16.msra.mxu1 %v16182_v11  ;;  %v16275_v10 = vld [vmem:[%s24485_s2 + $0x4a0] ss:$16 sps:$4 sm:$0xff]   ;;  %v16278_v11 = vld [vmem:[%s24485_s2 + $0x4a8] ss:$16 sps:$4 sm:$0xff]  }
  0x48   :  { %1173 = vmatprep.subr.bf16.mxu0 %v16187_v12  ;;  %1276 = vmatprep.subr.bf16.mxu1 %v16190_v13  ;;  %v16283_v12 = vld [vmem:[%s24485_s2 + $0x484] ss:$16 sps:$4 sm:$0xff]   ;;  %v16286_v13 = vld [vmem:[%s24485_s2 + $0x48c] ss:$16 sps:$4 sm:$0xff]  }
  0x49   :  { %13371 = vmatprep.mubr.msk.bf16.mxu1 %vm555_vm0, %v16191_v14  ;;  %13364 = vmatprep.mubr.msk.bf16.mxu0 %vm555_vm0, %v16191_v14  ;;  %v16287_v14 = vld [vmem:[%s24486_s0 + $0x14] ss:$8 sps:$4 sm:$0xff]  }
  0x4b   :  { %1174 = vmatpush1.bf16.msra.mxu0 %v16185_v15  ;;  %1277 = vmatpush1.bf16.msra.mxu1 %v16188_v16  ;;  %v16281_v15 = vld [vmem:[%s24485_s2 + $0x480] ss:$16 sps:$4 sm:$0xff]   ;;  %v16284_v16 = vld [vmem:[%s24485_s2 + $0x488] ss:$16 sps:$4 sm:$0xff]  }
  0x4c   :  { %1175 = vmatprep.subr.bf16.mxu0 %v16196_v17  ;;  %1278 = vmatprep.subr.bf16.mxu1 %v16199_v18  ;;  %v16292_v17 = vld [vmem:[%s24485_s2 + $0x464] ss:$16 sps:$4 sm:$0xff]   ;;  %v16295_v18 = vld [vmem:[%s24485_s2 + $0x46c] ss:$16 sps:$4 sm:$0xff]  }
  0x4e   :  { %733 = vmatmul.mubr.bf16.gmra.mxu1 %v16193_v19  ;;  %630 = vmatmul.mubr.bf16.gmra.mxu0 %v16193_v19  ;;  %v16289_v19 = vld [vmem:[%s24486_s0 + $0x10] ss:$8 sps:$4 sm:$0xff]  }
  0x4f   :  { %1176 = vmatpush1.bf16.msra.mxu0 %v16194_v20  ;;  %1279 = vmatpush1.bf16.msra.mxu1 %v16197_v21  ;;  %v16290_v20 = vld [vmem:[%s24485_s2 + $0x460] ss:$16 sps:$4 sm:$0xff]   ;;  %v16293_v21 = vld [vmem:[%s24485_s2 + $0x468] ss:$16 sps:$4 sm:$0xff]  }
  0x50   :  { %1177 = vmatprep.subr.bf16.mxu0 %v16202_v22  ;;  %1280 = vmatprep.subr.bf16.mxu1 %v16205_v23  ;;  %v16298_v22 = vld [vmem:[%s24485_s2 + $0x444] ss:$16 sps:$4 sm:$0xff]   ;;  %v16301_v23 = vld [vmem:[%s24485_s2 + $0x44c] ss:$16 sps:$4 sm:$0xff]  }
  0x51   :  { %13372 = vmatprep.mubr.msk.bf16.mxu1 %vm555_vm0, %v16206_v24  ;;  %13365 = vmatprep.mubr.msk.bf16.mxu0 %vm555_vm0, %v16206_v24  ;;  %v16302_v24 = vld [vmem:[%s24486_s0 + $0x24] ss:$8 sps:$4 sm:$0xff]  }
  0x53   :  { %1178 = vmatpush1.bf16.msra.mxu0 %v16200_v25  ;;  %1281 = vmatpush1.bf16.msra.mxu1 %v16203_v26  ;;  %v16296_v25 = vld [vmem:[%s24485_s2 + $0x440] ss:$16 sps:$4 sm:$0xff]   ;;  %v16299_v26 = vld [vmem:[%s24485_s2 + $0x448] ss:$16 sps:$4 sm:$0xff]  }
  0x54   :  { %1179 = vmatprep.subr.bf16.mxu0 %v16211_v27  ;;  %1282 = vmatprep.subr.bf16.mxu1 %v16214_v28  ;;  %v16307_v27 = vld [vmem:[%s24485_s2 + $0x424] ss:$16 sps:$4 sm:$0xff]   ;;  %v16310_v28 = vld [vmem:[%s24485_s2 + $0x42c] ss:$16 sps:$4 sm:$0xff]  }
  0x56   :  { %743 = vmatmul.mubr.bf16.gmra.mxu1 %v16208_v29  ;;  %640 = vmatmul.mubr.bf16.gmra.mxu0 %v16208_v29  ;;  %v16304_v29 = vld [vmem:[%s24486_s0 + $0x20] ss:$8 sps:$4 sm:$0xff]  }
  0x57   :  { %1180 = vmatpush1.bf16.msra.mxu0 %v16209_v30  ;;  %1283 = vmatpush1.bf16.msra.mxu1 %v16212_v31  ;;  %v16305_v30 = vld [vmem:[%s24485_s2 + $0x420] ss:$16 sps:$4 sm:$0xff]   ;;  %v16308_v31 = vld [vmem:[%s24485_s2 + $0x428] ss:$16 sps:$4 sm:$0xff]  }
  0x58   :  { %1181 = vmatprep.subr.bf16.mxu0 %v16217_v32  ;;  %1284 = vmatprep.subr.bf16.mxu1 %v16220_v33  ;;  %v16313_v32 = vld [vmem:[%s24485_s2 + $0x404] ss:$16 sps:$4 sm:$0xff]   ;;  %v16316_v33 = vld [vmem:[%s24485_s2 + $0x40c] ss:$16 sps:$4 sm:$0xff]  }
  0x59   :  { %13373 = vmatprep.mubr.msk.bf16.mxu1 %vm555_vm0, %v16221_v34  ;;  %13366 = vmatprep.mubr.msk.bf16.mxu0 %vm555_vm0, %v16221_v34  ;;  %v16317_v34 = vld [vmem:[%s24486_s0 + $0x34] ss:$8 sps:$4 sm:$0xff]  }
  0x5b   :  { %1182 = vmatpush1.bf16.msra.mxu0 %v16215_v35  ;;  %1285 = vmatpush1.bf16.msra.mxu1 %v16218_v36  ;;  %v16311_v35 = vld [vmem:[%s24485_s2 + $0x400] ss:$16 sps:$4 sm:$0xff]   ;;  %v16314_v36 = vld [vmem:[%s24485_s2 + $0x408] ss:$16 sps:$4 sm:$0xff]  }
  0x5c   :  { %1185 = vmatprep.subr.bf16.mxu0 %v16226_v37  ;;  %1288 = vmatprep.subr.bf16.mxu1 %v16229_v38  ;;  %v16322_v37 = vld [vmem:[%s24485_s2 + $0x3e4] ss:$16 sps:$4 sm:$0xff]   ;;  %v16325_v38 = vld [vmem:[%s24485_s2 + $0x3ec] ss:$16 sps:$4 sm:$0xff]  }
  0x5e   :  { %753 = vmatmul.mubr.bf16.gmra.mxu1 %v16223_v39  ;;  %650 = vmatmul.mubr.bf16.gmra.mxu0 %v16223_v39  ;;  %v16319_v39 = vld [vmem:[%s24486_s0 + $0x30] ss:$8 sps:$4 sm:$0xff]  }
  0x5f   :  { %1186 = vmatpush2.bf16.msra.mxu0 %v16224_v40  ;;  %1289 = vmatpush2.bf16.msra.mxu1 %v16227_v41  ;;  %v16320_v40 = vld [vmem:[%s24485_s2 + $0x3e0] ss:$16 sps:$4 sm:$0xff]   ;;  %v16323_v41 = vld [vmem:[%s24485_s2 + $0x3e8] ss:$16 sps:$4 sm:$0xff]  }
  0x60   :  { %1187 = vmatprep.subr.bf16.mxu0 %v16232_v42  ;;  %1290 = vmatprep.subr.bf16.mxu1 %v16235_v43  ;;  %v16328_v42 = vld [vmem:[%s24485_s2 + $0x3c4] ss:$16 sps:$4 sm:$0xff]   ;;  %v16331_v43 = vld [vmem:[%s24485_s2 + $0x3cc] ss:$16 sps:$4 sm:$0xff]  }
  0x61   :  { %13374 = vmatprep.mubr.msk.bf16.mxu1 %vm555_vm0, %v16236_v44  ;;  %13367 = vmatprep.mubr.msk.bf16.mxu0 %vm555_vm0, %v16236_v44  ;;  %v16332_v44 = vld [vmem:[%s24486_s0 + $0x44] ss:$8 sps:$4 sm:$0xff]  }
  0x63   :  { %1188 = vmatpush2.bf16.msra.mxu0 %v16230_v45  ;;  %1291 = vmatpush2.bf16.msra.mxu1 %v16233_v46  ;;  %v16326_v45 = vld [vmem:[%s24485_s2 + $0x3c0] ss:$16 sps:$4 sm:$0xff]   ;;  %v16329_v46 = vld [vmem:[%s24485_s2 + $0x3c8] ss:$16 sps:$4 sm:$0xff]  }
  0x64   :  { %1189 = vmatprep.subr.bf16.mxu0 %v16241_v47  ;;  %1292 = vmatprep.subr.bf16.mxu1 %v16244_v48  ;;  %v16337_v47 = vld [vmem:[%s24485_s2 + $0x584] ss:$16 sps:$4 sm:$0xff]   ;;  %v16340_v48 = vld [vmem:[%s24485_s2 + $0x58c] ss:$16 sps:$4 sm:$0xff]  }
  0x66   :  { %763 = vmatmul.mubr.bf16.gmra.mxu1 %v16238_v49  ;;  %660 = vmatmul.mubr.bf16.gmra.mxu0 %v16238_v49  ;;  %v16334_v49 = vld [vmem:[%s24486_s0 + $0x40] ss:$8 sps:$4 sm:$0xff]  }
  0x67   :  { %1190 = vmatpush2.bf16.msra.mxu0 %v16239_v50  ;;  %1293 = vmatpush2.bf16.msra.mxu1 %v16242_v51  ;;  %v16335_v50 = vld [vmem:[%s24485_s2 + $0x580] ss:$16 sps:$4 sm:$0xff]   ;;  %v16338_v51 = vld [vmem:[%s24485_s2 + $0x588] ss:$16 sps:$4 sm:$0xff]  }
  0x68   :  { %1191 = vmatprep.subr.bf16.mxu0 %v16247_v52  ;;  %1294 = vmatprep.subr.bf16.mxu1 %v16250_v53  ;;  %v16343_v52 = vld [vmem:[%s24485_s2 + $0x564] ss:$16 sps:$4 sm:$0xff]   ;;  %v16346_v53 = vld [vmem:[%s24485_s2 + $0x56c] ss:$16 sps:$4 sm:$0xff]  }
  0x69   :  { %13375 = vmatprep.mubr.msk.bf16.mxu1 %vm555_vm0, %v16251_v54  ;;  %13368 = vmatprep.mubr.msk.bf16.mxu0 %vm555_vm0, %v16251_v54  ;;  %v16347_v54 = vld [vmem:[%s24486_s0 + $0x54] ss:$8 sps:$4 sm:$0xff]  }
  0x6b   :  { %1192 = vmatpush2.bf16.msra.mxu0 %v16245_v55  ;;  %1295 = vmatpush2.bf16.msra.mxu1 %v16248_v56  ;;  %v16341_v55 = vld [vmem:[%s24485_s2 + $0x560] ss:$16 sps:$4 sm:$0xff]   ;;  %v16344_v56 = vld [vmem:[%s24485_s2 + $0x568] ss:$16 sps:$4 sm:$0xff]  }
  0x6c   :  { %1193 = vmatprep.subr.bf16.mxu0 %v16256_v57  ;;  %1296 = vmatprep.subr.bf16.mxu1 %v16259_v58  ;;  %v16352_v57 = vld [vmem:[%s24485_s2 + $0x544] ss:$16 sps:$4 sm:$0xff]   ;;  %v16355_v58 = vld [vmem:[%s24485_s2 + $0x54c] ss:$16 sps:$4 sm:$0xff]  }
  0x6e   :  { %773 = vmatmul.mubr.bf16.gmra.mxu1 %v16253_v59  ;;  %670 = vmatmul.mubr.bf16.gmra.mxu0 %v16253_v59  ;;  %v16349_v59 = vld [vmem:[%s24486_s0 + $0x50] ss:$8 sps:$4 sm:$0xff]  }
  0x6f   :  { %1194 = vmatpush2.bf16.msra.mxu0 %v16254_v60  ;;  %1297 = vmatpush2.bf16.msra.mxu1 %v16257_v61  ;;  %v16350_v60 = vld [vmem:[%s24485_s2 + $0x540] ss:$16 sps:$4 sm:$0xff]   ;;  %v16353_v61 = vld [vmem:[%s24485_s2 + $0x548] ss:$16 sps:$4 sm:$0xff]  }
  0x70   :  { %1195 = vmatprep.subr.bf16.mxu0 %v16262_v62  ;;  %1298 = vmatprep.subr.bf16.mxu1 %v16265_v63  ;;  %v16358_v62 = vld [vmem:[%s24485_s2 + $0x524] ss:$16 sps:$4 sm:$0xff]   ;;  %v16361_v63 = vld [vmem:[%s24485_s2 + $0x52c] ss:$16 sps:$4 sm:$0xff]  }
  0x71   :  { %13450 = vmatprep.mubr.msk.bf16.mxu0 %vm555_vm0, %v16274_v0  ;;  %13457 = vmatprep.mubr.msk.bf16.mxu1 %vm555_vm0, %v16274_v0  ;;  %v16362_v0 = vld [vmem:[%s24486_s0 + $0x64] ss:$8 sps:$4 sm:$0xff]  }
  0x73   :  { %1196 = vmatpush2.bf16.msra.mxu0 %v16260_v1  ;;  %1299 = vmatpush2.bf16.msra.mxu1 %v16263_v2  ;;  %v16356_v1 = vld [vmem:[%s24485_s2 + $0x520] ss:$16 sps:$4 sm:$0xff]   ;;  %v16359_v2 = vld [vmem:[%s24485_s2 + $0x528] ss:$16 sps:$4 sm:$0xff]  }
  0x74   :  { %1197 = vmatprep.subr.bf16.mxu0 %v16268_v3  ;;  %1300 = vmatprep.subr.bf16.mxu1 %v16271_v4  ;;  %v16367_v3 = vld [vmem:[%s24485_s2 + $0x504] ss:$16 sps:$4 sm:$0xff]   ;;  %v16370_v4 = vld [vmem:[%s24485_s2 + $0x50c] ss:$16 sps:$4 sm:$0xff]  }
  0x77   :  { %1198 = vmatpush2.bf16.msra.mxu0 %v16266_v5  ;;  %1301 = vmatpush2.bf16.msra.mxu1 %v16269_v6  ;;  %v16364_v5 = vld [vmem:[%s24486_s0 + $0x60] ss:$8 sps:$4 sm:$0xff]  }
  0x78   :  { %1833 = vmatprep.subr.bf16.mxu0 %v16277_v7  ;;  %1936 = vmatprep.subr.bf16.mxu1 %v16280_v8  ;;  %v16365_v6 = vld [vmem:[%s24485_s2 + $0x500] ss:$16 sps:$4 sm:$0xff]   ;;  %v16368_v7 = vld [vmem:[%s24485_s2 + $0x508] ss:$16 sps:$4 sm:$0xff]   ;;  %v16373_v8 = vld [vmem:[%s24485_s2 + $0x4e4] ss:$16 sps:$4 sm:$0xff]  }
  0x7a   :  { %1200 = vmatmul.mubr.bf16.vlgmr.msra.gmra.mxu0 %v16272_v9  ;;  %1303 = vmatmul.mubr.bf16.vlgmr.msra.gmra.mxu1 %v16272_v9  ;;  %v16376_v9 = vld [vmem:[%s24485_s2 + $0x4ec] ss:$16 sps:$4 sm:$0xff]  }
  0x7b   :  { %1834 = vmatpush1.bf16.msra.mxu0 %v16275_v10  ;;  %1937 = vmatpush1.bf16.msra.mxu1 %v16278_v11  ;;  %v16385_v10 = vld [vmem:[%s24486_s0 + $0xe4] ss:$8 sps:$4 sm:$0xff]   ;;  %v16371_v11 = vld [vmem:[%s24485_s2 + $0x4e0] ss:$16 sps:$4 sm:$0xff]  }
  0x7c   :  { %1835 = vmatprep.subr.bf16.mxu0 %v16283_v12  ;;  %1938 = vmatprep.subr.bf16.mxu1 %v16286_v13  ;;  %v16374_v12 = vld [vmem:[%s24485_s2 + $0x4e8] ss:$16 sps:$4 sm:$0xff]   ;;  %v16379_v13 = vld [vmem:[%s24485_s2 + $0x4c4] ss:$16 sps:$4 sm:$0xff]  }
  0x7d   :  { %13451 = vmatprep.mubr.msk.bf16.mxu0 %vm555_vm0, %v16287_v14  ;;  %13458 = vmatprep.mubr.msk.bf16.mxu1 %vm555_vm0, %v16287_v14  ;;  %v16382_v14 = vld [vmem:[%s24485_s2 + $0x4cc] ss:$16 sps:$4 sm:$0xff]  }
  0x7f   :  { %1836 = vmatpush1.bf16.msra.mxu0 %v16281_v15  ;;  %1939 = vmatpush1.bf16.msra.mxu1 %v16284_v16  ;;  %v16377_v15 = vld [vmem:[%s24485_s2 + $0x4c0] ss:$16 sps:$4 sm:$0xff]   ;;  %v16380_v16 = vld [vmem:[%s24485_s2 + $0x4c8] ss:$16 sps:$4 sm:$0xff]  }
  0x80   :  { %1837 = vmatprep.subr.bf16.mxu0 %v16292_v17  ;;  %1940 = vmatprep.subr.bf16.mxu1 %v16295_v18  ;;  %v16388_v17 = vld [vmem:[%s24485_s2 + $0x684] ss:$16 sps:$4 sm:$0xff]   ;;  %v16391_v18 = vld [vmem:[%s24485_s2 + $0x68c] ss:$16 sps:$4 sm:$0xff]  }
  0x82   :  { %1210 = vmatmul.mubr.bf16.gmra.mxu0 %v16289_v19  ;;  %1313 = vmatmul.mubr.bf16.gmra.mxu1 %v16289_v19  ;;  %v16383_v19 = vld [vmem:[%s24486_s0 + $0xe0] ss:$8 sps:$4 sm:$0xff]  }
  0x83   :  { %1838 = vmatpush1.bf16.msra.mxu0 %v16290_v20  ;;  %1941 = vmatpush1.bf16.msra.mxu1 %v16293_v21  ;;  %v16386_v20 = vld [vmem:[%s24485_s2 + $0x680] ss:$16 sps:$4 sm:$0xff]   ;;  %v16389_v21 = vld [vmem:[%s24485_s2 + $0x688] ss:$16 sps:$4 sm:$0xff]  }
  0x84   :  { %1839 = vmatprep.subr.bf16.mxu0 %v16298_v22  ;;  %1942 = vmatprep.subr.bf16.mxu1 %v16301_v23  ;;  %v16394_v22 = vld [vmem:[%s24485_s2 + $0x664] ss:$16 sps:$4 sm:$0xff]   ;;  %v16397_v23 = vld [vmem:[%s24485_s2 + $0x66c] ss:$16 sps:$4 sm:$0xff]  }
  0x85   :  { %13452 = vmatprep.mubr.msk.bf16.mxu0 %vm555_vm0, %v16302_v24  ;;  %13459 = vmatprep.mubr.msk.bf16.mxu1 %vm555_vm0, %v16302_v24  ;;  %v16398_v24 = vld [vmem:[%s24486_s0 + $0xf4] ss:$8 sps:$4 sm:$0xff]  }
  0x87   :  { %1840 = vmatpush1.bf16.msra.mxu0 %v16296_v25  ;;  %1943 = vmatpush1.bf16.msra.mxu1 %v16299_v26  ;;  %v16392_v25 = vld [vmem:[%s24485_s2 + $0x660] ss:$16 sps:$4 sm:$0xff]   ;;  %v16395_v26 = vld [vmem:[%s24485_s2 + $0x668] ss:$16 sps:$4 sm:$0xff]  }
  0x88   :  { %1841 = vmatprep.subr.bf16.mxu0 %v16307_v27  ;;  %1944 = vmatprep.subr.bf16.mxu1 %v16310_v28  ;;  %v16403_v27 = vld [vmem:[%s24485_s2 + $0x644] ss:$16 sps:$4 sm:$0xff]   ;;  %v16406_v28 = vld [vmem:[%s24485_s2 + $0x64c] ss:$16 sps:$4 sm:$0xff]  }
  0x8a   :  { %1220 = vmatmul.mubr.bf16.gmra.mxu0 %v16304_v29  ;;  %1323 = vmatmul.mubr.bf16.gmra.mxu1 %v16304_v29  ;;  %v16400_v29 = vld [vmem:[%s24486_s0 + $0xf0] ss:$8 sps:$4 sm:$0xff]  }
  0x8b   :  { %1842 = vmatpush1.bf16.msra.mxu0 %v16305_v30  ;;  %1945 = vmatpush1.bf16.msra.mxu1 %v16308_v31  ;;  %v16401_v30 = vld [vmem:[%s24485_s2 + $0x640] ss:$16 sps:$4 sm:$0xff]   ;;  %v16404_v31 = vld [vmem:[%s24485_s2 + $0x648] ss:$16 sps:$4 sm:$0xff]  }
  0x8c   :  { %1843 = vmatprep.subr.bf16.mxu0 %v16313_v32  ;;  %1946 = vmatprep.subr.bf16.mxu1 %v16316_v33  ;;  %v16409_v32 = vld [vmem:[%s24485_s2 + $0x624] ss:$16 sps:$4 sm:$0xff]   ;;  %v16412_v33 = vld [vmem:[%s24485_s2 + $0x62c] ss:$16 sps:$4 sm:$0xff]  }
  0x8d   :  { %13453 = vmatprep.mubr.msk.bf16.mxu0 %vm555_vm0, %v16317_v34  ;;  %13460 = vmatprep.mubr.msk.bf16.mxu1 %vm555_vm0, %v16317_v34  ;;  %v16413_v34 = vld [vmem:[%s24486_s0 + $0x104] ss:$8 sps:$4 sm:$0xff]  }
  0x8f   :  { %1844 = vmatpush1.bf16.msra.mxu0 %v16311_v35  ;;  %1947 = vmatpush1.bf16.msra.mxu1 %v16314_v36  ;;  %v16407_v35 = vld [vmem:[%s24485_s2 + $0x620] ss:$16 sps:$4 sm:$0xff]   ;;  %v16410_v36 = vld [vmem:[%s24485_s2 + $0x628] ss:$16 sps:$4 sm:$0xff]  }
  0x90   :  { %1845 = vmatprep.subr.bf16.mxu0 %v16322_v37  ;;  %1948 = vmatprep.subr.bf16.mxu1 %v16325_v38  ;;  %v16418_v37 = vld [vmem:[%s24485_s2 + $0x604] ss:$16 sps:$4 sm:$0xff]   ;;  %v16421_v38 = vld [vmem:[%s24485_s2 + $0x60c] ss:$16 sps:$4 sm:$0xff]  }
  0x92   :  { %1230 = vmatmul.mubr.bf16.gmra.mxu0 %v16319_v39  ;;  %1333 = vmatmul.mubr.bf16.gmra.mxu1 %v16319_v39  ;;  %v16415_v39 = vld [vmem:[%s24486_s0 + $0x100] ss:$8 sps:$4 sm:$0xff]  }
  0x93   :  { %1846 = vmatpush1.bf16.msra.mxu0 %v16320_v40  ;;  %1949 = vmatpush1.bf16.msra.mxu1 %v16323_v41  ;;  %v16416_v40 = vld [vmem:[%s24485_s2 + $0x600] ss:$16 sps:$4 sm:$0xff]   ;;  %v16419_v41 = vld [vmem:[%s24485_s2 + $0x608] ss:$16 sps:$4 sm:$0xff]  }
  0x94   :  { %1847 = vmatprep.subr.bf16.mxu0 %v16328_v42  ;;  %1950 = vmatprep.subr.bf16.mxu1 %v16331_v43  ;;  %v16424_v42 = vld [vmem:[%s24485_s2 + $0x5e4] ss:$16 sps:$4 sm:$0xff]   ;;  %v16427_v43 = vld [vmem:[%s24485_s2 + $0x5ec] ss:$16 sps:$4 sm:$0xff]  }
  0x95   :  { %13454 = vmatprep.mubr.msk.bf16.mxu0 %vm555_vm0, %v16332_v44  ;;  %13461 = vmatprep.mubr.msk.bf16.mxu1 %vm555_vm0, %v16332_v44  ;;  %v16428_v44 = vld [vmem:[%s24486_s0 + $0x114] ss:$8 sps:$4 sm:$0xff]  }
  0x97   :  { %1848 = vmatpush1.bf16.msra.mxu0 %v16326_v45  ;;  %1951 = vmatpush1.bf16.msra.mxu1 %v16329_v46  ;;  %v16422_v45 = vld [vmem:[%s24485_s2 + $0x5e0] ss:$16 sps:$4 sm:$0xff]   ;;  %v16425_v46 = vld [vmem:[%s24485_s2 + $0x5e8] ss:$16 sps:$4 sm:$0xff]  }
  0x98   :  { %1851 = vmatprep.subr.bf16.mxu0 %v16337_v47  ;;  %1954 = vmatprep.subr.bf16.mxu1 %v16340_v48  ;;  %v16433_v47 = vld [vmem:[%s24485_s2 + $0x5c4] ss:$16 sps:$4 sm:$0xff]   ;;  %v16436_v48 = vld [vmem:[%s24485_s2 + $0x5cc] ss:$16 sps:$4 sm:$0xff]  }
  0x9a   :  { %1240 = vmatmul.mubr.bf16.gmra.mxu0 %v16334_v49  ;;  %1343 = vmatmul.mubr.bf16.gmra.mxu1 %v16334_v49  ;;  %v16430_v49 = vld [vmem:[%s24486_s0 + $0x110] ss:$8 sps:$4 sm:$0xff]  }
  0x9b   :  { %1852 = vmatpush2.bf16.msra.mxu0 %v16335_v50  ;;  %1955 = vmatpush2.bf16.msra.mxu1 %v16338_v51  ;;  %v16431_v50 = vld [vmem:[%s24485_s2 + $0x5c0] ss:$16 sps:$4 sm:$0xff]   ;;  %v16434_v51 = vld [vmem:[%s24485_s2 + $0x5c8] ss:$16 sps:$4 sm:$0xff]  }
  0x9c   :  { %1853 = vmatprep.subr.bf16.mxu0 %v16343_v52  ;;  %1956 = vmatprep.subr.bf16.mxu1 %v16346_v53  ;;  %v16439_v52 = vld [vmem:[%s24485_s2 + $0x5a4] ss:$16 sps:$4 sm:$0xff]   ;;  %v16442_v53 = vld [vmem:[%s24485_s2 + $0x5ac] ss:$16 sps:$4 sm:$0xff]  }
  0x9d   :  { %13455 = vmatprep.mubr.msk.bf16.mxu0 %vm555_vm0, %v16347_v54  ;;  %13462 = vmatprep.mubr.msk.bf16.mxu1 %vm555_vm0, %v16347_v54  ;;  %v16443_v54 = vld [vmem:[%s24486_s0 + $0x124] ss:$8 sps:$4 sm:$0xff]  }
  0x9f   :  { %1854 = vmatpush2.bf16.msra.mxu0 %v16341_v55  ;;  %1957 = vmatpush2.bf16.msra.mxu1 %v16344_v56  ;;  %v16437_v55 = vld [vmem:[%s24485_s2 + $0x5a0] ss:$16 sps:$4 sm:$0xff]   ;;  %v16440_v56 = vld [vmem:[%s24485_s2 + $0x5a8] ss:$16 sps:$4 sm:$0xff]  }
  0xa0   :  { %1855 = vmatprep.subr.bf16.mxu0 %v16352_v57  ;;  %1958 = vmatprep.subr.bf16.mxu1 %v16355_v58  ;;  %v16448_v57 = vld [vmem:[%s24485_s2 + $0x764] ss:$16 sps:$4 sm:$0xff]   ;;  %v16451_v58 = vld [vmem:[%s24485_s2 + $0x76c] ss:$16 sps:$4 sm:$0xff]  }
  0xa2   :  { %1250 = vmatmul.mubr.bf16.gmra.mxu0 %v16349_v59  ;;  %1353 = vmatmul.mubr.bf16.gmra.mxu1 %v16349_v59  ;;  %v16445_v59 = vld [vmem:[%s24486_s0 + $0x120] ss:$8 sps:$4 sm:$0xff]  }
  0xa3   :  { %1856 = vmatpush2.bf16.msra.mxu0 %v16350_v60  ;;  %1959 = vmatpush2.bf16.msra.mxu1 %v16353_v61  ;;  %v16446_v60 = vld [vmem:[%s24485_s2 + $0x760] ss:$16 sps:$4 sm:$0xff]   ;;  %v16449_v61 = vld [vmem:[%s24485_s2 + $0x768] ss:$16 sps:$4 sm:$0xff]  }
  0xa4   :  { %1857 = vmatprep.subr.bf16.mxu0 %v16358_v62  ;;  %1960 = vmatprep.subr.bf16.mxu1 %v16361_v63  ;;  %v16454_v62 = vld [vmem:[%s24485_s2 + $0x744] ss:$16 sps:$4 sm:$0xff]   ;;  %v16457_v63 = vld [vmem:[%s24485_s2 + $0x74c] ss:$16 sps:$4 sm:$0xff]  }
  0xa5   :  { %13456 = vmatprep.mubr.msk.bf16.mxu0 %vm555_vm0, %v16362_v0  ;;  %13463 = vmatprep.mubr.msk.bf16.mxu1 %vm555_vm0, %v16362_v0  ;;  %v16458_v0 = vld [vmem:[%s24486_s0 + $0x134] ss:$8 sps:$4 sm:$0xff]  }
  0xa7   :  { %1858 = vmatpush2.bf16.msra.mxu0 %v16356_v1  ;;  %1961 = vmatpush2.bf16.msra.mxu1 %v16359_v2  ;;  %v16452_v1 = vld [vmem:[%s24485_s2 + $0x740] ss:$16 sps:$4 sm:$0xff]   ;;  %v16455_v2 = vld [vmem:[%s24485_s2 + $0x748] ss:$16 sps:$4 sm:$0xff]  }
  0xa8   :  { %1859 = vmatprep.subr.bf16.mxu0 %v16367_v3  ;;  %1962 = vmatprep.subr.bf16.mxu1 %v16370_v4  ;;  %v16463_v3 = vld [vmem:[%s24485_s2 + $0x724] ss:$16 sps:$4 sm:$0xff]   ;;  %v16466_v4 = vld [vmem:[%s24485_s2 + $0x72c] ss:$16 sps:$4 sm:$0xff]  }
  0xaa   :  { %1260 = vmatmul.mubr.bf16.gmra.mxu0 %v16364_v5  ;;  %1363 = vmatmul.mubr.bf16.gmra.mxu1 %v16364_v5  ;;  %v16460_v5 = vld [vmem:[%s24486_s0 + $0x130] ss:$8 sps:$4 sm:$0xff]  }
  0xab   :  { %1860 = vmatpush2.bf16.msra.mxu0 %v16365_v6  ;;  %1963 = vmatpush2.bf16.msra.mxu1 %v16368_v7  ;;  %v16461_v6 = vld [vmem:[%s24485_s2 + $0x720] ss:$16 sps:$4 sm:$0xff]   ;;  %v16464_v7 = vld [vmem:[%s24485_s2 + $0x728] ss:$16 sps:$4 sm:$0xff]  }
  0xac   :  { %1861 = vmatprep.subr.bf16.mxu0 %v16373_v8  ;;  %1964 = vmatprep.subr.bf16.mxu1 %v16376_v9  ;;  %v16469_v8 = vld [vmem:[%s24485_s2 + $0x704] ss:$16 sps:$4 sm:$0xff]   ;;  %v16472_v9 = vld [vmem:[%s24485_s2 + $0x70c] ss:$16 sps:$4 sm:$0xff]  }
  0xad   :  { %13612 = vmatprep.mubr.msk.bf16.mxu0 %vm555_vm0, %v16385_v10  ;;  %13619 = vmatprep.mubr.msk.bf16.mxu1 %vm555_vm0, %v16385_v10  ;;  %v16473_v10 = vld [vmem:[%s24486_s0 + $0x144] ss:$8 sps:$4 sm:$0xff]  }
  0xaf   :  { %1862 = vmatpush2.bf16.msra.mxu0 %v16371_v11  ;;  %1965 = vmatpush2.bf16.msra.mxu1 %v16374_v12  ;;  %v16467_v11 = vld [vmem:[%s24485_s2 + $0x700] ss:$16 sps:$4 sm:$0xff]   ;;  %v16470_v12 = vld [vmem:[%s24485_s2 + $0x708] ss:$16 sps:$4 sm:$0xff]  }
  0xb0   :  { %1863 = vmatprep.subr.bf16.mxu0 %v16379_v13  ;;  %1966 = vmatprep.subr.bf16.mxu1 %v16382_v14  ;;  %v16478_v13 = vld [vmem:[%s24485_s2 + $0x6e4] ss:$16 sps:$4 sm:$0xff]   ;;  %v16481_v14 = vld [vmem:[%s24485_s2 + $0x6ec] ss:$16 sps:$4 sm:$0xff]  }
  0xb3   :  { %1864 = vmatpush2.bf16.msra.mxu0 %v16377_v15  ;;  %1967 = vmatpush2.bf16.msra.mxu1 %v16380_v16  ;;  %v16475_v15 = vld [vmem:[%s24486_s0 + $0x140] ss:$8 sps:$4 sm:$0xff]  }
  0xb4   :  { %2555 = vmatprep.subr.bf16.mxu0 %v16388_v17  ;;  %2658 = vmatprep.subr.bf16.mxu1 %v16391_v18  ;;  %v16476_v16 = vld [vmem:[%s24485_s2 + $0x6e0] ss:$16 sps:$4 sm:$0xff]   ;;  %v16479_v17 = vld [vmem:[%s24485_s2 + $0x6e8] ss:$16 sps:$4 sm:$0xff]   ;;  %v16484_v18 = vld [vmem:[%s24485_s2 + $0x6c4] ss:$16 sps:$4 sm:$0xff]  }
  0xb6   :  { %1866 = vmatmul.mubr.bf16.vlgmr.msra.gmra.mxu0 %v16383_v19  ;;  %1969 = vmatmul.mubr.bf16.vlgmr.msra.gmra.mxu1 %v16383_v19  ;;  %v16487_v19 = vld [vmem:[%s24485_s2 + $0x6cc] ss:$16 sps:$4 sm:$0xff]  }
  0xb7   :  { %2556 = vmatpush1.bf16.msra.mxu0 %v16386_v20  ;;  %2659 = vmatpush1.bf16.msra.mxu1 %v16389_v21  ;;  %v16496_v20 = vld [vmem:[%s24486_s0 + $0x154] ss:$8 sps:$4 sm:$0xff]   ;;  %v16482_v21 = vld [vmem:[%s24485_s2 + $0x6c0] ss:$16 sps:$4 sm:$0xff]  }
  0xb8   :  { %2557 = vmatprep.subr.bf16.mxu0 %v16394_v22  ;;  %2660 = vmatprep.subr.bf16.mxu1 %v16397_v23  ;;  %v16485_v22 = vld [vmem:[%s24485_s2 + $0x6c8] ss:$16 sps:$4 sm:$0xff]   ;;  %v16490_v23 = vld [vmem:[%s24485_s2 + $0x6a4] ss:$16 sps:$4 sm:$0xff]  }
  0xb9   :  { %13613 = vmatprep.mubr.msk.bf16.mxu0 %vm555_vm0, %v16398_v24  ;;  %13620 = vmatprep.mubr.msk.bf16.mxu1 %vm555_vm0, %v16398_v24  ;;  %v16493_v24 = vld [vmem:[%s24485_s2 + $0x6ac] ss:$16 sps:$4 sm:$0xff]  }
  0xbb   :  { %2558 = vmatpush1.bf16.msra.mxu0 %v16392_v25  ;;  %2661 = vmatpush1.bf16.msra.mxu1 %v16395_v26  ;;  %v16488_v25 = vld [vmem:[%s24485_s2 + $0x6a0] ss:$16 sps:$4 sm:$0xff]   ;;  %v16491_v26 = vld [vmem:[%s24485_s2 + $0x6a8] ss:$16 sps:$4 sm:$0xff]  }
  0xbc   :  { %2559 = vmatprep.subr.bf16.mxu0 %v16403_v27  ;;  %2662 = vmatprep.subr.bf16.mxu1 %v16406_v28  ;;  %v16499_v27 = vld [vmem:[%s24485_s2 + $0x864] ss:$16 sps:$4 sm:$0xff]   ;;  %v16502_v28 = vld [vmem:[%s24485_s2 + $0x86c] ss:$16 sps:$4 sm:$0xff]  }
  0xbe   :  { %1876 = vmatmul.mubr.bf16.gmra.mxu0 %v16400_v29  ;;  %1979 = vmatmul.mubr.bf16.gmra.mxu1 %v16400_v29  ;;  %v16494_v29 = vld [vmem:[%s24486_s0 + $0x150] ss:$8 sps:$4 sm:$0xff]  }
  0xbf   :  { %2560 = vmatpush1.bf16.msra.mxu0 %v16401_v30  ;;  %2663 = vmatpush1.bf16.msra.mxu1 %v16404_v31  ;;  %v16497_v30 = vld [vmem:[%s24485_s2 + $0x860] ss:$16 sps:$4 sm:$0xff]   ;;  %v16500_v31 = vld [vmem:[%s24485_s2 + $0x868] ss:$16 sps:$4 sm:$0xff]  }
  0xc0   :  { %2561 = vmatprep.subr.bf16.mxu0 %v16409_v32  ;;  %2664 = vmatprep.subr.bf16.mxu1 %v16412_v33  ;;  %v16505_v32 = vld [vmem:[%s24485_s2 + $0x844] ss:$16 sps:$4 sm:$0xff]   ;;  %v16508_v33 = vld [vmem:[%s24485_s2 + $0x84c] ss:$16 sps:$4 sm:$0xff]  }
  0xc1   :  { %13614 = vmatprep.mubr.msk.bf16.mxu0 %vm555_vm0, %v16413_v34  ;;  %13621 = vmatprep.mubr.msk.bf16.mxu1 %vm555_vm0, %v16413_v34  ;;  %v16509_v34 = vld [vmem:[%s24486_s0 + $0x164] ss:$8 sps:$4 sm:$0xff]  }
  0xc3   :  { %2562 = vmatpush1.bf16.msra.mxu0 %v16407_v35  ;;  %2665 = vmatpush1.bf16.msra.mxu1 %v16410_v36  ;;  %v16503_v35 = vld [vmem:[%s24485_s2 + $0x840] ss:$16 sps:$4 sm:$0xff]   ;;  %v16506_v36 = vld [vmem:[%s24485_s2 + $0x848] ss:$16 sps:$4 sm:$0xff]  }
  0xc4   :  { %2563 = vmatprep.subr.bf16.mxu0 %v16418_v37  ;;  %2666 = vmatprep.subr.bf16.mxu1 %v16421_v38  ;;  %v16514_v37 = vld [vmem:[%s24485_s2 + $0x824] ss:$16 sps:$4 sm:$0xff]   ;;  %v16517_v38 = vld [vmem:[%s24485_s2 + $0x82c] ss:$16 sps:$4 sm:$0xff]  }
  0xc6   :  { %1886 = vmatmul.mubr.bf16.gmra.mxu0 %v16415_v39  ;;  %1989 = vmatmul.mubr.bf16.gmra.mxu1 %v16415_v39  ;;  %v16511_v39 = vld [vmem:[%s24486_s0 + $0x160] ss:$8 sps:$4 sm:$0xff]  }
  0xc7   :  { %2564 = vmatpush1.bf16.msra.mxu0 %v16416_v40  ;;  %2667 = vmatpush1.bf16.msra.mxu1 %v16419_v41  ;;  %v16512_v40 = vld [vmem:[%s24485_s2 + $0x820] ss:$16 sps:$4 sm:$0xff]   ;;  %v16515_v41 = vld [vmem:[%s24485_s2 + $0x828] ss:$16 sps:$4 sm:$0xff]  }
  0xc8   :  { %2565 = vmatprep.subr.bf16.mxu0 %v16424_v42  ;;  %2668 = vmatprep.subr.bf16.mxu1 %v16427_v43  ;;  %v16520_v42 = vld [vmem:[%s24485_s2 + $0x804] ss:$16 sps:$4 sm:$0xff]   ;;  %v16523_v43 = vld [vmem:[%s24485_s2 + $0x80c] ss:$16 sps:$4 sm:$0xff]  }
  0xc9   :  { %13615 = vmatprep.mubr.msk.bf16.mxu0 %vm555_vm0, %v16428_v44  ;;  %13622 = vmatprep.mubr.msk.bf16.mxu1 %vm555_vm0, %v16428_v44  ;;  %v16524_v44 = vld [vmem:[%s24486_s0 + $0x174] ss:$8 sps:$4 sm:$0xff]  }
  0xcb   :  { %2566 = vmatpush1.bf16.msra.mxu0 %v16422_v45  ;;  %2669 = vmatpush1.bf16.msra.mxu1 %v16425_v46  ;;  %v16518_v45 = vld [vmem:[%s24485_s2 + $0x800] ss:$16 sps:$4 sm:$0xff]   ;;  %v16521_v46 = vld [vmem:[%s24485_s2 + $0x808] ss:$16 sps:$4 sm:$0xff]  }
  0xcc   :  { %2567 = vmatprep.subr.bf16.mxu0 %v16433_v47  ;;  %2670 = vmatprep.subr.bf16.mxu1 %v16436_v48  ;;  %v16529_v47 = vld [vmem:[%s24485_s2 + $0x7e4] ss:$16 sps:$4 sm:$0xff]   ;;  %v16532_v48 = vld [vmem:[%s24485_s2 + $0x7ec] ss:$16 sps:$4 sm:$0xff]  }
  0xce   :  { %1896 = vmatmul.mubr.bf16.gmra.mxu0 %v16430_v49  ;;  %1999 = vmatmul.mubr.bf16.gmra.mxu1 %v16430_v49  ;;  %v16526_v49 = vld [vmem:[%s24486_s0 + $0x170] ss:$8 sps:$4 sm:$0xff]  }
  0xcf   :  { %2568 = vmatpush1.bf16.msra.mxu0 %v16431_v50  ;;  %2671 = vmatpush1.bf16.msra.mxu1 %v16434_v51 }
  0xd0   :  { %2569 = vmatprep.subr.bf16.mxu0 %v16439_v52  ;;  %2672 = vmatprep.subr.bf16.mxu1 %v16442_v53  ;;  %v16527_v52 = vld [vmem:[%s24485_s2 + $0x7e0] ss:$16 sps:$4 sm:$0xff]   ;;  %v16530_v53 = vld [vmem:[%s24485_s2 + $0x7e8] ss:$16 sps:$4 sm:$0xff]  }
  0xd1   :  { %13616 = vmatprep.mubr.msk.bf16.mxu0 %vm555_vm0, %v16443_v54  ;;  %13623 = vmatprep.mubr.msk.bf16.mxu1 %vm555_vm0, %v16443_v54  ;;  %v16535_v54 = vld [vmem:[%s24485_s2 + $0x7c4] ss:$16 sps:$4 sm:$0xff]  }
  0xd3   :  { %2570 = vmatpush1.bf16.msra.mxu0 %v16437_v55  ;;  %2673 = vmatpush1.bf16.msra.mxu1 %v16440_v56 }
  0xd4   :  { %2573 = vmatprep.subr.bf16.mxu0 %v16448_v57  ;;  %2676 = vmatprep.subr.bf16.mxu1 %v16451_v58  ;;  %v16538_v57 = vld [vmem:[%s24485_s2 + $0x7cc] ss:$16 sps:$4 sm:$0xff]  }
  0xd5   :  { %v16539_v58 = vld [vmem:[%s24486_s0 + $0x184] ss:$8 sps:$4 sm:$0xff]  }
  0xd6   :  { %1906 = vmatmul.mubr.bf16.gmra.mxu0 %v16445_v59  ;;  %2009 = vmatmul.mubr.bf16.gmra.mxu1 %v16445_v59 }
  0xd7   :  { %2574 = vmatpush2.bf16.msra.mxu0 %v16446_v60  ;;  %2677 = vmatpush2.bf16.msra.mxu1 %v16449_v61  ;;  %v16533_v61 = vld [vmem:[%s24485_s2 + $0x7c0] ss:$16 sps:$4 sm:$0xff]  }
  0xd8   :  { %2575 = vmatprep.subr.bf16.mxu0 %v16454_v62  ;;  %2678 = vmatprep.subr.bf16.mxu1 %v16457_v63  ;;  %v16536_v62 = vld [vmem:[%s24485_s2 + $0x7c8] ss:$16 sps:$4 sm:$0xff]   ;;  %v16544_v63 = vld [vmem:[%s24485_s2 + $0x7a4] ss:$16 sps:$4 sm:$0xff]  }
  0xd9   :  { %13617 = vmatprep.mubr.msk.bf16.mxu0 %vm555_vm0, %v16458_v0  ;;  %13624 = vmatprep.mubr.msk.bf16.mxu1 %vm555_vm0, %v16458_v0 }
  0xdb   :  { %2576 = vmatpush2.bf16.msra.mxu0 %v16452_v1  ;;  %2679 = vmatpush2.bf16.msra.mxu1 %v16455_v2  ;;  %v16547_v2 = vld [vmem:[%s24485_s2 + $0x7ac] ss:$16 sps:$4 sm:$0xff]  }
  0xdc   :  { %2577 = vmatprep.subr.bf16.mxu0 %v16463_v3  ;;  %2680 = vmatprep.subr.bf16.mxu1 %v16466_v4  ;;  %v16541_v3 = vld [vmem:[%s24486_s0 + $0x180] ss:$8 sps:$4 sm:$0xff]  }
  0xde   :  { %1916 = vmatmul.mubr.bf16.gmra.mxu0 %v16460_v5  ;;  %2019 = vmatmul.mubr.bf16.gmra.mxu1 %v16460_v5 }
  0xdf   :  { %2578 = vmatpush2.bf16.msra.mxu0 %v16461_v6  ;;  %2681 = vmatpush2.bf16.msra.mxu1 %v16464_v7  ;;  %v16542_v6 = vld [vmem:[%s24485_s2 + $0x7a0] ss:$16 sps:$4 sm:$0xff]   ;;  %v16545_v7 = vld [vmem:[%s24485_s2 + $0x7a8] ss:$16 sps:$4 sm:$0xff]  }
  0xe0   :  { %2579 = vmatprep.subr.bf16.mxu0 %v16469_v8  ;;  %2682 = vmatprep.subr.bf16.mxu1 %v16472_v9  ;;  %v16550_v8 = vld [vmem:[%s24485_s2 + $0x784] ss:$16 sps:$4 sm:$0xff]  }
  0xe1   :  { %13618 = vmatprep.mubr.msk.bf16.mxu0 %vm555_vm0, %v16473_v10  ;;  %13625 = vmatprep.mubr.msk.bf16.mxu1 %vm555_vm0, %v16473_v10 }
  0xe3   :  { %2580 = vmatpush2.bf16.msra.mxu0 %v16467_v11  ;;  %2683 = vmatpush2.bf16.msra.mxu1 %v16470_v12  ;;  %v16553_v11 = vld [vmem:[%s24485_s2 + $0x78c] ss:$16 sps:$4 sm:$0xff]  }
  0xe4   :  { %2581 = vmatprep.subr.bf16.mxu0 %v16478_v13  ;;  %2684 = vmatprep.subr.bf16.mxu1 %v16481_v14  ;;  %v16554_v12 = vld [vmem:[%s24486_s0 + $0x194] ss:$8 sps:$4 sm:$0xff]  }
  0xe6   :  { %1926 = vmatmul.mubr.bf16.gmra.mxu0 %v16475_v15  ;;  %2029 = vmatmul.mubr.bf16.gmra.mxu1 %v16475_v15  ;;  %v16548_v15 = vld [vmem:[%s24485_s2 + $0x780] ss:$16 sps:$4 sm:$0xff]  }
  0xe7   :  { %2582 = vmatpush2.bf16.msra.mxu0 %v16476_v16  ;;  %2685 = vmatpush2.bf16.msra.mxu1 %v16479_v17  ;;  %v16551_v16 = vld [vmem:[%s24485_s2 + $0x788] ss:$16 sps:$4 sm:$0xff]   ;;  %v16559_v17 = vld [vmem:[%s24485_s2 + $0x944] ss:$16 sps:$4 sm:$0xff]  }
  0xe8   :  { %2583 = vmatprep.subr.bf16.mxu0 %v16484_v18  ;;  %2686 = vmatprep.subr.bf16.mxu1 %v16487_v19 }
  0xe9   :  { %13774 = vmatprep.mubr.msk.bf16.mxu0 %vm555_vm0, %v16496_v20  ;;  %13781 = vmatprep.mubr.msk.bf16.mxu1 %vm555_vm0, %v16496_v20  ;;  %v16562_v20 = vld [vmem:[%s24485_s2 + $0x94c] ss:$16 sps:$4 sm:$0xff]  }
  0xeb   :  { %2584 = vmatpush2.bf16.msra.mxu0 %v16482_v21  ;;  %2687 = vmatpush2.bf16.msra.mxu1 %v16485_v22  ;;  %v16556_v21 = vld [vmem:[%s24486_s0 + $0x190] ss:$8 sps:$4 sm:$0xff]  }
  0xec   :  { %2585 = vmatprep.subr.bf16.mxu0 %v16490_v23  ;;  %2688 = vmatprep.subr.bf16.mxu1 %v16493_v24  ;;  %v16557_v24 = vld [vmem:[%s24485_s2 + $0x940] ss:$16 sps:$4 sm:$0xff]  }
  0xef   :  { %2586 = vmatpush2.bf16.msra.mxu0 %v16488_v25  ;;  %2689 = vmatpush2.bf16.msra.mxu1 %v16491_v26  ;;  %v16560_v25 = vld [vmem:[%s24485_s2 + $0x948] ss:$16 sps:$4 sm:$0xff]   ;;  %v16565_v26 = vld [vmem:[%s24485_s2 + $0x924] ss:$16 sps:$4 sm:$0xff]  }
  0xf0   :  { %3277 = vmatprep.subr.bf16.mxu0 %v16499_v27  ;;  %3380 = vmatprep.subr.bf16.mxu1 %v16502_v28 }
  0xf2   :  { %2588 = vmatmul.mubr.bf16.vlgmr.msra.gmra.mxu0 %v16494_v29  ;;  %2691 = vmatmul.mubr.bf16.vlgmr.msra.gmra.mxu1 %v16494_v29  ;;  %v16568_v29 = vld [vmem:[%s24485_s2 + $0x92c] ss:$16 sps:$4 sm:$0xff]  }
  0xf3   :  { %3278 = vmatpush1.bf16.msra.mxu0 %v16497_v30  ;;  %3381 = vmatpush1.bf16.msra.mxu1 %v16500_v31  ;;  %v16569_v30 = vld [vmem:[%s24486_s0 + $0x1a4] ss:$8 sps:$4 sm:$0xff]  }
  0xf4   :  { %3279 = vmatprep.subr.bf16.mxu0 %v16505_v32  ;;  %3382 = vmatprep.subr.bf16.mxu1 %v16508_v33  ;;  %v16563_v33 = vld [vmem:[%s24485_s2 + $0x920] ss:$16 sps:$4 sm:$0xff]  }
  0xf5   :  { %13775 = vmatprep.mubr.msk.bf16.mxu0 %vm555_vm0, %v16509_v34  ;;  %13782 = vmatprep.mubr.msk.bf16.mxu1 %vm555_vm0, %v16509_v34  ;;  %v16566_v34 = vld [vmem:[%s24485_s2 + $0x928] ss:$16 sps:$4 sm:$0xff]  }
  0xf7   :  { %3280 = vmatpush1.bf16.msra.mxu0 %v16503_v35  ;;  %3383 = vmatpush1.bf16.msra.mxu1 %v16506_v36  ;;  %v16574_v35 = vld [vmem:[%s24485_s2 + $0x904] ss:$16 sps:$4 sm:$0xff]  }
  0xf8   :  { %3281 = vmatprep.subr.bf16.mxu0 %v16514_v37  ;;  %3384 = vmatprep.subr.bf16.mxu1 %v16517_v38  ;;  %v16577_v38 = vld [vmem:[%s24485_s2 + $0x90c] ss:$16 sps:$4 sm:$0xff]  }
  0xfa   :  { %2598 = vmatmul.mubr.bf16.gmra.mxu0 %v16511_v39  ;;  %2701 = vmatmul.mubr.bf16.gmra.mxu1 %v16511_v39  ;;  %v16571_v39 = vld [vmem:[%s24486_s0 + $0x1a0] ss:$8 sps:$4 sm:$0xff]  }
  0xfb   :  { %3282 = vmatpush1.bf16.msra.mxu0 %v16512_v40  ;;  %3385 = vmatpush1.bf16.msra.mxu1 %v16515_v41 }
  0xfc   :  { %3283 = vmatprep.subr.bf16.mxu0 %v16520_v42  ;;  %3386 = vmatprep.subr.bf16.mxu1 %v16523_v43  ;;  %v16572_v42 = vld [vmem:[%s24485_s2 + $0x900] ss:$16 sps:$4 sm:$0xff]   ;;  %v16575_v43 = vld [vmem:[%s24485_s2 + $0x908] ss:$16 sps:$4 sm:$0xff]  }
  0xfd   :  { %13776 = vmatprep.mubr.msk.bf16.mxu0 %vm555_vm0, %v16524_v44  ;;  %13783 = vmatprep.mubr.msk.bf16.mxu1 %vm555_vm0, %v16524_v44  ;;  %v16580_v44 = vld [vmem:[%s24485_s2 + $0x8e4] ss:$16 sps:$4 sm:$0xff]  }
  0xfe   :  { %v19089_v50 = vpop.f32.mrf.mxu1  ;;  %v19091_v51 = vpop.f32.mrf.mxu0 }
  0xff   :  { %3284 = vmatpush1.bf16.msra.mxu0 %v16518_v45  ;;  %3387 = vmatpush1.bf16.msra.mxu1 %v16521_v46 }
 0x100   :  { %v19102_v55 = vpop.f32.mrf.mxu1  ;;  %3285 = vmatprep.subr.bf16.mxu0 %v16529_v47  ;;  %3388 = vmatprep.subr.bf16.mxu1 %v16532_v48  ;;  %v19104_v56 = vpop.f32.mrf.mxu0  ;;  %v16583_v47 = vld [vmem:[%s24485_s2 + $0x8ec] ss:$16 sps:$4 sm:$0xff]  }
 0x101   :  { %v16584_v48 = vld [vmem:[%s24486_s0 + $0x1b4] ss:$8 sps:$4 sm:$0xff]  }
 0x102   :  { %v19112_v59 = vpop.f32.mrf.mxu1  ;;  %2608 = vmatmul.mubr.bf16.gmra.mxu0 %v16526_v49  ;;  %2711 = vmatmul.mubr.bf16.gmra.mxu1 %v16526_v49  ;;  %v19114_v60 = vpop.f32.mrf.mxu0 }
 0x103   :  { %3286 = vmatpush1.bf16.msra.mxu0 %v16527_v52  ;;  %3389 = vmatpush1.bf16.msra.mxu1 %v16530_v53  ;;  %v16578_v53 = vld [vmem:[%s24485_s2 + $0x8e0] ss:$16 sps:$4 sm:$0xff]  }
 0x104   :  { %v19125_v0 = vpop.f32.mrf.mxu1  ;;  %3287 = vmatprep.subr.bf16.mxu0 %v16535_v54  ;;  %3390 = vmatprep.subr.bf16.mxu1 %v16538_v57  ;;  %v19127_v1 = vpop.f32.mrf.mxu0  ;;  %v16581_v54 = vld [vmem:[%s24485_s2 + $0x8e8] ss:$16 sps:$4 sm:$0xff]   ;;  %v16589_v57 = vld [vmem:[%s24485_s2 + $0x8c4] ss:$16 sps:$4 sm:$0xff]  }
 0x105   :  { %13777 = vmatprep.mubr.msk.bf16.mxu0 %vm555_vm0, %v16539_v58  ;;  %13784 = vmatprep.mubr.msk.bf16.mxu1 %vm555_vm0, %v16539_v58 }
 0x106   :  { %v19137_v4 = vpop.f32.mrf.mxu1  ;;  %v19139_v5 = vpop.f32.mrf.mxu0 }
 0x107   :  { %3288 = vmatpush1.bf16.msra.mxu0 %v16533_v61  ;;  %3391 = vmatpush1.bf16.msra.mxu1 %v16536_v62  ;;  %v16592_v62 = vld [vmem:[%s24485_s2 + $0x8cc] ss:$16 sps:$4 sm:$0xff]  }
 0x108   :  { %v19150_v9 = vpop.f32.mrf.mxu1  ;;  %3289 = vmatprep.subr.bf16.mxu0 %v16544_v63  ;;  %3392 = vmatprep.subr.bf16.mxu1 %v16547_v2  ;;  %v19152_v10 = vpop.f32.mrf.mxu0  ;;  %v16586_v63 = vld [vmem:[%s24486_s0 + $0x1b0] ss:$8 sps:$4 sm:$0xff]  }
 0x10a   :  { %v19160_v13 = vpop.f32.mrf.mxu1  ;;  %2618 = vmatmul.mubr.bf16.gmra.mxu0 %v16541_v3  ;;  %2721 = vmatmul.mubr.bf16.gmra.mxu1 %v16541_v3  ;;  %v19162_v14 = vpop.f32.mrf.mxu0 }
 0x10b   :  { %3290 = vmatpush1.bf16.msra.mxu0 %v16542_v6  ;;  %3393 = vmatpush1.bf16.msra.mxu1 %v16545_v7  ;;  %v16587_v6 = vld [vmem:[%s24485_s2 + $0x8c0] ss:$16 sps:$4 sm:$0xff]   ;;  %v16590_v7 = vld [vmem:[%s24485_s2 + $0x8c8] ss:$16 sps:$4 sm:$0xff]  }
 0x10c   :  { %v19173_v18 = vpop.f32.mrf.mxu1  ;;  %3291 = vmatprep.subr.bf16.mxu0 %v16550_v8  ;;  %3394 = vmatprep.subr.bf16.mxu1 %v16553_v11  ;;  %v19175_v19 = vpop.f32.mrf.mxu0  ;;  %v16595_v8 = vld [vmem:[%s24485_s2 + $0x8a4] ss:$16 sps:$4 sm:$0xff]  }
 0x10d   :  { %13778 = vmatprep.mubr.msk.bf16.mxu0 %vm555_vm0, %v16554_v12  ;;  %13785 = vmatprep.mubr.msk.bf16.mxu1 %vm555_vm0, %v16554_v12 }
 0x10e   :  { %v19185_v22 = vpop.f32.mrf.mxu1  ;;  %v19187_v23 = vpop.f32.mrf.mxu0 }
 0x10f   :  { %3292 = vmatpush1.bf16.msra.mxu0 %v16548_v15  ;;  %3395 = vmatpush1.bf16.msra.mxu1 %v16551_v16  ;;  %v16598_v15 = vld [vmem:[%s24485_s2 + $0x8ac] ss:$16 sps:$4 sm:$0xff]  }
 0x110   :  { %v19198_v27 = vpop.f32.mrf.mxu1  ;;  %3295 = vmatprep.subr.bf16.mxu0 %v16559_v17  ;;  %3398 = vmatprep.subr.bf16.mxu1 %v16562_v20  ;;  %v19200_v28 = vpop.f32.mrf.mxu0  ;;  %v16607_v16 = vld [vmem:[%s24486_s0 + $0x1c4] ss:$8 sps:$4 sm:$0xff]  }
 0x112   :  { %v19208_v31 = vpop.f32.mrf.mxu1  ;;  %2628 = vmatmul.mubr.bf16.gmra.mxu0 %v16556_v21  ;;  %2731 = vmatmul.mubr.bf16.gmra.mxu1 %v16556_v21  ;;  %v19210_v32 = vpop.f32.mrf.mxu0  ;;  %v16593_v21 = vld [vmem:[%s24485_s2 + $0x8a0] ss:$16 sps:$4 sm:$0xff]  }
 0x113   :  { %3296 = vmatpush2.bf16.msra.mxu0 %v16557_v24  ;;  %3399 = vmatpush2.bf16.msra.mxu1 %v16560_v25  ;;  %v16596_v24 = vld [vmem:[%s24485_s2 + $0x8a8] ss:$16 sps:$4 sm:$0xff]   ;;  %v16601_v25 = vld [vmem:[%s24485_s2 + $0x884] ss:$16 sps:$4 sm:$0xff]  }
 0x114   :  { %v19221_v36 = vpop.f32.mrf.mxu1  ;;  %3297 = vmatprep.subr.bf16.mxu0 %v16565_v26  ;;  %3400 = vmatprep.subr.bf16.mxu1 %v16568_v29  ;;  %v19223_v37 = vpop.f32.mrf.mxu0 }
 0x115   :  { %13779 = vmatprep.mubr.msk.bf16.mxu0 %vm555_vm0, %v16569_v30  ;;  %13786 = vmatprep.mubr.msk.bf16.mxu1 %vm555_vm0, %v16569_v30  ;;  %v16604_v30 = vld [vmem:[%s24485_s2 + $0x88c] ss:$16 sps:$4 sm:$0xff]  }
 0x116   :  { %v19233_v40 = vpop.f32.mrf.mxu1  ;;  %v19235_v41 = vpop.f32.mrf.mxu0 }
 0x117   :  { %3298 = vmatpush2.bf16.msra.mxu0 %v16563_v33  ;;  %3401 = vmatpush2.bf16.msra.mxu1 %v16566_v34 }
 0x118   :  { %v19246_v45 = vpop.f32.mrf.mxu1  ;;  %3299 = vmatprep.subr.bf16.mxu0 %v16574_v35  ;;  %3402 = vmatprep.subr.bf16.mxu1 %v16577_v38  ;;  %v19248_v46 = vpop.f32.mrf.mxu0  ;;  %v16599_v35 = vld [vmem:[%s24485_s2 + $0x880] ss:$16 sps:$4 sm:$0xff]   ;;  %v16602_v38 = vld [vmem:[%s24485_s2 + $0x888] ss:$16 sps:$4 sm:$0xff]  }
 0x11a   :  { %v19256_v49 = vpop.f32.mrf.mxu1  ;;  %2638 = vmatmul.mubr.bf16.gmra.mxu0 %v16571_v39  ;;  %2741 = vmatmul.mubr.bf16.gmra.mxu1 %v16571_v39  ;;  %v19258_v52 = vpop.f32.mrf.mxu0  ;;  %v16610_v39 = vld [vmem:[%s24485_s2 + $0xa44] ss:$16 sps:$4 sm:$0xff]  }
 0x11b   :  { %3300 = vmatpush2.bf16.msra.mxu0 %v16572_v42  ;;  %3403 = vmatpush2.bf16.msra.mxu1 %v16575_v43 }
 0x11c   :  { %v19269_v58 = vpop.f32.mrf.mxu1  ;;  %3301 = vmatprep.subr.bf16.mxu0 %v16580_v44  ;;  %3404 = vmatprep.subr.bf16.mxu1 %v16583_v47  ;;  %v19271_v61 = vpop.f32.mrf.mxu0  ;;  %v16613_v44 = vld [vmem:[%s24485_s2 + $0xa4c] ss:$16 sps:$4 sm:$0xff]   ;;  %v16605_v47 = vld [vmem:[%s24486_s0 + $0x1c0] ss:$8 sps:$4 sm:$0xff]  }
 0x11d   :  { %13780 = vmatprep.mubr.msk.bf16.mxu0 %vm555_vm0, %v16584_v48  ;;  %13787 = vmatprep.mubr.msk.bf16.mxu1 %vm555_vm0, %v16584_v48 }
 0x11e   :  { %v19281_v2 = vpop.f32.mrf.mxu1  ;;  %v19283_v3 = vpop.f32.mrf.mxu0 }
 0x11f   :  { %3302 = vmatpush2.bf16.msra.mxu0 %v16578_v53  ;;  %3405 = vmatpush2.bf16.msra.mxu1 %v16581_v54  ;;  %v16608_v54 = vld [vmem:[%s24485_s2 + $0xa40] ss:$16 sps:$4 sm:$0xff]  }
 0x120   :  { %v19294_v11 = vpop.f32.mrf.mxu1  ;;  %3303 = vmatprep.subr.bf16.mxu0 %v16589_v57  ;;  %3406 = vmatprep.subr.bf16.mxu1 %v16592_v62  ;;  %v19296_v12 = vpop.f32.mrf.mxu0  ;;  %v16611_v57 = vld [vmem:[%s24485_s2 + $0xa48] ss:$16 sps:$4 sm:$0xff]   ;;  %v16616_v62 = vld [vmem:[%s24485_s2 + $0xa24] ss:$16 sps:$4 sm:$0xff]  }
 0x122   :  { %v19304_v17 = vpop.f32.mrf.mxu1  ;;  %2648 = vmatmul.mubr.bf16.gmra.mxu0 %v16586_v63  ;;  %2751 = vmatmul.mubr.bf16.gmra.mxu1 %v16586_v63  ;;  %v19306_v20 = vpop.f32.mrf.mxu0 }
 0x123   :  { %3304 = vmatpush2.bf16.msra.mxu0 %v16587_v6  ;;  %3407 = vmatpush2.bf16.msra.mxu1 %v16590_v7  ;;  %v16619_v7 = vld [vmem:[%s24485_s2 + $0xa2c] ss:$16 sps:$4 sm:$0xff]  }
 0x124   :  { %v19317_v26 = vpop.f32.mrf.mxu1  ;;  %3305 = vmatprep.subr.bf16.mxu0 %v16595_v8  ;;  %3408 = vmatprep.subr.bf16.mxu1 %v16598_v15  ;;  %v19319_v29 = vpop.f32.mrf.mxu0  ;;  %v16620_v8 = vld [vmem:[%s24486_s0 + $0x1d4] ss:$8 sps:$4 sm:$0xff]  }
 0x125   :  { %13936 = vmatprep.mubr.msk.bf16.mxu0 %vm555_vm0, %v16607_v16  ;;  %13943 = vmatprep.mubr.msk.bf16.mxu1 %vm555_vm0, %v16607_v16 }
 0x126   :  { %v19326_v33 = vpop.f32.mrf.mxu1  ;;  %v19328_v34 = vpop.f32.mrf.mxu0 }
 0x127   :  { %3306 = vmatpush2.bf16.msra.mxu0 %v16593_v21  ;;  %3409 = vmatpush2.bf16.msra.mxu1 %v16596_v24  ;;  %v16614_v21 = vld [vmem:[%s24485_s2 + $0xa20] ss:$16 sps:$4 sm:$0xff]   ;;  %v16617_v24 = vld [vmem:[%s24485_s2 + $0xa28] ss:$16 sps:$4 sm:$0xff]  }
 0x128   :  { %v19339_v42 = vpop.f32.mrf.mxu1  ;;  %3307 = vmatprep.subr.bf16.mxu0 %v16601_v25  ;;  %3410 = vmatprep.subr.bf16.mxu1 %v16604_v30  ;;  %v19341_v43 = vpop.f32.mrf.mxu0  ;;  %v16625_v25 = vld [vmem:[%s24485_s2 + $0xa04] ss:$16 sps:$4 sm:$0xff]  }
 0x12a   :  { %v19349_v48 = vpop.f32.mrf.mxu1  ;;  %v19351_v53 = vpop.f32.mrf.mxu0 }
 0x12b   :  { %3308 = vmatpush2.bf16.msra.mxu0 %v16599_v35  ;;  %3411 = vmatpush2.bf16.msra.mxu1 %v16602_v38  ;;  %v16628_v38 = vld [vmem:[%s24485_s2 + $0xa0c] ss:$16 sps:$4 sm:$0xff]  }
 0x12c   :  { %v19362_v63 = vpop.f32.mrf.mxu1  ;;  %3999 = vmatprep.subr.bf16.mxu0 %v16610_v39  ;;  %4102 = vmatprep.subr.bf16.mxu1 %v16613_v44  ;;  %v19364_v6 = vpop.f32.mrf.mxu0  ;;  %v16622_v39 = vld [vmem:[%s24486_s0 + $0x1d0] ss:$8 sps:$4 sm:$0xff]  }
 0x12e   :  { %v19372_v15 = vpop.f32.mrf.mxu1  ;;  %3310 = vmatmul.mubr.bf16.vlgmr.msra.gmra.mxu0 %v16605_v47  ;;  %3413 = vmatmul.mubr.bf16.vlgmr.msra.gmra.mxu1 %v16605_v47  ;;  %v19374_v16 = vpop.f32.mrf.mxu0  ;;  %v16623_v47 = vld [vmem:[%s24485_s2 + $0xa00] ss:$16 sps:$4 sm:$0xff]  }
 0x12f   :  { %24506 = vst [vmem:[#allocation2_spill] sm:$0xff] %v19372_v15  ;;  %4000 = vmatpush1.bf16.msra.mxu0 %v16608_v54  ;;  %4103 = vmatpush1.bf16.msra.mxu1 %v16611_v57  ;;  %v16626_v54 = vld [vmem:[%s24485_s2 + $0xa08] ss:$16 sps:$4 sm:$0xff]   ;;  %v16631_v57 = vld [vmem:[%s24485_s2 + $0x9e4] ss:$16 sps:$4 sm:$0xff]  }
 0x130   :  { %v19385_v30 = vpop.f32.mrf.mxu1  ;;  %4001 = vmatprep.subr.bf16.mxu0 %v16616_v62  ;;  %4104 = vmatprep.subr.bf16.mxu1 %v16619_v7  ;;  %v19387_v35 = vpop.f32.mrf.mxu0  ;;  %v16634_v7 = vld [vmem:[%s24485_s2 + $0x9ec] ss:$16 sps:$4 sm:$0xff]  }
 0x131   :  { %24507 = vst [vmem:[#allocation3_spill] sm:$0xff] %v19385_v30  ;;  %24508 = vst [vmem:[#allocation4_spill] sm:$0xff] %v19387_v35  ;;  %13937 = vmatprep.mubr.msk.bf16.mxu0 %vm555_vm0, %v16620_v8  ;;  %13944 = vmatprep.mubr.msk.bf16.mxu1 %vm555_vm0, %v16620_v8  ;;  %v16635_v8 = vld [vmem:[%s24486_s0 + $0x1e4] ss:$8 sps:$4 sm:$0xff]  }
 0x132   :  { %v19397_v44 = vpop.f32.mrf.mxu0  ;;  %v19408_v62 = vpop.f32.mrf.mxu1  ;;  %v16649_v15 = vld [vmem:[%s24485_s2 + $0x9ac] ss:$16 sps:$4 sm:$0xff]  }
 0x133   :  { %24509 = vst [vmem:[#allocation5_spill] sm:$0xff] %v19397_v44  ;;  %4002 = vmatpush1.bf16.msra.mxu0 %v16614_v21  ;;  %4105 = vmatpush1.bf16.msra.mxu1 %v16617_v24  ;;  %24510 = vst [vmem:[#allocation6_spill] sm:$0xff] %v19408_v62  ;;  %v16629_v24 = vld [vmem:[%s24485_s2 + $0x9e0] ss:$16 sps:$4 sm:$0xff]  }
 0x134   :  { %4003 = vmatprep.subr.bf16.mxu0 %v16625_v25  ;;  %4106 = vmatprep.subr.bf16.mxu1 %v16628_v38  ;;  %v19416_v21 = vpop.f32.mrf.mxu0  ;;  %v16632_v25 = vld [vmem:[%s24485_s2 + $0x9e8] ss:$16 sps:$4 sm:$0xff]   ;;  %v16640_v38 = vld [vmem:[%s24485_s2 + $0x9c4] ss:$16 sps:$4 sm:$0xff]   ;;  %v19427_v62 = vpop.f32.mrf.mxu1 }
 0x135   :  { %24511 = vst [vmem:[#allocation7_spill] sm:$0xff] %v19416_v21  ;;  %24512 = vst [vmem:[#allocation8_spill] sm:$0xff] %v19427_v62  ;;  %v16638_v62 = vld [vmem:[%s24485_s2 + $0x9c0] ss:$16 sps:$4 sm:$0xff]  }
 0x136   :  { %3320 = vmatmul.mubr.bf16.gmra.mxu0 %v16622_v39  ;;  %3423 = vmatmul.mubr.bf16.gmra.mxu1 %v16622_v39  ;;  %v16643_v39 = vld [vmem:[%s24485_s2 + $0x9cc] ss:$16 sps:$4 sm:$0xff]  }
 0x137   :  { %4004 = vmatpush1.bf16.msra.mxu0 %v16623_v47  ;;  %4107 = vmatpush1.bf16.msra.mxu1 %v16626_v54  ;;  %v16637_v47 = vld [vmem:[%s24486_s0 + $0x1e0] ss:$8 sps:$4 sm:$0xff]  }
 0x138   :  { %4005 = vmatprep.subr.bf16.mxu0 %v16631_v57  ;;  %4108 = vmatprep.subr.bf16.mxu1 %v16634_v7  ;;  %v16641_v57 = vld [vmem:[%s24485_s2 + $0x9c8] ss:$16 sps:$4 sm:$0xff]  }
 0x139   :  { %13938 = vmatprep.mubr.msk.bf16.mxu0 %vm555_vm0, %v16635_v8  ;;  %13945 = vmatprep.mubr.msk.bf16.mxu1 %vm555_vm0, %v16635_v8  ;;  %v16646_v8 = vld [vmem:[%s24485_s2 + $0x9a4] ss:$16 sps:$4 sm:$0xff]  }
 0x13a   :  { %v1201_v54 = vpop.f32.mrf.mxu0  ;;  %v1304_v21 = vpop.f32.mrf.mxu1 }
 0x13b   :  { %v19444_v7 = vadd.f32 %v1201_v54, %v19091_v51  ;;  %v19447_v44 = vadd.f32 %v1304_v21, %v19089_v50  ;;  %4006 = vmatpush1.bf16.msra.mxu0 %v16629_v24  ;;  %4109 = vmatpush1.bf16.msra.mxu1 %v16632_v25  ;;  %v16650_v21 = vld [vmem:[%s24486_s0 + $0x1f4] ss:$8 sps:$4 sm:$0xff]  }
 0x13c   :  { %v1203_v30 = vpop.f32.mrf.mxu0  ;;  %v1306_v35 = vpop.f32.mrf.mxu1  ;;  %4007 = vmatprep.subr.bf16.mxu0 %v16640_v38  ;;  %4110 = vmatprep.subr.bf16.mxu1 %v16643_v39  ;;  %v16644_v38 = vld [vmem:[%s24485_s2 + $0x9a0] ss:$16 sps:$4 sm:$0xff]   ;;  %v16658_v54 = vld [vmem:[%s24485_s2 + $0x98c] ss:$16 sps:$4 sm:$0xff]  }
 0x13d   :  { %v19456_v51 = vadd.f32 %v1203_v30, %v19104_v56  ;;  %v19459_v50 = vadd.f32 %v1306_v35, %v19102_v55  ;;  %v16647_v56 = vld [vmem:[%s24485_s2 + $0x9a8] ss:$16 sps:$4 sm:$0xff]   ;;  %v16655_v35 = vld [vmem:[%s24485_s2 + $0x984] ss:$16 sps:$4 sm:$0xff]  }
 0x13e   :  { %v1205_v24 = vpop.f32.mrf.mxu0  ;;  %v1308_v25 = vpop.f32.mrf.mxu1  ;;  %3330 = vmatmul.mubr.bf16.gmra.mxu0 %v16637_v47  ;;  %3433 = vmatmul.mubr.bf16.gmra.mxu1 %v16637_v47 }
 0x13f   :  { %v19471_v30 = vadd.f32 %v1205_v24, %v19114_v60  ;;  %v19474_v55 = vadd.f32 %v1308_v25, %v19112_v59  ;;  %4008 = vmatpush1.bf16.msra.mxu0 %v16638_v62  ;;  %4111 = vmatpush1.bf16.msra.mxu1 %v16641_v57  ;;  %v16652_v62 = vld [vmem:[%s24486_s0 + $0x1f0] ss:$8 sps:$4 sm:$0xff]  }
 0x140   :  { %v1207_v39 = vpop.f32.mrf.mxu0  ;;  %v1310_v47 = vpop.f32.mrf.mxu1  ;;  %4009 = vmatprep.subr.bf16.mxu0 %v16646_v8  ;;  %4112 = vmatprep.subr.bf16.mxu1 %v16649_v15  ;;  %v16653_v8 = vld [vmem:[%s24485_s2 + $0x980] ss:$16 sps:$4 sm:$0xff]  }
 0x141   :  { %v19483_v60 = vadd.f32 %v1207_v39, %v19127_v1  ;;  %v19486_v59 = vadd.f32 %v1310_v47, %v19125_v0  ;;  %13939 = vmatprep.mubr.msk.bf16.mxu0 %vm555_vm0, %v16650_v21  ;;  %13946 = vmatprep.mubr.msk.bf16.mxu1 %vm555_vm0, %v16650_v21  ;;  %v16656_v1 = vld [vmem:[%s24485_s2 + $0x988] ss:$16 sps:$4 sm:$0xff]   ;;  %v16661_v21 = vld [vmem:[%s24485_s2 + $0x964] ss:$16 sps:$4 sm:$0xff]   ;;  %v16664_v47 = vld [vmem:[%s24485_s2 + $0x96c] ss:$16 sps:$4 sm:$0xff]  }
 0x142   :  { %v1211_v57 = vpop.f32.mrf.mxu0  ;;  %v1314_v15 = vpop.f32.mrf.mxu1 }
 0x143   :  { %v19500_v0 = vadd.f32 %v1211_v57, %v19139_v5  ;;  %v19503_v24 = vadd.f32 %v1314_v15, %v19137_v4  ;;  %4010 = vmatpush1.bf16.msra.mxu0 %v16644_v38  ;;  %4113 = vmatpush1.bf16.msra.mxu1 %v16647_v56  ;;  %v16665_v38 = vld [vmem:[%s24486_s0 + $0x204] ss:$8 sps:$4 sm:$0xff]  }
 0x144   :  { %v1213_v25 = vpop.f32.mrf.mxu0  ;;  %v1316_v39 = vpop.f32.mrf.mxu1  ;;  %4011 = vmatprep.subr.bf16.mxu0 %v16655_v35  ;;  %4114 = vmatprep.subr.bf16.mxu1 %v16658_v54  ;;  %v16659_v35 = vld [vmem:[%s24485_s2 + $0x960] ss:$16 sps:$4 sm:$0xff]  }
 0x145   :  { %v19512_v5 = vadd.f32 %v1213_v25, %v19152_v10  ;;  %v19515_v4 = vadd.f32 %v1316_v39, %v19150_v9  ;;  %v16662_v10 = vld [vmem:[%s24485_s2 + $0x968] ss:$16 sps:$4 sm:$0xff]   ;;  %v16673_v39 = vld [vmem:[%s24485_s2 + $0xb2c] ss:$16 sps:$4 sm:$0xff]  }
 0x146   :  { %v1215_v56 = vpop.f32.mrf.mxu0  ;;  %v1318_v57 = vpop.f32.mrf.mxu1  ;;  %3340 = vmatmul.mubr.bf16.gmra.mxu0 %v16652_v62  ;;  %3443 = vmatmul.mubr.bf16.gmra.mxu1 %v16652_v62  ;;  %v16670_v62 = vld [vmem:[%s24485_s2 + $0xb24] ss:$16 sps:$4 sm:$0xff]  }
 0x147   :  { %v19527_v54 = vadd.f32 %v1215_v56, %v19162_v14  ;;  %v19530_v9 = vadd.f32 %v1318_v57, %v19160_v13  ;;  %4012 = vmatpush1.bf16.msra.mxu0 %v16653_v8  ;;  %4115 = vmatpush1.bf16.msra.mxu1 %v16656_v1  ;;  %v16667_v8 = vld [vmem:[%s24486_s0 + $0x200] ss:$8 sps:$4 sm:$0xff]  }
 0x148   :  { %v1217_v15 = vpop.f32.mrf.mxu0  ;;  %v1320_v25 = vpop.f32.mrf.mxu1  ;;  %4013 = vmatprep.subr.bf16.mxu0 %v16661_v21  ;;  %4116 = vmatprep.subr.bf16.mxu1 %v16664_v47  ;;  %v16668_v47 = vld [vmem:[%s24485_s2 + $0xb20] ss:$16 sps:$4 sm:$0xff]  }
 0x149   :  { %v19539_v14 = vadd.f32 %v1217_v15, %v19175_v19  ;;  %v19542_v13 = vadd.f32 %v1320_v25, %v19173_v18  ;;  %13940 = vmatprep.mubr.msk.bf16.mxu0 %vm555_vm0, %v16665_v38  ;;  %13947 = vmatprep.mubr.msk.bf16.mxu1 %vm555_vm0, %v16665_v38  ;;  %v16671_v19 = vld [vmem:[%s24485_s2 + $0xb28] ss:$16 sps:$4 sm:$0xff]   ;;  %v16676_v38 = vld [vmem:[%s24485_s2 + $0xb04] ss:$16 sps:$4 sm:$0xff]   ;;  %v16679_v25 = vld [vmem:[%s24485_s2 + $0xb0c] ss:$16 sps:$4 sm:$0xff]  }
 0x14a   :  { %v1221_v1 = vpop.f32.mrf.mxu0  ;;  %v1324_v21 = vpop.f32.mrf.mxu1 }
 0x14b   :  { %v19556_v18 = vadd.f32 %v1221_v1, %v19187_v23  ;;  %v19559_v56 = vadd.f32 %v1324_v21, %v19185_v22  ;;  %4014 = vmatpush1.bf16.msra.mxu0 %v16659_v35  ;;  %4117 = vmatpush1.bf16.msra.mxu1 %v16662_v10  ;;  %v16680_v35 = vld [vmem:[%s24486_s0 + $0x214] ss:$8 sps:$4 sm:$0xff]  }
 0x14c   :  { %v1223_v57 = vpop.f32.mrf.mxu0  ;;  %v1326_v15 = vpop.f32.mrf.mxu1  ;;  %4017 = vmatprep.subr.bf16.mxu0 %v16670_v62  ;;  %4120 = vmatprep.subr.bf16.mxu1 %v16673_v39  ;;  %v16674_v62 = vld [vmem:[%s24485_s2 + $0xb00] ss:$16 sps:$4 sm:$0xff]  }
 0x14d   :  { %v19568_v23 = vadd.f32 %v1223_v57, %v19200_v28  ;;  %v19571_v22 = vadd.f32 %v1326_v15, %v19198_v27  ;;  %v16677_v28 = vld [vmem:[%s24485_s2 + $0xb08] ss:$16 sps:$4 sm:$0xff]   ;;  %v16688_v15 = vld [vmem:[%s24485_s2 + $0xaec] ss:$16 sps:$4 sm:$0xff]  }
 0x14e   :  { %v1225_v10 = vpop.f32.mrf.mxu0  ;;  %v1328_v1 = vpop.f32.mrf.mxu1  ;;  %3350 = vmatmul.mubr.bf16.gmra.mxu0 %v16667_v8  ;;  %3453 = vmatmul.mubr.bf16.gmra.mxu1 %v16667_v8  ;;  %v16685_v8 = vld [vmem:[%s24485_s2 + $0xae4] ss:$16 sps:$4 sm:$0xff]  }
 0x14f   :  { %v19583_v39 = vadd.f32 %v1225_v10, %v19210_v32  ;;  %v19586_v27 = vadd.f32 %v1328_v1, %v19208_v31  ;;  %4018 = vmatpush2.bf16.msra.mxu0 %v16668_v47  ;;  %4121 = vmatpush2.bf16.msra.mxu1 %v16671_v19  ;;  %v16682_v47 = vld [vmem:[%s24486_s0 + $0x210] ss:$8 sps:$4 sm:$0xff]  }
 0x150   :  { %v1227_v21 = vpop.f32.mrf.mxu0  ;;  %v1330_v57 = vpop.f32.mrf.mxu1  ;;  %4019 = vmatprep.subr.bf16.mxu0 %v16676_v38  ;;  %4122 = vmatprep.subr.bf16.mxu1 %v16679_v25  ;;  %v16683_v25 = vld [vmem:[%s24485_s2 + $0xae0] ss:$16 sps:$4 sm:$0xff]  }
 0x151   :  { %v19595_v32 = vadd.f32 %v1227_v21, %v19223_v37  ;;  %v19598_v31 = vadd.f32 %v1330_v57, %v19221_v36  ;;  %13941 = vmatprep.mubr.msk.bf16.mxu0 %vm555_vm0, %v16680_v35  ;;  %13948 = vmatprep.mubr.msk.bf16.mxu1 %vm555_vm0, %v16680_v35  ;;  %v16686_v37 = vld [vmem:[%s24485_s2 + $0xae8] ss:$16 sps:$4 sm:$0xff]   ;;  %v16691_v35 = vld [vmem:[%s24485_s2 + $0xac4] ss:$16 sps:$4 sm:$0xff]   ;;  %v16694_v57 = vld [vmem:[%s24485_s2 + $0xacc] ss:$16 sps:$4 sm:$0xff]  }
 0x152   :  { %v1231_v19 = vpop.f32.mrf.mxu0  ;;  %v1334_v38 = vpop.f32.mrf.mxu1 }
 0x153   :  { %v19612_v36 = vadd.f32 %v1231_v19, %v19235_v41  ;;  %v19615_v10 = vadd.f32 %v1334_v38, %v19233_v40  ;;  %4020 = vmatpush2.bf16.msra.mxu0 %v16674_v62  ;;  %4123 = vmatpush2.bf16.msra.mxu1 %v16677_v28  ;;  %v16695_v62 = vld [vmem:[%s24486_s0 + $0x224] ss:$8 sps:$4 sm:$0xff]  }
 0x154   :  { %v1233_v1 = vpop.f32.mrf.mxu0  ;;  %v1336_v21 = vpop.f32.mrf.mxu1  ;;  %4021 = vmatprep.subr.bf16.mxu0 %v16685_v8  ;;  %4124 = vmatprep.subr.bf16.mxu1 %v16688_v15  ;;  %v16689_v8 = vld [vmem:[%s24485_s2 + $0xac0] ss:$16 sps:$4 sm:$0xff]  }
 0x155   :  { %v19624_v41 = vadd.f32 %v1233_v1, %v19248_v46  ;;  %v19627_v40 = vadd.f32 %v1336_v21, %v19246_v45  ;;  %v16692_v46 = vld [vmem:[%s24485_s2 + $0xac8] ss:$16 sps:$4 sm:$0xff]   ;;  %v16703_v21 = vld [vmem:[%s24485_s2 + $0xaac] ss:$16 sps:$4 sm:$0xff]  }
 0x156   :  { %v1235_v28 = vpop.f32.mrf.mxu0  ;;  %v1338_v19 = vpop.f32.mrf.mxu1  ;;  %3360 = vmatmul.mubr.bf16.gmra.mxu0 %v16682_v47  ;;  %3463 = vmatmul.mubr.bf16.gmra.mxu1 %v16682_v47  ;;  %v16700_v47 = vld [vmem:[%s24485_s2 + $0xaa4] ss:$16 sps:$4 sm:$0xff]  }
 0x157   :  { %v19639_v15 = vadd.f32 %v1235_v28, %v19258_v52  ;;  %v19642_v45 = vadd.f32 %v1338_v19, %v19256_v49  ;;  %4022 = vmatpush2.bf16.msra.mxu0 %v16683_v25  ;;  %4125 = vmatpush2.bf16.msra.mxu1 %v16686_v37  ;;  %v16697_v25 = vld [vmem:[%s24486_s0 + $0x220] ss:$8 sps:$4 sm:$0xff]  }
 0x158   :  { %v1237_v38 = vpop.f32.mrf.mxu0  ;;  %v1340_v1 = vpop.f32.mrf.mxu1  ;;  %4023 = vmatprep.subr.bf16.mxu0 %v16691_v35  ;;  %4126 = vmatprep.subr.bf16.mxu1 %v16694_v57  ;;  %v16698_v57 = vld [vmem:[%s24485_s2 + $0xaa0] ss:$16 sps:$4 sm:$0xff]  }
 0x159   :  { %v19651_v52 = vadd.f32 %v1237_v38, %v19271_v61  ;;  %v19654_v49 = vadd.f32 %v1340_v1, %v19269_v58  ;;  %13942 = vmatprep.mubr.msk.bf16.mxu0 %vm555_vm0, %v16695_v62  ;;  %13949 = vmatprep.mubr.msk.bf16.mxu1 %vm555_vm0, %v16695_v62  ;;  %v16701_v61 = vld [vmem:[%s24485_s2 + $0xaa8] ss:$16 sps:$4 sm:$0xff]   ;;  %v16706_v62 = vld [vmem:[%s24485_s2 + $0xa84] ss:$16 sps:$4 sm:$0xff]   ;;  %v16709_v1 = vld [vmem:[%s24485_s2 + $0xa8c] ss:$16 sps:$4 sm:$0xff]  }
 0x15a   :  { %v1241_v37 = vpop.f32.mrf.mxu0  ;;  %v1344_v35 = vpop.f32.mrf.mxu1 }
 0x15b   :  { %v19668_v58 = vadd.f32 %v1241_v37, %v19283_v3  ;;  %v19671_v28 = vadd.f32 %v1344_v35, %v19281_v2  ;;  %4024 = vmatpush2.bf16.msra.mxu0 %v16689_v8  ;;  %4127 = vmatpush2.bf16.msra.mxu1 %v16692_v46  ;;  %v16718_v8 = vld [vmem:[%s24486_s0 + $0x234] ss:$8 sps:$4 sm:$0xff]  }
 0x15c   :  { %v1243_v19 = vpop.f32.mrf.mxu0  ;;  %v1346_v38 = vpop.f32.mrf.mxu1  ;;  %4025 = vmatprep.subr.bf16.mxu0 %v16700_v47  ;;  %4128 = vmatprep.subr.bf16.mxu1 %v16703_v21  ;;  %v16704_v47 = vld [vmem:[%s24485_s2 + $0xa80] ss:$16 sps:$4 sm:$0xff]  }
 0x15d   :  { %v19680_v3 = vadd.f32 %v1243_v19, %v19296_v12  ;;  %v19683_v2 = vadd.f32 %v1346_v38, %v19294_v11  ;;  %v16707_v12 = vld [vmem:[%s24485_s2 + $0xa88] ss:$16 sps:$4 sm:$0xff]   ;;  %v16715_v38 = vld [vmem:[%s24485_s2 + $0xa6c] ss:$16 sps:$4 sm:$0xff]  }
 0x15e   :  { %v1245_v46 = vpop.f32.mrf.mxu0  ;;  %v1348_v37 = vpop.f32.mrf.mxu1  ;;  %3370 = vmatmul.mubr.bf16.gmra.mxu0 %v16697_v25  ;;  %3473 = vmatmul.mubr.bf16.gmra.mxu1 %v16697_v25  ;;  %v16712_v25 = vld [vmem:[%s24485_s2 + $0xa64] ss:$16 sps:$4 sm:$0xff]  }
 0x15f   :  { %v19695_v21 = vadd.f32 %v1245_v46, %v19306_v20  ;;  %v19698_v11 = vadd.f32 %v1348_v37, %v19304_v17  ;;  %4026 = vmatpush2.bf16.msra.mxu0 %v16698_v57  ;;  %4129 = vmatpush2.bf16.msra.mxu1 %v16701_v61 }
 0x160   :  { %v1247_v35 = vpop.f32.mrf.mxu0  ;;  %v1350_v19 = vpop.f32.mrf.mxu1  ;;  %4027 = vmatprep.subr.bf16.mxu0 %v16706_v62  ;;  %4130 = vmatprep.subr.bf16.mxu1 %v16709_v1  ;;  %v16710_v62 = vld [vmem:[%s24485_s2 + $0xa60] ss:$16 sps:$4 sm:$0xff]   ;;  %v16713_v1 = vld [vmem:[%s24485_s2 + $0xa68] ss:$16 sps:$4 sm:$0xff]  }
 0x161   :  { %v19707_v20 = vadd.f32 %v1247_v35, %v19319_v29  ;;  %v19710_v17 = vadd.f32 %v1350_v19, %v19317_v26  ;;  %14098 = vmatprep.mubr.msk.bf16.mxu0 %vm555_vm0, %v16718_v8  ;;  %14105 = vmatprep.mubr.msk.bf16.mxu1 %vm555_vm0, %v16718_v8  ;;  %v16721_v8 = vld [vmem:[%s24485_s2 + $0xc24] ss:$16 sps:$4 sm:$0xff]   ;;  %v16724_v35 = vld [vmem:[%s24485_s2 + $0xc2c] ss:$16 sps:$4 sm:$0xff]  }
 0x162   :  { %v1251_v57 = vpop.f32.mrf.mxu0  ;;  %v1354_v61 = vpop.f32.mrf.mxu1 }
 0x163   :  { %v19721_v29 = vadd.f32 %v1251_v57, %v19328_v34  ;;  %v19724_v26 = vadd.f32 %v1354_v61, %v19326_v33  ;;  %4028 = vmatpush2.bf16.msra.mxu0 %v16704_v47  ;;  %4131 = vmatpush2.bf16.msra.mxu1 %v16707_v12  ;;  %v16716_v47 = vld [vmem:[%s24486_s0 + $0x230] ss:$8 sps:$4 sm:$0xff]   ;;  %v16727_v57 = vld [vmem:[%s24485_s2 + $0xc04] ss:$16 sps:$4 sm:$0xff]  }
 0x164   :  { %v1253_v46 = vpop.f32.mrf.mxu0  ;;  %v1356_v37 = vpop.f32.mrf.mxu1  ;;  %4029 = vmatprep.subr.bf16.mxu0 %v16712_v25  ;;  %4132 = vmatprep.subr.bf16.mxu1 %v16715_v38  ;;  %v16719_v25 = vld [vmem:[%s24485_s2 + $0xc20] ss:$16 sps:$4 sm:$0xff]   ;;  %v16722_v38 = vld [vmem:[%s24485_s2 + $0xc28] ss:$16 sps:$4 sm:$0xff]  }
 0x165   :  { %v19733_v34 = vadd.f32 %v1253_v46, %v19341_v43  ;;  %v19736_v33 = vadd.f32 %v1356_v37, %v19339_v42  ;;  %v16730_v37 = vld [vmem:[%s24485_s2 + $0xc0c] ss:$16 sps:$4 sm:$0xff]  }
 0x166   :  { %v1255_v12 = vpop.f32.mrf.mxu0  ;;  %v1358_v19 = vpop.f32.mrf.mxu1 }
 0x167   :  { %v19748_v43 = vadd.f32 %v1255_v12, %v19351_v53  ;;  %v19751_v42 = vadd.f32 %v1358_v19, %v19349_v48  ;;  %4030 = vmatpush2.bf16.msra.mxu0 %v16710_v62  ;;  %4133 = vmatpush2.bf16.msra.mxu1 %v16713_v1  ;;  %v16731_v62 = vld [vmem:[%s24486_s0 + $0x244] ss:$8 sps:$4 sm:$0xff]  }
 0x168   :  { %v1257_v61 = vpop.f32.mrf.mxu0  ;;  %v1360_v46 = vpop.f32.mrf.mxu1  ;;  %4721 = vmatprep.subr.bf16.mxu0 %v16721_v8  ;;  %4824 = vmatprep.subr.bf16.mxu1 %v16724_v35  ;;  %v16725_v8 = vld [vmem:[%s24485_s2 + $0xc00] ss:$16 sps:$4 sm:$0xff]  }
 0x169   :  { %v19760_v53 = vadd.f32 %v1257_v61, %v19364_v6  ;;  %v19763_v48 = vadd.f32 %v1360_v46, %v19362_v63  ;;  %v16728_v6 = vld [vmem:[%s24485_s2 + $0xc08] ss:$16 sps:$4 sm:$0xff]   ;;  %v24516_v63 = vld [vmem:[#allocation2_spill] sm:$0xff] }
 0x16a   :  { %v1261_v1 = vpop.f32.mrf.mxu0  ;;  %v1364_v12 = vpop.f32.mrf.mxu1  ;;  %4032 = vmatmul.mubr.bf16.vlgmr.msra.gmra.mxu0 %v16716_v47  ;;  %4135 = vmatmul.mubr.bf16.vlgmr.msra.gmra.mxu1 %v16716_v47  ;;  %v16736_v47 = vld [vmem:[%s24485_s2 + $0xbe4] ss:$16 sps:$4 sm:$0xff]  }
 0x16b   :  { %24513 = vst [vmem:[#allocation9_spill] sm:$0xff] %v19760_v53  ;;  %24514 = vst [vmem:[#allocation10_spill] sm:$0xff] %v19763_v48  ;;  %v19775_v35 = vadd.f32 %v1261_v1, %v19374_v16  ;;  %v19778_v19 = vadd.f32 %v1364_v12, %v24516_v63  ;;  %4722 = vmatpush1.bf16.msra.mxu0 %v16719_v25  ;;  %4825 = vmatpush1.bf16.msra.mxu1 %v16722_v38  ;;  %v16739_v48 = vld [vmem:[%s24485_s2 + $0xbec] ss:$16 sps:$4 sm:$0xff]   ;;  %v24518_v53 = vld [vmem:[#allocation4_spill] sm:$0xff] }
 0x16c   :  { %v1263_v61 = vpop.f32.mrf.mxu0  ;;  %v1366_v46 = vpop.f32.mrf.mxu1  ;;  %4723 = vmatprep.subr.bf16.mxu0 %v16727_v57  ;;  %4826 = vmatprep.subr.bf16.mxu1 %v16730_v37  ;;  %v24520_v1 = vld [vmem:[#allocation3_spill] sm:$0xff]  ;;  %v16734_v37 = vld [vmem:[%s24485_s2 + $0xbe0] ss:$16 sps:$4 sm:$0xff]   ;;  %v24522_v63 = vld [vmem:[#allocation5_spill] sm:$0xff] }
 0x16d   :  { %24515 = vst [vmem:[#allocation11_spill] sm:$0xff] %v19775_v35  ;;  %24517 = vst [vmem:[#allocation2_spill] sm:$0xff] %v19778_v19  ;;  %v19787_v16 = vadd.f32 %v1263_v61, %v24518_v53  ;;  %v19790_v12 = vadd.f32 %v1366_v46, %v24520_v1  ;;  %14099 = vmatprep.mubr.msk.bf16.mxu0 %vm555_vm0, %v16731_v62  ;;  %14106 = vmatprep.mubr.msk.bf16.mxu1 %vm555_vm0, %v16731_v62  ;;  %v16733_v25 = vld [vmem:[%s24486_s0 + $0x240] ss:$8 sps:$4 sm:$0xff]   ;;  %v16742_v62 = vld [vmem:[%s24485_s2 + $0xbc4] ss:$16 sps:$4 sm:$0xff]  }
 0x16e   :  { %v1265_v38 = vpop.f32.mrf.mxu0  ;;  %v1368_v57 = vpop.f32.mrf.mxu1  ;;  %v16737_v53 = vld [vmem:[%s24485_s2 + $0xbe8] ss:$16 sps:$4 sm:$0xff]   ;;  %v24523_v46 = vld [vmem:[#allocation6_spill] sm:$0xff]  ;;  %v16745_v19 = vld [vmem:[%s24485_s2 + $0xbcc] ss:$16 sps:$4 sm:$0xff]  }
 0x16f   :  { %24519 = vst [vmem:[#allocation4_spill] sm:$0xff] %v19787_v16  ;;  %24521 = vst [vmem:[#allocation3_spill] sm:$0xff] %v19790_v12  ;;  %v19804_v61 = vadd.f32 %v1265_v38, %v24522_v63  ;;  %v19807_v1 = vadd.f32 %v1368_v57, %v24523_v46  ;;  %4724 = vmatpush1.bf16.msra.mxu0 %v16725_v8  ;;  %4827 = vmatpush1.bf16.msra.mxu1 %v16728_v6  ;;  %v24524_v35 = vld [vmem:[#allocation7_spill] sm:$0xff]  ;;  %v24525_v63 = vld [vmem:[#allocation8_spill] sm:$0xff] }
 0x170   :  { %v1267_v12 = vpop.f32.mrf.mxu0  ;;  %v1370_v16 = vpop.f32.mrf.mxu1  ;;  %4725 = vmatprep.subr.bf16.mxu0 %v16736_v47  ;;  %4828 = vmatprep.subr.bf16.mxu1 %v16739_v48  ;;  %v16746_v8 = vld [vmem:[%s24486_s0 + $0x254] ss:$8 sps:$4 sm:$0xff]   ;;  %v16740_v48 = vld [vmem:[%s24485_s2 + $0xbc0] ss:$16 sps:$4 sm:$0xff]   ;;  %v16743_v6 = vld [vmem:[%s24485_s2 + $0xbc8] ss:$16 sps:$4 sm:$0xff]  }
 0x171   :  { %v19816_v38 = vadd.f32 %v1267_v12, %v24524_v35  ;;  %v19819_v57 = vadd.f32 %v1370_v16, %v24525_v63  ;;  %v16751_v35 = vld [vmem:[%s24485_s2 + $0xba4] ss:$16 sps:$4 sm:$0xff]   ;;  %v16754_v47 = vld [vmem:[%s24485_s2 + $0xbac] ss:$16 sps:$4 sm:$0xff]   ;;  %v16748_v16 = vld [vmem:[%s24486_s0 + $0x250] ss:$8 sps:$4 sm:$0xff]  }
 0x172   :  { %4042 = vmatmul.mubr.bf16.gmra.mxu0 %v16733_v25  ;;  %4145 = vmatmul.mubr.bf16.gmra.mxu1 %v16733_v25 }
 0x173   :  { %24526 = vst [vmem:[#allocation5_spill] sm:$0xff] %v19819_v57  ;;  %4726 = vmatpush1.bf16.msra.mxu0 %v16734_v37  ;;  %4829 = vmatpush1.bf16.msra.mxu1 %v16737_v53  ;;  %v16749_v37 = vld [vmem:[%s24485_s2 + $0xba0] ss:$16 sps:$4 sm:$0xff]   ;;  %v16760_v57 = vld [vmem:[%s24485_s2 + $0xb8c] ss:$16 sps:$4 sm:$0xff]  }
 0x174   :  { %4727 = vmatprep.subr.bf16.mxu0 %v16742_v62  ;;  %4830 = vmatprep.subr.bf16.mxu1 %v16745_v19  ;;  %v16752_v19 = vld [vmem:[%s24485_s2 + $0xba8] ss:$16 sps:$4 sm:$0xff]   ;;  %v16757_v62 = vld [vmem:[%s24485_s2 + $0xb84] ss:$16 sps:$4 sm:$0xff]  }
 0x175   :  { %14100 = vmatprep.mubr.msk.bf16.mxu0 %vm555_vm0, %v16746_v8  ;;  %14107 = vmatprep.mubr.msk.bf16.mxu1 %vm555_vm0, %v16746_v8 }
 0x176   :  { %v1867_v12 = vpop.f32.mrf.mxu0  ;;  %v1970_v25 = vpop.f32.mrf.mxu1 }
 0x177   :  { %v19848_v53 = vadd.f32 %v1867_v12, %v19444_v7  ;;  %v19851_v46 = vadd.f32 %v1970_v25, %v19447_v44  ;;  %4728 = vmatpush1.bf16.msra.mxu0 %v16740_v48  ;;  %4831 = vmatpush1.bf16.msra.mxu1 %v16743_v6  ;;  %v16761_v48 = vld [vmem:[%s24486_s0 + $0x264] ss:$8 sps:$4 sm:$0xff]  }
 0x178   :  { %v1869_v63 = vpop.f32.mrf.mxu0  ;;  %v1972_v8 = vpop.f32.mrf.mxu1  ;;  %4729 = vmatprep.subr.bf16.mxu0 %v16751_v35  ;;  %4832 = vmatprep.subr.bf16.mxu1 %v16754_v47  ;;  %v16755_v35 = vld [vmem:[%s24485_s2 + $0xb80] ss:$16 sps:$4 sm:$0xff]  }
 0x179   :  { %v19860_v7 = vadd.f32 %v1869_v63, %v19456_v51  ;;  %v19863_v44 = vadd.f32 %v1972_v8, %v19459_v50  ;;  %v16758_v51 = vld [vmem:[%s24485_s2 + $0xb88] ss:$16 sps:$4 sm:$0xff]   ;;  %v16769_v8 = vld [vmem:[%s24485_s2 + $0xb6c] ss:$16 sps:$4 sm:$0xff]  }
 0x17a   :  { %v1871_v6 = vpop.f32.mrf.mxu0  ;;  %v1974_v12 = vpop.f32.mrf.mxu1  ;;  %4052 = vmatmul.mubr.bf16.gmra.mxu0 %v16748_v16  ;;  %4155 = vmatmul.mubr.bf16.gmra.mxu1 %v16748_v16  ;;  %v16766_v16 = vld [vmem:[%s24485_s2 + $0xb64] ss:$16 sps:$4 sm:$0xff]  }
 0x17b   :  { %v19875_v47 = vadd.f32 %v1871_v6, %v19471_v30  ;;  %v19878_v50 = vadd.f32 %v1974_v12, %v19474_v55  ;;  %4730 = vmatpush1.bf16.msra.mxu0 %v16749_v37  ;;  %4833 = vmatpush1.bf16.msra.mxu1 %v16752_v19  ;;  %v16763_v37 = vld [vmem:[%s24486_s0 + $0x260] ss:$8 sps:$4 sm:$0xff]  }
 0x17c   :  { %v1873_v25 = vpop.f32.mrf.mxu0  ;;  %v1976_v63 = vpop.f32.mrf.mxu1  ;;  %4731 = vmatprep.subr.bf16.mxu0 %v16757_v62  ;;  %4834 = vmatprep.subr.bf16.mxu1 %v16760_v57  ;;  %v16764_v62 = vld [vmem:[%s24485_s2 + $0xb60] ss:$16 sps:$4 sm:$0xff]  }
 0x17d   :  { %v19887_v30 = vadd.f32 %v1873_v25, %v19483_v60  ;;  %v19890_v55 = vadd.f32 %v1976_v63, %v19486_v59  ;;  %14101 = vmatprep.mubr.msk.bf16.mxu0 %vm555_vm0, %v16761_v48  ;;  %14108 = vmatprep.mubr.msk.bf16.mxu1 %vm555_vm0, %v16761_v48  ;;  %v16767_v60 = vld [vmem:[%s24485_s2 + $0xb68] ss:$16 sps:$4 sm:$0xff]   ;;  %v16772_v48 = vld [vmem:[%s24485_s2 + $0xb44] ss:$16 sps:$4 sm:$0xff]   ;;  %v16775_v63 = vld [vmem:[%s24485_s2 + $0xb4c] ss:$16 sps:$4 sm:$0xff]  }
 0x17e   :  { %v1877_v19 = vpop.f32.mrf.mxu0  ;;  %v1980_v57 = vpop.f32.mrf.mxu1 }
 0x17f   :  { %v19904_v59 = vadd.f32 %v1877_v19, %v19500_v0  ;;  %v19907_v6 = vadd.f32 %v1980_v57, %v19503_v24  ;;  %4732 = vmatpush1.bf16.msra.mxu0 %v16755_v35  ;;  %4835 = vmatpush1.bf16.msra.mxu1 %v16758_v51  ;;  %v16776_v35 = vld [vmem:[%s24486_s0 + $0x274] ss:$8 sps:$4 sm:$0xff]  }
 0x180   :  { %v1879_v12 = vpop.f32.mrf.mxu0  ;;  %v1982_v25 = vpop.f32.mrf.mxu1  ;;  %4733 = vmatprep.subr.bf16.mxu0 %v16766_v16  ;;  %4836 = vmatprep.subr.bf16.mxu1 %v16769_v8  ;;  %v16770_v16 = vld [vmem:[%s24485_s2 + $0xb40] ss:$16 sps:$4 sm:$0xff]  }
 0x181   :  { %v19916_v0 = vadd.f32 %v1879_v12, %v19512_v5  ;;  %v19919_v24 = vadd.f32 %v1982_v25, %v19515_v4  ;;  %v16773_v5 = vld [vmem:[%s24485_s2 + $0xb48] ss:$16 sps:$4 sm:$0xff]   ;;  %v16784_v25 = vld [vmem:[%s24485_s2 + $0xd0c] ss:$16 sps:$4 sm:$0xff]  }
 0x182   :  { %v1881_v51 = vpop.f32.mrf.mxu0  ;;  %v1984_v19 = vpop.f32.mrf.mxu1  ;;  %4062 = vmatmul.mubr.bf16.gmra.mxu0 %v16763_v37  ;;  %4165 = vmatmul.mubr.bf16.gmra.mxu1 %v16763_v37  ;;  %v16781_v37 = vld [vmem:[%s24485_s2 + $0xd04] ss:$16 sps:$4 sm:$0xff]  }
 0x183   :  { %v19931_v8 = vadd.f32 %v1881_v51, %v19527_v54  ;;  %v19934_v4 = vadd.f32 %v1984_v19, %v19530_v9  ;;  %4734 = vmatpush1.bf16.msra.mxu0 %v16764_v62  ;;  %4837 = vmatpush1.bf16.msra.mxu1 %v16767_v60  ;;  %v16778_v62 = vld [vmem:[%s24486_s0 + $0x270] ss:$8 sps:$4 sm:$0xff]  }
 0x184   :  { %v1883_v57 = vpop.f32.mrf.mxu0  ;;  %v1986_v12 = vpop.f32.mrf.mxu1  ;;  %4735 = vmatprep.subr.bf16.mxu0 %v16772_v48  ;;  %4838 = vmatprep.subr.bf16.mxu1 %v16775_v63  ;;  %v16779_v63 = vld [vmem:[%s24485_s2 + $0xd00] ss:$16 sps:$4 sm:$0xff]  }
 0x185   :  { %v19943_v54 = vadd.f32 %v1883_v57, %v19539_v14  ;;  %v19946_v9 = vadd.f32 %v1986_v12, %v19542_v13  ;;  %14102 = vmatprep.mubr.msk.bf16.mxu0 %vm555_vm0, %v16776_v35  ;;  %14109 = vmatprep.mubr.msk.bf16.mxu1 %vm555_vm0, %v16776_v35  ;;  %v16782_v14 = vld [vmem:[%s24485_s2 + $0xd08] ss:$16 sps:$4 sm:$0xff]   ;;  %v16787_v35 = vld [vmem:[%s24485_s2 + $0xce4] ss:$16 sps:$4 sm:$0xff]   ;;  %v16790_v12 = vld [vmem:[%s24485_s2 + $0xcec] ss:$16 sps:$4 sm:$0xff]  }
 0x186   :  { %v1887_v60 = vpop.f32.mrf.mxu0  ;;  %v1990_v48 = vpop.f32.mrf.mxu1 }
 0x187   :  { %v19960_v13 = vadd.f32 %v1887_v60, %v19556_v18  ;;  %v19963_v51 = vadd.f32 %v1990_v48, %v19559_v56  ;;  %4736 = vmatpush1.bf16.msra.mxu0 %v16770_v16  ;;  %4839 = vmatpush1.bf16.msra.mxu1 %v16773_v5  ;;  %v16791_v16 = vld [vmem:[%s24486_s0 + $0x284] ss:$8 sps:$4 sm:$0xff]  }
 0x188   :  { %v1889_v19 = vpop.f32.mrf.mxu0  ;;  %v1992_v57 = vpop.f32.mrf.mxu1  ;;  %4739 = vmatprep.subr.bf16.mxu0 %v16781_v37  ;;  %4842 = vmatprep.subr.bf16.mxu1 %v16784_v25 }
 0x189   :  { %v19972_v18 = vadd.f32 %v1889_v19, %v19568_v23  ;;  %v19975_v56 = vadd.f32 %v1992_v57, %v19571_v22  ;;  %v16785_v23 = vld [vmem:[%s24485_s2 + $0xce0] ss:$16 sps:$4 sm:$0xff]   ;;  %v16788_v22 = vld [vmem:[%s24485_s2 + $0xce8] ss:$16 sps:$4 sm:$0xff]  }
 0x18a   :  { %v1891_v5 = vpop.f32.mrf.mxu0  ;;  %v1994_v60 = vpop.f32.mrf.mxu1  ;;  %4072 = vmatmul.mubr.bf16.gmra.mxu0 %v16778_v62  ;;  %4175 = vmatmul.mubr.bf16.gmra.mxu1 %v16778_v62  ;;  %v16793_v57 = vld [vmem:[%s24486_s0 + $0x280] ss:$8 sps:$4 sm:$0xff]  }
 0x18b   :  { %v19981_v37 = vadd.f32 %v1891_v5, %v19583_v39  ;;  %v19984_v25 = vadd.f32 %v1994_v60, %v19586_v27  ;;  %4740 = vmatpush2.bf16.msra.mxu0 %v16779_v63  ;;  %4843 = vmatpush2.bf16.msra.mxu1 %v16782_v14  ;;  %v16796_v39 = vld [vmem:[%s24485_s2 + $0xcc4] ss:$16 sps:$4 sm:$0xff]   ;;  %v16799_v27 = vld [vmem:[%s24485_s2 + $0xccc] ss:$16 sps:$4 sm:$0xff]  }
 0x18c   :  { %v1893_v48 = vpop.f32.mrf.mxu0  ;;  %v1996_v19 = vpop.f32.mrf.mxu1  ;;  %4741 = vmatprep.subr.bf16.mxu0 %v16787_v35  ;;  %4844 = vmatprep.subr.bf16.mxu1 %v16790_v12 }
 0x18d   :  { %v19999_v62 = vadd.f32 %v1893_v48, %v19595_v32  ;;  %v20002_v63 = vadd.f32 %v1996_v19, %v19598_v31  ;;  %14103 = vmatprep.mubr.msk.bf16.mxu0 %vm555_vm0, %v16791_v16  ;;  %14110 = vmatprep.mubr.msk.bf16.mxu1 %vm555_vm0, %v16791_v16  ;;  %v16794_v32 = vld [vmem:[%s24485_s2 + $0xcc0] ss:$16 sps:$4 sm:$0xff]   ;;  %v16797_v31 = vld [vmem:[%s24485_s2 + $0xcc8] ss:$16 sps:$4 sm:$0xff]   ;;  %v16806_v48 = vld [vmem:[%s24486_s0 + $0x294] ss:$8 sps:$4 sm:$0xff]  }
 0x18e   :  { %v1897_v14 = vpop.f32.mrf.mxu0  ;;  %v2000_v35 = vpop.f32.mrf.mxu1 }
 0x18f   :  { %v20010_v12 = vadd.f32 %v1897_v14, %v19612_v36  ;;  %v20013_v5 = vadd.f32 %v2000_v35, %v19615_v10  ;;  %4742 = vmatpush2.bf16.msra.mxu0 %v16785_v23  ;;  %4845 = vmatpush2.bf16.msra.mxu1 %v16788_v22  ;;  %v16802_v36 = vld [vmem:[%s24485_s2 + $0xca4] ss:$16 sps:$4 sm:$0xff]   ;;  %v16805_v10 = vld [vmem:[%s24485_s2 + $0xcac] ss:$16 sps:$4 sm:$0xff]  }
 0x190   :  { %v1899_v16 = vpop.f32.mrf.mxu0  ;;  %v2002_v60 = vpop.f32.mrf.mxu1  ;;  %4743 = vmatprep.subr.bf16.mxu0 %v16796_v39  ;;  %4846 = vmatprep.subr.bf16.mxu1 %v16799_v27 }
 0x191   :  { %v20028_v23 = vadd.f32 %v1899_v16, %v19624_v41  ;;  %v20031_v22 = vadd.f32 %v2002_v60, %v19627_v40  ;;  %v16800_v41 = vld [vmem:[%s24485_s2 + $0xca0] ss:$16 sps:$4 sm:$0xff]   ;;  %v16803_v40 = vld [vmem:[%s24485_s2 + $0xca8] ss:$16 sps:$4 sm:$0xff]  }
 0x192   :  { %v1901_v19 = vpop.f32.mrf.mxu0  ;;  %v2004_v39 = vpop.f32.mrf.mxu1  ;;  %4082 = vmatmul.mubr.bf16.gmra.mxu0 %v16793_v57  ;;  %4185 = vmatmul.mubr.bf16.gmra.mxu1 %v16793_v57 }
 0x193   :  { %v20037_v27 = vadd.f32 %v1901_v19, %v19639_v15  ;;  %v20040_v14 = vadd.f32 %v2004_v39, %v19642_v45  ;;  %4744 = vmatpush2.bf16.msra.mxu0 %v16794_v32  ;;  %4847 = vmatpush2.bf16.msra.mxu1 %v16797_v31  ;;  %v16811_v15 = vld [vmem:[%s24485_s2 + $0xc84] ss:$16 sps:$4 sm:$0xff]   ;;  %v16814_v45 = vld [vmem:[%s24485_s2 + $0xc8c] ss:$16 sps:$4 sm:$0xff]  }
 0x194   :  { %v1903_v35 = vpop.f32.mrf.mxu0  ;;  %v2006_v16 = vpop.f32.mrf.mxu1  ;;  %4745 = vmatprep.subr.bf16.mxu0 %v16802_v36  ;;  %4848 = vmatprep.subr.bf16.mxu1 %v16805_v10  ;;  %v16808_v36 = vld [vmem:[%s24486_s0 + $0x290] ss:$8 sps:$4 sm:$0xff]  }
 0x195   :  { %v20055_v57 = vadd.f32 %v1903_v35, %v19651_v52  ;;  %v20058_v32 = vadd.f32 %v2006_v16, %v19654_v49  ;;  %14104 = vmatprep.mubr.msk.bf16.mxu0 %vm555_vm0, %v16806_v48  ;;  %14111 = vmatprep.mubr.msk.bf16.mxu1 %vm555_vm0, %v16806_v48  ;;  %v16809_v52 = vld [vmem:[%s24485_s2 + $0xc80] ss:$16 sps:$4 sm:$0xff]   ;;  %v16812_v49 = vld [vmem:[%s24485_s2 + $0xc88] ss:$16 sps:$4 sm:$0xff]   ;;  %v16829_v35 = vld [vmem:[%s24486_s0 + $0x2a4] ss:$8 sps:$4 sm:$0xff]  }
 0x196   :  { %v1907_v31 = vpop.f32.mrf.mxu0  ;;  %v2010_v60 = vpop.f32.mrf.mxu1 }
 0x197   :  { %v20066_v10 = vadd.f32 %v1907_v31, %v19668_v58  ;;  %v20069_v19 = vadd.f32 %v2010_v60, %v19671_v28  ;;  %4746 = vmatpush2.bf16.msra.mxu0 %v16800_v41  ;;  %4849 = vmatpush2.bf16.msra.mxu1 %v16803_v40  ;;  %v16817_v58 = vld [vmem:[%s24485_s2 + $0xc64] ss:$16 sps:$4 sm:$0xff]   ;;  %v16820_v28 = vld [vmem:[%s24485_s2 + $0xc6c] ss:$16 sps:$4 sm:$0xff]  }
 0x198   :  { %v1909_v48 = vpop.f32.mrf.mxu0  ;;  %v2012_v39 = vpop.f32.mrf.mxu1  ;;  %4747 = vmatprep.subr.bf16.mxu0 %v16811_v15  ;;  %4850 = vmatprep.subr.bf16.mxu1 %v16814_v45 }
 0x199   :  { %v20084_v41 = vadd.f32 %v1909_v48, %v19680_v3  ;;  %v20087_v40 = vadd.f32 %v2012_v39, %v19683_v2  ;;  %v16815_v3 = vld [vmem:[%s24485_s2 + $0xc60] ss:$16 sps:$4 sm:$0xff]   ;;  %v16818_v2 = vld [vmem:[%s24485_s2 + $0xc68] ss:$16 sps:$4 sm:$0xff]  }
 0x19a   :  { %v1911_v16 = vpop.f32.mrf.mxu0  ;;  %v2014_v15 = vpop.f32.mrf.mxu1  ;;  %4092 = vmatmul.mubr.bf16.gmra.mxu0 %v16808_v36  ;;  %4195 = vmatmul.mubr.bf16.gmra.mxu1 %v16808_v36 }
 0x19b   :  { %v20093_v45 = vadd.f32 %v1911_v16, %v19695_v21  ;;  %v20096_v31 = vadd.f32 %v2014_v15, %v19698_v11  ;;  %4748 = vmatpush2.bf16.msra.mxu0 %v16809_v52  ;;  %4851 = vmatpush2.bf16.msra.mxu1 %v16812_v49  ;;  %v16823_v21 = vld [vmem:[%s24485_s2 + $0xc44] ss:$16 sps:$4 sm:$0xff]   ;;  %v16826_v11 = vld [vmem:[%s24485_s2 + $0xc4c] ss:$16 sps:$4 sm:$0xff]  }
 0x19c   :  { %v1913_v60 = vpop.f32.mrf.mxu0  ;;  %v2016_v48 = vpop.f32.mrf.mxu1  ;;  %4749 = vmatprep.subr.bf16.mxu0 %v16817_v58  ;;  %4852 = vmatprep.subr.bf16.mxu1 %v16820_v28 }
 0x19d   :  { %v20111_v36 = vadd.f32 %v1913_v60, %v19707_v20  ;;  %v20114_v52 = vadd.f32 %v2016_v48, %v19710_v17  ;;  %14260 = vmatprep.mubr.msk.bf16.mxu0 %vm555_vm0, %v16829_v35  ;;  %14267 = vmatprep.mubr.msk.bf16.mxu1 %vm555_vm0, %v16829_v35  ;;  %v16821_v20 = vld [vmem:[%s24485_s2 + $0xc40] ss:$16 sps:$4 sm:$0xff]   ;;  %v16824_v17 = vld [vmem:[%s24485_s2 + $0xc48] ss:$16 sps:$4 sm:$0xff]  }
 0x19e   :  { %v1917_v49 = vpop.f32.mrf.mxu0  ;;  %v2020_v39 = vpop.f32.mrf.mxu1  ;;  %v16827_v48 = vld [vmem:[%s24486_s0 + $0x2a0] ss:$8 sps:$4 sm:$0xff]  }
 0x19f   :  { %v20119_v58 = vadd.f32 %v1917_v49, %v19721_v29  ;;  %v20122_v28 = vadd.f32 %v2020_v39, %v19724_v26  ;;  %4750 = vmatpush2.bf16.msra.mxu0 %v16815_v3  ;;  %4853 = vmatpush2.bf16.msra.mxu1 %v16818_v2  ;;  %v16832_v29 = vld [vmem:[%s24485_s2 + $0xe04] ss:$16 sps:$4 sm:$0xff]   ;;  %v16835_v26 = vld [vmem:[%s24485_s2 + $0xe0c] ss:$16 sps:$4 sm:$0xff]  }
 0x1a0   :  { %v1919_v16 = vpop.f32.mrf.mxu0  ;;  %v2022_v35 = vpop.f32.mrf.mxu1  ;;  %4751 = vmatprep.subr.bf16.mxu0 %v16823_v21  ;;  %4854 = vmatprep.subr.bf16.mxu1 %v16826_v11 }
 0x1a1   :  { %v20137_v15 = vadd.f32 %v1919_v16, %v19733_v34  ;;  %v20140_v3 = vadd.f32 %v2022_v35, %v19736_v33  ;;  %v16830_v34 = vld [vmem:[%s24485_s2 + $0xe00] ss:$16 sps:$4 sm:$0xff]   ;;  %v16833_v33 = vld [vmem:[%s24485_s2 + $0xe08] ss:$16 sps:$4 sm:$0xff]  }
 0x1a2   :  { %v1921_v2 = vpop.f32.mrf.mxu0  ;;  %v2024_v60 = vpop.f32.mrf.mxu1  ;;  %v24531_v16 = vld [vmem:[#allocation10_spill] sm:$0xff] }
 0x1a3   :  { %24527 = vst [vmem:[#allocation6_spill] sm:$0xff] %v20140_v3  ;;  %v20146_v21 = vadd.f32 %v1921_v2, %v19748_v43  ;;  %v20149_v11 = vadd.f32 %v2024_v60, %v19751_v42  ;;  %4752 = vmatpush2.bf16.msra.mxu0 %v16821_v20  ;;  %4855 = vmatpush2.bf16.msra.mxu1 %v16824_v17  ;;  %v16838_v43 = vld [vmem:[%s24485_s2 + $0xde4] ss:$16 sps:$4 sm:$0xff]   ;;  %v16841_v42 = vld [vmem:[%s24485_s2 + $0xdec] ss:$16 sps:$4 sm:$0xff]  }
 0x1a4   :  { %v1923_v49 = vpop.f32.mrf.mxu0  ;;  %v2026_v39 = vpop.f32.mrf.mxu1  ;;  %5443 = vmatprep.subr.bf16.mxu0 %v16832_v29  ;;  %5546 = vmatprep.subr.bf16.mxu1 %v16835_v26  ;;  %v24530_v20 = vld [vmem:[#allocation9_spill] sm:$0xff]  ;;  %v24532_v60 = vld [vmem:[#allocation11_spill] sm:$0xff] }
 0x1a5   :  { %24528 = vst [vmem:[#allocation7_spill] sm:$0xff] %v20146_v21  ;;  %24529 = vst [vmem:[#allocation8_spill] sm:$0xff] %v20149_v11  ;;  %v20164_v17 = vadd.f32 %v1923_v49, %v24530_v20  ;;  %v20167_v35 = vadd.f32 %v2026_v39, %v24531_v16  ;;  %v16842_v2 = vld [vmem:[%s24486_s0 + $0x2b4] ss:$8 sps:$4 sm:$0xff]   ;;  %v24534_v21 = vld [vmem:[#allocation2_spill] sm:$0xff] }
 0x1a6   :  { %v1927_v29 = vpop.f32.mrf.mxu0  ;;  %v2030_v26 = vpop.f32.mrf.mxu1  ;;  %4754 = vmatmul.mubr.bf16.vlgmr.msra.gmra.mxu0 %v16827_v48  ;;  %4857 = vmatmul.mubr.bf16.vlgmr.msra.gmra.mxu1 %v16827_v48  ;;  %v16836_v49 = vld [vmem:[%s24485_s2 + $0xde0] ss:$16 sps:$4 sm:$0xff]   ;;  %v16839_v39 = vld [vmem:[%s24485_s2 + $0xde8] ss:$16 sps:$4 sm:$0xff]   ;;  %v16847_v48 = vld [vmem:[%s24485_s2 + $0xdc4] ss:$16 sps:$4 sm:$0xff]  }
 0x1a7   :  { %v20173_v11 = vadd.f32 %v1927_v29, %v24532_v60  ;;  %v20176_v3 = vadd.f32 %v2030_v26, %v24534_v21  ;;  %5444 = vmatpush1.bf16.msra.mxu0 %v16830_v34  ;;  %5547 = vmatpush1.bf16.msra.mxu1 %v16833_v33  ;;  %v16850_v21 = vld [vmem:[%s24485_s2 + $0xdcc] ss:$16 sps:$4 sm:$0xff]   ;;  %v24536_v34 = vld [vmem:[#allocation4_spill] sm:$0xff] }
 0x1a8   :  { %v1929_v20 = vpop.f32.mrf.mxu0  ;;  %v2032_v16 = vpop.f32.mrf.mxu1  ;;  %5445 = vmatprep.subr.bf16.mxu0 %v16838_v43  ;;  %5548 = vmatprep.subr.bf16.mxu1 %v16841_v42  ;;  %v24537_v29 = vld [vmem:[#allocation3_spill] sm:$0xff]  ;;  %v16844_v60 = vld [vmem:[%s24486_s0 + $0x2b0] ss:$8 sps:$4 sm:$0xff]  }
 0x1a9   :  { %24533 = vst [vmem:[#allocation9_spill] sm:$0xff] %v20173_v11  ;;  %24535 = vst [vmem:[#allocation10_spill] sm:$0xff] %v20176_v3  ;;  %v20191_v33 = vadd.f32 %v1929_v20, %v24536_v34  ;;  %v20194_v26 = vadd.f32 %v2032_v16, %v24537_v29  ;;  %14261 = vmatprep.mubr.msk.bf16.mxu0 %vm555_vm0, %v16842_v2  ;;  %14268 = vmatprep.mubr.msk.bf16.mxu1 %vm555_vm0, %v16842_v2  ;;  %v16845_v20 = vld [vmem:[%s24485_s2 + $0xdc0] ss:$16 sps:$4 sm:$0xff]   ;;  %v16848_v2 = vld [vmem:[%s24485_s2 + $0xdc8] ss:$16 sps:$4 sm:$0xff]  }
 0x1aa   :  { %v1931_v43 = vpop.f32.mrf.mxu0  ;;  %v2034_v42 = vpop.f32.mrf.mxu1 }
 0x1ab   :  { %v20202_v3 = vadd.f32 %v1931_v43, %v19804_v61  ;;  %v20205_v11 = vadd.f32 %v2034_v42, %v19807_v1  ;;  %5446 = vmatpush1.bf16.msra.mxu0 %v16836_v49  ;;  %5549 = vmatpush1.bf16.msra.mxu1 %v16839_v39  ;;  %v16853_v61 = vld [vmem:[%s24485_s2 + $0xda4] ss:$16 sps:$4 sm:$0xff]   ;;  %v16856_v1 = vld [vmem:[%s24485_s2 + $0xdac] ss:$16 sps:$4 sm:$0xff]  }
 0x1ac   :  { %v1933_v16 = vpop.f32.mrf.mxu0  ;;  %v2036_v34 = vpop.f32.mrf.mxu1  ;;  %5447 = vmatprep.subr.bf16.mxu0 %v16847_v48  ;;  %5550 = vmatprep.subr.bf16.mxu1 %v16850_v21  ;;  %v24538_v39 = vld [vmem:[#allocation5_spill] sm:$0xff]  ;;  %v16857_v43 = vld [vmem:[%s24486_s0 + $0x2c4] ss:$8 sps:$4 sm:$0xff]   ;;  %v16851_v48 = vld [vmem:[%s24485_s2 + $0xda0] ss:$16 sps:$4 sm:$0xff]  }
 0x1ad   :  { %v20220_v49 = vadd.f32 %v1933_v16, %v19816_v38  ;;  %v20223_v29 = vadd.f32 %v2036_v34, %v24538_v39  ;;  %v16854_v38 = vld [vmem:[%s24485_s2 + $0xda8] ss:$16 sps:$4 sm:$0xff]   ;;  %v16862_v21 = vld [vmem:[%s24485_s2 + $0xd84] ss:$16 sps:$4 sm:$0xff]   ;;  %v16865_v42 = vld [vmem:[%s24485_s2 + $0xd8c] ss:$16 sps:$4 sm:$0xff]  }
 0x1ae   :  { %4764 = vmatmul.mubr.bf16.gmra.mxu0 %v16844_v60  ;;  %4867 = vmatmul.mubr.bf16.gmra.mxu1 %v16844_v60 }
 0x1af   :  { %5448 = vmatpush1.bf16.msra.mxu0 %v16845_v20  ;;  %5551 = vmatpush1.bf16.msra.mxu1 %v16848_v2  ;;  %v16859_v2 = vld [vmem:[%s24486_s0 + $0x2c0] ss:$8 sps:$4 sm:$0xff]  }
 0x1b0   :  { %5449 = vmatprep.subr.bf16.mxu0 %v16853_v61  ;;  %5552 = vmatprep.subr.bf16.mxu1 %v16856_v1  ;;  %v16860_v61 = vld [vmem:[%s24485_s2 + $0xd80] ss:$16 sps:$4 sm:$0xff]   ;;  %v16863_v1 = vld [vmem:[%s24485_s2 + $0xd88] ss:$16 sps:$4 sm:$0xff]  }
 0x1b1   :  { %14262 = vmatprep.mubr.msk.bf16.mxu0 %vm555_vm0, %v16857_v43  ;;  %14269 = vmatprep.mubr.msk.bf16.mxu1 %vm555_vm0, %v16857_v43 }
 0x1b2   :  { %v2589_v60 = vpop.f32.mrf.mxu0  ;;  %v2692_v20 = vpop.f32.mrf.mxu1 }
 0x1b3   :  { %v20246_v16 = vadd.f32 %v2589_v60, %v19848_v53  ;;  %v20249_v34 = vadd.f32 %v2692_v20, %v19851_v46  ;;  %5450 = vmatpush1.bf16.msra.mxu0 %v16851_v48  ;;  %5553 = vmatpush1.bf16.msra.mxu1 %v16854_v38  ;;  %v16868_v53 = vld [vmem:[%s24485_s2 + $0xd64] ss:$16 sps:$4 sm:$0xff]   ;;  %v16871_v46 = vld [vmem:[%s24485_s2 + $0xd6c] ss:$16 sps:$4 sm:$0xff]  }
 0x1b4   :  { %v2591_v39 = vpop.f32.mrf.mxu0  ;;  %v2694_v43 = vpop.f32.mrf.mxu1  ;;  %5451 = vmatprep.subr.bf16.mxu0 %v16862_v21  ;;  %5554 = vmatprep.subr.bf16.mxu1 %v16865_v42  ;;  %v16872_v60 = vld [vmem:[%s24486_s0 + $0x2d4] ss:$8 sps:$4 sm:$0xff]  }
 0x1b5   :  { %24539 = vst [vmem:[#allocation11_spill] sm:$0xff] %v20249_v34  ;;  %v20264_v48 = vadd.f32 %v2591_v39, %v19860_v7  ;;  %v20267_v38 = vadd.f32 %v2694_v43, %v19863_v44  ;;  %v16866_v7 = vld [vmem:[%s24485_s2 + $0xd60] ss:$16 sps:$4 sm:$0xff]   ;;  %v16869_v44 = vld [vmem:[%s24485_s2 + $0xd68] ss:$16 sps:$4 sm:$0xff]  }
 0x1b6   :  { %v2593_v21 = vpop.f32.mrf.mxu0  ;;  %v2696_v42 = vpop.f32.mrf.mxu1  ;;  %4774 = vmatmul.mubr.bf16.gmra.mxu0 %v16859_v2  ;;  %4877 = vmatmul.mubr.bf16.gmra.mxu1 %v16859_v2 }
 0x1b7   :  { %v20273_v20 = vadd.f32 %v2593_v21, %v19875_v47  ;;  %v20276_v34 = vadd.f32 %v2696_v42, %v19878_v50  ;;  %5452 = vmatpush1.bf16.msra.mxu0 %v16860_v61  ;;  %5555 = vmatpush1.bf16.msra.mxu1 %v16863_v1  ;;  %v16877_v47 = vld [vmem:[%s24485_s2 + $0xd44] ss:$16 sps:$4 sm:$0xff]   ;;  %v16880_v50 = vld [vmem:[%s24485_s2 + $0xd4c] ss:$16 sps:$4 sm:$0xff]  }
 0x1b8   :  { %v2595_v39 = vpop.f32.mrf.mxu0  ;;  %v2698_v43 = vpop.f32.mrf.mxu1  ;;  %5453 = vmatprep.subr.bf16.mxu0 %v16868_v53  ;;  %5556 = vmatprep.subr.bf16.mxu1 %v16871_v46  ;;  %v16874_v46 = vld [vmem:[%s24486_s0 + $0x2d0] ss:$8 sps:$4 sm:$0xff]  }
 0x1b9   :  { %v20291_v2 = vadd.f32 %v2595_v39, %v19887_v30  ;;  %v20294_v61 = vadd.f32 %v2698_v43, %v19890_v55  ;;  %14263 = vmatprep.mubr.msk.bf16.mxu0 %vm555_vm0, %v16872_v60  ;;  %14270 = vmatprep.mubr.msk.bf16.mxu1 %vm555_vm0, %v16872_v60  ;;  %v16875_v30 = vld [vmem:[%s24485_s2 + $0xd40] ss:$16 sps:$4 sm:$0xff]   ;;  %v16878_v55 = vld [vmem:[%s24485_s2 + $0xd48] ss:$16 sps:$4 sm:$0xff]   ;;  %v16887_v43 = vld [vmem:[%s24486_s0 + $0x2e4] ss:$8 sps:$4 sm:$0xff]  }
 0x1ba   :  { %v2599_v1 = vpop.f32.mrf.mxu0  ;;  %v2702_v53 = vpop.f32.mrf.mxu1 }
 0x1bb   :  { %v20302_v21 = vadd.f32 %v2599_v1, %v19904_v59  ;;  %v20305_v42 = vadd.f32 %v2702_v53, %v19907_v6  ;;  %5454 = vmatpush1.bf16.msra.mxu0 %v16866_v7  ;;  %5557 = vmatpush1.bf16.msra.mxu1 %v16869_v44  ;;  %v16883_v59 = vld [vmem:[%s24485_s2 + $0xd24] ss:$16 sps:$4 sm:$0xff]   ;;  %v16886_v6 = vld [vmem:[%s24485_s2 + $0xd2c] ss:$16 sps:$4 sm:$0xff]  }
 0x1bc   :  { %v2601_v60 = vpop.f32.mrf.mxu0  ;;  %v2704_v39 = vpop.f32.mrf.mxu1  ;;  %5455 = vmatprep.subr.bf16.mxu0 %v16877_v47  ;;  %5558 = vmatprep.subr.bf16.mxu1 %v16880_v50 }
 0x1bd   :  { %v20320_v7 = vadd.f32 %v2601_v60, %v19916_v0  ;;  %v20323_v44 = vadd.f32 %v2704_v39, %v19919_v24  ;;  %v16881_v0 = vld [vmem:[%s24485_s2 + $0xd20] ss:$16 sps:$4 sm:$0xff]   ;;  %v16884_v24 = vld [vmem:[%s24485_s2 + $0xd28] ss:$16 sps:$4 sm:$0xff]  }
 0x1be   :  { %v2603_v47 = vpop.f32.mrf.mxu0  ;;  %v2706_v50 = vpop.f32.mrf.mxu1  ;;  %4784 = vmatmul.mubr.bf16.gmra.mxu0 %v16874_v46  ;;  %4887 = vmatmul.mubr.bf16.gmra.mxu1 %v16874_v46 }
 0x1bf   :  { %v20329_v1 = vadd.f32 %v2603_v47, %v19931_v8  ;;  %v20332_v53 = vadd.f32 %v2706_v50, %v19934_v4  ;;  %5456 = vmatpush1.bf16.msra.mxu0 %v16875_v30  ;;  %5559 = vmatpush1.bf16.msra.mxu1 %v16878_v55  ;;  %v16892_v8 = vld [vmem:[%s24485_s2 + $0xee4] ss:$16 sps:$4 sm:$0xff]   ;;  %v16895_v4 = vld [vmem:[%s24485_s2 + $0xeec] ss:$16 sps:$4 sm:$0xff]  }
 0x1c0   :  { %v2605_v60 = vpop.f32.mrf.mxu0  ;;  %v2708_v39 = vpop.f32.mrf.mxu1  ;;  %5457 = vmatprep.subr.bf16.mxu0 %v16883_v59  ;;  %5560 = vmatprep.subr.bf16.mxu1 %v16886_v6  ;;  %v16889_v6 = vld [vmem:[%s24486_s0 + $0x2e0] ss:$8 sps:$4 sm:$0xff]  }
 0x1c1   :  { %v20347_v46 = vadd.f32 %v2605_v60, %v19943_v54  ;;  %v20350_v30 = vadd.f32 %v2708_v39, %v19946_v9  ;;  %14264 = vmatprep.mubr.msk.bf16.mxu0 %vm555_vm0, %v16887_v43  ;;  %14271 = vmatprep.mubr.msk.bf16.mxu1 %vm555_vm0, %v16887_v43  ;;  %v16890_v54 = vld [vmem:[%s24485_s2 + $0xee0] ss:$16 sps:$4 sm:$0xff]   ;;  %v16893_v9 = vld [vmem:[%s24485_s2 + $0xee8] ss:$16 sps:$4 sm:$0xff]   ;;  %v16902_v39 = vld [vmem:[%s24486_s0 + $0x2f4] ss:$8 sps:$4 sm:$0xff]  }
 0x1c2   :  { %v2609_v55 = vpop.f32.mrf.mxu0  ;;  %v2712_v59 = vpop.f32.mrf.mxu1 }
 0x1c3   :  { %v20358_v47 = vadd.f32 %v2609_v55, %v19960_v13  ;;  %v20361_v50 = vadd.f32 %v2712_v59, %v19963_v51  ;;  %5458 = vmatpush1.bf16.msra.mxu0 %v16881_v0  ;;  %5561 = vmatpush1.bf16.msra.mxu1 %v16884_v24  ;;  %v16898_v13 = vld [vmem:[%s24485_s2 + $0xec4] ss:$16 sps:$4 sm:$0xff]   ;;  %v16901_v51 = vld [vmem:[%s24485_s2 + $0xecc] ss:$16 sps:$4 sm:$0xff]  }
 0x1c4   :  { %v2611_v43 = vpop.f32.mrf.mxu0  ;;  %v2714_v60 = vpop.f32.mrf.mxu1  ;;  %5461 = vmatprep.subr.bf16.mxu0 %v16892_v8  ;;  %5564 = vmatprep.subr.bf16.mxu1 %v16895_v4 }
 0x1c5   :  { %v20376_v0 = vadd.f32 %v2611_v43, %v19972_v18  ;;  %v20379_v24 = vadd.f32 %v2714_v60, %v19975_v56  ;;  %v16896_v18 = vld [vmem:[%s24485_s2 + $0xec0] ss:$16 sps:$4 sm:$0xff]   ;;  %v16899_v56 = vld [vmem:[%s24485_s2 + $0xec8] ss:$16 sps:$4 sm:$0xff]  }
 0x1c6   :  { %v2613_v8 = vpop.f32.mrf.mxu0  ;;  %v2716_v4 = vpop.f32.mrf.mxu1  ;;  %4794 = vmatmul.mubr.bf16.gmra.mxu0 %v16889_v6  ;;  %4897 = vmatmul.mubr.bf16.gmra.mxu1 %v16889_v6 }
 0x1c7   :  { %v20385_v55 = vadd.f32 %v2613_v8, %v19981_v37  ;;  %v20388_v59 = vadd.f32 %v2716_v4, %v19984_v25  ;;  %5462 = vmatpush2.bf16.msra.mxu0 %v16890_v54  ;;  %5565 = vmatpush2.bf16.msra.mxu1 %v16893_v9  ;;  %v16907_v37 = vld [vmem:[%s24485_s2 + $0xea4] ss:$16 sps:$4 sm:$0xff]   ;;  %v16910_v25 = vld [vmem:[%s24485_s2 + $0xeac] ss:$16 sps:$4 sm:$0xff]  }
 0x1c8   :  { %v2615_v43 = vpop.f32.mrf.mxu0  ;;  %v2718_v60 = vpop.f32.mrf.mxu1  ;;  %5463 = vmatprep.subr.bf16.mxu0 %v16898_v13  ;;  %5566 = vmatprep.subr.bf16.mxu1 %v16901_v51  ;;  %v16904_v51 = vld [vmem:[%s24486_s0 + $0x2f0] ss:$8 sps:$4 sm:$0xff]  }
 0x1c9   :  { %v20403_v6 = vadd.f32 %v2615_v43, %v19999_v62  ;;  %v20406_v54 = vadd.f32 %v2718_v60, %v20002_v63  ;;  %14265 = vmatprep.mubr.msk.bf16.mxu0 %vm555_vm0, %v16902_v39  ;;  %14272 = vmatprep.mubr.msk.bf16.mxu1 %vm555_vm0, %v16902_v39  ;;  %v16905_v62 = vld [vmem:[%s24485_s2 + $0xea0] ss:$16 sps:$4 sm:$0xff]   ;;  %v16908_v63 = vld [vmem:[%s24485_s2 + $0xea8] ss:$16 sps:$4 sm:$0xff]   ;;  %v16917_v60 = vld [vmem:[%s24486_s0 + $0x304] ss:$8 sps:$4 sm:$0xff]  }
 0x1ca   :  { %v2619_v9 = vpop.f32.mrf.mxu0  ;;  %v2722_v13 = vpop.f32.mrf.mxu1 }
 0x1cb   :  { %24540 = vst [vmem:[#allocation2_spill] sm:$0xff] %v20406_v54  ;;  %v20414_v8 = vadd.f32 %v2619_v9, %v20010_v12  ;;  %v20417_v4 = vadd.f32 %v2722_v13, %v20013_v5  ;;  %5464 = vmatpush2.bf16.msra.mxu0 %v16896_v18  ;;  %5567 = vmatpush2.bf16.msra.mxu1 %v16899_v56  ;;  %v16913_v12 = vld [vmem:[%s24485_s2 + $0xe84] ss:$16 sps:$4 sm:$0xff]   ;;  %v16916_v5 = vld [vmem:[%s24485_s2 + $0xe8c] ss:$16 sps:$4 sm:$0xff]  }
 0x1cc   :  { %v2621_v39 = vpop.f32.mrf.mxu0  ;;  %v2724_v43 = vpop.f32.mrf.mxu1  ;;  %5465 = vmatprep.subr.bf16.mxu0 %v16907_v37  ;;  %5568 = vmatprep.subr.bf16.mxu1 %v16910_v25 }
 0x1cd   :  { %v20432_v18 = vadd.f32 %v2621_v39, %v20028_v23  ;;  %v20435_v56 = vadd.f32 %v2724_v43, %v20031_v22  ;;  %v16911_v23 = vld [vmem:[%s24485_s2 + $0xe80] ss:$16 sps:$4 sm:$0xff]   ;;  %v16914_v22 = vld [vmem:[%s24485_s2 + $0xe88] ss:$16 sps:$4 sm:$0xff]  }
 0x1ce   :  { %v2623_v37 = vpop.f32.mrf.mxu0  ;;  %v2726_v25 = vpop.f32.mrf.mxu1  ;;  %4804 = vmatmul.mubr.bf16.gmra.mxu0 %v16904_v51  ;;  %4907 = vmatmul.mubr.bf16.gmra.mxu1 %v16904_v51 }
 0x1cf   :  { %v20441_v9 = vadd.f32 %v2623_v37, %v20037_v27  ;;  %v20444_v13 = vadd.f32 %v2726_v25, %v20040_v14  ;;  %5466 = vmatpush2.bf16.msra.mxu0 %v16905_v62  ;;  %5569 = vmatpush2.bf16.msra.mxu1 %v16908_v63  ;;  %v16922_v27 = vld [vmem:[%s24485_s2 + $0xe64] ss:$16 sps:$4 sm:$0xff]   ;;  %v16925_v14 = vld [vmem:[%s24485_s2 + $0xe6c] ss:$16 sps:$4 sm:$0xff]  }
 0x1d0   :  { %v2625_v39 = vpop.f32.mrf.mxu0  ;;  %v2728_v43 = vpop.f32.mrf.mxu1  ;;  %5467 = vmatprep.subr.bf16.mxu0 %v16913_v12  ;;  %5570 = vmatprep.subr.bf16.mxu1 %v16916_v5  ;;  %v16919_v5 = vld [vmem:[%s24486_s0 + $0x300] ss:$8 sps:$4 sm:$0xff]  }
 0x1d1   :  { %v20459_v51 = vadd.f32 %v2625_v39, %v20055_v57  ;;  %v20462_v62 = vadd.f32 %v2728_v43, %v20058_v32  ;;  %14266 = vmatprep.mubr.msk.bf16.mxu0 %vm555_vm0, %v16917_v60  ;;  %14273 = vmatprep.mubr.msk.bf16.mxu1 %vm555_vm0, %v16917_v60  ;;  %v16920_v57 = vld [vmem:[%s24485_s2 + $0xe60] ss:$16 sps:$4 sm:$0xff]   ;;  %v16923_v32 = vld [vmem:[%s24485_s2 + $0xe68] ss:$16 sps:$4 sm:$0xff]   ;;  %v16940_v43 = vld [vmem:[%s24486_s0 + $0x314] ss:$8 sps:$4 sm:$0xff]  }
 0x1d2   :  { %v2629_v63 = vpop.f32.mrf.mxu0  ;;  %v2732_v12 = vpop.f32.mrf.mxu1 }
 0x1d3   :  { %24541 = vst [vmem:[#allocation4_spill] sm:$0xff] %v20459_v51  ;;  %24542 = vst [vmem:[#allocation3_spill] sm:$0xff] %v20462_v62  ;;  %v20470_v37 = vadd.f32 %v2629_v63, %v20066_v10  ;;  %v20473_v25 = vadd.f32 %v2732_v12, %v20069_v19  ;;  %5468 = vmatpush2.bf16.msra.mxu0 %v16911_v23  ;;  %5571 = vmatpush2.bf16.msra.mxu1 %v16914_v22  ;;  %v16928_v10 = vld [vmem:[%s24485_s2 + $0xe44] ss:$16 sps:$4 sm:$0xff]   ;;  %v16931_v19 = vld [vmem:[%s24485_s2 + $0xe4c] ss:$16 sps:$4 sm:$0xff]  }
 0x1d4   :  { %v2631_v60 = vpop.f32.mrf.mxu0  ;;  %v2734_v39 = vpop.f32.mrf.mxu1  ;;  %5469 = vmatprep.subr.bf16.mxu0 %v16922_v27  ;;  %5572 = vmatprep.subr.bf16.mxu1 %v16925_v14 }
 0x1d5   :  { %v20488_v23 = vadd.f32 %v2631_v60, %v20084_v41  ;;  %v20491_v22 = vadd.f32 %v2734_v39, %v20087_v40  ;;  %v16926_v41 = vld [vmem:[%s24485_s2 + $0xe40] ss:$16 sps:$4 sm:$0xff]   ;;  %v16929_v40 = vld [vmem:[%s24485_s2 + $0xe48] ss:$16 sps:$4 sm:$0xff]  }
 0x1d6   :  { %v2633_v27 = vpop.f32.mrf.mxu0  ;;  %v2736_v14 = vpop.f32.mrf.mxu1  ;;  %4814 = vmatmul.mubr.bf16.gmra.mxu0 %v16919_v5  ;;  %4917 = vmatmul.mubr.bf16.gmra.mxu1 %v16919_v5 }
 0x1d7   :  { %v20497_v63 = vadd.f32 %v2633_v27, %v20093_v45  ;;  %v20500_v12 = vadd.f32 %v2736_v14, %v20096_v31  ;;  %5470 = vmatpush2.bf16.msra.mxu0 %v16920_v57  ;;  %5573 = vmatpush2.bf16.msra.mxu1 %v16923_v32  ;;  %v16934_v45 = vld [vmem:[%s24485_s2 + $0xe24] ss:$16 sps:$4 sm:$0xff]   ;;  %v16937_v31 = vld [vmem:[%s24485_s2 + $0xe2c] ss:$16 sps:$4 sm:$0xff]  }
 0x1d8   :  { %v2635_v60 = vpop.f32.mrf.mxu0  ;;  %v2738_v39 = vpop.f32.mrf.mxu1  ;;  %5471 = vmatprep.subr.bf16.mxu0 %v16928_v10  ;;  %5574 = vmatprep.subr.bf16.mxu1 %v16931_v19 }
 0x1d9   :  { %v20515_v5 = vadd.f32 %v2635_v60, %v20111_v36  ;;  %v20518_v57 = vadd.f32 %v2738_v39, %v20114_v52  ;;  %14422 = vmatprep.mubr.msk.bf16.mxu0 %vm555_vm0, %v16940_v43  ;;  %14429 = vmatprep.mubr.msk.bf16.mxu1 %vm555_vm0, %v16940_v43  ;;  %v16932_v36 = vld [vmem:[%s24485_s2 + $0xe20] ss:$16 sps:$4 sm:$0xff]   ;;  %v16935_v52 = vld [vmem:[%s24485_s2 + $0xe28] ss:$16 sps:$4 sm:$0xff]  }
 0x1da   :  { %v2639_v32 = vpop.f32.mrf.mxu0  ;;  %v2742_v10 = vpop.f32.mrf.mxu1  ;;  %v24545_v60 = vld [vmem:[#allocation6_spill] sm:$0xff]  ;;  %v16938_v39 = vld [vmem:[%s24486_s0 + $0x310] ss:$8 sps:$4 sm:$0xff]  }
 0x1db   :  { %24543 = vst [vmem:[#allocation5_spill] sm:$0xff] %v20515_v5  ;;  %24544 = vst [vmem:[#allocation12_spill] sm:$0xff] %v20518_v57  ;;  %v20523_v19 = vadd.f32 %v2639_v32, %v20119_v58  ;;  %v20526_v27 = vadd.f32 %v2742_v10, %v20122_v28  ;;  %5472 = vmatpush2.bf16.msra.mxu0 %v16926_v41  ;;  %5575 = vmatpush2.bf16.msra.mxu1 %v16929_v40  ;;  %v24546_v32 = vld [vmem:[#allocation7_spill] sm:$0xff]  ;;  %v24547_v57 = vld [vmem:[#allocation8_spill] sm:$0xff] }
 0x1dc   :  { %v2641_v14 = vpop.f32.mrf.mxu0  ;;  %v2744_v43 = vpop.f32.mrf.mxu1  ;;  %5473 = vmatprep.subr.bf16.mxu0 %v16934_v45  ;;  %5576 = vmatprep.subr.bf16.mxu1 %v16937_v31 }
 0x1dd   :  { %v20535_v58 = vadd.f32 %v2641_v14, %v20137_v15  ;;  %v20538_v28 = vadd.f32 %v2744_v43, %v24545_v60  ;;  %v16941_v15 = vld [vmem:[%s24486_s0 + $0x324] ss:$8 sps:$4 sm:$0xff]  }
 0x1de   :  { %v2643_v41 = vpop.f32.mrf.mxu0  ;;  %v2746_v40 = vpop.f32.mrf.mxu1 }
 0x1df   :  { %v20544_v10 = vadd.f32 %v2643_v41, %v24546_v32  ;;  %v20547_v5 = vadd.f32 %v2746_v40, %v24547_v57  ;;  %5474 = vmatpush2.bf16.msra.mxu0 %v16932_v36  ;;  %5577 = vmatpush2.bf16.msra.mxu1 %v16935_v52  ;;  %v24550_v57 = vld [vmem:[#allocation9_spill] sm:$0xff]  ;;  %v24551_v36 = vld [vmem:[#allocation10_spill] sm:$0xff] }
 0x1e0   :  { %v2645_v45 = vpop.f32.mrf.mxu0  ;;  %v2748_v31 = vpop.f32.mrf.mxu1 }
 0x1e1   :  { %v20553_v14 = vadd.f32 %v2645_v45, %v20164_v17  ;;  %v20556_v43 = vadd.f32 %v2748_v31, %v20167_v35 }
 0x1e2   :  { %v2649_v60 = vpop.f32.mrf.mxu0  ;;  %v2752_v41 = vpop.f32.mrf.mxu1  ;;  %5476 = vmatmul.mubr.bf16.vlgmr.msra.gmra.mxu0 %v16938_v39  ;;  %5579 = vmatmul.mubr.bf16.vlgmr.msra.gmra.mxu1 %v16938_v39 }
 0x1e3   :  { %24548 = vst [vmem:[#allocation6_spill] sm:$0xff] %v20553_v14  ;;  %24549 = vst [vmem:[#allocation7_spill] sm:$0xff] %v20556_v43  ;;  %v20559_v40 = vadd.f32 %v2649_v60, %v24550_v57  ;;  %v20562_v52 = vadd.f32 %v2752_v41, %v24551_v36  ;;  %14423 = vmatprep.mubr.msk.bf16.mxu0 %vm555_vm0, %v16941_v15  ;;  %14430 = vmatprep.mubr.msk.bf16.mxu1 %vm555_vm0, %v16941_v15  ;;  %v16943_v60 = vld [vmem:[%s24486_s0 + $0x320] ss:$8 sps:$4 sm:$0xff]  }
 0x1e4   :  { %v2651_v32 = vpop.f32.mrf.mxu0  ;;  %v2754_v17 = vpop.f32.mrf.mxu1 }
 0x1e5   :  { %v20567_v45 = vadd.f32 %v2651_v32, %v20191_v33  ;;  %v20570_v35 = vadd.f32 %v2754_v17, %v20194_v26  ;;  %v16944_v33 = vld [vmem:[%s24486_s0 + $0x334] ss:$8 sps:$4 sm:$0xff]   ;;  %v16946_v17 = vld [vmem:[%s24486_s0 + $0x330] ss:$8 sps:$4 sm:$0xff]  }
 0x1e6   :  { %v2653_v31 = vpop.f32.mrf.mxu0  ;;  %v2756_v39 = vpop.f32.mrf.mxu1 }
 0x1e7   :  { %v20576_v41 = vadd.f32 %v2653_v31, %v20202_v3  ;;  %v20579_v57 = vadd.f32 %v2756_v39, %v20205_v11 }
 0x1e8   :  { %v2655_v15 = vpop.f32.mrf.mxu0  ;;  %v2758_v36 = vpop.f32.mrf.mxu1 }
 0x1e9   :  { %v20585_v26 = vadd.f32 %v2655_v15, %v20220_v49  ;;  %v20588_v32 = vadd.f32 %v2758_v36, %v20223_v29  ;;  %v24554_v49 = vld [vmem:[#allocation11_spill] sm:$0xff] }
 0x1ea   :  { %5486 = vmatmul.mubr.bf16.gmra.mxu0 %v16943_v60  ;;  %5589 = vmatmul.mubr.bf16.gmra.mxu1 %v16943_v60  ;;  %v16947_v29 = vld [vmem:[%s24486_s0 + $0x344] ss:$8 sps:$4 sm:$0xff]  }
 0x1eb   :  { %24552 = vst [vmem:[#allocation8_spill] sm:$0xff] %v20585_v26  ;;  %24553 = vst [vmem:[#allocation9_spill] sm:$0xff] %v20588_v32  ;;  %14424 = vmatprep.mubr.msk.bf16.mxu0 %vm555_vm0, %v16944_v33  ;;  %14431 = vmatprep.mubr.msk.bf16.mxu1 %vm555_vm0, %v16944_v33 }
 0x1ee   :  { %v3311_v3 = vpop.f32.mrf.mxu0  ;;  %v3414_v11 = vpop.f32.mrf.mxu1 }
 0x1ef   :  { %v20596_v31 = vadd.f32 %v3311_v3, %v20246_v16  ;;  %v20599_v39 = vadd.f32 %v3414_v11, %v24554_v49 }
 0x1f0   :  { %v3313_v60 = vpop.f32.mrf.mxu0  ;;  %v3416_v15 = vpop.f32.mrf.mxu1 }
 0x1f1   :  { %v20605_v33 = vadd.f32 %v3313_v60, %v20264_v48  ;;  %v20608_v36 = vadd.f32 %v3416_v15, %v20267_v38 }
 0x1f2   :  { %v3315_v32 = vpop.f32.mrf.mxu0  ;;  %v3418_v26 = vpop.f32.mrf.mxu1  ;;  %5496 = vmatmul.mubr.bf16.gmra.mxu0 %v16946_v17  ;;  %5599 = vmatmul.mubr.bf16.gmra.mxu1 %v16946_v17  ;;  %v16949_v17 = vld [vmem:[%s24486_s0 + $0x340] ss:$8 sps:$4 sm:$0xff]  }
 0x1f3   :  { %v20611_v16 = vadd.f32 %v3315_v32, %v20273_v20  ;;  %v20614_v3 = vadd.f32 %v3418_v26, %v20276_v34  ;;  %14425 = vmatprep.mubr.msk.bf16.mxu0 %vm555_vm0, %v16947_v29  ;;  %14432 = vmatprep.mubr.msk.bf16.mxu1 %vm555_vm0, %v16947_v29  ;;  %v16950_v26 = vld [vmem:[%s24486_s0 + $0x354] ss:$8 sps:$4 sm:$0xff]  }
 0x1f4   :  { %v20618_v11 = vpop.f32.mrf.mxu0  ;;  %v20620_v48 = vpop.f32.mrf.mxu1 }
 0x1f6   :  { %v3321_v38 = vpop.f32.mrf.mxu0  ;;  %v3424_v49 = vpop.f32.mrf.mxu1 }
 0x1f7   :  { %v20626_v20 = vadd.f32 %v3321_v38, %v20302_v21  ;;  %v20629_v34 = vadd.f32 %v3424_v49, %v20305_v42 }
 0x1f8   :  { %v3323_v32 = vpop.f32.mrf.mxu0  ;;  %v3426_v29 = vpop.f32.mrf.mxu1 }
 0x1f9   :  { %v20635_v60 = vadd.f32 %v3323_v32, %v20320_v7  ;;  %v20638_v15 = vadd.f32 %v3426_v29, %v20323_v44 }
 0x1fa   :  { %v3325_v43 = vpop.f32.mrf.mxu0  ;;  %v3428_v14 = vpop.f32.mrf.mxu1  ;;  %5506 = vmatmul.mubr.bf16.gmra.mxu0 %v16949_v17  ;;  %5609 = vmatmul.mubr.bf16.gmra.mxu1 %v16949_v17  ;;  %v16952_v17 = vld [vmem:[%s24486_s0 + $0x350] ss:$8 sps:$4 sm:$0xff]  }
 0x1fb   :  { %v20641_v21 = vadd.f32 %v3325_v43, %v20329_v1  ;;  %v20644_v42 = vadd.f32 %v3428_v14, %v20332_v53  ;;  %14426 = vmatprep.mubr.msk.bf16.mxu0 %vm555_vm0, %v16950_v26  ;;  %14433 = vmatprep.mubr.msk.bf16.mxu1 %vm555_vm0, %v16950_v26  ;;  %v16953_v14 = vld [vmem:[%s24486_s0 + $0x364] ss:$8 sps:$4 sm:$0xff]  }
 0x1fc   :  { %v20648_v38 = vpop.f32.mrf.mxu0  ;;  %v20650_v7 = vpop.f32.mrf.mxu1 }
 0x1fe   :  { %v3331_v44 = vpop.f32.mrf.mxu0  ;;  %v3434_v49 = vpop.f32.mrf.mxu1 }
 0x1ff   :  { %v20656_v1 = vadd.f32 %v3331_v44, %v20358_v47  ;;  %v20659_v53 = vadd.f32 %v3434_v49, %v20361_v50 }
 0x200   :  { %v3333_v43 = vpop.f32.mrf.mxu0  ;;  %v3436_v26 = vpop.f32.mrf.mxu1 }
 0x201   :  { %v20665_v32 = vadd.f32 %v3333_v43, %v20376_v0  ;;  %v20668_v29 = vadd.f32 %v3436_v26, %v20379_v24 }
 0x202   :  { %v3335_v62 = vpop.f32.mrf.mxu0  ;;  %v3438_v51 = vpop.f32.mrf.mxu1  ;;  %5516 = vmatmul.mubr.bf16.gmra.mxu0 %v16952_v17  ;;  %5619 = vmatmul.mubr.bf16.gmra.mxu1 %v16952_v17  ;;  %v16955_v17 = vld [vmem:[%s24486_s0 + $0x360] ss:$8 sps:$4 sm:$0xff]  }
 0x203   :  { %v20671_v47 = vadd.f32 %v3335_v62, %v20385_v55  ;;  %v20674_v50 = vadd.f32 %v3438_v51, %v20388_v59  ;;  %14427 = vmatprep.mubr.msk.bf16.mxu0 %vm555_vm0, %v16953_v14  ;;  %14434 = vmatprep.mubr.msk.bf16.mxu1 %vm555_vm0, %v16953_v14  ;;  %v16956_v51 = vld [vmem:[%s24486_s0 + $0x374] ss:$8 sps:$4 sm:$0xff]  }
 0x204   :  { %v20678_v44 = vpop.f32.mrf.mxu0  ;;  %v20680_v0 = vpop.f32.mrf.mxu1 }
 0x205   :  { %24555 = vst [vmem:[#allocation10_spill] sm:$0xff] %v20680_v0 }
 0x206   :  { %v3341_v24 = vpop.f32.mrf.mxu0  ;;  %v3444_v49 = vpop.f32.mrf.mxu1 }
 0x207   :  { %v20686_v55 = vadd.f32 %v3341_v24, %v20414_v8  ;;  %v20689_v59 = vadd.f32 %v3444_v49, %v20417_v4 }
 0x208   :  { %v3343_v62 = vpop.f32.mrf.mxu0  ;;  %v3446_v14 = vpop.f32.mrf.mxu1 }
 0x209   :  { %v20695_v43 = vadd.f32 %v3343_v62, %v20432_v18  ;;  %v20698_v26 = vadd.f32 %v3446_v14, %v20435_v56 }
 0x20a   :  { %v3345_v0 = vpop.f32.mrf.mxu0  ;;  %v3448_v54 = vpop.f32.mrf.mxu1  ;;  %5526 = vmatmul.mubr.bf16.gmra.mxu0 %v16955_v17  ;;  %5629 = vmatmul.mubr.bf16.gmra.mxu1 %v16955_v17  ;;  %v16958_v17 = vld [vmem:[%s24486_s0 + $0x370] ss:$8 sps:$4 sm:$0xff]  }
 0x20b   :  { %v20701_v8 = vadd.f32 %v3345_v0, %v20441_v9  ;;  %v20704_v4 = vadd.f32 %v3448_v54, %v20444_v13  ;;  %14428 = vmatprep.mubr.msk.bf16.mxu0 %vm555_vm0, %v16956_v51  ;;  %14435 = vmatprep.mubr.msk.bf16.mxu1 %vm555_vm0, %v16956_v51 }
 0x20c   :  { %v20708_v24 = vpop.f32.mrf.mxu0  ;;  %v20710_v18 = vpop.f32.mrf.mxu1 }
 0x20d   :  { %24556 = vst [vmem:[#allocation11_spill] sm:$0xff] %v20708_v24  ;;  %24557 = vst [vmem:[#allocation13_spill] sm:$0xff] %v20710_v18 }
 0x20e   :  { %v3351_v56 = vpop.f32.mrf.mxu0  ;;  %v3454_v49 = vpop.f32.mrf.mxu1 }
 0x20f   :  { %v20716_v9 = vadd.f32 %v3351_v56, %v20470_v37  ;;  %v20719_v54 = vadd.f32 %v3454_v49, %v20473_v25 }
 0x210   :  { %v3353_v13 = vpop.f32.mrf.mxu0  ;;  %v3456_v0 = vpop.f32.mrf.mxu1 }
 0x211   :  { %v20722_v51 = vadd.f32 %v3353_v13, %v20488_v23  ;;  %v20725_v62 = vadd.f32 %v3456_v0, %v20491_v22 }
 0x212   :  { %v3355_v14 = vpop.f32.mrf.mxu0  ;;  %v3458_v18 = vpop.f32.mrf.mxu1  ;;  %5536 = vmatmul.mubr.bf16.gmra.mxu0 %v16958_v17  ;;  %5639 = vmatmul.mubr.bf16.gmra.mxu1 %v16958_v17 }
 0x213   :  { %v20728_v24 = vadd.f32 %v3355_v14, %v20497_v63  ;;  %v20731_v37 = vadd.f32 %v3458_v18, %v20500_v12 }
 0x214   :  { %v20733_v25 = vpop.f32.mrf.mxu0  ;;  %v20735_v56 = vpop.f32.mrf.mxu1 }
 0x215   :  { %24558 = vst [vmem:[#allocation14_spill] sm:$0xff] %v20733_v25  ;;  %24559 = vst [vmem:[#allocation15_spill] sm:$0xff] %v20735_v56 }
 0x216   :  { %v3361_v49 = vpop.f32.mrf.mxu0  ;;  %v3464_v23 = vpop.f32.mrf.mxu1 }
 0x217   :  { %v20738_v13 = vadd.f32 %v3361_v49, %v20523_v19  ;;  %v20741_v22 = vadd.f32 %v3464_v23, %v20526_v27 }
 0x218   :  { %v3363_v0 = vpop.f32.mrf.mxu0  ;;  %v3466_v17 = vpop.f32.mrf.mxu1 }
 0x219   :  { %v20744_v63 = vadd.f32 %v3363_v0, %v20535_v58  ;;  %v20747_v12 = vadd.f32 %v3466_v17, %v20538_v28 }
 0x21a   :  { %v3365_v18 = vpop.f32.mrf.mxu0  ;;  %v3468_v14 = vpop.f32.mrf.mxu1 }
 0x21b   :  { %v20750_v56 = vadd.f32 %v3365_v18, %v20544_v10  ;;  %v20753_v25 = vadd.f32 %v3468_v14, %v20547_v5 }
 0x21c   :  { %v20755_v19 = vpop.f32.mrf.mxu0  ;;  %v20757_v27 = vpop.f32.mrf.mxu1 }
 0x21d   :  { %24560 = vst [vmem:[#allocation16_spill] sm:$0xff] %v20755_v19  ;;  %24561 = vst [vmem:[#allocation17_spill] sm:$0xff] %v20757_v27 }
 0x21e   :  { %v3371_v49 = vpop.f32.mrf.mxu0  ;;  %v3474_v23 = vpop.f32.mrf.mxu1 }
 0x21f   :  { %v20760_v58 = vadd.f32 %v3371_v49, %v20559_v40  ;;  %v20763_v28 = vadd.f32 %v3474_v23, %v20562_v52 }
 0x220   :  { %v3373_v0 = vpop.f32.mrf.mxu0  ;;  %v3476_v17 = vpop.f32.mrf.mxu1 }
 0x221   :  { %v20766_v10 = vadd.f32 %v3373_v0, %v20567_v45  ;;  %v20769_v5 = vadd.f32 %v3476_v17, %v20570_v35 }
 0x222   :  { %v3375_v18 = vpop.f32.mrf.mxu0  ;;  %v3478_v14 = vpop.f32.mrf.mxu1 }
 0x223   :  { %v20772_v27 = vadd.f32 %v3375_v18, %v20576_v41  ;;  %v20775_v19 = vadd.f32 %v3478_v14, %v20579_v57 }
 0x224   :  { %v20777_v40 = vpop.f32.mrf.mxu0  ;;  %v20779_v52 = vpop.f32.mrf.mxu1 }
 0x225   :  { %24562 = vst [vmem:[#allocation18_spill] sm:$0xff] %v20777_v40  ;;  %24563 = vst [vmem:[#allocation19_spill] sm:$0xff] %v20779_v52 }
 0x22a   :  { %v4033_v49 = vpop.f32.mrf.mxu0  ;;  %v4136_v23 = vpop.f32.mrf.mxu1 }
 0x22b   :  { %v20782_v45 = vadd.f32 %v4033_v49, %v20596_v31  ;;  %v20785_v35 = vadd.f32 %v4136_v23, %v20599_v39 }
 0x22c   :  { %v4035_v0 = vpop.f32.mrf.mxu0  ;;  %v4138_v17 = vpop.f32.mrf.mxu1 }
 0x22d   :  { %v20788_v41 = vadd.f32 %v4035_v0, %v20605_v33  ;;  %v20791_v57 = vadd.f32 %v4138_v17, %v20608_v36 }
 0x22e   :  { %v4037_v18 = vpop.f32.mrf.mxu0  ;;  %v4140_v14 = vpop.f32.mrf.mxu1 }
 0x22f   :  { %v20794_v52 = vadd.f32 %v4037_v18, %v20611_v16  ;;  %v20797_v40 = vadd.f32 %v4140_v14, %v20614_v3 }
 0x230   :  { %v20799_v31 = vpop.f32.mrf.mxu0  ;;  %v20801_v39 = vpop.f32.mrf.mxu1 }
 0x231   :  { %24564 = vst [vmem:[#allocation20_spill] sm:$0xff] %v20799_v31  ;;  %24565 = vst [vmem:[#allocation21_spill] sm:$0xff] %v20801_v39 }
 0x232   :  { %v4043_v49 = vpop.f32.mrf.mxu0  ;;  %v4146_v23 = vpop.f32.mrf.mxu1 }
 0x233   :  { %v20804_v33 = vadd.f32 %v4043_v49, %v20626_v20  ;;  %v20807_v36 = vadd.f32 %v4146_v23, %v20629_v34 }
 0x234   :  { %v4045_v0 = vpop.f32.mrf.mxu0  ;;  %v4148_v17 = vpop.f32.mrf.mxu1 }
 0x235   :  { %v20810_v16 = vadd.f32 %v4045_v0, %v20635_v60  ;;  %v20813_v3 = vadd.f32 %v4148_v17, %v20638_v15 }
 0x236   :  { %v4047_v18 = vpop.f32.mrf.mxu0  ;;  %v4150_v14 = vpop.f32.mrf.mxu1 }
 0x237   :  { %v20816_v39 = vadd.f32 %v4047_v18, %v20641_v21  ;;  %v20819_v31 = vadd.f32 %v4150_v14, %v20644_v42 }
 0x238   :  { %v20821_v20 = vpop.f32.mrf.mxu0  ;;  %v20823_v34 = vpop.f32.mrf.mxu1 }
 0x239   :  { %24566 = vst [vmem:[#allocation22_spill] sm:$0xff] %v20821_v20  ;;  %24567 = vst [vmem:[#allocation23_spill] sm:$0xff] %v20823_v34 }
 0x23a   :  { %v4053_v49 = vpop.f32.mrf.mxu0  ;;  %v4156_v23 = vpop.f32.mrf.mxu1 }
 0x23b   :  { %v20826_v60 = vadd.f32 %v4053_v49, %v20656_v1  ;;  %v20829_v15 = vadd.f32 %v4156_v23, %v20659_v53 }
 0x23c   :  { %v4055_v0 = vpop.f32.mrf.mxu0  ;;  %v4158_v17 = vpop.f32.mrf.mxu1 }
 0x23d   :  { %v20832_v21 = vadd.f32 %v4055_v0, %v20665_v32  ;;  %v20835_v42 = vadd.f32 %v4158_v17, %v20668_v29 }
 0x23e   :  { %v4057_v18 = vpop.f32.mrf.mxu0  ;;  %v4160_v14 = vpop.f32.mrf.mxu1 }
 0x23f   :  { %v20838_v34 = vadd.f32 %v4057_v18, %v20671_v47  ;;  %v20841_v20 = vadd.f32 %v4160_v14, %v20674_v50 }
 0x240   :  { %v20843_v1 = vpop.f32.mrf.mxu0  ;;  %v20845_v53 = vpop.f32.mrf.mxu1 }
 0x241   :  { %24568 = vst [vmem:[#allocation24_spill] sm:$0xff] %v20843_v1  ;;  %24569 = vst [vmem:[#allocation25_spill] sm:$0xff] %v20845_v53 }
 0x242   :  { %v4063_v49 = vpop.f32.mrf.mxu0  ;;  %v4166_v23 = vpop.f32.mrf.mxu1 }
 0x243   :  { %v20848_v32 = vadd.f32 %v4063_v49, %v20686_v55  ;;  %v20851_v29 = vadd.f32 %v4166_v23, %v20689_v59 }
 0x244   :  { %v4065_v0 = vpop.f32.mrf.mxu0  ;;  %v4168_v17 = vpop.f32.mrf.mxu1 }
 0x245   :  { %v20854_v47 = vadd.f32 %v4065_v0, %v20695_v43  ;;  %v20857_v50 = vadd.f32 %v4168_v17, %v20698_v26 }
 0x246   :  { %v4067_v18 = vpop.f32.mrf.mxu0  ;;  %v4170_v14 = vpop.f32.mrf.mxu1 }
 0x247   :  { %v20860_v53 = vadd.f32 %v4067_v18, %v20701_v8  ;;  %v20863_v1 = vadd.f32 %v4170_v14, %v20704_v4 }
 0x248   :  { %v20865_v55 = vpop.f32.mrf.mxu0  ;;  %v20867_v59 = vpop.f32.mrf.mxu1 }
 0x249   :  { %24570 = vst [vmem:[#allocation26_spill] sm:$0xff] %v20865_v55  ;;  %24571 = vst [vmem:[#allocation27_spill] sm:$0xff] %v20867_v59 }
 0x24a   :  { %v4073_v49 = vpop.f32.mrf.mxu0  ;;  %v4176_v23 = vpop.f32.mrf.mxu1 }
 0x24b   :  { %v20870_v43 = vadd.f32 %v4073_v49, %v20716_v9  ;;  %v20873_v26 = vadd.f32 %v4176_v23, %v20719_v54 }
 0x24c   :  { %v4075_v0 = vpop.f32.mrf.mxu0  ;;  %v4178_v17 = vpop.f32.mrf.mxu1 }
 0x24d   :  { %v20876_v8 = vadd.f32 %v4075_v0, %v20722_v51  ;;  %v20879_v4 = vadd.f32 %v4178_v17, %v20725_v62 }
 0x24e   :  { %v4077_v18 = vpop.f32.mrf.mxu0  ;;  %v4180_v14 = vpop.f32.mrf.mxu1 }
 0x24f   :  { %v20882_v59 = vadd.f32 %v4077_v18, %v20728_v24  ;;  %v20885_v55 = vadd.f32 %v4180_v14, %v20731_v37 }
 0x250   :  { %v20887_v9 = vpop.f32.mrf.mxu0  ;;  %v20889_v54 = vpop.f32.mrf.mxu1 }
 0x251   :  { %24572 = vst [vmem:[#allocation28_spill] sm:$0xff] %v20887_v9  ;;  %24573 = vst [vmem:[#allocation29_spill] sm:$0xff] %v20889_v54 }
 0x252   :  { %v4083_v49 = vpop.f32.mrf.mxu0  ;;  %v4186_v23 = vpop.f32.mrf.mxu1 }
 0x253   :  { %v20892_v51 = vadd.f32 %v4083_v49, %v20738_v13  ;;  %v20895_v62 = vadd.f32 %v4186_v23, %v20741_v22 }
 0x254   :  { %v4085_v0 = vpop.f32.mrf.mxu0  ;;  %v4188_v17 = vpop.f32.mrf.mxu1 }
 0x255   :  { %v20898_v24 = vadd.f32 %v4085_v0, %v20744_v63  ;;  %v20901_v37 = vadd.f32 %v4188_v17, %v20747_v12 }
 0x256   :  { %v4087_v18 = vpop.f32.mrf.mxu0  ;;  %v4190_v14 = vpop.f32.mrf.mxu1 }
 0x257   :  { %v20904_v54 = vadd.f32 %v4087_v18, %v20750_v56  ;;  %v20907_v9 = vadd.f32 %v4190_v14, %v20753_v25 }
 0x258   :  { %v20909_v13 = vpop.f32.mrf.mxu0  ;;  %v20911_v22 = vpop.f32.mrf.mxu1 }
 0x259   :  { %24574 = vst [vmem:[#allocation30_spill] sm:$0xff] %v20909_v13  ;;  %24575 = vst [vmem:[#allocation31_spill] sm:$0xff] %v20911_v22 }
 0x25a   :  { %v4093_v49 = vpop.f32.mrf.mxu0  ;;  %v4196_v23 = vpop.f32.mrf.mxu1 }
 0x25b   :  { %v20914_v63 = vadd.f32 %v4093_v49, %v20760_v58  ;;  %v20917_v12 = vadd.f32 %v4196_v23, %v20763_v28 }
 0x25c   :  { %v4095_v0 = vpop.f32.mrf.mxu0  ;;  %v4198_v17 = vpop.f32.mrf.mxu1 }
 0x25d   :  { %24576 = vst [vmem:[#allocation32_spill] sm:$0xff] %v20914_v63  ;;  %24577 = vst [vmem:[#allocation33_spill] sm:$0xff] %v20917_v12  ;;  %v20920_v56 = vadd.f32 %v4095_v0, %v20766_v10  ;;  %v20923_v25 = vadd.f32 %v4198_v17, %v20769_v5 }
 0x25e   :  { %v4097_v18 = vpop.f32.mrf.mxu0  ;;  %v4200_v14 = vpop.f32.mrf.mxu1 }
 0x25f   :  { %24578 = vst [vmem:[#allocation34_spill] sm:$0xff] %v20920_v56  ;;  %24579 = vst [vmem:[#allocation35_spill] sm:$0xff] %v20923_v25  ;;  %v20926_v22 = vadd.f32 %v4097_v18, %v20772_v27  ;;  %v20929_v13 = vadd.f32 %v4200_v14, %v20775_v19 }
 0x260   :  { %v20931_v58 = vpop.f32.mrf.mxu0  ;;  %v20933_v28 = vpop.f32.mrf.mxu1 }
 0x261   :  { %24580 = vst [vmem:[#allocation36_spill] sm:$0xff] %v20926_v22  ;;  %24581 = vst [vmem:[#allocation37_spill] sm:$0xff] %v20929_v13 }
 0x262   :  { %24582 = vst [vmem:[#allocation38_spill] sm:$0xff] %v20931_v58  ;;  %24583 = vst [vmem:[#allocation39_spill] sm:$0xff] %v20933_v28 }
 0x266   :  { %v4755_v49 = vpop.f32.mrf.mxu0  ;;  %v4858_v23 = vpop.f32.mrf.mxu1 }
 0x267   :  { %v20936_v10 = vadd.f32 %v4755_v49, %v20782_v45  ;;  %v20939_v5 = vadd.f32 %v4858_v23, %v20785_v35 }
 0x268   :  { %v4757_v0 = vpop.f32.mrf.mxu0  ;;  %v4860_v17 = vpop.f32.mrf.mxu1 }
 0x269   :  { %v20942_v27 = vadd.f32 %v4757_v0, %v20788_v41  ;;  %v20945_v19 = vadd.f32 %v4860_v17, %v20791_v57 }
 0x26a   :  { %v4759_v18 = vpop.f32.mrf.mxu0  ;;  %v4862_v14 = vpop.f32.mrf.mxu1 }
 0x26b   :  { %v20948_v13 = vadd.f32 %v4759_v18, %v20794_v52  ;;  %v20951_v22 = vadd.f32 %v4862_v14, %v20797_v40 }
 0x26c   :  { %v20953_v45 = vpop.f32.mrf.mxu0  ;;  %v20955_v35 = vpop.f32.mrf.mxu1 }
 0x26e   :  { %v4765_v49 = vpop.f32.mrf.mxu0  ;;  %v4868_v23 = vpop.f32.mrf.mxu1 }
 0x26f   :  { %v20958_v41 = vadd.f32 %v4765_v49, %v20804_v33  ;;  %v20961_v57 = vadd.f32 %v4868_v23, %v20807_v36 }
 0x270   :  { %v4767_v0 = vpop.f32.mrf.mxu0  ;;  %v4870_v17 = vpop.f32.mrf.mxu1 }
 0x271   :  { %v20964_v52 = vadd.f32 %v4767_v0, %v20810_v16  ;;  %v20967_v40 = vadd.f32 %v4870_v17, %v20813_v3 }
 0x272   :  { %v4769_v18 = vpop.f32.mrf.mxu0  ;;  %v4872_v14 = vpop.f32.mrf.mxu1 }
 0x273   :  { %v20970_v25 = vadd.f32 %v4769_v18, %v20816_v39  ;;  %v20973_v56 = vadd.f32 %v4872_v14, %v20819_v31 }
 0x274   :  { %v20975_v33 = vpop.f32.mrf.mxu0  ;;  %v20977_v36 = vpop.f32.mrf.mxu1 }
 0x276   :  { %v4775_v49 = vpop.f32.mrf.mxu0  ;;  %v4878_v23 = vpop.f32.mrf.mxu1 }
 0x277   :  { %v20980_v16 = vadd.f32 %v4775_v49, %v20826_v60  ;;  %v20983_v3 = vadd.f32 %v4878_v23, %v20829_v15  ;;  %v24498_v60 = vmov 0  }
 0x278   :  { %v4777_v0 = vpop.f32.mrf.mxu0  ;;  %v4880_v17 = vpop.f32.mrf.mxu1  ;;  %6019 = vmatprep.mubr.bf16.mxu0 %v24498_v60  ;;  %6172 = vmatprep.mubr.bf16.mxu1 %v24498_v60 }
 0x279   :  { %v20986_v39 = vadd.f32 %v4777_v0, %v20832_v21  ;;  %v20989_v31 = vadd.f32 %v4880_v17, %v20835_v42 }
 0x27a   :  { %v4779_v18 = vpop.f32.mrf.mxu0  ;;  %v4882_v14 = vpop.f32.mrf.mxu1 }
 0x27b   :  { %v20992_v12 = vadd.f32 %v4779_v18, %v20838_v34  ;;  %v20995_v63 = vadd.f32 %v4882_v14, %v20841_v20 }
 0x27c   :  { %v20999_v15 = vpop.f32.mrf.mxu0  ;;  %v21001_v21 = vpop.f32.mrf.mxu1 }
 0x27e   :  { %v4785_v49 = vpop.f32.mrf.mxu0  ;;  %v4888_v42 = vpop.f32.mrf.mxu1 }
 0x27f   :  { %v21004_v23 = vadd.f32 %v4785_v49, %v20848_v32  ;;  %v21007_v34 = vadd.f32 %v4888_v42, %v20851_v29 }
 0x280   :  { %v4787_v0 = vpop.f32.mrf.mxu0  ;;  %v4890_v20 = vpop.f32.mrf.mxu1 }
 0x281   :  { %v21010_v17 = vadd.f32 %v4787_v0, %v20854_v47  ;;  %v21013_v18 = vadd.f32 %v4890_v20, %v20857_v50 }
 0x282   :  { %v4789_v14 = vpop.f32.mrf.mxu0  ;;  %v4892_v60 = vpop.f32.mrf.mxu1 }
 0x283   :  { %24584 = vst [vmem:[#allocation40_spill] sm:$0xff] %v21010_v17  ;;  %24585 = vst [vmem:[#allocation41_spill] sm:$0xff] %v21013_v18  ;;  %v21016_v28 = vadd.f32 %v4789_v14, %v20860_v53  ;;  %v21019_v58 = vadd.f32 %v4892_v60, %v20863_v1 }
 0x284   :  { %v21021_v32 = vpop.f32.mrf.mxu0  ;;  %v21023_v29 = vpop.f32.mrf.mxu1 }
 0x285   :  { %24586 = vst [vmem:[#allocation42_spill] sm:$0xff] %v21016_v28  ;;  %24587 = vst [vmem:[#allocation43_spill] sm:$0xff] %v21019_v58 }
 0x286   :  { %v4795_v49 = vpop.f32.mrf.mxu0  ;;  %v4898_v42 = vpop.f32.mrf.mxu1 }
 0x287   :  { %v21026_v47 = vadd.f32 %v4795_v49, %v20870_v43  ;;  %v21029_v50 = vadd.f32 %v4898_v42, %v20873_v26 }
 0x288   :  { %v4797_v0 = vpop.f32.mrf.mxu0  ;;  %v4900_v20 = vpop.f32.mrf.mxu1 }
 0x289   :  { %24588 = vst [vmem:[#allocation44_spill] sm:$0xff] %v21026_v47  ;;  %24589 = vst [vmem:[#allocation45_spill] sm:$0xff] %v21029_v50  ;;  %v21032_v53 = vadd.f32 %v4797_v0, %v20876_v8  ;;  %v21035_v1 = vadd.f32 %v4900_v20, %v20879_v4 }
 0x28a   :  { %v4799_v60 = vpop.f32.mrf.mxu0  ;;  %v4902_v14 = vpop.f32.mrf.mxu1 }
 0x28b   :  { %24590 = vst [vmem:[#allocation46_spill] sm:$0xff] %v21032_v53  ;;  %24591 = vst [vmem:[#allocation47_spill] sm:$0xff] %v21035_v1  ;;  %v21038_v58 = vadd.f32 %v4799_v60, %v20882_v59  ;;  %v21041_v28 = vadd.f32 %v4902_v14, %v20885_v55  ;;  %v24624_v53 = vld [vmem:[#allocation15_spill] sm:$0xff] }
 0x28c   :  { %v21043_v43 = vpop.f32.mrf.mxu0  ;;  %v21045_v26 = vpop.f32.mrf.mxu1 }
 0x28d   :  { %24592 = vst [vmem:[#allocation48_spill] sm:$0xff] %v21038_v58  ;;  %24593 = vst [vmem:[#allocation49_spill] sm:$0xff] %v21041_v28 }
 0x28e   :  { %24594 = vst [vmem:[#allocation50_spill] sm:$0xff] %v21043_v43  ;;  %24595 = vst [vmem:[#allocation51_spill] sm:$0xff] %v21045_v26  ;;  %v4805_v49 = vpop.f32.mrf.mxu0  ;;  %v4908_v42 = vpop.f32.mrf.mxu1  ;;  %v24637_v43 = vld [vmem:[#allocation23_spill] sm:$0xff] }
 0x28f   :  { %v21048_v8 = vadd.f32 %v4805_v49, %v20892_v51  ;;  %v21051_v4 = vadd.f32 %v4908_v42, %v20895_v62 }
 0x290   :  { %v4807_v0 = vpop.f32.mrf.mxu0  ;;  %v4910_v20 = vpop.f32.mrf.mxu1 }
 0x291   :  { %24596 = vst [vmem:[#allocation52_spill] sm:$0xff] %v21048_v8  ;;  %24597 = vst [vmem:[#allocation53_spill] sm:$0xff] %v21051_v4  ;;  %v21054_v59 = vadd.f32 %v4807_v0, %v20898_v24  ;;  %v21057_v55 = vadd.f32 %v4910_v20, %v20901_v37  ;;  %v24500_v24 = vlaneseq  ;;  %v24615_v4 = vld [vmem:[#allocation4_spill] sm:$0xff]  ;;  %v24617_v8 = vld [vmem:[#allocation3_spill] sm:$0xff] }
 0x292   :  { %v4809_v60 = vpop.f32.mrf.mxu0  ;;  %v4912_v14 = vpop.f32.mrf.mxu1 }
 0x293   :  { %24598 = vst [vmem:[#allocation54_spill] sm:$0xff] %v21054_v59  ;;  %24599 = vst [vmem:[#allocation55_spill] sm:$0xff] %v21057_v55  ;;  %v21060_v28 = vadd.f32 %v4809_v60, %v20904_v54  ;;  %v21063_v58 = vadd.f32 %v4912_v14, %v20907_v9  ;;  %v21078_v20 = vshrl.u32 %v24500_v24, 7  ;;  %v3488_v60 = vadd.f32 %v20618_v11, %v20291_v2  ;;  %v24614_v55 = vld [vmem:[#allocation10_spill] sm:$0xff] }
 0x294   :  { %v21065_v51 = vpop.f32.mrf.mxu0  ;;  %v21067_v62 = vpop.f32.mrf.mxu1  ;;  %v3490_v14 = vadd.f32 %v20620_v48, %v20294_v61  ;;  %v3496_v24 = vadd.f32 %v20648_v38, %v20347_v46  ;;  %v3504_v11 = vadd.f32 %v20678_v44, %v20403_v6  ;;  %v24613_v48 = vld [vmem:[#allocation2_spill] sm:$0xff]  ;;  %v24616_v46 = vld [vmem:[#allocation11_spill] sm:$0xff]  ;;  %v24623_v61 = vld [vmem:[#allocation12_spill] sm:$0xff] }
 0x295   :  { %24600 = vst [vmem:[#allocation56_spill] sm:$0xff] %v21060_v28  ;;  %24601 = vst [vmem:[#allocation57_spill] sm:$0xff] %v21063_v58  ;;  %v21089_v58 = vsub.s32 0, %v21078_v20  ;;  %v21092_v28 = vsub.s32 2, %v21078_v20  ;;  %v21102_v2 = vsub.s32 1, %v21078_v20  ;;  %v3506_v59 = vadd.f32 %v24614_v55, %v24613_v48  ;;  %v24625_v6 = vld [vmem:[#allocation6_spill] sm:$0xff] }
 0x296   :  { %24602 = vst [vmem:[#allocation58_spill] sm:$0xff] %v21065_v51  ;;  %24603 = vst [vmem:[#allocation59_spill] sm:$0xff] %v21067_v62  ;;  %v21069_v49 = vpop.f32.mrf.mxu0  ;;  %v21071_v42 = vpop.f32.mrf.mxu1  ;;  %v3512_v38 = vadd.f32 %v24616_v46, %v24615_v4  ;;  %v3522_v50 = vadd.f32 %v24624_v53, %v24623_v61  ;;  %v24626_v44 = vld [vmem:[#allocation16_spill] sm:$0xff]  ;;  %v24627_v55 = vld [vmem:[#allocation7_spill] sm:$0xff] }
 0x297   :  { %24604 = vst [vmem:[#allocation60_spill] sm:$0xff] %v21069_v49  ;;  %24605 = vst [vmem:[#allocation61_spill] sm:$0xff] %v21071_v42  ;;  %v24621_v42 = vld [vmem:[#allocation5_spill] sm:$0xff]  ;;  %v24622_v49 = vld [vmem:[#allocation14_spill] sm:$0xff]  ;;  %v3528_v47 = vadd.f32 %v24626_v44, %v24625_v6 }
 0x298   :  { %v21073_v0 = vpop.f32.mrf.mxu0  ;;  %v21075_v37 = vpop.f32.mrf.mxu1  ;;  %24608 = vst [vmem:[#allocation64_spill] sm:$0xff] %v21078_v20  ;;  %24611 = vst [vmem:[#allocation67_spill] sm:$0xff] %v21089_v58  ;;  %v3520_v1 = vadd.f32 %v24622_v49, %v24621_v42  ;;  %v24628_v48 = vld [vmem:[#allocation17_spill] sm:$0xff]  ;;  %v24629_v4 = vld [vmem:[#allocation8_spill] sm:$0xff] }
 0x299   :  { %24606 = vst [vmem:[#allocation62_spill] sm:$0xff] %v21073_v0  ;;  %24607 = vst [vmem:[#allocation63_spill] sm:$0xff] %v21075_v37  ;;  %v3530_v62 = vadd.f32 %v24628_v48, %v24627_v55  ;;  %v24630_v46 = vld [vmem:[#allocation18_spill] sm:$0xff]  ;;  %v24633_v55 = vsub.s32 3, %v21078_v20 }
 0x29a   :  { %v21080_v54 = vpop.f32.mrf.mxu0  ;;  %v21082_v9 = vpop.f32.mrf.mxu1  ;;  %24612 = vst [vmem:[#allocation68_spill] sm:$0xff] %v21092_v28  ;;  %v21127_v51 = vadd.f32 %v24630_v46, %v24629_v4  ;;  %v24634_v4 = vld [vmem:[#allocation20_spill] sm:$0xff] }
 0x29b   :  { %24609 = vst [vmem:[#allocation65_spill] sm:$0xff] %v21080_v54  ;;  %24610 = vst [vmem:[#allocation66_spill] sm:$0xff] %v21082_v9  ;;  %v3498_v54 = vadd.f32 %v20650_v7, %v20350_v30  ;;  %v5705_v9 = vld [vmem:[%s24488_s7] sm:$0xf]  ;;  %v24618_v30 = vld [vmem:[#allocation13_spill] sm:$0xff]  ;;  %v4210_v46 = vadd.f32 %v24634_v4, %v3488_v60 }
 0x29c   :  { %v3514_v7 = vadd.f32 %v24618_v30, %v24617_v8  ;;  %v21113_v37 = vpop.f32.mrf.mxu0  ;;  %v21115_v0 = vpop.f32.mrf.mxu1  ;;  %v24631_v8 = vld [vmem:[#allocation9_spill] sm:$0xff]  ;;  %v24632_v30 = vld [vmem:[#allocation19_spill] sm:$0xff]  ;;  %v21134_v49 = vrot.slane %v5705_v9, %v21089_v58  ;;  %v21137_v53 = vrot.slane %v5705_v9, %v21092_v28  ;;  %v21142_v44 = vrot.slane %v5705_v9, %v21102_v2  ;;  %v24636_v58 = vld [vmem:[#allocation22_spill] sm:$0xff] }
 0x29d   :  { %24619 = vst [vmem:[#allocation2_spill] sm:$0xff] %v21113_v37  ;;  %24620 = vst [vmem:[#allocation10_spill] sm:$0xff] %v21115_v0  ;;  %v21131_v37 = vadd.f32 %v24632_v30, %v24631_v8  ;;  %v21146_v48 = vrot.slane %v5705_v9, %v24633_v55  ;;  %v24635_v8 = vld [vmem:[#allocation21_spill] sm:$0xff]  ;;  %v4218_v26 = vadd.f32 %v24636_v58, %v3496_v24  ;;  %v24640_v55 = vld [vmem:[#allocation26_spill] sm:$0xff] }
 0x29e   :  { %v4212_v30 = vadd.f32 %v24635_v8, %v3490_v14  ;;  %v4220_v28 = vadd.f32 %v24637_v43, %v3498_v54  ;;  %v21161_v60 = vadd.f32 %v24640_v55, %v3512_v38  ;;  %v24641_v14 = vld [vmem:[#allocation27_spill] sm:$0xff] }
 0x29f   :  { %v21164_v4 = vadd.f32 %v24641_v14, %v3514_v7  ;;  %v24645_v55 = vld [vmem:[#allocation31_spill] sm:$0xff] }
 0x2a2   :  { %v5477_v0 = vpop.f32.mrf.mxu0  ;;  %v5580_v42 = vpop.f32.mrf.mxu1 }
 0x2a3   :  { %v5649_v61 = vadd.f32 %v5477_v0, %v20936_v10  ;;  %v5651_v6 = vadd.f32 %v5580_v42, %v20939_v5  ;;  %v24638_v10 = vld [vmem:[#allocation24_spill] sm:$0xff]  ;;  %v24639_v5 = vld [vmem:[#allocation25_spill] sm:$0xff] }
 0x2a4   :  { %v5479_v18 = vpop.f32.mrf.mxu0  ;;  %v5582_v17 = vpop.f32.mrf.mxu1  ;;  %v21153_v0 = vadd.f32 %v24638_v10, %v3504_v11  ;;  %v21156_v42 = vadd.f32 %v24639_v5, %v3506_v59  ;;  %v24642_v11 = vld [vmem:[#allocation28_spill] sm:$0xff]  ;;  %v24643_v59 = vld [vmem:[#allocation29_spill] sm:$0xff]  ;;  %v24644_v5 = vld [vmem:[#allocation30_spill] sm:$0xff] }
 0x2a5   :  { %v5650_v20 = vadd.f32 %v5479_v18, %v20942_v27  ;;  %v5652_v9 = vadd.f32 %v5582_v17, %v20945_v19  ;;  %v5727_v58 = vadd.f32 %v21134_v49, %v5649_v61  ;;  %v5729_v43 = vadd.f32 %v21137_v53, %v5651_v6 }
 0x2a6   :  { %v5481_v24 = vpop.f32.mrf.mxu0  ;;  %v5584_v54 = vpop.f32.mrf.mxu1  ;;  %v21169_v8 = vadd.f32 %v24642_v11, %v3520_v1  ;;  %v21172_v10 = vadd.f32 %v24643_v59, %v3522_v50  ;;  %v4932_v27 = vadd.f32 %v20953_v45, %v4210_v46  ;;  %v4934_v19 = vadd.f32 %v20955_v35, %v4212_v30 }
 0x2a7   :  { %v5728_v17 = vadd.f32 %v21142_v44, %v5650_v20  ;;  %v5730_v18 = vadd.f32 %v21146_v48, %v5652_v9  ;;  %v5653_v38 = vadd.f32 %v5481_v24, %v20948_v13  ;;  %v5655_v7 = vadd.f32 %v5584_v54, %v20951_v22 }
 0x2a8   :  { %v5483_v61 = vpop.f32.mrf.mxu0  ;;  %v5586_v6 = vpop.f32.mrf.mxu1  ;;  %v21181_v1 = vadd.f32 %v24644_v5, %v3528_v47  ;;  %v21184_v50 = vadd.f32 %v24645_v55, %v3530_v62  ;;  %v5783_v46 = vmax.f32 %v5727_v58, 0.0  ;;  %v5785_v35 = vmax.f32 %v5729_v43, 0.0 }
 0x2a9   :  { %v5654_v14 = vadd.f32 %v5483_v61, %v4932_v27  ;;  %v5656_v45 = vadd.f32 %v5586_v6, %v4934_v19  ;;  %v5731_v20 = vadd.f32 %v21134_v49, %v5653_v38  ;;  %v5733_v30 = vadd.f32 %v21137_v53, %v5655_v7 }
 0x2aa   :  { %v5487_v9 = vpop.f32.mrf.mxu0  ;;  %v5590_v13 = vpop.f32.mrf.mxu1  ;;  %v5784_v62 = vmax.f32 %v5728_v17, 0.0  ;;  %v5786_v11 = vmax.f32 %v5730_v18, 0.0  ;;  %v4940_v55 = vadd.f32 %v20975_v33, %v4218_v26 }
 0x2ab   :  { %v5732_v22 = vadd.f32 %v21142_v44, %v5654_v14  ;;  %v5734_v24 = vadd.f32 %v21146_v48, %v5656_v45  ;;  %v5657_v47 = vadd.f32 %v5487_v9, %v20958_v41  ;;  %v5659_v54 = vadd.f32 %v5590_v13, %v20961_v57 }
 0x2ac   :  { %v5787_v59 = vmax.f32 %v5731_v20, 0.0  ;;  %v5789_v27 = vmax.f32 %v5733_v30, 0.0  ;;  %v5489_v58 = vpop.f32.mrf.mxu0  ;;  %v5592_v43 = vpop.f32.mrf.mxu1  ;;  %v4942_v14 = vadd.f32 %v20977_v36, %v4220_v28 }
 0x2ad   :  { %v5788_v19 = vmax.f32 %v5732_v22, 0.0  ;;  %v5790_v38 = vmax.f32 %v5734_v24, 0.0  ;;  %v5735_v7 = vadd.f32 %v21134_v49, %v5657_v47  ;;  %v5737_v61 = vadd.f32 %v21137_v53, %v5659_v54 }
 0x2ae   :  { %v21194_v6 = vpack.c.bf16 %v5787_v59, %v5783_v46  ;;  %v21196_v5 = vpack.c.bf16 %v5789_v27, %v5785_v35  ;;  %v5658_v41 = vadd.f32 %v5489_v58, %v20964_v52  ;;  %v5660_v57 = vadd.f32 %v5592_v43, %v20967_v40  ;;  %v5491_v17 = vpop.f32.mrf.mxu0  ;;  %v5594_v18 = vpop.f32.mrf.mxu1 }
 0x2af   :  { %v5661_v45 = vadd.f32 %v5491_v17, %v20970_v25  ;;  %v5663_v20 = vadd.f32 %v5594_v18, %v20973_v56  ;;  %v21206_v13 = vpack.c.bf16 %v5788_v19, %v5784_v62  ;;  %v21208_v52 = vpack.c.bf16 %v5790_v38, %v5786_v11 }
 0x2b0   :  { %v5736_v30 = vadd.f32 %v21142_v44, %v5658_v41  ;;  %v5738_v46 = vadd.f32 %v21146_v48, %v5660_v57  ;;  %v5493_v35 = vpop.f32.mrf.mxu0  ;;  %v5596_v9 = vpop.f32.mrf.mxu1  ;;  %v4948_v25 = vadd.f32 %v20999_v15, %v21153_v0  ;;  %v4950_v56 = vadd.f32 %v21001_v21, %v21156_v42 }
 0x2b1   :  { %v5739_v40 = vadd.f32 %v21134_v49, %v5661_v45  ;;  %v5741_v33 = vadd.f32 %v21137_v53, %v5663_v20  ;;  %v5662_v26 = vadd.f32 %v5493_v35, %v4940_v55  ;;  %v5664_v28 = vadd.f32 %v5596_v9, %v4942_v14  ;;  %v24646_v20 = vld [vmem:[#allocation38_spill] sm:$0xff] }
 0x2b2   :  { %v5791_v36 = vmax.f32 %v5735_v7, 0.0  ;;  %v5793_v22 = vmax.f32 %v5737_v61, 0.0  ;;  %v5497_v24 = vpop.f32.mrf.mxu0  ;;  %v5600_v47 = vpop.f32.mrf.mxu1  ;;  %v5792_v27 = vmax.f32 %v5736_v30, 0.0  ;;  %v5794_v58 = vmax.f32 %v5738_v46, 0.0  ;;  %v24647_v46 = vld [vmem:[#allocation39_spill] sm:$0xff] }
 0x2b3   :  { %v5795_v54 = vmax.f32 %v5739_v40, 0.0  ;;  %v5797_v62 = vmax.f32 %v5741_v33, 0.0  ;;  %v5740_v11 = vadd.f32 %v21142_v44, %v5662_v26  ;;  %v5742_v59 = vadd.f32 %v21146_v48, %v5664_v28 }
 0x2b4   :  { %v5665_v43 = vadd.f32 %v5497_v24, %v20980_v16  ;;  %v5667_v19 = vadd.f32 %v5600_v47, %v20983_v3  ;;  %v5499_v15 = vpop.f32.mrf.mxu0  ;;  %v5602_v0 = vpop.f32.mrf.mxu1  ;;  %v21236_v30 = vadd.f32 %v24646_v20, %v21127_v51  ;;  %v21240_v35 = vadd.f32 %v24647_v46, %v21131_v37 }
 0x2b5   :  { %v21220_v38 = vpack.c.bf16 %v5795_v54, %v5791_v36  ;;  %v21222_v21 = vpack.c.bf16 %v5797_v62, %v5793_v22  ;;  %v5796_v42 = vmax.f32 %v5740_v11, 0.0  ;;  %v5798_v7 = vmax.f32 %v5742_v59, 0.0 }
 0x2b6   :  { %v5743_v61 = vadd.f32 %v21134_v49, %v5665_v43  ;;  %v5745_v41 = vadd.f32 %v21137_v53, %v5667_v19  ;;  %v5666_v57 = vadd.f32 %v5499_v15, %v20986_v39  ;;  %v5668_v17 = vadd.f32 %v5602_v0, %v20989_v31  ;;  %v5501_v18 = vpop.f32.mrf.mxu0  ;;  %v5604_v16 = vpop.f32.mrf.mxu1  ;;  %v24648_v0 = vld [vmem:[#allocation40_spill] sm:$0xff] }
 0x2b7   :  { %v5669_v3 = vadd.f32 %v5501_v18, %v20992_v12  ;;  %v5671_v55 = vadd.f32 %v5604_v16, %v20995_v63  ;;  %v21230_v14 = vpack.c.bf16 %v5796_v42, %v5792_v27  ;;  %v21232_v45 = vpack.c.bf16 %v5798_v7, %v5794_v58  ;;  %v24649_v7 = vld [vmem:[#allocation41_spill] sm:$0xff] }
 0x2b8   :  { %v5744_v39 = vadd.f32 %v21142_v44, %v5666_v57  ;;  %v5746_v31 = vadd.f32 %v21146_v48, %v5668_v17  ;;  %v5503_v9 = vpop.f32.mrf.mxu0  ;;  %v5606_v12 = vpop.f32.mrf.mxu1  ;;  %v4956_v51 = vadd.f32 %v21021_v32, %v21161_v60  ;;  %v4958_v28 = vadd.f32 %v21023_v29, %v21164_v4  ;;  %v24650_v57 = vld [vmem:[#allocation42_spill] sm:$0xff]  ;;  %v24651_v17 = vld [vmem:[#allocation43_spill] sm:$0xff] }
 0x2b9   :  { %v5747_v63 = vadd.f32 %v21134_v49, %v5669_v3  ;;  %v5749_v40 = vadd.f32 %v21137_v53, %v5671_v55  ;;  %v5670_v33 = vadd.f32 %v5503_v9, %v4948_v25  ;;  %v5672_v26 = vadd.f32 %v5606_v12, %v4950_v56  ;;  %v24652_v55 = vld [vmem:[#allocation50_spill] sm:$0xff] }
 0x2ba   :  { %v5799_v37 = vmax.f32 %v5743_v61, 0.0  ;;  %v5801_v36 = vmax.f32 %v5745_v41, 0.0  ;;  %v5507_v22 = vpop.f32.mrf.mxu0  ;;  %v5610_v24 = vpop.f32.mrf.mxu1  ;;  %v5800_v59 = vmax.f32 %v5744_v39, 0.0  ;;  %v5802_v27 = vmax.f32 %v5746_v31, 0.0 }
 0x2bb   :  { %v5803_v47 = vmax.f32 %v5747_v63, 0.0  ;;  %v5805_v54 = vmax.f32 %v5749_v40, 0.0  ;;  %v5748_v62 = vadd.f32 %v21142_v44, %v5670_v33  ;;  %v5750_v11 = vadd.f32 %v21146_v48, %v5672_v26 }
 0x2bc   :  { %v5673_v25 = vadd.f32 %v5507_v22, %v21004_v23  ;;  %v5675_v56 = vadd.f32 %v5610_v24, %v21007_v34  ;;  %v5509_v32 = vpop.f32.mrf.mxu0  ;;  %v5612_v60 = vpop.f32.mrf.mxu1  ;;  %v4964_v20 = vadd.f32 %v24652_v55, %v21169_v8 }
 0x2bd   :  { %v21254_v58 = vpack.c.bf16 %v5803_v47, %v5799_v37  ;;  %v21256_v29 = vpack.c.bf16 %v5805_v54, %v5801_v36  ;;  %v5804_v4 = vmax.f32 %v5748_v62, 0.0  ;;  %v5806_v43 = vmax.f32 %v5750_v11, 0.0  ;;  %v24653_v37 = vld [vmem:[#allocation51_spill] sm:$0xff] }
 0x2be   :  { %v5751_v19 = vadd.f32 %v21134_v49, %v5673_v25  ;;  %v5753_v15 = vadd.f32 %v21137_v53, %v5675_v56  ;;  %v5674_v42 = vadd.f32 %v5509_v32, %v24648_v0  ;;  %v5676_v61 = vadd.f32 %v5612_v60, %v24649_v7  ;;  %v5511_v41 = vpop.f32.mrf.mxu0  ;;  %v5614_v23 = vpop.f32.mrf.mxu1  ;;  %v24654_v25 = vld [vmem:[#allocation58_spill] sm:$0xff]  ;;  %v24657_v60 = vld [vmem:[#allocation45_spill] sm:$0xff] }
 0x2bf   :  { %v5677_v34 = vadd.f32 %v5511_v41, %v24650_v57  ;;  %v5679_v18 = vadd.f32 %v5614_v23, %v24651_v17  ;;  %v21264_v16 = vpack.c.bf16 %v5804_v4, %v5800_v59  ;;  %v21266_v3 = vpack.c.bf16 %v5806_v43, %v5802_v27  ;;  %v24658_v41 = vld [vmem:[#allocation46_spill] sm:$0xff] }
 0x2c0   :  { %v5807_v46 = vmax.f32 %v5751_v19, 0.0  ;;  %v5752_v39 = vadd.f32 %v21142_v44, %v5674_v42  ;;  %v5754_v31 = vadd.f32 %v21146_v48, %v5676_v61  ;;  %v5513_v9 = vpop.f32.mrf.mxu0  ;;  %v5616_v12 = vpop.f32.mrf.mxu1  ;;  %v4966_v36 = vadd.f32 %v24653_v37, %v21172_v10  ;;  %v24656_v10 = vld [vmem:[#allocation44_spill] sm:$0xff] }
 0x2c1   :  { %v5755_v63 = vadd.f32 %v21134_v49, %v5677_v34  ;;  %v5757_v40 = vadd.f32 %v21137_v53, %v5679_v18  ;;  %v5678_v33 = vadd.f32 %v5513_v9, %v4956_v51  ;;  %v5680_v26 = vadd.f32 %v5616_v12, %v4958_v28  ;;  %v24655_v51 = vld [vmem:[#allocation59_spill] sm:$0xff]  ;;  %v24660_v18 = vld [vmem:[#allocation48_spill] sm:$0xff] }
 0x2c2   :  { %v5809_v22 = vmax.f32 %v5753_v15, 0.0  ;;  %v5808_v24 = vmax.f32 %v5752_v39, 0.0  ;;  %v5810_v47 = vmax.f32 %v5754_v31, 0.0  ;;  %v5517_v8 = vpop.f32.mrf.mxu0  ;;  %v5620_v54 = vpop.f32.mrf.mxu1  ;;  %v21280_v56 = vadd.f32 %v24654_v25, %v21181_v1  ;;  %v24661_v39 = vld [vmem:[#allocation49_spill] sm:$0xff] }
 0x2c3   :  { %v5811_v62 = vmax.f32 %v5755_v63, 0.0  ;;  %v5813_v11 = vmax.f32 %v5757_v40, 0.0  ;;  %v5756_v59 = vadd.f32 %v21142_v44, %v5678_v33  ;;  %v5758_v27 = vadd.f32 %v21146_v48, %v5680_v26 }
 0x2c4   :  { %v21284_v28 = vadd.f32 %v24655_v51, %v21184_v50  ;;  %v5681_v32 = vadd.f32 %v5517_v8, %v24656_v10  ;;  %v5683_v4 = vadd.f32 %v5620_v54, %v24657_v60  ;;  %v5519_v43 = vpop.f32.mrf.mxu0  ;;  %v5622_v19 = vpop.f32.mrf.mxu1  ;;  %v24659_v50 = vld [vmem:[#allocation47_spill] sm:$0xff] }
 0x2c5   :  { %v21288_v15 = vpack.c.bf16 %v5811_v62, %v5807_v46  ;;  %v21290_v0 = vpack.c.bf16 %v5813_v11, %v5809_v22  ;;  %v5812_v42 = vmax.f32 %v5756_v59, 0.0  ;;  %v5814_v7 = vmax.f32 %v5758_v27, 0.0  ;;  %v24662_v11 = vld [vmem:[#allocation32_spill] sm:$0xff]  ;;  %v24664_v27 = vld [vmem:[#allocation33_spill] sm:$0xff] }
 0x2c6   :  { %v5759_v61 = vadd.f32 %v21134_v49, %v5681_v32  ;;  %v5761_v1 = vadd.f32 %v21137_v53, %v5683_v4  ;;  %v5682_v23 = vadd.f32 %v5519_v43, %v24658_v41  ;;  %v5684_v57 = vadd.f32 %v5622_v19, %v24659_v50  ;;  %v5521_v34 = vpop.f32.mrf.mxu0  ;;  %v5624_v17 = vpop.f32.mrf.mxu1  ;;  %v24663_v59 = vld [vmem:[#allocation60_spill] sm:$0xff] }
 0x2c7   :  { %v5685_v55 = vadd.f32 %v5521_v34, %v24660_v18  ;;  %v5687_v31 = vadd.f32 %v5624_v17, %v24661_v39  ;;  %v21298_v46 = vpack.c.bf16 %v5812_v42, %v5808_v24  ;;  %v21300_v9 = vpack.c.bf16 %v5814_v7, %v5810_v47  ;;  %v24665_v47 = vld [vmem:[#allocation61_spill] sm:$0xff]  ;;  %v24666_v7 = vld [vmem:[#allocation34_spill] sm:$0xff] }
 0x2c8   :  { %v5815_v12 = vmax.f32 %v5759_v61, 0.0  ;;  %v5817_v63 = vmax.f32 %v5761_v1, 0.0  ;;  %v5760_v40 = vadd.f32 %v21142_v44, %v5682_v23  ;;  %v5762_v33 = vadd.f32 %v21146_v48, %v5684_v57  ;;  %v5523_v26 = vpop.f32.mrf.mxu0  ;;  %v5626_v37 = vpop.f32.mrf.mxu1  ;;  %v24667_v61 = vld [vmem:[#allocation62_spill] sm:$0xff]  ;;  %v24669_v1 = vld [vmem:[#allocation63_spill] sm:$0xff]  ;;  %v24670_v23 = vld [vmem:[#allocation52_spill] sm:$0xff] }
 0x2c9   :  { %v5763_v22 = vadd.f32 %v21134_v49, %v5685_v55  ;;  %v5765_v8 = vadd.f32 %v21137_v53, %v5687_v31  ;;  %v5686_v54 = vadd.f32 %v5523_v26, %v4964_v20  ;;  %v5688_v62 = vadd.f32 %v5626_v37, %v4966_v36  ;;  %v24668_v36 = vld [vmem:[#allocation35_spill] sm:$0xff]  ;;  %v24671_v57 = vld [vmem:[#allocation53_spill] sm:$0xff]  ;;  %v24672_v37 = vld [vmem:[#allocation54_spill] sm:$0xff] }
 0x2ca   :  { %v4975_v24 = vadd.f32 %v24663_v59, %v24662_v11  ;;  %v4977_v25 = vadd.f32 %v24665_v47, %v24664_v27  ;;  %v5816_v51 = vmax.f32 %v5760_v40, 0.0  ;;  %v5818_v10 = vmax.f32 %v5762_v33, 0.0  ;;  %v5527_v32 = vpop.f32.mrf.mxu0  ;;  %v5630_v60 = vpop.f32.mrf.mxu1  ;;  %v24674_v59 = vld [vmem:[#allocation56_spill] sm:$0xff]  ;;  %v24675_v47 = vld [vmem:[#allocation57_spill] sm:$0xff] }
 0x2cb   :  { %v5819_v4 = vmax.f32 %v5763_v22, 0.0  ;;  %v5821_v43 = vmax.f32 %v5765_v8, 0.0  ;;  %v5764_v19 = vadd.f32 %v21142_v44, %v5686_v54  ;;  %v5766_v42 = vadd.f32 %v21146_v48, %v5688_v62  ;;  %v24673_v8 = vld [vmem:[#allocation55_spill] sm:$0xff] }
 0x2cc   :  { %v4976_v20 = vadd.f32 %v24667_v61, %v24666_v7  ;;  %v4978_v41 = vadd.f32 %v24669_v1, %v24668_v36  ;;  %v5689_v50 = vadd.f32 %v5527_v32, %v24670_v23  ;;  %v5691_v34 = vadd.f32 %v5630_v60, %v24671_v57  ;;  %v5529_v17 = vpop.f32.mrf.mxu0  ;;  %v5632_v18 = vpop.f32.mrf.mxu1  ;;  %v24678_v57 = vld [vmem:[#allocation37_spill] sm:$0xff] }
 0x2cd   :  { %v21318_v55 = vpack.c.bf16 %v5819_v4, %v5815_v12  ;;  %v21320_v39 = vpack.c.bf16 %v5821_v43, %v5817_v63  ;;  %v5820_v31 = vmax.f32 %v5764_v19, 0.0  ;;  %v5822_v40 = vmax.f32 %v5766_v42, 0.0 }
 0x2ce   :  { %v5767_v33 = vadd.f32 %v21134_v49, %v5689_v50  ;;  %v5769_v26 = vadd.f32 %v21137_v53, %v5691_v34  ;;  %v5690_v22 = vadd.f32 %v5529_v17, %v24672_v37  ;;  %v5692_v54 = vadd.f32 %v5632_v18, %v24673_v8  ;;  %v5531_v62 = vpop.f32.mrf.mxu0  ;;  %v5634_v11 = vpop.f32.mrf.mxu1  ;;  %v24677_v50 = vld [vmem:[#allocation65_spill] sm:$0xff]  ;;  %v24679_v34 = vld [vmem:[#allocation66_spill] sm:$0xff] }
 0x2cf   :  { %v5693_v27 = vadd.f32 %v5531_v62, %v24674_v59  ;;  %v5695_v32 = vadd.f32 %v5634_v11, %v24675_v47  ;;  %v21328_v12 = vpack.c.bf16 %v5820_v31, %v5816_v51  ;;  %v21330_v63 = vpack.c.bf16 %v5822_v40, %v5818_v10  ;;  %v24676_v51 = vld [vmem:[#allocation36_spill] sm:$0xff] }
 0x2d0   :  { %v5823_v60 = vmax.f32 %v5767_v33, 0.0  ;;  %v5825_v4 = vmax.f32 %v5769_v26, 0.0  ;;  %v5768_v43 = vadd.f32 %v21142_v44, %v5690_v22  ;;  %v5770_v19 = vadd.f32 %v21146_v48, %v5692_v54  ;;  %v5533_v42 = vpop.f32.mrf.mxu0  ;;  %v5636_v7 = vpop.f32.mrf.mxu1 }
 0x2d1   :  { %v5771_v61 = vadd.f32 %v21134_v49, %v5693_v27  ;;  %v5773_v36 = vadd.f32 %v21137_v53, %v5695_v32  ;;  %v5694_v1 = vadd.f32 %v5533_v42, %v21280_v56  ;;  %v5696_v23 = vadd.f32 %v5636_v7, %v21284_v28  ;;  %v24680_v56 = vld [vmem:[#allocation2_spill] sm:$0xff] }
 0x2d2   :  { %v4979_v10 = vadd.f32 %v24677_v50, %v24676_v51  ;;  %v4981_v17 = vadd.f32 %v24679_v34, %v24678_v57  ;;  %v5824_v18 = vmax.f32 %v5768_v43, 0.0  ;;  %v5826_v31 = vmax.f32 %v5770_v19, 0.0  ;;  %v5537_v40 = vpop.f32.mrf.mxu0  ;;  %v5640_v33 = vpop.f32.mrf.mxu1  ;;  %v24681_v28 = vld [vmem:[#allocation10_spill] sm:$0xff] }
 0x2d3   :  { %v5827_v26 = vmax.f32 %v5771_v61, 0.0  ;;  %v5829_v37 = vmax.f32 %v5773_v36, 0.0  ;;  %v5772_v22 = vadd.f32 %v21142_v44, %v5694_v1  ;;  %v5774_v8 = vadd.f32 %v21146_v48, %v5696_v23 }
 0x2d4   :  { %v4980_v54 = vadd.f32 %v24680_v56, %v21236_v30  ;;  %v4982_v62 = vadd.f32 %v24681_v28, %v21240_v35  ;;  %v5697_v11 = vadd.f32 %v5537_v40, %v4975_v24  ;;  %v5699_v59 = vadd.f32 %v5640_v33, %v4977_v25  ;;  %v5539_v27 = vpop.f32.mrf.mxu0  ;;  %v5642_v47 = vpop.f32.mrf.mxu1 }
 0x2d5   :  { %v5859_v32 = vpack.c.bf16 %v5827_v26, %v5823_v60  ;;  %v5861_v43 = vpack.c.bf16 %v5829_v37, %v5825_v4  ;;  %v5828_v19 = vmax.f32 %v5772_v22, 0.0  ;;  %v5830_v42 = vmax.f32 %v5774_v8, 0.0 }
 0x2d6   :  { %v5775_v7 = vadd.f32 %v21134_v49, %v5697_v11  ;;  %v5777_v61 = vadd.f32 %v21137_v53, %v5699_v59  ;;  %v5698_v36 = vadd.f32 %v5539_v27, %v4976_v20  ;;  %v5700_v1 = vadd.f32 %v5642_v47, %v4978_v41  ;;  %v5541_v23 = vpop.f32.mrf.mxu0  ;;  %v5644_v51 = vpop.f32.mrf.mxu1  ;;  %v16990_v27 = vld [vmem:[%s24489_s3 + $0x2d0] ss:$12 sps:$4 sm:$0xff]  }
 0x2d7   :  { %v5701_v30 = vadd.f32 %v5541_v23, %v4979_v10  ;;  %v5703_v50 = vadd.f32 %v5644_v51, %v4981_v17  ;;  %v5860_v57 = vpack.c.bf16 %v5828_v19, %v5824_v18  ;;  %v5862_v35 = vpack.c.bf16 %v5830_v42, %v5826_v31  ;;  %v16998_v47 = vld [vmem:[%s24489_s3 + $0x2bc] ss:$12 sps:$4 sm:$0xff]   ;;  %v17002_v19 = vld [vmem:[%s24489_s3 + $0x2a4] ss:$12 sps:$4 sm:$0xff]   ;;  %v17000_v42 = vld [vmem:[%s24489_s3 + $0x2a0] ss:$12 sps:$4 sm:$0xff]  }
 0x2d8   :  { %v5776_v24 = vadd.f32 %v21142_v44, %v5698_v36  ;;  %v5778_v25 = vadd.f32 %v21146_v48, %v5700_v1  ;;  %v5543_v60 = vpop.f32.mrf.mxu0  ;;  %v5646_v4 = vpop.f32.mrf.mxu1  ;;  %v5831_v20 = vmax.f32 %v5775_v7, 0.0  ;;  %v5833_v41 = vmax.f32 %v5777_v61, 0.0  ;;  %v16963_v7 = vld [vmem:[%s24487_s1 + $0x20] sm:$0xff]   ;;  %v16964_v61 = vld [vmem:[%s24487_s1 + $0x28] sm:$0xff]   ;;  %v16989_v36 = vld [vmem:[%s24487_s1 + $0x30] sm:$0xff]  }
 0x2d9   :  { %v5779_v34 = vadd.f32 %v21134_v49, %v5701_v30  ;;  %v5781_v40 = vadd.f32 %v21137_v53, %v5703_v50  ;;  %v5702_v33 = vadd.f32 %v5543_v60, %v4980_v54  ;;  %v5704_v26 = vadd.f32 %v5646_v4, %v4982_v62  ;;  %v16967_v53 = vld [vmem:[%s24489_s3 + $0x4cc] ss:$12 sps:$4 sm:$0xff]   ;;  %v17003_v54 = vld [vmem:[%s24489_s3 + $0x468] ss:$12 sps:$4 sm:$0xff]   ;;  %v17009_v23 = vld [vmem:[%s24487_s1 + $0x40] sm:$0xff]  }
 0x2da   :  { %v5832_v18 = vmax.f32 %v5776_v24, 0.0  ;;  %v5834_v31 = vmax.f32 %v5778_v25, 0.0  ;;  %v16992_v62 = vld [vmem:[%s24489_s3 + $0x2d4] ss:$12 sps:$4 sm:$0xff]   ;;  %v16999_v1 = vld [vmem:[%s24487_s1 + $0x38] sm:$0xff]   ;;  %v17022_v50 = vld [vmem:[%s24487_s1 + $0x48] sm:$0xff]  }
 0x2db   :  { %v5835_v37 = vmax.f32 %v5779_v34, 0.0  ;;  %v5837_v22 = vmax.f32 %v5781_v40, 0.0  ;;  %v5780_v10 = vadd.f32 %v21142_v44, %v5702_v33  ;;  %v5782_v17 = vadd.f32 %v21146_v48, %v5704_v26  ;;  %v16970_v44 = vld [vmem:[%s24489_s3 + $0x34c] ss:$12 sps:$4 sm:$0xff]   ;;  %v16959_v48 = vld [vmem:[%s24487_s1] sm:$0xff]   ;;  %v17035_v33 = vld [vmem:[%s24487_s1 + $0x50] sm:$0xff]  }
 0x2dc   :  { %v17006_v51 = vld [vmem:[%s24489_s3 + $0x408] ss:$12 sps:$4 sm:$0xff]   ;;  %v17008_v30 = vld [vmem:[%s24489_s3 + $0x40c] ss:$12 sps:$4 sm:$0xff]   ;;  %v17010_v24 = vld [vmem:[%s24489_s3 + $0x3f0] ss:$12 sps:$4 sm:$0xff]  }
 0x2dd   :  { %v5863_v8 = vpack.c.bf16 %v5835_v37, %v5831_v20  ;;  %v5865_v56 = vpack.c.bf16 %v5837_v22, %v5833_v41  ;;  %v5836_v28 = vmax.f32 %v5780_v10, 0.0  ;;  %v5838_v11 = vmax.f32 %v5782_v17, 0.0  ;;  %v17013_v25 = vld [vmem:[%s24489_s3 + $0x450] ss:$12 sps:$4 sm:$0xff]   ;;  %v17016_v60 = vld [vmem:[%s24489_s3 + $0x3d8] ss:$12 sps:$4 sm:$0xff]  }
 0x2de   :  { %v17018_v4 = vld [vmem:[%s24489_s3 + $0x3dc] ss:$12 sps:$4 sm:$0xff]   ;;  %v17019_v34 = vld [vmem:[%s24489_s3 + $0x438] ss:$12 sps:$4 sm:$0xff]   ;;  %v17023_v41 = vld [vmem:[%s24489_s3 + $0x3c0] ss:$12 sps:$4 sm:$0xff]  }
 0x2df   :  { %v5864_v59 = vpack.c.bf16 %v5836_v28, %v5832_v18  ;;  %v5866_v49 = vpack.c.bf16 %v5838_v11, %v5834_v31  ;;  %v17021_v40 = vld [vmem:[%s24489_s3 + $0x43c] ss:$12 sps:$4 sm:$0xff]   ;;  %v17025_v26 = vld [vmem:[%s24489_s3 + $0x3c4] ss:$12 sps:$4 sm:$0xff]   ;;  %v17026_v37 = vld [vmem:[%s24489_s3 + $0x420] ss:$12 sps:$4 sm:$0xff]  }
 0x2e0   :  { %v17028_v20 = vld [vmem:[%s24489_s3 + $0x424] ss:$12 sps:$4 sm:$0xff]   ;;  %v17029_v22 = vld [vmem:[%s24489_s3 + $0x3a8] ss:$12 sps:$4 sm:$0xff]   ;;  %v17031_v10 = vld [vmem:[%s24489_s3 + $0x3ac] ss:$12 sps:$4 sm:$0xff]  }
 0x2e1   :  { %5989 = vmatprep.subr.bf16.mxu0 %v5864_v59  ;;  %6142 = vmatprep.subr.bf16.mxu1 %v5866_v49  ;;  %v17032_v17 = vld [vmem:[%s24489_s3 + $0x528] ss:$12 sps:$4 sm:$0xff]   ;;  %v17034_v18 = vld [vmem:[%s24489_s3 + $0x52c] ss:$12 sps:$4 sm:$0xff]   ;;  %v17039_v28 = vld [vmem:[%s24489_s3 + $0x510] ss:$12 sps:$4 sm:$0xff]  }
 0x2e2   :  { %5990 = vmatpush1.bf16.msra.mxu0 %v5863_v8  ;;  %6143 = vmatpush1.bf16.msra.mxu1 %v5865_v56  ;;  %v17038_v31 = vld [vmem:[%s24489_s3 + $0x394] ss:$12 sps:$4 sm:$0xff]   ;;  %v17036_v56 = vld [vmem:[%s24489_s3 + $0x390] ss:$12 sps:$4 sm:$0xff]   ;;  %v17042_v59 = vld [vmem:[%s24489_s3 + $0x378] ss:$12 sps:$4 sm:$0xff]  }
 0x2e3   :  { %5991 = vmatprep.subr.bf16.mxu0 %v5860_v57  ;;  %6144 = vmatprep.subr.bf16.mxu1 %v5862_v35  ;;  %v17012_v57 = vld [vmem:[%s24489_s3 + $0x3f4] ss:$12 sps:$4 sm:$0xff]   ;;  %v17048_v11 = vld [vmem:[%s24487_s1 + $0x58] sm:$0xff]  }
 0x2e4   :  { %v17015_v35 = vld [vmem:[%s24489_s3 + $0x454] ss:$12 sps:$4 sm:$0xff]   ;;  %v17044_v49 = vld [vmem:[%s24489_s3 + $0x37c] ss:$12 sps:$4 sm:$0xff]  }
 0x2e5   :  { %v17041_v8 = vld [vmem:[%s24489_s3 + $0x514] ss:$12 sps:$4 sm:$0xff]  }
 0x2e6   :  { %5992 = vmatpush1.bf16.msra.mxu0 %v5859_v32  ;;  %6145 = vmatpush1.bf16.msra.mxu1 %v5861_v43  ;;  %v16962_v32 = vld [vmem:[%s24487_s1 + $0x18] sm:$0xff]  }
 0x2e7   :  { %5993 = vmatprep.subr.bf16.mxu0 %v21328_v12  ;;  %6146 = vmatprep.subr.bf16.mxu1 %v21330_v63  ;;  %v16961_v12 = vld [vmem:[%s24487_s1 + $0x10] sm:$0xff]   ;;  %v16996_v43 = vld [vmem:[%s24489_s3 + $0x2b8] ss:$12 sps:$4 sm:$0xff]  }
 0x2e8   :  { %v16986_v63 = vld [vmem:[%s24489_s3 + $0x2e8] ss:$12 sps:$4 sm:$0xff]  }
 0x2ea   :  { %5994 = vmatpush1.bf16.msra.mxu0 %v21318_v55  ;;  %6147 = vmatpush1.bf16.msra.mxu1 %v21320_v39  ;;  %v16988_v55 = vld [vmem:[%s24489_s3 + $0x2ec] ss:$12 sps:$4 sm:$0xff]  }
 0x2eb   :  { %5995 = vmatprep.subr.bf16.mxu0 %v21298_v46  ;;  %6148 = vmatprep.subr.bf16.mxu1 %v21300_v9  ;;  %v16980_v46 = vld [vmem:[%s24489_s3 + $0x300] ss:$12 sps:$4 sm:$0xff]  }
 0x2ec   :  { %v16993_v9 = vld [vmem:[%s24489_s3 + $0x480] ss:$12 sps:$4 sm:$0xff]  }
 0x2ed   :  { %v17005_v39 = vld [vmem:[%s24489_s3 + $0x46c] ss:$12 sps:$4 sm:$0xff]  }
 0x2ee   :  { %5996 = vmatpush1.bf16.msra.mxu0 %v21288_v15  ;;  %6149 = vmatpush1.bf16.msra.mxu1 %v21290_v0  ;;  %v16982_v15 = vld [vmem:[%s24489_s3 + $0x304] ss:$12 sps:$4 sm:$0xff]  }
 0x2ef   :  { %5997 = vmatprep.subr.bf16.mxu0 %v21264_v16  ;;  %6150 = vmatprep.subr.bf16.mxu1 %v21266_v3  ;;  %v16977_v16 = vld [vmem:[%s24489_s3 + $0x318] ss:$12 sps:$4 sm:$0xff]  }
 0x2f0   :  { %v16983_v3 = vld [vmem:[%s24489_s3 + $0x498] ss:$12 sps:$4 sm:$0xff]  }
 0x2f1   :  { %v16995_v0 = vld [vmem:[%s24489_s3 + $0x484] ss:$12 sps:$4 sm:$0xff]  }
 0x2f2   :  { %5998 = vmatpush1.bf16.msra.mxu0 %v21254_v58  ;;  %6151 = vmatpush1.bf16.msra.mxu1 %v21256_v29  ;;  %v16985_v58 = vld [vmem:[%s24489_s3 + $0x49c] ss:$12 sps:$4 sm:$0xff]  }
 0x2f3   :  { %5999 = vmatprep.subr.bf16.mxu0 %v21230_v14  ;;  %6152 = vmatprep.subr.bf16.mxu1 %v21232_v45  ;;  %v16965_v14 = vld [vmem:[%s24489_s3 + $0x4c8] ss:$12 sps:$4 sm:$0xff]  }
 0x2f4   :  { %v16968_v45 = vld [vmem:[%s24489_s3 + $0x348] ss:$12 sps:$4 sm:$0xff]  }
 0x2f5   :  { %v16960_v29 = vld [vmem:[%s24487_s1 + $0x8] sm:$0xff]  }
 0x2f6   :  { %6000 = vmatpush1.bf16.msra.mxu0 %v21220_v38  ;;  %6153 = vmatpush1.bf16.msra.mxu1 %v21222_v21  ;;  %v24682_v38 = vmov 0   ;;  %v16979_v21 = vld [vmem:[%s24489_s3 + $0x31c] ss:$12 sps:$4 sm:$0xff]  }
 0x2f7   :  { %6001 = vmatprep.subr.bf16.mxu0 %v21206_v13  ;;  %6154 = vmatprep.subr.bf16.mxu1 %v21208_v52  ;;  %v16973_v13 = vld [vmem:[%s24489_s3 + $0x334] ss:$12 sps:$4 sm:$0xff]  }
 0x2f8   :  { %v16976_v52 = vld [vmem:[%s24489_s3 + $0x4b4] ss:$12 sps:$4 sm:$0xff]  }
 0x2fa   :  { %6002 = vmatpush1.bf16.msra.mxu0 %v21194_v6  ;;  %6155 = vmatpush1.bf16.msra.mxu1 %v21196_v5  ;;  %v16971_v6 = vld [vmem:[%s24489_s3 + $0x330] ss:$12 sps:$4 sm:$0xff]  }
 0x2fb   :  { %7087 = vmatprep.subr.bf16.mxu1 %v16967_v53  ;;  %7024 = vmatprep.subr.bf16.mxu0 %v16970_v44  ;;  %v16974_v5 = vld [vmem:[%s24489_s3 + $0x4b0] ss:$12 sps:$4 sm:$0xff]   ;;  %v17045_v53 = vld [vmem:[%s24489_s3 + $0x4f8] ss:$12 sps:$4 sm:$0xff]  }
 0x2fc   :  { %v17047_v44 = vld [vmem:[%s24489_s3 + $0x4fc] ss:$12 sps:$4 sm:$0xff]  }
 0x2fd   :  { %14448 = vmatmul.mubr.msk.bf16.vlgmr.msra.gmra.mxu0 %vm555_vm0, %v16959_v48  ;;  %14460 = vmatmul.mubr.msk.bf16.vlgmr.msra.gmra.mxu1 %vm555_vm0, %v16959_v48  ;;  %v17051_v48 = vld [vmem:[%s24489_s3 + $0x364] ss:$12 sps:$4 sm:$0xff]  }
 0x2fe   :  { %6029 = vmatprep.mubr.bf16.mxu0 %v24682_v38  ;;  %6182 = vmatprep.mubr.bf16.mxu1 %v24682_v38 }
 0x2ff   :  { %7088 = vmatpush1.bf16.msra.mxu1 %v16965_v14  ;;  %7025 = vmatpush1.bf16.msra.mxu0 %v16968_v45  ;;  %v17054_v14 = vld [vmem:[%s24489_s3 + $0x4e4] ss:$12 sps:$4 sm:$0xff]   ;;  %v17049_v45 = vld [vmem:[%s24489_s3 + $0x360] ss:$12 sps:$4 sm:$0xff]  }
 0x300   :  { %7026 = vmatprep.subr.bf16.mxu0 %v16973_v13  ;;  %7089 = vmatprep.subr.bf16.mxu1 %v16976_v52  ;;  %v17052_v13 = vld [vmem:[%s24489_s3 + $0x4e0] ss:$12 sps:$4 sm:$0xff]   ;;  %v17055_v52 = vld [vmem:[%s24489_s3 + $0x410] ss:$12 sps:$4 sm:$0xff]  }
 0x303   :  { %7027 = vmatpush1.bf16.msra.mxu0 %v16971_v6  ;;  %7090 = vmatpush1.bf16.msra.mxu1 %v16974_v5 }
 0x304   :  { %7028 = vmatprep.subr.bf16.mxu0 %v16979_v21  ;;  %7091 = vmatprep.subr.bf16.mxu1 %v16985_v58 }
 0x305   :  { %14449 = vmatmul.mubr.msk.bf16.gmra.mxu0 %vm555_vm0, %v16960_v29  ;;  %14461 = vmatmul.mubr.msk.bf16.gmra.mxu1 %vm555_vm0, %v16960_v29 }
 0x306   :  { %6039 = vmatprep.mubr.bf16.mxu0 %v24682_v38  ;;  %6192 = vmatprep.mubr.bf16.mxu1 %v24682_v38 }
 0x307   :  { %7029 = vmatpush1.bf16.msra.mxu0 %v16977_v16  ;;  %7092 = vmatpush1.bf16.msra.mxu1 %v16983_v3 }
 0x308   :  { %7030 = vmatprep.subr.bf16.mxu0 %v16982_v15  ;;  %7093 = vmatprep.subr.bf16.mxu1 %v16995_v0 }
 0x30b   :  { %7031 = vmatpush1.bf16.msra.mxu0 %v16980_v46  ;;  %7094 = vmatpush1.bf16.msra.mxu1 %v16993_v9 }
 0x30c   :  { %7032 = vmatprep.subr.bf16.mxu0 %v16988_v55  ;;  %7095 = vmatprep.subr.bf16.mxu1 %v17005_v39 }
 0x30d   :  { %14450 = vmatmul.mubr.msk.bf16.gmra.mxu0 %vm555_vm0, %v16961_v12  ;;  %14462 = vmatmul.mubr.msk.bf16.gmra.mxu1 %vm555_vm0, %v16961_v12 }
 0x30e   :  { %6049 = vmatprep.mubr.bf16.mxu0 %v24682_v38  ;;  %6202 = vmatprep.mubr.bf16.mxu1 %v24682_v38 }
 0x30f   :  { %7033 = vmatpush1.bf16.msra.mxu0 %v16986_v63  ;;  %7096 = vmatpush1.bf16.msra.mxu1 %v17003_v54 }
 0x310   :  { %7034 = vmatprep.subr.bf16.mxu0 %v16992_v62  ;;  %7097 = vmatprep.subr.bf16.mxu1 %v17015_v35 }
 0x313   :  { %7035 = vmatpush1.bf16.msra.mxu0 %v16990_v27  ;;  %7098 = vmatpush1.bf16.msra.mxu1 %v17013_v25 }
 0x314   :  { %7036 = vmatprep.subr.bf16.mxu0 %v16998_v47  ;;  %7099 = vmatprep.subr.bf16.mxu1 %v17021_v40 }
 0x315   :  { %14451 = vmatmul.mubr.msk.bf16.gmra.mxu0 %vm555_vm0, %v16962_v32  ;;  %14463 = vmatmul.mubr.msk.bf16.gmra.mxu1 %vm555_vm0, %v16962_v32 }
 0x316   :  { %6212 = vmatprep.mubr.bf16.mxu1 %v24682_v38  ;;  %6059 = vmatprep.mubr.bf16.mxu0 %v24682_v38 }
 0x317   :  { %7037 = vmatpush1.bf16.msra.mxu0 %v16996_v43  ;;  %7100 = vmatpush1.bf16.msra.mxu1 %v17019_v34 }
 0x318   :  { %7038 = vmatprep.subr.bf16.mxu0 %v17002_v19  ;;  %7101 = vmatprep.subr.bf16.mxu1 %v17028_v20  ;;  %v17056_v20 = vld [vmem:[%s24489_s3 + $0x350] ss:$12 sps:$4 sm:$0xff]  }
 0x31b   :  { %7039 = vmatpush1.bf16.msra.mxu0 %v17000_v42  ;;  %7102 = vmatpush1.bf16.msra.mxu1 %v17026_v37 }
 0x31c   :  { %7040 = vmatprep.subr.bf16.mxu0 %v17008_v30  ;;  %7111 = vmatprep.subr.bf16.mxu1 %v17034_v18 }
 0x31d   :  { %14464 = vmatmul.mubr.msk.bf16.gmra.mxu1 %vm555_vm0, %v16963_v7  ;;  %14452 = vmatmul.mubr.msk.bf16.gmra.mxu0 %vm555_vm0, %v16963_v7 }
 0x31e   :  { %6222 = vmatprep.mubr.bf16.mxu1 %v24682_v38  ;;  %6069 = vmatprep.mubr.bf16.mxu0 %v24682_v38 }
 0x31f   :  { %7041 = vmatpush2.bf16.msra.mxu0 %v17006_v51  ;;  %7112 = vmatpush2.bf16.msra.mxu1 %v17032_v17 }
 0x320   :  { %7042 = vmatprep.subr.bf16.mxu0 %v17012_v57  ;;  %7113 = vmatprep.subr.bf16.mxu1 %v17041_v8  ;;  %v17059_v8 = vld [vmem:[%s24489_s3 + $0x338] ss:$12 sps:$4 sm:$0xff]  }
 0x323   :  { %7043 = vmatpush2.bf16.msra.mxu0 %v17010_v24  ;;  %7114 = vmatpush2.bf16.msra.mxu1 %v17039_v28 }
 0x324   :  { %7044 = vmatprep.subr.bf16.mxu0 %v17018_v4  ;;  %7115 = vmatprep.subr.bf16.mxu1 %v17047_v44 }
 0x325   :  { %14465 = vmatmul.mubr.msk.bf16.gmra.mxu1 %vm555_vm0, %v16964_v61  ;;  %14453 = vmatmul.mubr.msk.bf16.gmra.mxu0 %vm555_vm0, %v16964_v61 }
 0x326   :  { %6079 = vmatprep.mubr.bf16.mxu0 %v24682_v38  ;;  %6232 = vmatprep.mubr.bf16.mxu1 %v24682_v38 }
 0x327   :  { %7045 = vmatpush2.bf16.msra.mxu0 %v17016_v60  ;;  %7116 = vmatpush2.bf16.msra.mxu1 %v17045_v53 }
 0x328   :  { %7046 = vmatprep.subr.bf16.mxu0 %v17025_v26  ;;  %7117 = vmatprep.subr.bf16.mxu1 %v17054_v14  ;;  %v17062_v14 = vld [vmem:[%s24489_s3 + $0x320] ss:$12 sps:$4 sm:$0xff]  }
 0x32b   :  { %7047 = vmatpush2.bf16.msra.mxu0 %v17023_v41  ;;  %7118 = vmatpush2.bf16.msra.mxu1 %v17052_v13  ;;  %v17057_v41 = vld [vmem:[%s24489_s3 + $0x4d0] ss:$12 sps:$4 sm:$0xff]  }
 0x32c   :  { %7048 = vmatprep.subr.bf16.mxu0 %v17031_v10  ;;  %7207 = vmatprep.subr.bf16.mxu1 %v24682_v38  ;;  %v17058_v10 = vld [vmem:[%s24489_s3 + $0x3f8] ss:$12 sps:$4 sm:$0xff]  }
 0x32d   :  { %14454 = vmatmul.mubr.msk.bf16.gmra.mxu0 %vm555_vm0, %v16989_v36  ;;  %14466 = vmatmul.mubr.msk.bf16.gmra.mxu1 %vm555_vm0, %v16989_v36 }
 0x32e   :  { %6089 = vmatprep.mubr.bf16.mxu0 %v24682_v38  ;;  %6242 = vmatprep.mubr.bf16.mxu1 %v24682_v38 }
 0x32f   :  { %7049 = vmatpush2.bf16.msra.mxu0 %v17029_v22 }
 0x330   :  { %7050 = vmatprep.subr.bf16.mxu0 %v17038_v31 }
 0x333   :  { %7051 = vmatpush2.bf16.msra.mxu0 %v17036_v56  ;;  %v17060_v56 = vld [vmem:[%s24489_s3 + $0x4b8] ss:$12 sps:$4 sm:$0xff]  }
 0x334   :  { %7052 = vmatprep.subr.bf16.mxu0 %v17044_v49 }
 0x335   :  { %14455 = vmatmul.mubr.msk.bf16.gmra.mxu0 %vm555_vm0, %v16999_v1  ;;  %14467 = vmatmul.mubr.msk.bf16.gmra.mxu1 %vm555_vm0, %v16999_v1 }
 0x336   :  { %6099 = vmatprep.mubr.bf16.mxu0 %v24682_v38  ;;  %6252 = vmatprep.mubr.bf16.mxu1 %v24682_v38 }
 0x337   :  { %7053 = vmatpush2.bf16.msra.mxu0 %v17042_v59 }
 0x338   :  { %7054 = vmatprep.subr.bf16.mxu0 %v17051_v48 }
 0x33b   :  { %7055 = vmatpush2.bf16.msra.mxu0 %v17049_v45  ;;  %v17063_v45 = vld [vmem:[%s24489_s3 + $0x4a0] ss:$12 sps:$4 sm:$0xff]  }
 0x33c   :  { %15890 = vmatprep.subr.bf16.mxu0 %v17055_v52 }
 0x33d   :  { %14456 = vmatmul.mubr.msk.bf16.gmra.mxu0 %vm555_vm0, %v17009_v23  ;;  %14468 = vmatmul.mubr.msk.bf16.gmra.mxu1 %vm555_vm0, %v17009_v23 }
 0x33e   :  { %6109 = vmatprep.mubr.bf16.mxu0 %v24682_v38  ;;  %6262 = vmatprep.mubr.bf16.mxu1 %v24682_v38 }
 0x345   :  { %14457 = vmatmul.mubr.msk.bf16.gmra.mxu0 %vm555_vm0, %v17022_v50  ;;  %14469 = vmatmul.mubr.msk.bf16.gmra.mxu1 %vm555_vm0, %v17022_v50 }
 0x346   :  { %6119 = vmatprep.mubr.bf16.mxu0 %v24682_v38  ;;  %6272 = vmatprep.mubr.bf16.mxu1 %v24682_v38 }
 0x34d   :  { %14458 = vmatmul.mubr.msk.bf16.gmra.mxu0 %vm555_vm0, %v17035_v33  ;;  %14470 = vmatmul.mubr.msk.bf16.gmra.mxu1 %vm555_vm0, %v17035_v33 }
 0x34e   :  { %6129 = vmatprep.mubr.bf16.mxu0 %v24682_v38  ;;  %6282 = vmatprep.mubr.bf16.mxu1 %v24682_v38 }
 0x355   :  { %14459 = vmatmul.mubr.msk.bf16.gmra.mxu0 %vm555_vm0, %v17048_v11  ;;  %14471 = vmatmul.mubr.msk.bf16.gmra.mxu1 %vm555_vm0, %v17048_v11  ;;  %v17061_v11 = vld [vmem:[%s24489_s3 + $0x3e0] ss:$12 sps:$4 sm:$0xff]  }
 0x3bd   :  { %v6021_v6 = vpop.f32.mrf.mxu0  ;;  %v6174_v5 = vpop.f32.mrf.mxu1 }
 0x3bf   :  { %v21630_v21 = vpop.f32.mrf.mxu0  ;;  %v21632_v58 = vpop.f32.mrf.mxu1 }
 0x3c1   :  { %v6025_v29 = vpop.f32.mrf.mxu0  ;;  %v6178_v16 = vpop.f32.mrf.mxu1 }
 0x3c2   :  { %v21634_v3 = vpack.c.bf16 %v6025_v29, %v6021_v6  ;;  %v21636_v15 = vpack.c.bf16 %v6178_v16, %v6174_v5  ;;  %v17064_v5 = vld [vmem:[%s24489_s3 + $0x3c8] ss:$12 sps:$4 sm:$0xff]  }
 0x3c3   :  { %v21638_v0 = vpop.f32.mrf.mxu0  ;;  %v21640_v46 = vpop.f32.mrf.mxu1 }
 0x3c5   :  { %v6031_v9 = vpop.f32.mrf.mxu0  ;;  %v6184_v55 = vpop.f32.mrf.mxu1 }
 0x3c7   :  { %v21642_v39 = vpop.f32.mrf.mxu0  ;;  %v21644_v12 = vpop.f32.mrf.mxu1 }
 0x3c9   :  { %v6035_v63 = vpop.f32.mrf.mxu0  ;;  %v6188_v54 = vpop.f32.mrf.mxu1 }
 0x3ca   :  { %v21646_v62 = vpack.c.bf16 %v6035_v63, %v6031_v9  ;;  %v21648_v27 = vpack.c.bf16 %v6188_v54, %v6184_v55  ;;  %v17065_v55 = vld [vmem:[%s24489_s3 + $0x308] ss:$12 sps:$4 sm:$0xff]  }
 0x3cb   :  { %v21650_v47 = vpop.f32.mrf.mxu0  ;;  %v21652_v32 = vpop.f32.mrf.mxu1  ;;  %v17066_v63 = vld [vmem:[%s24489_s3 + $0x488] ss:$12 sps:$4 sm:$0xff]  }
 0x3cd   :  { %v6041_v43 = vpop.f32.mrf.mxu0  ;;  %v6194_v19 = vpop.f32.mrf.mxu1 }
 0x3cf   :  { %v21654_v42 = vpop.f32.mrf.mxu0  ;;  %v21656_v7 = vpop.f32.mrf.mxu1 }
 0x3d1   :  { %v6045_v61 = vpop.f32.mrf.mxu0  ;;  %v6198_v36 = vpop.f32.mrf.mxu1 }
 0x3d2   :  { %v21658_v1 = vpack.c.bf16 %v6045_v61, %v6041_v43  ;;  %v21660_v23 = vpack.c.bf16 %v6198_v36, %v6194_v19  ;;  %v17067_v43 = vld [vmem:[%s24489_s3 + $0x3b0] ss:$12 sps:$4 sm:$0xff]  }
 0x3d3   :  { %v21662_v51 = vpop.f32.mrf.mxu0  ;;  %v21664_v30 = vpop.f32.mrf.mxu1 }
 0x3d5   :  { %v6051_v50 = vpop.f32.mrf.mxu0  ;;  %v6204_v57 = vpop.f32.mrf.mxu1 }
 0x3d7   :  { %v6053_v35 = vpop.f32.mrf.mxu0  ;;  %v6206_v24 = vpop.f32.mrf.mxu1 }
 0x3d9   :  { %v6055_v25 = vpop.f32.mrf.mxu0  ;;  %v6208_v60 = vpop.f32.mrf.mxu1 }
 0x3da   :  { %v21666_v4 = vpack.c.bf16 %v6055_v25, %v6051_v50  ;;  %v21678_v37 = vpack.c.bf16 %v6208_v60, %v6204_v57 }
 0x3db   :  { %v6057_v34 = vpop.f32.mrf.mxu0  ;;  %v6210_v40 = vpop.f32.mrf.mxu1 }
 0x3dc   :  { %v21668_v33 = vpack.c.bf16 %v6057_v34, %v6053_v35  ;;  %v21670_v26 = vpack.c.bf16 %v6210_v40, %v6206_v24  ;;  %v17068_v35 = vld [vmem:[%s24489_s3 + $0x2f0] ss:$12 sps:$4 sm:$0xff]   ;;  %v17070_v34 = vld [vmem:[%s24489_s3 + $0x398] ss:$12 sps:$4 sm:$0xff]  }
 0x3dd   :  { %v6214_v22 = vpop.f32.mrf.mxu1  ;;  %v6061_v17 = vpop.f32.mrf.mxu0  ;;  %v17069_v24 = vld [vmem:[%s24489_s3 + $0x470] ss:$12 sps:$4 sm:$0xff]  }
 0x3de   :  { %7056 = vmatprep.mubr.bf16.mxu0 %v21668_v33  ;;  %14668 = vmatprep.mubr.msk.bf16.mxu1 %vm7014_vm1, %v21670_v26 }
 0x3df   :  { %7057 = vmatmul.mubr.bf16.vlgmr.msra.gmra.mxu0 %v21666_v4  ;;  %7120 = vmatmul.mubr.bf16.vlgmr.msra.gmra.mxu1 %v21678_v37  ;;  %v6216_v18 = vpop.f32.mrf.mxu1  ;;  %v6063_v31 = vpop.f32.mrf.mxu0 }
 0x3e0   :  { %15891 = vmatpush3.bf16.msra.mxu0 %v17056_v20  ;;  %7208 = vmatpush1.bf16.msra.mxu1 %v17057_v41  ;;  %v17071_v41 = vld [vmem:[%s24489_s3 + $0x2d8] ss:$12 sps:$4 sm:$0xff]  }
 0x3e1   :  { %15892 = vmatprep.subr.bf16.mxu0 %v17058_v10  ;;  %7209 = vmatprep.subr.bf16.mxu1 %v24682_v38  ;;  %v6218_v28 = vpop.f32.mrf.mxu1  ;;  %v6065_v59 = vpop.f32.mrf.mxu0  ;;  %v17073_v10 = vld [vmem:[%s24489_s3 + $0x380] ss:$12 sps:$4 sm:$0xff]  }
 0x3e2   :  { %v21698_v49 = vpack.c.bf16 %v6218_v28, %v6214_v22  ;;  %v21700_v53 = vpack.c.bf16 %v6065_v59, %v6061_v17  ;;  %v17072_v22 = vld [vmem:[%s24489_s3 + $0x458] ss:$12 sps:$4 sm:$0xff]   ;;  %v17077_v28 = vld [vmem:[%s24489_s3 + $0x2a8] ss:$12 sps:$4 sm:$0xff]  }
 0x3e3   :  { %v6220_v44 = vpop.f32.mrf.mxu1  ;;  %v6067_v48 = vpop.f32.mrf.mxu0  ;;  %v17081_v59 = vld [vmem:[%s24489_s3 + $0xac] ss:$12 sps:$4 sm:$0xff]  }
 0x3e4   :  { %15893 = vmatpush3.bf16.msra.mxu0 %v17059_v8  ;;  %7210 = vmatpush1.bf16.msra.mxu1 %v17060_v56  ;;  %v21708_v13 = vpack.c.bf16 %v6220_v44, %v6216_v18  ;;  %v21710_v52 = vpack.c.bf16 %v6067_v48, %v6063_v31  ;;  %v17074_v31 = vld [vmem:[%s24489_s3 + $0x2c0] ss:$12 sps:$4 sm:$0xff]  }
 0x3e5   :  { %15894 = vmatprep.subr.bf16.mxu0 %v17061_v11  ;;  %7211 = vmatprep.subr.bf16.mxu1 %v24682_v38  ;;  %v6224_v6 = vpop.f32.mrf.mxu1  ;;  %v6071_v29 = vpop.f32.mrf.mxu0  ;;  %v17075_v8 = vld [vmem:[%s24489_s3 + $0x440] ss:$12 sps:$4 sm:$0xff]   ;;  %v17078_v11 = vld [vmem:[%s24489_s3 + $0x428] ss:$12 sps:$4 sm:$0xff]  }
 0x3e6   :  { %14669 = vmatprep.mubr.msk.bf16.mxu1 %vm7014_vm1, %v21708_v13  ;;  %7066 = vmatprep.mubr.bf16.mxu0 %v21710_v52 }
 0x3e7   :  { %v6226_v16 = vpop.f32.mrf.mxu1  ;;  %7130 = vmatmul.mubr.bf16.gmra.mxu1 %v21698_v49  ;;  %v6073_v9 = vpop.f32.mrf.mxu0  ;;  %7067 = vmatmul.mubr.bf16.gmra.mxu0 %v21700_v53 }
 0x3e8   :  { %15895 = vmatpush3.bf16.msra.mxu0 %v17062_v14  ;;  %7212 = vmatpush1.bf16.msra.mxu1 %v17063_v45  ;;  %v17079_v14 = vld [vmem:[%s24489_s3 + $0xa8] ss:$12 sps:$4 sm:$0xff]   ;;  %v17082_v45 = vld [vmem:[%s24489_s3 + $0x530] ss:$12 sps:$4 sm:$0xff]  }
 0x3e9   :  { %15896 = vmatprep.subr.bf16.mxu0 %v17064_v5  ;;  %7213 = vmatprep.subr.bf16.mxu1 %v24682_v38  ;;  %v6228_v54 = vpop.f32.mrf.mxu1  ;;  %v6075_v19 = vpop.f32.mrf.mxu0 }
 0x3ea   :  { %v21731_v61 = vpack.c.bf16 %v6228_v54, %v6224_v6  ;;  %v21733_v36 = vpack.c.bf16 %v6075_v19, %v6071_v29  ;;  %v17085_v6 = vld [vmem:[%s24489_s3 + $0x94] ss:$12 sps:$4 sm:$0xff]   ;;  %v17087_v54 = vld [vmem:[%s24489_s3 + $0x78] ss:$12 sps:$4 sm:$0xff]  }
 0x3eb   :  { %v6230_v50 = vpop.f32.mrf.mxu1  ;;  %v6077_v57 = vpop.f32.mrf.mxu0  ;;  %v17093_v19 = vld [vmem:[%s24489_s3 + $0x64] ss:$12 sps:$4 sm:$0xff]  }
 0x3ec   :  { %15897 = vmatpush3.bf16.msra.mxu0 %v17065_v55  ;;  %7214 = vmatpush1.bf16.msra.mxu1 %v17066_v63  ;;  %v21741_v25 = vpack.c.bf16 %v6230_v50, %v6226_v16  ;;  %v21743_v60 = vpack.c.bf16 %v6077_v57, %v6073_v9  ;;  %v17083_v16 = vld [vmem:[%s24489_s3 + $0x90] ss:$12 sps:$4 sm:$0xff]   ;;  %v17086_v9 = vld [vmem:[%s24489_s3 + $0x518] ss:$12 sps:$4 sm:$0xff]   ;;  %v17091_v57 = vld [vmem:[%s24489_s3 + $0x60] ss:$12 sps:$4 sm:$0xff]  }
 0x3ed   :  { %15898 = vmatprep.subr.bf16.mxu0 %v17067_v43  ;;  %7215 = vmatprep.subr.bf16.mxu1 %v24682_v38  ;;  %v21749_v40 = vpop.f32.mrf.mxu1  ;;  %v17089_v55 = vld [vmem:[%s24489_s3 + $0x7c] ss:$12 sps:$4 sm:$0xff]   ;;  %v17090_v43 = vld [vmem:[%s24489_s3 + $0x500] ss:$12 sps:$4 sm:$0xff]  }
 0x3ee   :  { %14670 = vmatprep.mubr.msk.bf16.mxu1 %vm7014_vm1, %v21741_v25  ;;  %7076 = vmatprep.mubr.bf16.mxu0 %v21743_v60 }
 0x3ef   :  { %7140 = vmatmul.mubr.bf16.gmra.mxu1 %v21731_v61  ;;  %7077 = vmatmul.mubr.bf16.gmra.mxu0 %v21733_v36  ;;  %v21756_v20 = vpop.f32.mrf.mxu1 }
 0x3f0   :  { %15899 = vmatpush3.bf16.msra.mxu0 %v17068_v35  ;;  %7216 = vmatpush1.bf16.msra.mxu1 %v17069_v24  ;;  %v17094_v35 = vld [vmem:[%s24489_s3 + $0x4e8] ss:$12 sps:$4 sm:$0xff]   ;;  %v17097_v24 = vld [vmem:[%s24489_s3 + $0x4c] ss:$12 sps:$4 sm:$0xff]  }
 0x3f1   :  { %15900 = vmatprep.subr.bf16.mxu0 %v17070_v34  ;;  %7217 = vmatprep.subr.bf16.mxu1 %v24682_v38  ;;  %v21768_v17 = vpop.f32.mrf.mxu1 }
 0x3f2   :  { %14671 = vmatprep.mubr.msk.bf16.mxu1 %vm7014_vm1, %v21670_v26  ;;  %7182 = vmatprep.mubr.bf16.mxu0 %v21668_v33  ;;  %v17076_v26 = vld [vmem:[%s24489_s3 + $0x368] ss:$12 sps:$4 sm:$0xff]  }
 0x3f3   :  { %v21773_v18 = vpop.f32.mrf.mxu1 }
 0x3f4   :  { %15901 = vmatpush3.bf16.msra.mxu0 %v17071_v41  ;;  %7218 = vmatpush1.bf16.msra.mxu1 %v17072_v22  ;;  %v17095_v22 = vld [vmem:[%s24489_s3 + $0x48] ss:$12 sps:$4 sm:$0xff]  }
 0x3f5   :  { %15902 = vmatprep.subr.bf16.mxu0 %v17073_v10  ;;  %7219 = vmatprep.subr.bf16.mxu1 %v24682_v38  ;;  %v21785_v33 = vpop.f32.mrf.mxu1 }
 0x3f7   :  { %v21787_v56 = vpop.f32.mrf.mxu1 }
 0x3f8   :  { %15903 = vmatpush3.bf16.msra.mxu0 %v17074_v31  ;;  %7220 = vmatpush1.bf16.msra.mxu1 %v17075_v8  ;;  %v17098_v31 = vld [vmem:[%s24489_s3 + $0x228] ss:$12 sps:$4 sm:$0xff]   ;;  %v21875_v8 = vpack.c.bf16 %v21638_v0, %v21630_v21  ;;  %v17104_v21 = vld [vmem:[%s24489_s3 + $0x210] ss:$12 sps:$4 sm:$0xff]  }
 0x3f9   :  { %15904 = vmatprep.subr.bf16.mxu0 %v17076_v26  ;;  %7221 = vmatprep.subr.bf16.mxu1 %v24682_v38  ;;  %v21799_v44 = vpop.f32.mrf.mxu1  ;;  %v17106_v26 = vld [vmem:[%s24489_s3 + $0x214] ss:$12 sps:$4 sm:$0xff]   ;;  %v17109_v0 = vld [vmem:[%s24489_s3 + $0x1c] ss:$12 sps:$4 sm:$0xff]  }
 0x3fb   :  { %v21801_v48 = vpop.f32.mrf.mxu1 }
 0x3fc   :  { %15905 = vmatpush3.bf16.msra.mxu0 %v17077_v28  ;;  %7222 = vmatpush1.bf16.msra.mxu1 %v17078_v11  ;;  %v17101_v11 = vld [vmem:[%s24489_s3 + $0x30] ss:$12 sps:$4 sm:$0xff]  }
 0x3fd   :  { %7231 = vmatprep.subr.bf16.mxu1 %v24682_v38  ;;  %7721 = vmatprep.subr.bf16.mxu0 %v17081_v59  ;;  %v21813_v5 = vpop.f32.mrf.mxu1 }
 0x3ff   :  { %7183 = vmatmul.mubr.bf16.vlgmr.msra.gmra.mxu0 %v21666_v4  ;;  %v21816_v29 = vpop.f32.mrf.mxu1 }
 0x400   :  { %7232 = vmatpush2.bf16.msra.mxu1 %v17082_v45  ;;  %7722 = vmatpush1.bf16.msra.mxu0 %v17079_v14  ;;  %v17107_v14 = vld [vmem:[%s24489_s3 + $0x18] ss:$12 sps:$4 sm:$0xff]  }
 0x401   :  { %7233 = vmatprep.subr.bf16.mxu1 %v24682_v38  ;;  %7723 = vmatprep.subr.bf16.mxu0 %v17085_v6  ;;  %v21828_v4 = vpop.f32.mrf.mxu1 }
 0x402   :  { %7190 = vmatprep.mubr.bf16.mxu0 %v21710_v52 }
 0x403   :  { %v21831_v63 = vpop.f32.mrf.mxu1 }
 0x404   :  { %7234 = vmatpush2.bf16.msra.mxu1 %v17086_v9  ;;  %7724 = vmatpush1.bf16.msra.mxu0 %v17083_v16  ;;  %v17115_v16 = vld [vmem:[%s24489_s3 + $0x4] ss:$12 sps:$4 sm:$0xff]  }
 0x405   :  { %7235 = vmatprep.subr.bf16.mxu1 %v24682_v38  ;;  %7725 = vmatprep.subr.bf16.mxu0 %v17089_v55  ;;  %v6264_v52 = vpop.f32.mrf.mxu1  ;;  %v17118_v9 = vld [vmem:[%s24489_s3 + $0x1e4] ss:$12 sps:$4 sm:$0xff]  }
 0x407   :  { %7191 = vmatmul.mubr.bf16.gmra.mxu0 %v21700_v53  ;;  %v21844_v50 = vpop.f32.mrf.mxu1  ;;  %v17100_v53 = vld [vmem:[%s24489_s3 + $0x22c] ss:$12 sps:$4 sm:$0xff]  }
 0x408   :  { %7236 = vmatpush2.bf16.msra.mxu1 %v17090_v43  ;;  %7726 = vmatpush1.bf16.msra.mxu0 %v17087_v54  ;;  %v17113_v54 = vld [vmem:[%s24489_s3] ss:$12 sps:$4 sm:$0xff]  }
 0x409   :  { %7237 = vmatprep.subr.bf16.mxu1 %v24682_v38  ;;  %7727 = vmatprep.subr.bf16.mxu0 %v17093_v19  ;;  %v6268_v34 = vpop.f32.mrf.mxu1  ;;  %v17116_v19 = vld [vmem:[%s24489_s3 + $0x1e0] ss:$12 sps:$4 sm:$0xff]  }
 0x40a   :  { %7198 = vmatprep.mubr.bf16.mxu0 %v21743_v60  ;;  %v21865_v10 = vpack.c.bf16 %v6268_v34, %v6264_v52  ;;  %v17103_v60 = vld [vmem:[%s24489_s3 + $0x34] ss:$12 sps:$4 sm:$0xff]   ;;  %v17124_v52 = vld [vmem:[%s24489_s3 + $0x1cc] ss:$12 sps:$4 sm:$0xff]   ;;  %v21945_v34 = vpack.c.bf16 %v21640_v46, %v21632_v58  ;;  %v17128_v58 = vld [vmem:[%s24489_s3 + $0x1b0] ss:$12 sps:$4 sm:$0xff]  }
 0x40b   :  { %v21860_v41 = vpop.f32.mrf.mxu1  ;;  %v17133_v46 = vld [vmem:[%s24489_s3 + $0x13c] ss:$12 sps:$4 sm:$0xff]  }
 0x40c   :  { %7238 = vmatpush2.bf16.msra.mxu1 %v17094_v35  ;;  %7728 = vmatpush1.bf16.msra.mxu0 %v17091_v57  ;;  %v17122_v35 = vld [vmem:[%s24489_s3 + $0x1c8] ss:$12 sps:$4 sm:$0xff]  }
 0x40d   :  { %7729 = vmatprep.subr.bf16.mxu0 %v17097_v24  ;;  %7784 = vmatprep.subr.bf16.mxu1 %v17100_v53  ;;  %v6274_v28 = vpop.f32.mrf.mxu1  ;;  %v17127_v24 = vld [vmem:[%s24489_s3 + $0x154] ss:$12 sps:$4 sm:$0xff]  }
 0x40f   :  { %7199 = vmatmul.mubr.bf16.gmra.mxu0 %v21733_v36  ;;  %7240 = vmatmul.mubr.bf16.vlgmr.msra.gmra.mxu1 %v21678_v37  ;;  %v21886_v59 = vpop.f32.mrf.mxu1  ;;  %v17112_v37 = vld [vmem:[%s24489_s3 + $0x1fc] ss:$12 sps:$4 sm:$0xff]  }
 0x410   :  { %7730 = vmatpush1.bf16.msra.mxu0 %v17095_v22  ;;  %7753 = vmatprep.mubr.bf16.mxu0 %v21875_v8  ;;  %v17130_v22 = vld [vmem:[%s24489_s3 + $0x1b4] ss:$12 sps:$4 sm:$0xff]  }
 0x411   :  { %7785 = vmatpush1.bf16.msra.mxu1 %v17098_v31  ;;  %7731 = vmatprep.subr.bf16.mxu0 %v17103_v60  ;;  %v6278_v36 = vpop.f32.mrf.mxu1  ;;  %v17125_v31 = vld [vmem:[%s24489_s3 + $0x150] ss:$12 sps:$4 sm:$0xff]   ;;  %v17131_v60 = vld [vmem:[%s24489_s3 + $0x138] ss:$12 sps:$4 sm:$0xff]  }
 0x412   :  { %7786 = vmatprep.subr.bf16.mxu1 %v17106_v26  ;;  %14672 = vmatprep.mubr.msk.bf16.mxu1 %vm7014_vm1, %v21708_v13  ;;  %v21902_v45 = vpack.c.bf16 %v6278_v36, %v6274_v28  ;;  %v17110_v13 = vld [vmem:[%s24489_s3 + $0x1f8] ss:$12 sps:$4 sm:$0xff]  }
 0x413   :  { %v21904_v6 = vpop.f32.mrf.mxu1  ;;  %v17134_v26 = vld [vmem:[%s24489_s3 + $0x198] ss:$12 sps:$4 sm:$0xff]  }
 0x414   :  { %7732 = vmatpush1.bf16.msra.mxu0 %v17101_v11  ;;  %v17139_v28 = vld [vmem:[%s24489_s3 + $0x124] ss:$12 sps:$4 sm:$0xff]   ;;  %v17148_v36 = vld [vmem:[%s24489_s3 + $0x28c] ss:$12 sps:$4 sm:$0xff]  }
 0x415   :  { %7787 = vmatpush1.bf16.msra.mxu1 %v17104_v21  ;;  %7733 = vmatprep.subr.bf16.mxu0 %v17109_v0  ;;  %v6284_v55 = vpop.f32.mrf.mxu1  ;;  %v17142_v11 = vld [vmem:[%s24489_s3 + $0x184] ss:$12 sps:$4 sm:$0xff]   ;;  %v17137_v21 = vld [vmem:[%s24489_s3 + $0x120] ss:$12 sps:$4 sm:$0xff]  }
 0x416   :  { %7788 = vmatprep.subr.bf16.mxu1 %v17112_v37  ;;  %v17140_v0 = vld [vmem:[%s24489_s3 + $0x180] ss:$12 sps:$4 sm:$0xff]  }
 0x417   :  { %7248 = vmatmul.mubr.bf16.gmra.mxu1 %v21698_v49  ;;  %v21921_v43 = vpop.f32.mrf.mxu1  ;;  %v17121_v49 = vld [vmem:[%s24489_s3 + $0x16c] ss:$12 sps:$4 sm:$0xff]  }
 0x418   :  { %7734 = vmatpush1.bf16.msra.mxu0 %v17107_v14  ;;  %14673 = vmatprep.mubr.msk.bf16.mxu1 %vm7014_vm1, %v21741_v25  ;;  %v17119_v25 = vld [vmem:[%s24489_s3 + $0x168] ss:$12 sps:$4 sm:$0xff]   ;;  %v17145_v37 = vld [vmem:[%s24489_s3 + $0x10c] ss:$12 sps:$4 sm:$0xff]  }
 0x419   :  { %7789 = vmatpush1.bf16.msra.mxu1 %v17110_v13  ;;  %7735 = vmatprep.subr.bf16.mxu0 %v17115_v16  ;;  %v6288_v57 = vpop.f32.mrf.mxu1  ;;  %v17143_v14 = vld [vmem:[%s24489_s3 + $0x108] ss:$12 sps:$4 sm:$0xff]  }
 0x41a   :  { %7790 = vmatprep.subr.bf16.mxu1 %v17118_v9  ;;  %v21941_v53 = vpack.c.bf16 %v6288_v57, %v6284_v55  ;;  %v17146_v13 = vld [vmem:[%s24489_s3 + $0x288] ss:$12 sps:$4 sm:$0xff]   ;;  %v17149_v55 = vld [vmem:[%s24489_s3 + $0xf0] ss:$12 sps:$4 sm:$0xff]  }
 0x41b   :  { %v17151_v16 = vld [vmem:[%s24489_s3 + $0xf4] ss:$12 sps:$4 sm:$0xff]   ;;  %v17163_v57 = vld [vmem:[%s24489_s3 + $0xc4] ss:$12 sps:$4 sm:$0xff]  }
 0x41c   :  { %7736 = vmatpush1.bf16.msra.mxu0 %v17113_v54  ;;  %v17154_v9 = vld [vmem:[%s24489_s3 + $0x274] ss:$12 sps:$4 sm:$0xff]   ;;  %v17152_v54 = vld [vmem:[%s24489_s3 + $0x270] ss:$12 sps:$4 sm:$0xff]  }
 0x41d   :  { %7791 = vmatpush1.bf16.msra.mxu1 %v17116_v19  ;;  %7737 = vmatprep.subr.bf16.mxu0 %v17121_v49  ;;  %v17157_v19 = vld [vmem:[%s24489_s3 + $0xdc] ss:$12 sps:$4 sm:$0xff]  }
 0x41e   :  { %7792 = vmatprep.subr.bf16.mxu1 %v17124_v52  ;;  %v17160_v49 = vld [vmem:[%s24489_s3 + $0x25c] ss:$12 sps:$4 sm:$0xff]   ;;  %v17155_v52 = vld [vmem:[%s24489_s3 + $0xd8] ss:$12 sps:$4 sm:$0xff]  }
 0x41f   :  { %7256 = vmatmul.mubr.bf16.gmra.mxu1 %v21731_v61  ;;  %v17136_v61 = vld [vmem:[%s24489_s3 + $0x19c] ss:$12 sps:$4 sm:$0xff]  }
 0x420   :  { %7738 = vmatpush2.bf16.msra.mxu0 %v17119_v25  ;;  %14758 = vmatprep.mubr.msk.bf16.mxu1 %vm7014_vm1, %v21945_v34  ;;  %v17158_v25 = vld [vmem:[%s24489_s3 + $0x258] ss:$12 sps:$4 sm:$0xff]  }
 0x421   :  { %7793 = vmatpush1.bf16.msra.mxu1 %v17122_v35  ;;  %7739 = vmatprep.subr.bf16.mxu0 %v17127_v24  ;;  %v17166_v35 = vld [vmem:[%s24489_s3 + $0x244] ss:$12 sps:$4 sm:$0xff]   ;;  %v17161_v24 = vld [vmem:[%s24489_s3 + $0xc0] ss:$12 sps:$4 sm:$0xff]  }
 0x422   :  { %7794 = vmatprep.subr.bf16.mxu1 %v17130_v22  ;;  %v17164_v22 = vld [vmem:[%s24489_s3 + $0x240] ss:$12 sps:$4 sm:$0xff]  }
 0x424   :  { %7740 = vmatpush2.bf16.msra.mxu0 %v17125_v31  ;;  %v17167_v31 = vld [vmem:[%s24489_s3 + $0x170] ss:$12 sps:$4 sm:$0xff]  }
 0x425   :  { %7795 = vmatpush1.bf16.msra.mxu1 %v17128_v58  ;;  %7741 = vmatprep.subr.bf16.mxu0 %v17133_v46  ;;  %v17168_v58 = vld [vmem:[%s24489_s3 + $0xb0] ss:$12 sps:$4 sm:$0xff]   ;;  %v22039_v46 = vpack.c.bf16 %v21650_v47, %v21642_v39  ;;  %v17171_v39 = vld [vmem:[%s24489_s3 + $0x98] ss:$12 sps:$4 sm:$0xff]   ;;  %v17173_v47 = vld [vmem:[%s24489_s3 + $0x140] ss:$12 sps:$4 sm:$0xff]  }
 0x426   :  { %7796 = vmatprep.subr.bf16.mxu1 %v17136_v61  ;;  %v17169_v61 = vld [vmem:[%s24489_s3 + $0x230] ss:$12 sps:$4 sm:$0xff]  }
 0x428   :  { %7742 = vmatpush2.bf16.msra.mxu0 %v17131_v60  ;;  %v17170_v60 = vld [vmem:[%s24489_s3 + $0x158] ss:$12 sps:$4 sm:$0xff]  }
 0x429   :  { %7797 = vmatpush1.bf16.msra.mxu1 %v17134_v26  ;;  %7743 = vmatprep.subr.bf16.mxu0 %v17139_v28  ;;  %v22050_v26 = vpack.c.bf16 %v21652_v32, %v21644_v12  ;;  %v22053_v28 = vpop.f32.mrf.mxu0  ;;  %v17172_v12 = vld [vmem:[%s24489_s3 + $0x218] ss:$12 sps:$4 sm:$0xff]  }
 0x42a   :  { %7798 = vmatprep.subr.bf16.mxu1 %v17142_v11  ;;  %v17174_v11 = vld [vmem:[%s24489_s3 + $0x80] ss:$12 sps:$4 sm:$0xff]  }
 0x42b   :  { %v22069_v32 = vpop.f32.mrf.mxu0 }
 0x42c   :  { %7744 = vmatpush2.bf16.msra.mxu0 %v17137_v21  ;;  %v22076_v21 = vpack.c.bf16 %v21662_v51, %v21654_v42  ;;  %v17177_v51 = vld [vmem:[%s24489_s3 + $0x68] ss:$12 sps:$4 sm:$0xff]  }
 0x42d   :  { %7799 = vmatpush1.bf16.msra.mxu1 %v17140_v0  ;;  %7745 = vmatprep.subr.bf16.mxu0 %v17145_v37  ;;  %v17175_v0 = vld [vmem:[%s24489_s3 + $0x200] ss:$12 sps:$4 sm:$0xff]   ;;  %v17176_v37 = vld [vmem:[%s24489_s3 + $0x128] ss:$12 sps:$4 sm:$0xff]   ;;  %v22090_v42 = vpop.f32.mrf.mxu0 }
 0x42e   :  { %7808 = vmatprep.subr.bf16.mxu1 %v17148_v36  ;;  %v22086_v36 = vpack.c.bf16 %v21664_v30, %v21656_v7  ;;  %v17178_v7 = vld [vmem:[%s24489_s3 + $0x1e8] ss:$12 sps:$4 sm:$0xff]   ;;  %v17179_v30 = vld [vmem:[%s24489_s3 + $0x110] ss:$12 sps:$4 sm:$0xff]  }
 0x430   :  { %7746 = vmatpush2.bf16.msra.mxu0 %v17143_v14  ;;  %v22106_v14 = vpop.f32.mrf.mxu0 }
 0x431   :  { %7809 = vmatpush2.bf16.msra.mxu1 %v17146_v13  ;;  %7747 = vmatprep.subr.bf16.mxu0 %v17151_v16  ;;  %v17180_v13 = vld [vmem:[%s24489_s3 + $0x50] ss:$12 sps:$4 sm:$0xff]  }
 0x432   :  { %7810 = vmatprep.subr.bf16.mxu1 %v17154_v9  ;;  %v17181_v16 = vld [vmem:[%s24489_s3 + $0x1d0] ss:$12 sps:$4 sm:$0xff]   ;;  %v17182_v9 = vld [vmem:[%s24489_s3 + $0xf8] ss:$12 sps:$4 sm:$0xff]  }
 0x434   :  { %7748 = vmatpush2.bf16.msra.mxu0 %v17149_v55  ;;  %v22119_v55 = vpop.f32.mrf.mxu0 }
 0x435   :  { %7811 = vmatpush2.bf16.msra.mxu1 %v17152_v54  ;;  %7749 = vmatprep.subr.bf16.mxu0 %v17157_v19  ;;  %v17183_v54 = vld [vmem:[%s24489_s3 + $0x38] ss:$12 sps:$4 sm:$0xff]  }
 0x436   :  { %7812 = vmatprep.subr.bf16.mxu1 %v17160_v49  ;;  %v17184_v19 = vld [vmem:[%s24489_s3 + $0x1b8] ss:$12 sps:$4 sm:$0xff]   ;;  %v17185_v49 = vld [vmem:[%s24489_s3 + $0xe0] ss:$12 sps:$4 sm:$0xff]  }
 0x438   :  { %7750 = vmatpush2.bf16.msra.mxu0 %v17155_v52  ;;  %v17187_v52 = vld [vmem:[%s24489_s3 + $0x1a0] ss:$12 sps:$4 sm:$0xff]  }
 0x439   :  { %7813 = vmatpush2.bf16.msra.mxu1 %v17158_v25  ;;  %7751 = vmatprep.subr.bf16.mxu0 %v17163_v57  ;;  %v17188_v25 = vld [vmem:[%s24489_s3 + $0xc8] ss:$12 sps:$4 sm:$0xff]  }
 0x43a   :  { %7814 = vmatprep.subr.bf16.mxu1 %v17166_v35  ;;  %v17189_v35 = vld [vmem:[%s24489_s3 + $0x8] ss:$12 sps:$4 sm:$0xff]  }
 0x43c   :  { %7752 = vmatpush2.bf16.msra.mxu0 %v17161_v24  ;;  %v17190_v24 = vld [vmem:[%s24489_s3 + $0x188] ss:$12 sps:$4 sm:$0xff]  }
 0x43d   :  { %7815 = vmatpush2.bf16.msra.mxu1 %v17164_v22  ;;  %15924 = vmatprep.subr.bf16.mxu0 %v17167_v31  ;;  %v17193_v22 = vld [vmem:[%s24489_s3 + $0x5ec] ss:$12 sps:$4 sm:$0xff]  }
 0x43e   :  { %7904 = vmatprep.subr.bf16.mxu1 %v24682_v38 }
 0x43f   :  { %7754 = vmatmul.mubr.bf16.vlgmr.msra.gmra.mxu0 %v21634_v3 }
 0x440   :  { %7817 = vmatmul.mubr.bf16.vlgmr.msra.gmra.mxu1 %v21636_v15  ;;  %7763 = vmatprep.mubr.bf16.mxu0 %v22039_v46 }
 0x441   :  { %14759 = vmatprep.mubr.msk.bf16.mxu1 %vm7014_vm1, %v22050_v26  ;;  %15925 = vmatpush3.bf16.msra.mxu0 %v17168_v58  ;;  %v17191_v58 = vld [vmem:[%s24489_s3 + $0x5e8] ss:$12 sps:$4 sm:$0xff]  }
 0x442   :  { %7905 = vmatpush1.bf16.msra.mxu1 %v17169_v61  ;;  %15926 = vmatprep.subr.bf16.mxu0 %v17170_v60  ;;  %v17194_v61 = vld [vmem:[%s24489_s3 + $0x290] ss:$12 sps:$4 sm:$0xff]   ;;  %v17197_v60 = vld [vmem:[%s24489_s3 + $0x5d4] ss:$12 sps:$4 sm:$0xff]  }
 0x443   :  { %7906 = vmatprep.subr.bf16.mxu1 %v24682_v38 }
 0x445   :  { %15927 = vmatpush3.bf16.msra.mxu0 %v17171_v39 }
 0x446   :  { %7907 = vmatpush1.bf16.msra.mxu1 %v17172_v12  ;;  %15928 = vmatprep.subr.bf16.mxu0 %v17173_v47  ;;  %v17195_v12 = vld [vmem:[%s24489_s3 + $0x5d0] ss:$12 sps:$4 sm:$0xff]   ;;  %v17198_v47 = vld [vmem:[%s24489_s3 + $0x278] ss:$12 sps:$4 sm:$0xff]  }
 0x447   :  { %7764 = vmatmul.mubr.bf16.gmra.mxu0 %v21646_v62  ;;  %7908 = vmatprep.subr.bf16.mxu1 %v24682_v38 }
 0x448   :  { %7827 = vmatmul.mubr.bf16.gmra.mxu1 %v21648_v27  ;;  %7773 = vmatprep.mubr.bf16.mxu0 %v22076_v21 }
 0x449   :  { %14760 = vmatprep.mubr.msk.bf16.mxu1 %vm7014_vm1, %v22086_v36  ;;  %15929 = vmatpush3.bf16.msra.mxu0 %v17174_v11  ;;  %v17201_v11 = vld [vmem:[%s24489_s3 + $0x5bc] ss:$12 sps:$4 sm:$0xff]  }
 0x44a   :  { %7909 = vmatpush1.bf16.msra.mxu1 %v17175_v0  ;;  %15930 = vmatprep.subr.bf16.mxu0 %v17176_v37  ;;  %v17202_v0 = vld [vmem:[%s24489_s3 + $0x260] ss:$12 sps:$4 sm:$0xff]   ;;  %v17205_v37 = vld [vmem:[%s24489_s3 + $0x5a4] ss:$12 sps:$4 sm:$0xff]  }
 0x44b   :  { %7910 = vmatprep.subr.bf16.mxu1 %v24682_v38 }
 0x44d   :  { %15931 = vmatpush3.bf16.msra.mxu0 %v17177_v51 }
 0x44e   :  { %7911 = vmatpush1.bf16.msra.mxu1 %v17178_v7  ;;  %15932 = vmatprep.subr.bf16.mxu0 %v17179_v30  ;;  %v17203_v7 = vld [vmem:[%s24489_s3 + $0x5a0] ss:$12 sps:$4 sm:$0xff]   ;;  %v17206_v30 = vld [vmem:[%s24489_s3 + $0x248] ss:$12 sps:$4 sm:$0xff]  }
 0x44f   :  { %7774 = vmatmul.mubr.bf16.gmra.mxu0 %v21658_v1  ;;  %7912 = vmatprep.subr.bf16.mxu1 %v24682_v38 }
 0x450   :  { %7837 = vmatmul.mubr.bf16.gmra.mxu1 %v21660_v23  ;;  %7879 = vmatprep.mubr.bf16.mxu0 %v21875_v8  ;;  %v22135_v8 = vpop.f32.mrf.mxu0 }
 0x451   :  { %15933 = vmatpush3.bf16.msra.mxu0 %v17180_v13  ;;  %14761 = vmatprep.mubr.msk.bf16.mxu1 %vm7014_vm1, %v21945_v34  ;;  %v17186_v34 = vld [vmem:[%s24489_s3 + $0x20] ss:$12 sps:$4 sm:$0xff]  }
 0x452   :  { %7913 = vmatpush1.bf16.msra.mxu1 %v17181_v16  ;;  %15934 = vmatprep.subr.bf16.mxu0 %v17182_v9  ;;  %v22147_v57 = vpop.f32.mrf.mxu0  ;;  %v17209_v13 = vld [vmem:[%s24489_s3 + $0x58c] ss:$12 sps:$4 sm:$0xff]   ;;  %v17207_v16 = vld [vmem:[%s24489_s3 + $0x588] ss:$12 sps:$4 sm:$0xff]  }
 0x453   :  { %7914 = vmatprep.subr.bf16.mxu1 %v24682_v38  ;;  %v17210_v9 = vld [vmem:[%s24489_s3 + $0x768] ss:$12 sps:$4 sm:$0xff]  }
 0x454   :  { %v22159_v31 = vpop.f32.mrf.mxu0 }
 0x455   :  { %15935 = vmatpush3.bf16.msra.mxu0 %v17183_v54  ;;  %v17215_v54 = vld [vmem:[%s24489_s3 + $0x574] ss:$12 sps:$4 sm:$0xff]  }
 0x456   :  { %7915 = vmatpush1.bf16.msra.mxu1 %v17184_v19  ;;  %15936 = vmatprep.subr.bf16.mxu0 %v17185_v49  ;;  %v22171_v39 = vpop.f32.mrf.mxu0  ;;  %v17218_v19 = vld [vmem:[%s24489_s3 + $0x754] ss:$12 sps:$4 sm:$0xff]  }
 0x457   :  { %7916 = vmatprep.subr.bf16.mxu1 %v24682_v38 }
 0x459   :  { %15937 = vmatpush3.bf16.msra.mxu0 %v17186_v34  ;;  %v22233_v34 = vpack.c.bf16 %v22106_v14, %v22069_v32  ;;  %v17222_v14 = vld [vmem:[%s24489_s3 + $0x738] ss:$12 sps:$4 sm:$0xff]  }
 0x45a   :  { %7917 = vmatpush1.bf16.msra.mxu1 %v17187_v52  ;;  %15938 = vmatprep.subr.bf16.mxu0 %v17188_v25  ;;  %v17213_v52 = vld [vmem:[%s24489_s3 + $0x570] ss:$12 sps:$4 sm:$0xff]  }
 0x45b   :  { %7918 = vmatprep.subr.bf16.mxu1 %v24682_v38  ;;  %v17216_v25 = vld [vmem:[%s24489_s3 + $0x750] ss:$12 sps:$4 sm:$0xff]  }
 0x45d   :  { %15939 = vmatpush3.bf16.msra.mxu0 %v17189_v35  ;;  %v17227_v35 = vld [vmem:[%s24489_s3 + $0x544] ss:$12 sps:$4 sm:$0xff]  }
 0x45e   :  { %7919 = vmatpush1.bf16.msra.mxu1 %v17190_v24  ;;  %8531 = vmatprep.subr.bf16.mxu0 %v17193_v22  ;;  %v17230_v24 = vld [vmem:[%s24489_s3 + $0x724] ss:$12 sps:$4 sm:$0xff]  }
 0x45f   :  { %7928 = vmatprep.subr.bf16.mxu1 %v24682_v38 }
 0x460   :  { %7880 = vmatmul.mubr.bf16.vlgmr.msra.gmra.mxu0 %v21634_v3  ;;  %v22185_v3 = vpop.f32.mrf.mxu0 }
 0x461   :  { %7887 = vmatprep.mubr.bf16.mxu0 %v22039_v46  ;;  %8532 = vmatpush1.bf16.msra.mxu0 %v17191_v58  ;;  %v17199_v46 = vld [vmem:[%s24489_s3 + $0x5b8] ss:$12 sps:$4 sm:$0xff]   ;;  %v17225_v58 = vld [vmem:[%s24489_s3 + $0x540] ss:$12 sps:$4 sm:$0xff]  }
 0x462   :  { %7929 = vmatpush2.bf16.msra.mxu1 %v17194_v61  ;;  %8533 = vmatprep.subr.bf16.mxu0 %v17197_v60  ;;  %v22197_v51 = vpop.f32.mrf.mxu0  ;;  %v17228_v61 = vld [vmem:[%s24489_s3 + $0x720] ss:$12 sps:$4 sm:$0xff]  }
 0x463   :  { %7930 = vmatprep.subr.bf16.mxu1 %v24682_v38  ;;  %v17233_v60 = vld [vmem:[%s24489_s3 + $0x6ac] ss:$12 sps:$4 sm:$0xff]  }
 0x465   :  { %8534 = vmatpush1.bf16.msra.mxu0 %v17195_v12 }
 0x466   :  { %7931 = vmatpush2.bf16.msra.mxu1 %v17198_v47  ;;  %8535 = vmatprep.subr.bf16.mxu0 %v17201_v11  ;;  %v17234_v47 = vld [vmem:[%s24489_s3 + $0x708] ss:$12 sps:$4 sm:$0xff]  }
 0x467   :  { %7932 = vmatprep.subr.bf16.mxu1 %v24682_v38  ;;  %v17239_v11 = vld [vmem:[%s24489_s3 + $0x694] ss:$12 sps:$4 sm:$0xff]  }
 0x468   :  { %7888 = vmatmul.mubr.bf16.gmra.mxu0 %v21646_v62  ;;  %v17212_v62 = vld [vmem:[%s24489_s3 + $0x76c] ss:$12 sps:$4 sm:$0xff]  }
 0x469   :  { %7895 = vmatprep.mubr.bf16.mxu0 %v22076_v21  ;;  %8536 = vmatpush1.bf16.msra.mxu0 %v17199_v46  ;;  %v22214_v21 = vpop.f32.mrf.mxu0  ;;  %v17242_v46 = vld [vmem:[%s24489_s3 + $0x6f4] ss:$12 sps:$4 sm:$0xff]  }
 0x46a   :  { %7933 = vmatpush2.bf16.msra.mxu1 %v17202_v0  ;;  %8537 = vmatprep.subr.bf16.mxu0 %v17205_v37  ;;  %v17237_v37 = vld [vmem:[%s24489_s3 + $0x690] ss:$12 sps:$4 sm:$0xff]  }
 0x46b   :  { %7934 = vmatprep.subr.bf16.mxu1 %v24682_v38  ;;  %v22228_v49 = vpop.f32.mrf.mxu0 }
 0x46d   :  { %8538 = vmatpush1.bf16.msra.mxu0 %v17203_v7  ;;  %v22250_v32 = vpop.f32.mrf.mxu0  ;;  %v22304_v7 = vpack.c.bf16 %v21773_v18, %v21756_v20  ;;  %v17243_v18 = vld [vmem:[%s24489_s3 + $0x678] ss:$12 sps:$4 sm:$0xff]  }
 0x46e   :  { %7935 = vmatpush2.bf16.msra.mxu1 %v17206_v30  ;;  %8539 = vmatprep.subr.bf16.mxu0 %v17209_v13  ;;  %v17240_v30 = vld [vmem:[%s24489_s3 + $0x6f0] ss:$12 sps:$4 sm:$0xff]  }
 0x46f   :  { %8594 = vmatprep.subr.bf16.mxu1 %v17212_v62  ;;  %v22265_v22 = vpop.f32.mrf.mxu0  ;;  %v17245_v13 = vld [vmem:[%s24489_s3 + $0x67c] ss:$12 sps:$4 sm:$0xff]   ;;  %v17246_v62 = vld [vmem:[%s24489_s3 + $0x6d8] ss:$12 sps:$4 sm:$0xff]  }
 0x470   :  { %7896 = vmatmul.mubr.bf16.gmra.mxu0 %v21658_v1  ;;  %v17221_v1 = vld [vmem:[%s24489_s3 + $0x55c] ss:$12 sps:$4 sm:$0xff]  }
 0x471   :  { %7937 = vmatmul.mubr.bf16.vlgmr.msra.gmra.mxu1 %v21636_v15  ;;  %8540 = vmatpush1.bf16.msra.mxu0 %v17207_v16  ;;  %v17224_v15 = vld [vmem:[%s24489_s3 + $0x73c] ss:$12 sps:$4 sm:$0xff]   ;;  %v22282_v12 = vpop.f32.mrf.mxu0  ;;  %v17251_v16 = vld [vmem:[%s24489_s3 + $0x664] ss:$12 sps:$4 sm:$0xff]  }
 0x472   :  { %14762 = vmatprep.mubr.msk.bf16.mxu1 %vm7014_vm1, %v22050_v26  ;;  %8595 = vmatpush1.bf16.msra.mxu1 %v17210_v9  ;;  %v17219_v26 = vld [vmem:[%s24489_s3 + $0x558] ss:$12 sps:$4 sm:$0xff]  }
 0x473   :  { %8541 = vmatprep.subr.bf16.mxu0 %v17215_v54  ;;  %8596 = vmatprep.subr.bf16.mxu1 %v17218_v19  ;;  %v22296_v0 = vpop.f32.mrf.mxu0  ;;  %v17254_v9 = vld [vmem:[%s24489_s3 + $0x6c4] ss:$12 sps:$4 sm:$0xff]   ;;  %v17249_v19 = vld [vmem:[%s24489_s3 + $0x660] ss:$12 sps:$4 sm:$0xff]  }
 0x474   :  { %8563 = vmatprep.mubr.bf16.mxu0 %v22233_v34 }
 0x475   :  { %8542 = vmatpush1.bf16.msra.mxu0 %v17213_v52  ;;  %v22317_v20 = vpop.f32.mrf.mxu0  ;;  %v17252_v52 = vld [vmem:[%s24489_s3 + $0x6c0] ss:$12 sps:$4 sm:$0xff]  }
 0x476   :  { %8597 = vmatpush1.bf16.msra.mxu1 %v17216_v25  ;;  %8543 = vmatprep.subr.bf16.mxu0 %v17221_v1  ;;  %v17257_v25 = vld [vmem:[%s24489_s3 + $0x64c] ss:$12 sps:$4 sm:$0xff]  }
 0x477   :  { %8598 = vmatprep.subr.bf16.mxu1 %v17224_v15  ;;  %v22331_v54 = vpop.f32.mrf.mxu0  ;;  %v17260_v1 = vld [vmem:[%s24489_s3 + $0x7cc] ss:$12 sps:$4 sm:$0xff]  }
 0x479   :  { %7945 = vmatmul.mubr.bf16.gmra.mxu1 %v21648_v27  ;;  %8544 = vmatpush1.bf16.msra.mxu0 %v17219_v26  ;;  %v17236_v27 = vld [vmem:[%s24489_s3 + $0x70c] ss:$12 sps:$4 sm:$0xff]   ;;  %v22345_v15 = vpop.f32.mrf.mxu0  ;;  %v17255_v26 = vld [vmem:[%s24489_s3 + $0x648] ss:$12 sps:$4 sm:$0xff]  }
 0x47a   :  { %14763 = vmatprep.mubr.msk.bf16.mxu1 %vm7014_vm1, %v22086_v36  ;;  %8599 = vmatpush1.bf16.msra.mxu1 %v17222_v14  ;;  %v17231_v36 = vld [vmem:[%s24489_s3 + $0x6a8] ss:$12 sps:$4 sm:$0xff]  }
 0x47b   :  { %8545 = vmatprep.subr.bf16.mxu0 %v17227_v35  ;;  %8600 = vmatprep.subr.bf16.mxu1 %v17230_v24  ;;  %v17258_v14 = vld [vmem:[%s24489_s3 + $0x7c8] ss:$12 sps:$4 sm:$0xff]  }
 0x47c   :  { %v17263_v35 = vld [vmem:[%s24489_s3 + $0x634] ss:$12 sps:$4 sm:$0xff]  }
 0x47d   :  { %8546 = vmatpush1.bf16.msra.mxu0 %v17225_v58  ;;  %v17266_v24 = vld [vmem:[%s24489_s3 + $0x7b4] ss:$12 sps:$4 sm:$0xff]   ;;  %v22359_v58 = vpop.f32.mrf.mxu0 }
 0x47e   :  { %8601 = vmatpush1.bf16.msra.mxu1 %v17228_v61  ;;  %8547 = vmatprep.subr.bf16.mxu0 %v17233_v60  ;;  %v17261_v61 = vld [vmem:[%s24489_s3 + $0x630] ss:$12 sps:$4 sm:$0xff]  }
 0x47f   :  { %8602 = vmatprep.subr.bf16.mxu1 %v17236_v27  ;;  %v17264_v60 = vld [vmem:[%s24489_s3 + $0x7b0] ss:$12 sps:$4 sm:$0xff]  }
 0x480   :  { %v17269_v27 = vld [vmem:[%s24489_s3 + $0x61c] ss:$12 sps:$4 sm:$0xff]  }
 0x481   :  { %7953 = vmatmul.mubr.bf16.gmra.mxu1 %v21660_v23  ;;  %8548 = vmatpush2.bf16.msra.mxu0 %v17231_v36  ;;  %v17248_v23 = vld [vmem:[%s24489_s3 + $0x6dc] ss:$12 sps:$4 sm:$0xff]  }
 0x482   :  { %8603 = vmatpush1.bf16.msra.mxu1 %v17234_v47  ;;  %8549 = vmatprep.subr.bf16.mxu0 %v17239_v11  ;;  %v17272_v36 = vld [vmem:[%s24489_s3 + $0x79c] ss:$12 sps:$4 sm:$0xff]   ;;  %v22373_v47 = vpop.f32.mrf.mxu0  ;;  %v17267_v11 = vld [vmem:[%s24489_s3 + $0x618] ss:$12 sps:$4 sm:$0xff]  }
 0x483   :  { %8604 = vmatprep.subr.bf16.mxu1 %v17242_v46  ;;  %14960 = vmatprep.mubr.msk.bf16.mxu1 %vm7014_vm1, %v22304_v7  ;;  %v17270_v46 = vld [vmem:[%s24489_s3 + $0x798] ss:$12 sps:$4 sm:$0xff]  }
 0x485   :  { %8550 = vmatpush2.bf16.msra.mxu0 %v17237_v37  ;;  %v17275_v37 = vld [vmem:[%s24489_s3 + $0x604] ss:$12 sps:$4 sm:$0xff]  }
 0x486   :  { %8605 = vmatpush1.bf16.msra.mxu1 %v17240_v30  ;;  %8551 = vmatprep.subr.bf16.mxu0 %v17245_v13  ;;  %v17278_v30 = vld [vmem:[%s24489_s3 + $0x784] ss:$12 sps:$4 sm:$0xff]   ;;  %v22387_v13 = vpop.f32.mrf.mxu0 }
 0x487   :  { %8606 = vmatprep.subr.bf16.mxu1 %v17248_v23  ;;  %v17273_v23 = vld [vmem:[%s24489_s3 + $0x600] ss:$12 sps:$4 sm:$0xff]  }
 0x489   :  { %8552 = vmatpush2.bf16.msra.mxu0 %v17243_v18  ;;  %v17276_v18 = vld [vmem:[%s24489_s3 + $0x780] ss:$12 sps:$4 sm:$0xff]  }
 0x48a   :  { %8607 = vmatpush1.bf16.msra.mxu1 %v17246_v62  ;;  %8553 = vmatprep.subr.bf16.mxu0 %v17251_v16  ;;  %v17279_v62 = vld [vmem:[%s24489_s3 + $0x6b0] ss:$12 sps:$4 sm:$0xff]   ;;  %v22398_v16 = vpop.f32.mrf.mxu0 }
 0x48b   :  { %8608 = vmatprep.subr.bf16.mxu1 %v17254_v9  ;;  %v17280_v9 = vld [vmem:[%s24489_s3 + $0x5f0] ss:$12 sps:$4 sm:$0xff]  }
 0x48d   :  { %8554 = vmatpush2.bf16.msra.mxu0 %v17249_v19  ;;  %v22403_v19 = vpop.f32.mrf.mxu1 }
 0x48e   :  { %8609 = vmatpush1.bf16.msra.mxu1 %v17252_v52  ;;  %8555 = vmatprep.subr.bf16.mxu0 %v17257_v25  ;;  %v22407_v52 = vpack.c.bf16 %v22090_v42, %v22053_v28  ;;  %v17281_v25 = vld [vmem:[%s24489_s3 + $0x770] ss:$12 sps:$4 sm:$0xff]   ;;  %v22422_v28 = vpack.c.bf16 %v21801_v48, %v21787_v56  ;;  %v17284_v56 = vld [vmem:[%s24489_s3 + $0x758] ss:$12 sps:$4 sm:$0xff]   ;;  %v17285_v48 = vld [vmem:[%s24489_s3 + $0x680] ss:$12 sps:$4 sm:$0xff]  }
 0x48f   :  { %8618 = vmatprep.subr.bf16.mxu1 %v17260_v1  ;;  %v22414_v1 = vpack.c.bf16 %v21768_v17, %v21749_v40  ;;  %v17283_v40 = vld [vmem:[%s24489_s3 + $0x5d8] ss:$12 sps:$4 sm:$0xff]  }
 0x491   :  { %8556 = vmatpush2.bf16.msra.mxu0 %v17255_v26  ;;  %v17282_v26 = vld [vmem:[%s24489_s3 + $0x698] ss:$12 sps:$4 sm:$0xff]  }
 0x492   :  { %8619 = vmatpush2.bf16.msra.mxu1 %v17258_v14  ;;  %8557 = vmatprep.subr.bf16.mxu0 %v17263_v35 }
 0x493   :  { %8620 = vmatprep.subr.bf16.mxu1 %v17266_v24 }
 0x495   :  { %8558 = vmatpush2.bf16.msra.mxu0 %v17261_v61  ;;  %v22433_v61 = vpack.c.bf16 %v22159_v31, %v22135_v8 }
 0x496   :  { %8621 = vmatpush2.bf16.msra.mxu1 %v17264_v60  ;;  %8559 = vmatprep.subr.bf16.mxu0 %v17269_v27 }
 0x497   :  { %8622 = vmatprep.subr.bf16.mxu1 %v17272_v36  ;;  %v17286_v36 = vld [vmem:[%s24489_s3 + $0x5c0] ss:$12 sps:$4 sm:$0xff]  }
 0x499   :  { %8560 = vmatpush2.bf16.msra.mxu0 %v17267_v11 }
 0x49a   :  { %8623 = vmatpush2.bf16.msra.mxu1 %v17270_v46  ;;  %8561 = vmatprep.subr.bf16.mxu0 %v17275_v37  ;;  %v22458_v37 = vpack.c.bf16 %v22147_v57, %v22119_v55  ;;  %v22473_v55 = vpack.c.bf16 %v21831_v63, %v21816_v29  ;;  %v17290_v29 = vld [vmem:[%s24489_s3 + $0x728] ss:$12 sps:$4 sm:$0xff]   ;;  %v17291_v63 = vld [vmem:[%s24489_s3 + $0x650] ss:$12 sps:$4 sm:$0xff]  }
 0x49b   :  { %8624 = vmatprep.subr.bf16.mxu1 %v17278_v30  ;;  %v17287_v30 = vld [vmem:[%s24489_s3 + $0x740] ss:$12 sps:$4 sm:$0xff]  }
 0x49d   :  { %8562 = vmatpush2.bf16.msra.mxu0 %v17273_v23  ;;  %v22465_v23 = vpack.c.bf16 %v21799_v44, %v21785_v33  ;;  %v17289_v33 = vld [vmem:[%s24489_s3 + $0x5a8] ss:$12 sps:$4 sm:$0xff]  }
 0x49e   :  { %8625 = vmatpush2.bf16.msra.mxu1 %v17276_v18  ;;  %15958 = vmatprep.subr.bf16.mxu0 %v17279_v62  ;;  %v17288_v18 = vld [vmem:[%s24489_s3 + $0x668] ss:$12 sps:$4 sm:$0xff]  }
 0x49f   :  { %8714 = vmatprep.subr.bf16.mxu1 %v24682_v38  ;;  %v7058_v14 = vpop.f32.mrf.mxu0  ;;  %v7121_v35 = vpop.f32.mrf.mxu1 }
 0x4a0   :  { %8564 = vmatmul.mubr.bf16.vlgmr.msra.gmra.mxu0 %v22407_v52  ;;  %v22425_v42 = vadd.f32 %v7121_v35, %v7058_v14 }
 0x4a1   :  { %8627 = vmatmul.mubr.bf16.vlgmr.msra.gmra.mxu1 %v22414_v1  ;;  %15959 = vmatpush3.bf16.msra.mxu0 %v17280_v9  ;;  %v7060_v17 = vpop.f32.mrf.mxu0  ;;  %v7123_v24 = vpop.f32.mrf.mxu1 }
 0x4a2   :  { %14961 = vmatprep.mubr.msk.bf16.mxu1 %vm7014_vm1, %v22422_v28  ;;  %8715 = vmatpush1.bf16.msra.mxu1 %v17281_v25  ;;  %v22443_v60 = vadd.f32 %v7123_v24, %v7060_v17 }
 0x4a3   :  { %15960 = vmatprep.subr.bf16.mxu0 %v17282_v26  ;;  %8716 = vmatprep.subr.bf16.mxu1 %v24682_v38  ;;  %v7062_v27 = vpop.f32.mrf.mxu0  ;;  %v7125_v8 = vpop.f32.mrf.mxu1  ;;  %v22484_v26 = vpack.c.bf16 %v22214_v21, %v22185_v3 }
 0x4a4   :  { %8573 = vmatprep.mubr.bf16.mxu0 %v22433_v61  ;;  %v22447_v31 = vadd.f32 %v7125_v8, %v7062_v27  ;;  %v22516_v27 = vpack.c.bf16 %v21828_v4, %v21813_v5  ;;  %v17294_v8 = vld [vmem:[%s24489_s3 + $0x638] ss:$12 sps:$4 sm:$0xff]  }
 0x4a5   :  { %15961 = vmatpush3.bf16.msra.mxu0 %v17283_v40  ;;  %v22452_v11 = vpop.f32.mrf.mxu0  ;;  %v22454_v46 = vpop.f32.mrf.mxu1  ;;  %v17292_v40 = vld [vmem:[%s24489_s3 + $0x590] ss:$12 sps:$4 sm:$0xff]   ;;  %v17295_v5 = vld [vmem:[%s24489_s3 + $0x578] ss:$12 sps:$4 sm:$0xff]  }
 0x4a6   :  { %8717 = vmatpush1.bf16.msra.mxu1 %v17284_v56  ;;  %15962 = vmatprep.subr.bf16.mxu0 %v17285_v48  ;;  %v22509_v56 = vpack.c.bf16 %v22197_v51, %v22171_v39  ;;  %v17293_v48 = vld [vmem:[%s24489_s3 + $0x710] ss:$12 sps:$4 sm:$0xff]  }
 0x4a7   :  { %8718 = vmatprep.subr.bf16.mxu1 %v24682_v38  ;;  %v7068_v62 = vpop.f32.mrf.mxu0  ;;  %v7131_v9 = vpop.f32.mrf.mxu1 }
 0x4a8   :  { %8574 = vmatmul.mubr.bf16.gmra.mxu0 %v22458_v37  ;;  %v22476_v57 = vadd.f32 %v7131_v9, %v7068_v62  ;;  %v17297_v62 = vld [vmem:[%s24489_s3 + $0x620] ss:$12 sps:$4 sm:$0xff]  }
 0x4a9   :  { %8637 = vmatmul.mubr.bf16.gmra.mxu1 %v22465_v23  ;;  %15963 = vmatpush3.bf16.msra.mxu0 %v17286_v36  ;;  %v7070_v44 = vpop.f32.mrf.mxu0  ;;  %v7133_v25 = vpop.f32.mrf.mxu1 }
 0x4aa   :  { %14962 = vmatprep.mubr.msk.bf16.mxu1 %vm7014_vm1, %v22473_v55  ;;  %8719 = vmatpush1.bf16.msra.mxu1 %v17287_v30  ;;  %v22494_v14 = vadd.f32 %v7133_v25, %v7070_v44  ;;  %v17298_v25 = vld [vmem:[%s24489_s3 + $0x560] ss:$12 sps:$4 sm:$0xff]  }
 0x4ab   :  { %15964 = vmatprep.subr.bf16.mxu0 %v17288_v18  ;;  %8720 = vmatprep.subr.bf16.mxu1 %v24682_v38  ;;  %v7072_v35 = vpop.f32.mrf.mxu0  ;;  %v7135_v3 = vpop.f32.mrf.mxu1  ;;  %v17296_v18 = vld [vmem:[%s24489_s3 + $0x6f8] ss:$12 sps:$4 sm:$0xff]  }
 0x4ac   :  { %8583 = vmatprep.mubr.bf16.mxu0 %v22484_v26  ;;  %v22498_v21 = vadd.f32 %v7135_v3, %v7072_v35  ;;  %v17302_v35 = vld [vmem:[%s24489_s3 + $0x6c8] ss:$12 sps:$4 sm:$0xff]   ;;  %v17305_v3 = vld [vmem:[%s24489_s3 + $0x88c] ss:$12 sps:$4 sm:$0xff]  }
 0x4ad   :  { %15965 = vmatpush3.bf16.msra.mxu0 %v17289_v33  ;;  %v22503_v17 = vpop.f32.mrf.mxu0  ;;  %v22505_v24 = vpop.f32.mrf.mxu1 }
 0x4ae   :  { %8721 = vmatpush1.bf16.msra.mxu1 %v17290_v29  ;;  %15966 = vmatprep.subr.bf16.mxu0 %v17291_v63  ;;  %v17299_v29 = vld [vmem:[%s24489_s3 + $0x6e0] ss:$12 sps:$4 sm:$0xff]   ;;  %v17301_v63 = vld [vmem:[%s24489_s3 + $0x548] ss:$12 sps:$4 sm:$0xff]  }
 0x4af   :  { %8722 = vmatprep.subr.bf16.mxu1 %v24682_v38  ;;  %v7078_v36 = vpop.f32.mrf.mxu0  ;;  %v7141_v30 = vpop.f32.mrf.mxu1 }
 0x4b0   :  { %8584 = vmatmul.mubr.bf16.gmra.mxu0 %v22509_v56  ;;  %v22523_v39 = vadd.f32 %v7141_v30, %v7078_v36  ;;  %v17309_v36 = vld [vmem:[%s24489_s3 + $0x874] ss:$12 sps:$4 sm:$0xff]  }
 0x4b1   :  { %8647 = vmatmul.mubr.bf16.gmra.mxu1 %v22516_v27  ;;  %15967 = vmatpush3.bf16.msra.mxu0 %v17292_v40  ;;  %v7080_v4 = vpop.f32.mrf.mxu0  ;;  %v7143_v51 = vpop.f32.mrf.mxu1 }
 0x4b2   :  { %8689 = vmatprep.mubr.bf16.mxu0 %v22233_v34  ;;  %8723 = vmatpush1.bf16.msra.mxu1 %v17293_v48  ;;  %v22536_v9 = vadd.f32 %v7143_v51, %v7080_v4  ;;  %v17303_v48 = vld [vmem:[%s24489_s3 + $0x888] ss:$12 sps:$4 sm:$0xff]   ;;  %v17307_v4 = vld [vmem:[%s24489_s3 + $0x870] ss:$12 sps:$4 sm:$0xff]  }
 0x4b3   :  { %14963 = vmatprep.mubr.msk.bf16.mxu1 %vm7014_vm1, %v22304_v7  ;;  %15968 = vmatprep.subr.bf16.mxu0 %v17294_v8  ;;  %v7082_v33 = vpop.f32.mrf.mxu0  ;;  %v7145_v44 = vpop.f32.mrf.mxu1  ;;  %v17300_v7 = vld [vmem:[%s24489_s3 + $0x608] ss:$12 sps:$4 sm:$0xff]   ;;  %v17306_v8 = vld [vmem:[%s24489_s3 + $0x7d0] ss:$12 sps:$4 sm:$0xff]  }
 0x4b4   :  { %8724 = vmatprep.subr.bf16.mxu1 %v24682_v38  ;;  %v22541_v34 = vadd.f32 %v7145_v44, %v7082_v33  ;;  %v17311_v33 = vld [vmem:[%s24489_s3 + $0x858] ss:$12 sps:$4 sm:$0xff]   ;;  %v17314_v44 = vld [vmem:[%s24489_s3 + $0x7a0] ss:$12 sps:$4 sm:$0xff]  }
 0x4b5   :  { %15969 = vmatpush3.bf16.msra.mxu0 %v17295_v5  ;;  %v22563_v40 = vpop.f32.mrf.mxu0 }
 0x4b6   :  { %8725 = vmatpush1.bf16.msra.mxu1 %v17296_v18  ;;  %15970 = vmatprep.subr.bf16.mxu0 %v17297_v62  ;;  %v17310_v18 = vld [vmem:[%s24489_s3 + $0x7b8] ss:$12 sps:$4 sm:$0xff]   ;;  %v17313_v62 = vld [vmem:[%s24489_s3 + $0x85c] ss:$12 sps:$4 sm:$0xff]  }
 0x4b7   :  { %8726 = vmatprep.subr.bf16.mxu1 %v24682_v38 }
 0x4b9   :  { %15971 = vmatpush3.bf16.msra.mxu0 %v17298_v25  ;;  %v17317_v25 = vld [vmem:[%s24489_s3 + $0x844] ss:$12 sps:$4 sm:$0xff]  }
 0x4ba   :  { %8727 = vmatpush1.bf16.msra.mxu1 %v17299_v29  ;;  %15972 = vmatprep.subr.bf16.mxu0 %v17300_v7  ;;  %v17315_v7 = vld [vmem:[%s24489_s3 + $0x840] ss:$12 sps:$4 sm:$0xff]  }
 0x4bb   :  { %8728 = vmatprep.subr.bf16.mxu1 %v24682_v38 }
 0x4bd   :  { %15973 = vmatpush3.bf16.msra.mxu0 %v17301_v63 }
 0x4be   :  { %8729 = vmatpush1.bf16.msra.mxu1 %v17302_v35  ;;  %9359 = vmatprep.subr.bf16.mxu0 %v17305_v3  ;;  %v17318_v35 = vld [vmem:[%s24489_s3 + $0x788] ss:$12 sps:$4 sm:$0xff]  }
 0x4bf   :  { %v15906_v30 = vpop.f32.mrf.mxu0  ;;  %8738 = vmatprep.subr.bf16.mxu1 %v24682_v38 }
 0x4c0   :  { %8690 = vmatmul.mubr.bf16.vlgmr.msra.gmra.mxu0 %v22407_v52 }
 0x4c1   :  { %8697 = vmatprep.mubr.bf16.mxu0 %v22433_v61  ;;  %9360 = vmatpush1.bf16.msra.mxu0 %v17303_v48  ;;  %v15907_v5 = vpop.f32.mrf.mxu0  ;;  %v17321_v48 = vld [vmem:[%s24489_s3 + $0x82c] ss:$12 sps:$4 sm:$0xff]  }
 0x4c2   :  { %8739 = vmatpush2.bf16.msra.mxu1 %v17306_v8  ;;  %v15908_v51 = vadd.f32 %v15907_v5, %v15906_v30  ;;  %9361 = vmatprep.subr.bf16.mxu0 %v17309_v36  ;;  %v22612_v8 = vpop.f32.mrf.mxu1  ;;  %v17319_v36 = vld [vmem:[%s24489_s3 + $0x828] ss:$12 sps:$4 sm:$0xff]  }
 0x4c3   :  { %v15909_v52 = vpop.f32.mrf.mxu0  ;;  %8740 = vmatprep.subr.bf16.mxu1 %v24682_v38 }
 0x4c5   :  { %9362 = vmatpush1.bf16.msra.mxu0 %v17307_v4  ;;  %v15910_v61 = vpop.f32.mrf.mxu0  ;;  %v17322_v4 = vld [vmem:[%s24489_s3 + $0xa08] ss:$12 sps:$4 sm:$0xff]  }
 0x4c6   :  { %8741 = vmatpush2.bf16.msra.mxu1 %v17310_v18  ;;  %9363 = vmatprep.subr.bf16.mxu0 %v17313_v62  ;;  %v17327_v18 = vld [vmem:[%s24489_s3 + $0x814] ss:$12 sps:$4 sm:$0xff]  }
 0x4c7   :  { %8742 = vmatprep.subr.bf16.mxu1 %v24682_v38  ;;  %v15912_v29 = vpop.f32.mrf.mxu0 }
 0x4c8   :  { %8698 = vmatmul.mubr.bf16.gmra.mxu0 %v22458_v37  ;;  %v17324_v37 = vld [vmem:[%s24489_s3 + $0xa0c] ss:$12 sps:$4 sm:$0xff]  }
 0x4c9   :  { %8705 = vmatprep.mubr.bf16.mxu0 %v22484_v26  ;;  %9364 = vmatpush1.bf16.msra.mxu0 %v17311_v33  ;;  %v15913_v63 = vpop.f32.mrf.mxu0  ;;  %v22625_v33 = vpack.c.bf16 %v22282_v12, %v22250_v32  ;;  %v17333_v12 = vld [vmem:[%s24489_s3 + $0x7fc] ss:$12 sps:$4 sm:$0xff]  }
 0x4ca   :  { %8743 = vmatpush2.bf16.msra.mxu1 %v17314_v44  ;;  %9365 = vmatprep.subr.bf16.mxu0 %v17317_v25  ;;  %v15914_v3 = vadd.f32 %v15913_v63, %v15912_v29  ;;  %v17330_v25 = vld [vmem:[%s24489_s3 + $0x9f4] ss:$12 sps:$4 sm:$0xff]  }
 0x4cb   :  { %8744 = vmatprep.subr.bf16.mxu1 %v24682_v38  ;;  %v15915_v26 = vpop.f32.mrf.mxu0 }
 0x4cd   :  { %9366 = vmatpush1.bf16.msra.mxu0 %v17315_v7  ;;  %v15916_v30 = vpop.f32.mrf.mxu0  ;;  %v17325_v7 = vld [vmem:[%s24489_s3 + $0x810] ss:$12 sps:$4 sm:$0xff]  }
 0x4ce   :  { %8745 = vmatpush2.bf16.msra.mxu1 %v17318_v35  ;;  %9367 = vmatprep.subr.bf16.mxu0 %v17321_v48  ;;  %v15911_v35 = vadd.f32 %v15910_v61, %v15909_v52  ;;  %v17331_v61 = vld [vmem:[%s24489_s3 + $0x7f8] ss:$12 sps:$4 sm:$0xff]  }
 0x4cf   :  { %v7241_v5 = vpop.f32.mrf.mxu1  ;;  %9422 = vmatprep.subr.bf16.mxu1 %v17324_v37  ;;  %v15918_v62 = vpop.f32.mrf.mxu0  ;;  %v17339_v48 = vld [vmem:[%s24489_s3 + $0x7e4] ss:$12 sps:$4 sm:$0xff]  }
 0x4d0   :  { %v22627_v44 = vadd.f32 %v15908_v51, %v7241_v5  ;;  %8706 = vmatmul.mubr.bf16.gmra.mxu0 %v22509_v56  ;;  %v17328_v56 = vld [vmem:[%s24489_s3 + $0x9f0] ss:$12 sps:$4 sm:$0xff]  }
 0x4d1   :  { %8747 = vmatmul.mubr.bf16.vlgmr.msra.gmra.mxu1 %v22414_v1  ;;  %9368 = vmatpush1.bf16.msra.mxu0 %v17319_v36  ;;  %v7243_v29 = vpop.f32.mrf.mxu1  ;;  %v15919_v63 = vpop.f32.mrf.mxu0  ;;  %v17334_v36 = vld [vmem:[%s24489_s3 + $0x9d8] ss:$12 sps:$4 sm:$0xff]  }
 0x4d2   :  { %14964 = vmatprep.mubr.msk.bf16.mxu1 %vm7014_vm1, %v22422_v28  ;;  %9391 = vmatprep.mubr.bf16.mxu0 %v22625_v33  ;;  %v15920_v32 = vadd.f32 %v15919_v63, %v15918_v62  ;;  %v17336_v28 = vld [vmem:[%s24489_s3 + $0x9dc] ss:$12 sps:$4 sm:$0xff]   ;;  %v17337_v62 = vld [vmem:[%s24489_s3 + $0x7e0] ss:$12 sps:$4 sm:$0xff]  }
 0x4d3   :  { %9423 = vmatpush1.bf16.msra.mxu1 %v17322_v4  ;;  %v7244_v1 = vpop.f32.mrf.mxu1  ;;  %9369 = vmatprep.subr.bf16.mxu0 %v17327_v18  ;;  %v17342_v4 = vld [vmem:[%s24489_s3 + $0x9c4] ss:$12 sps:$4 sm:$0xff]   ;;  %v15921_v29 = vpop.f32.mrf.mxu0 }
 0x4d4   :  { %v22646_v51 = vadd.f32 %v15911_v35, %v7244_v1  ;;  %9424 = vmatprep.subr.bf16.mxu1 %v17330_v25  ;;  %v15917_v25 = vadd.f32 %v15916_v30, %v15915_v26  ;;  %v17348_v26 = vld [vmem:[%s24489_s3 + $0x9ac] ss:$12 sps:$4 sm:$0xff]   ;;  %v17343_v30 = vld [vmem:[%s24489_s3 + $0x948] ss:$12 sps:$4 sm:$0xff]  }
 0x4d5   :  { %9370 = vmatpush1.bf16.msra.mxu0 %v17325_v7  ;;  %v7246_v52 = vpop.f32.mrf.mxu1  ;;  %v17351_v35 = vld [vmem:[%s24489_s3 + $0x934] ss:$12 sps:$4 sm:$0xff]  }
 0x4d6   :  { %9371 = vmatprep.subr.bf16.mxu0 %v17333_v12  ;;  %v15922_v12 = vpop.f32.mrf.mxu0 }
 0x4d7   :  { %9425 = vmatpush1.bf16.msra.mxu1 %v17328_v56  ;;  %v7249_v37 = vpop.f32.mrf.mxu1  ;;  %v17346_v56 = vld [vmem:[%s24489_s3 + $0x9a8] ss:$12 sps:$4 sm:$0xff]  }
 0x4d8   :  { %v22660_v5 = vadd.f32 %v15914_v3, %v7249_v37  ;;  %9426 = vmatprep.subr.bf16.mxu1 %v17336_v28  ;;  %v17345_v3 = vld [vmem:[%s24489_s3 + $0x94c] ss:$12 sps:$4 sm:$0xff]   ;;  %v22693_v28 = vpack.c.bf16 %v21860_v41, %v21844_v50  ;;  %v17349_v37 = vld [vmem:[%s24489_s3 + $0x930] ss:$12 sps:$4 sm:$0xff]  }
 0x4d9   :  { %8755 = vmatmul.mubr.bf16.gmra.mxu1 %v22465_v23  ;;  %9372 = vmatpush1.bf16.msra.mxu0 %v17331_v61  ;;  %v7251_v18 = vpop.f32.mrf.mxu1  ;;  %v17340_v23 = vld [vmem:[%s24489_s3 + $0x9c0] ss:$12 sps:$4 sm:$0xff]   ;;  %v17357_v50 = vld [vmem:[%s24489_s3 + $0x91c] ss:$12 sps:$4 sm:$0xff]  }
 0x4da   :  { %14965 = vmatprep.mubr.msk.bf16.mxu1 %vm7014_vm1, %v22473_v55  ;;  %9373 = vmatprep.subr.bf16.mxu0 %v17339_v48  ;;  %v17354_v61 = vld [vmem:[%s24489_s3 + $0x994] ss:$12 sps:$4 sm:$0xff]  }
 0x4db   :  { %9427 = vmatpush1.bf16.msra.mxu1 %v17334_v36  ;;  %v7252_v7 = vpop.f32.mrf.mxu1  ;;  %v15923_v36 = vadd.f32 %v15922_v12, %v15921_v29  ;;  %v17366_v29 = vld [vmem:[%s24489_s3 + $0x964] ss:$12 sps:$4 sm:$0xff]   ;;  %v17370_v12 = vld [vmem:[%s24489_s3 + $0xa68] ss:$12 sps:$4 sm:$0xff]  }
 0x4dc   :  { %v22677_v63 = vadd.f32 %v15917_v25, %v7252_v7  ;;  %9428 = vmatprep.subr.bf16.mxu1 %v17342_v4  ;;  %v17360_v4 = vld [vmem:[%s24489_s3 + $0x97c] ss:$12 sps:$4 sm:$0xff]   ;;  %v17363_v25 = vld [vmem:[%s24489_s3 + $0x904] ss:$12 sps:$4 sm:$0xff]   ;;  %v17361_v7 = vld [vmem:[%s24489_s3 + $0x900] ss:$12 sps:$4 sm:$0xff]  }
 0x4dd   :  { %9374 = vmatpush1.bf16.msra.mxu0 %v17337_v62  ;;  %v7254_v55 = vpop.f32.mrf.mxu1  ;;  %v17355_v62 = vld [vmem:[%s24489_s3 + $0x918] ss:$12 sps:$4 sm:$0xff]  }
 0x4de   :  { %9375 = vmatprep.subr.bf16.mxu0 %v17345_v3  ;;  %v17358_v3 = vld [vmem:[%s24489_s3 + $0x978] ss:$12 sps:$4 sm:$0xff]  }
 0x4df   :  { %9429 = vmatpush1.bf16.msra.mxu1 %v17340_v23  ;;  %v7257_v1 = vpop.f32.mrf.mxu1  ;;  %v17369_v23 = vld [vmem:[%s24489_s3 + $0x8ec] ss:$12 sps:$4 sm:$0xff]  }
 0x4e0   :  { %v22695_v52 = vadd.f32 %v15920_v32, %v7257_v1  ;;  %9430 = vmatprep.subr.bf16.mxu1 %v17348_v26  ;;  %v17364_v26 = vld [vmem:[%s24489_s3 + $0x960] ss:$12 sps:$4 sm:$0xff]  }
 0x4e1   :  { %8763 = vmatmul.mubr.bf16.gmra.mxu1 %v22516_v27  ;;  %9376 = vmatpush2.bf16.msra.mxu0 %v17343_v30  ;;  %v7259_v48 = vpop.f32.mrf.mxu1  ;;  %v17352_v27 = vld [vmem:[%s24489_s3 + $0x990] ss:$12 sps:$4 sm:$0xff]   ;;  %v17372_v55 = vld [vmem:[%s24489_s3 + $0xa6c] ss:$12 sps:$4 sm:$0xff]   ;;  %v17367_v30 = vld [vmem:[%s24489_s3 + $0x8e8] ss:$12 sps:$4 sm:$0xff]  }
 0x4e2   :  { %15162 = vmatprep.mubr.msk.bf16.mxu1 %vm7014_vm1, %v22693_v28  ;;  %9377 = vmatprep.subr.bf16.mxu0 %v17351_v35  ;;  %v17375_v35 = vld [vmem:[%s24489_s3 + $0x8d4] ss:$12 sps:$4 sm:$0xff]   ;;  %v17376_v48 = vld [vmem:[%s24489_s3 + $0xa50] ss:$12 sps:$4 sm:$0xff]  }
 0x4e3   :  { %9431 = vmatpush1.bf16.msra.mxu1 %v17346_v56  ;;  %v7260_v41 = vpop.f32.mrf.mxu1  ;;  %v17378_v1 = vld [vmem:[%s24489_s3 + $0xa54] ss:$12 sps:$4 sm:$0xff]   ;;  %v17373_v56 = vld [vmem:[%s24489_s3 + $0x8d0] ss:$12 sps:$4 sm:$0xff]  }
 0x4e4   :  { %v22712_v32 = vadd.f32 %v15923_v36, %v7260_v41  ;;  %9432 = vmatprep.subr.bf16.mxu1 %v17354_v61  ;;  %v17381_v61 = vld [vmem:[%s24489_s3 + $0x8bc] ss:$12 sps:$4 sm:$0xff]   ;;  %v17379_v36 = vld [vmem:[%s24489_s3 + $0x8b8] ss:$12 sps:$4 sm:$0xff]  }
 0x4e5   :  { %9378 = vmatpush2.bf16.msra.mxu0 %v17349_v37  ;;  %v7262_v18 = vpop.f32.mrf.mxu1  ;;  %v17384_v37 = vld [vmem:[%s24489_s3 + $0xa3c] ss:$12 sps:$4 sm:$0xff]   ;;  %v17382_v41 = vld [vmem:[%s24489_s3 + $0xa38] ss:$12 sps:$4 sm:$0xff]  }
 0x4e6   :  { %9379 = vmatprep.subr.bf16.mxu0 %v17357_v50  ;;  %v17387_v50 = vld [vmem:[%s24489_s3 + $0x8a4] ss:$12 sps:$4 sm:$0xff]  }
 0x4e7   :  { %9433 = vmatpush1.bf16.msra.mxu1 %v17352_v27  ;;  %v17390_v27 = vld [vmem:[%s24489_s3 + $0xa24] ss:$12 sps:$4 sm:$0xff]  }
 0x4e8   :  { %9434 = vmatprep.subr.bf16.mxu1 %v17360_v4  ;;  %v17385_v4 = vld [vmem:[%s24489_s3 + $0x8a0] ss:$12 sps:$4 sm:$0xff]   ;;  %v17391_v18 = vld [vmem:[%s24489_s3 + $0x950] ss:$12 sps:$4 sm:$0xff]  }
 0x4e9   :  { %9380 = vmatpush2.bf16.msra.mxu0 %v17355_v62  ;;  %v17388_v62 = vld [vmem:[%s24489_s3 + $0xa20] ss:$12 sps:$4 sm:$0xff]  }
 0x4ea   :  { %9381 = vmatprep.subr.bf16.mxu0 %v17363_v25  ;;  %v17392_v25 = vld [vmem:[%s24489_s3 + $0x890] ss:$12 sps:$4 sm:$0xff]  }
 0x4eb   :  { %9435 = vmatpush1.bf16.msra.mxu1 %v17358_v3  ;;  %v22791_v3 = vpack.c.bf16 %v22265_v22, %v22228_v49  ;;  %v22808_v49 = vpack.c.bf16 %v21904_v6, %v21886_v59  ;;  %v17397_v59 = vld [vmem:[%s24489_s3 + $0x920] ss:$12 sps:$4 sm:$0xff]  }
 0x4ec   :  { %9436 = vmatprep.subr.bf16.mxu1 %v17366_v29  ;;  %v17394_v29 = vld [vmem:[%s24489_s3 + $0x938] ss:$12 sps:$4 sm:$0xff]  }
 0x4ed   :  { %9382 = vmatpush2.bf16.msra.mxu0 %v17361_v7  ;;  %v22798_v7 = vpack.c.bf16 %v22345_v15, %v22317_v20  ;;  %v17395_v20 = vld [vmem:[%s24489_s3 + $0x878] ss:$12 sps:$4 sm:$0xff]  }
 0x4ee   :  { %9383 = vmatprep.subr.bf16.mxu0 %v17369_v23 }
 0x4ef   :  { %9437 = vmatpush1.bf16.msra.mxu1 %v17364_v26  ;;  %v17393_v26 = vld [vmem:[%s24489_s3 + $0xa10] ss:$12 sps:$4 sm:$0xff]  }
 0x4f0   :  { %9446 = vmatprep.subr.bf16.mxu1 %v17372_v55 }
 0x4f1   :  { %9384 = vmatpush2.bf16.msra.mxu0 %v17367_v30 }
 0x4f2   :  { %9385 = vmatprep.subr.bf16.mxu0 %v17375_v35 }
 0x4f3   :  { %9447 = vmatpush2.bf16.msra.mxu1 %v17370_v12  ;;  %v17396_v12 = vld [vmem:[%s24489_s3 + $0x9f8] ss:$12 sps:$4 sm:$0xff]  }
 0x4f4   :  { %9448 = vmatprep.subr.bf16.mxu1 %v17378_v1 }
 0x4f5   :  { %9386 = vmatpush2.bf16.msra.mxu0 %v17373_v56 }
 0x4f6   :  { %9387 = vmatprep.subr.bf16.mxu0 %v17381_v61 }
 0x4f7   :  { %9449 = vmatpush2.bf16.msra.mxu1 %v17376_v48  ;;  %v17398_v48 = vld [vmem:[%s24489_s3 + $0x860] ss:$12 sps:$4 sm:$0xff]  }
 0x4f8   :  { %9450 = vmatprep.subr.bf16.mxu1 %v17384_v37  ;;  %v22837_v37 = vpack.c.bf16 %v22331_v54, %v22296_v0  ;;  %v17399_v0 = vld [vmem:[%s24489_s3 + $0x9e0] ss:$12 sps:$4 sm:$0xff]  }
 0x4f9   :  { %9388 = vmatpush2.bf16.msra.mxu0 %v17379_v36 }
 0x4fa   :  { %9389 = vmatprep.subr.bf16.mxu0 %v17387_v50 }
 0x4fb   :  { %9451 = vmatpush2.bf16.msra.mxu1 %v17382_v41  ;;  %v22848_v41 = vpack.c.bf16 %v22398_v16, %v22373_v47  ;;  %v17401_v16 = vld [vmem:[%s24489_s3 + $0x848] ss:$12 sps:$4 sm:$0xff]  }
 0x4fc   :  { %9452 = vmatprep.subr.bf16.mxu1 %v17390_v27 }
 0x4fd   :  { %9390 = vmatpush2.bf16.msra.mxu0 %v17385_v4 }
 0x4fe   :  { %15992 = vmatprep.subr.bf16.mxu0 %v17391_v18  ;;  %v22858_v18 = vpack.c.bf16 %v22403_v19, %v21921_v43  ;;  %v17403_v43 = vld [vmem:[%s24489_s3 + $0x8f0] ss:$12 sps:$4 sm:$0xff]  }
 0x4ff   :  { %9453 = vmatpush2.bf16.msra.mxu1 %v17388_v62  ;;  %v7755_v23 = vpop.f32.mrf.mxu0 }
 0x500   :  { %v7756_v55 = vadd.f32 %v7755_v23, %v22425_v42  ;;  %v7818_v30 = vpop.f32.mrf.mxu1  ;;  %9392 = vmatmul.mubr.bf16.vlgmr.msra.gmra.mxu0 %v22791_v3  ;;  %9542 = vmatprep.subr.bf16.mxu1 %v24682_v38  ;;  %v7138_v23 = vadd.f32 %v22505_v24, %v22503_v17 }
 0x501   :  { %9401 = vmatprep.mubr.bf16.mxu0 %v22798_v7  ;;  %15993 = vmatpush3.bf16.msra.mxu0 %v17392_v25  ;;  %v7757_v22 = vpop.f32.mrf.mxu0 }
 0x502   :  { %v22814_v15 = vadd.f32 %v7818_v30, %v7756_v55  ;;  %9455 = vmatmul.mubr.bf16.vlgmr.msra.gmra.mxu1 %v21865_v10  ;;  %v7758_v42 = vadd.f32 %v7757_v22, %v22443_v60  ;;  %v7820_v35 = vpop.f32.mrf.mxu1  ;;  %15994 = vmatprep.subr.bf16.mxu0 %v17394_v29  ;;  %v17402_v29 = vld [vmem:[%s24489_s3 + $0x9c8] ss:$12 sps:$4 sm:$0xff]   ;;  %v17404_v22 = vld [vmem:[%s24489_s3 + $0x830] ss:$12 sps:$4 sm:$0xff]  }
 0x503   :  { %15163 = vmatprep.mubr.msk.bf16.mxu1 %vm7014_vm1, %v22808_v49  ;;  %9543 = vmatpush1.bf16.msra.mxu1 %v17393_v26  ;;  %v7759_v6 = vpop.f32.mrf.mxu0 }
 0x504   :  { %v22826_v1 = vadd.f32 %v7820_v35, %v7758_v42  ;;  %v7760_v56 = vadd.f32 %v7759_v6, %v22447_v31  ;;  %v7822_v60 = vpop.f32.mrf.mxu1  ;;  %9544 = vmatprep.subr.bf16.mxu1 %v24682_v38  ;;  %v17400_v31 = vld [vmem:[%s24489_s3 + $0x908] ss:$12 sps:$4 sm:$0xff]  }
 0x505   :  { %15995 = vmatpush3.bf16.msra.mxu0 %v17395_v20  ;;  %v22830_v61 = vpop.f32.mrf.mxu0  ;;  %v22887_v20 = vpack.c.bf16 %v22387_v13, %v22359_v58 }
 0x506   :  { %v22839_v36 = vadd.f32 %v7822_v60, %v7760_v56  ;;  %v22841_v50 = vpop.f32.mrf.mxu1  ;;  %15996 = vmatprep.subr.bf16.mxu0 %v17397_v59  ;;  %v17405_v59 = vld [vmem:[%s24489_s3 + $0x9b0] ss:$12 sps:$4 sm:$0xff]   ;;  %v17407_v56 = vld [vmem:[%s24489_s3 + $0x818] ss:$12 sps:$4 sm:$0xff]  }
 0x507   :  { %9545 = vmatpush1.bf16.msra.mxu1 %v17396_v12  ;;  %v7765_v27 = vpop.f32.mrf.mxu0 }
 0x508   :  { %v7766_v54 = vadd.f32 %v7765_v27, %v22476_v57  ;;  %v7828_v4 = vpop.f32.mrf.mxu1  ;;  %9402 = vmatmul.mubr.bf16.gmra.mxu0 %v22837_v37  ;;  %9546 = vmatprep.subr.bf16.mxu1 %v24682_v38  ;;  %v17408_v27 = vld [vmem:[%s24489_s3 + $0x998] ss:$12 sps:$4 sm:$0xff]  }
 0x509   :  { %9411 = vmatprep.mubr.bf16.mxu0 %v22848_v41  ;;  %15997 = vmatpush3.bf16.msra.mxu0 %v17398_v48  ;;  %v7767_v47 = vpop.f32.mrf.mxu0 }
 0x50a   :  { %v22864_v62 = vadd.f32 %v7828_v4, %v7766_v54  ;;  %9465 = vmatmul.mubr.bf16.gmra.mxu1 %v21902_v45  ;;  %v7768_v57 = vadd.f32 %v7767_v47, %v22494_v14  ;;  %v7830_v25 = vpop.f32.mrf.mxu1  ;;  %15998 = vmatprep.subr.bf16.mxu0 %v17400_v31  ;;  %v17409_v31 = vld [vmem:[%s24489_s3 + $0x8c0] ss:$12 sps:$4 sm:$0xff]  }
 0x50b   :  { %15164 = vmatprep.mubr.msk.bf16.mxu1 %vm7014_vm1, %v22858_v18  ;;  %9547 = vmatpush1.bf16.msra.mxu1 %v17399_v0  ;;  %v7769_v19 = vpop.f32.mrf.mxu0  ;;  %v7148_v0 = vadd.f32 %v22612_v8, %v22563_v40  ;;  %v17412_v40 = vld [vmem:[%s24489_s3 + $0x8a8] ss:$12 sps:$4 sm:$0xff]  }
 0x50c   :  { %v22878_v26 = vadd.f32 %v7830_v25, %v7768_v57  ;;  %v7770_v14 = vadd.f32 %v7769_v19, %v22498_v21  ;;  %v7832_v55 = vpop.f32.mrf.mxu1  ;;  %9548 = vmatprep.subr.bf16.mxu1 %v24682_v38  ;;  %v17406_v21 = vld [vmem:[%s24489_s3 + $0x8d8] ss:$12 sps:$4 sm:$0xff]   ;;  %v17414_v19 = vld [vmem:[%s24489_s3 + $0x968] ss:$12 sps:$4 sm:$0xff]  }
 0x50d   :  { %15999 = vmatpush3.bf16.msra.mxu0 %v17401_v16  ;;  %v7771_v30 = vpop.f32.mrf.mxu0 }
 0x50e   :  { %v22889_v42 = vadd.f32 %v7832_v55, %v7770_v14  ;;  %v7772_v17 = vadd.f32 %v7771_v30, %v7138_v23  ;;  %v7834_v24 = vpop.f32.mrf.mxu1  ;;  %16000 = vmatprep.subr.bf16.mxu0 %v17403_v43  ;;  %v17413_v43 = vld [vmem:[%s24489_s3 + $0x7e8] ss:$12 sps:$4 sm:$0xff]   ;;  %v17419_v14 = vld [vmem:[%s24490_s4 + $0x1f0] ss:$8 sps:$4 sm:$0xff]  }
 0x50f   :  { %9549 = vmatpush1.bf16.msra.mxu1 %v17402_v29  ;;  %v7775_v35 = vpop.f32.mrf.mxu0  ;;  %v17415_v29 = vld [vmem:[%s24489_s3 + $0xa70] ss:$12 sps:$4 sm:$0xff]   ;;  %v17416_v30 = vld [vmem:[%s24489_s3 + $0xa58] ss:$12 sps:$4 sm:$0xff]  }
 0x510   :  { %v22897_v6 = vadd.f32 %v7834_v24, %v7772_v17  ;;  %v7776_v58 = vadd.f32 %v7775_v35, %v22523_v39  ;;  %v7838_v13 = vpop.f32.mrf.mxu1  ;;  %9412 = vmatmul.mubr.bf16.gmra.mxu0 %v22887_v20  ;;  %9550 = vmatprep.subr.bf16.mxu1 %v24682_v38  ;;  %v17421_v23 = vld [vmem:[%s24490_s4 + $0x1f4] ss:$8 sps:$4 sm:$0xff]   ;;  %v17424_v17 = vld [vmem:[%s24490_s4 + $0x1e4] ss:$8 sps:$4 sm:$0xff]  }
 0x511   :  { %16001 = vmatpush3.bf16.msra.mxu0 %v17404_v22  ;;  %9517 = vmatprep.mubr.bf16.mxu0 %v22625_v33  ;;  %v7777_v12 = vpop.f32.mrf.mxu0 }
 0x512   :  { %v22906_v60 = vadd.f32 %v7838_v13, %v7776_v58  ;;  %9475 = vmatmul.mubr.bf16.gmra.mxu1 %v21941_v53  ;;  %v7778_v48 = vadd.f32 %v7777_v12, %v22536_v9  ;;  %v7840_v39 = vpop.f32.mrf.mxu1  ;;  %16002 = vmatprep.subr.bf16.mxu0 %v17406_v21  ;;  %v17427_v58 = vld [vmem:[%s24490_s4 + $0x1d4] ss:$8 sps:$4 sm:$0xff]   ;;  %v17425_v12 = vld [vmem:[%s24490_s4 + $0x1d0] ss:$8 sps:$4 sm:$0xff]  }
 0x513   :  { %9551 = vmatpush1.bf16.msra.mxu1 %v17405_v59  ;;  %15165 = vmatprep.mubr.msk.bf16.mxu1 %vm7014_vm1, %v22693_v28  ;;  %v7779_v33 = vpop.f32.mrf.mxu0  ;;  %v17410_v28 = vld [vmem:[%s24489_s3 + $0x800] ss:$12 sps:$4 sm:$0xff]  }
 0x514   :  { %v22920_v54 = vadd.f32 %v7840_v39, %v7778_v48  ;;  %v7780_v9 = vadd.f32 %v7779_v33, %v22541_v34  ;;  %v7842_v4 = vpop.f32.mrf.mxu1  ;;  %9552 = vmatprep.subr.bf16.mxu1 %v24682_v38  ;;  %v17411_v34 = vld [vmem:[%s24489_s3 + $0x980] ss:$12 sps:$4 sm:$0xff]  }
 0x515   :  { %16003 = vmatpush3.bf16.msra.mxu0 %v17407_v56  ;;  %v7781_v47 = vpop.f32.mrf.mxu0 }
 0x516   :  { %v22927_v16 = vadd.f32 %v7842_v4, %v7780_v9  ;;  %v7782_v57 = vadd.f32 %v7781_v47, %v7148_v0  ;;  %16004 = vmatprep.subr.bf16.mxu0 %v17409_v31  ;;  %v7844_v8 = vpop.f32.mrf.mxu1  ;;  %v17428_v31 = vld [vmem:[%s24490_s4 + $0x1c0] ss:$8 sps:$4 sm:$0xff]   ;;  %v17436_v9 = vld [vmem:[%s24490_s4 + $0x1a4] ss:$8 sps:$4 sm:$0xff]  }
 0x517   :  { %9553 = vmatpush1.bf16.msra.mxu1 %v17408_v27 }
 0x518   :  { %v22935_v25 = vadd.f32 %v7844_v8, %v7782_v57  ;;  %9554 = vmatprep.subr.bf16.mxu1 %v24682_v38  ;;  %v17434_v57 = vld [vmem:[%s24490_s4 + $0x1a0] ss:$8 sps:$4 sm:$0xff]  }
 0x519   :  { %16005 = vmatpush3.bf16.msra.mxu0 %v17410_v28 }
 0x51a   :  { %16006 = vmatprep.subr.bf16.mxu0 %v17412_v40 }
 0x51b   :  { %9555 = vmatpush1.bf16.msra.mxu1 %v17411_v34 }
 0x51c   :  { %9556 = vmatprep.subr.bf16.mxu1 %v24682_v38 }
 0x51d   :  { %16007 = vmatpush3.bf16.msra.mxu0 %v17413_v43 }
 0x51e   :  { %10047 = vmatprep.subr.bf16.mxu0 %v17421_v23 }
 0x51f   :  { %9557 = vmatpush1.bf16.msra.mxu1 %v17414_v19 }
 0x520   :  { %v15940_v55 = vpop.f32.mrf.mxu0  ;;  %9518 = vmatmul.mubr.bf16.vlgmr.msra.gmra.mxu0 %v22791_v3  ;;  %9566 = vmatprep.subr.bf16.mxu1 %v24682_v38  ;;  %v17422_v3 = vld [vmem:[%s24490_s4 + $0x1e0] ss:$8 sps:$4 sm:$0xff]  }
 0x521   :  { %9525 = vmatprep.mubr.bf16.mxu0 %v22798_v7  ;;  %10048 = vmatpush1.bf16.msra.mxu0 %v17419_v14  ;;  %v17417_v7 = vld [vmem:[%s24489_s3 + $0xa40] ss:$12 sps:$4 sm:$0xff]  }
 0x522   :  { %v15941_v22 = vpop.f32.mrf.mxu0  ;;  %10049 = vmatprep.subr.bf16.mxu0 %v17424_v17  ;;  %v17440_v17 = vld [vmem:[%s24490_s4 + $0x180] ss:$8 sps:$4 sm:$0xff]  }
 0x523   :  { %9567 = vmatpush2.bf16.msra.mxu1 %v17415_v29  ;;  %v15942_v24 = vadd.f32 %v15941_v22, %v15940_v55 }
 0x524   :  { %v15943_v21 = vpop.f32.mrf.mxu0  ;;  %9568 = vmatprep.subr.bf16.mxu1 %v24682_v38 }
 0x525   :  { %v7882_v35 = vadd.f32 %v15942_v24, %v22627_v44  ;;  %10050 = vmatpush1.bf16.msra.mxu0 %v17422_v3  ;;  %v17430_v44 = vld [vmem:[%s24490_s4 + $0x1c4] ss:$8 sps:$4 sm:$0xff]  }
 0x526   :  { %v15944_v59 = vpop.f32.mrf.mxu0  ;;  %10051 = vmatprep.subr.bf16.mxu0 %v17427_v58 }
 0x527   :  { %9569 = vmatpush2.bf16.msra.mxu1 %v17416_v30  ;;  %v15945_v13 = vadd.f32 %v15944_v59, %v15943_v21 }
 0x528   :  { %v15946_v56 = vpop.f32.mrf.mxu0  ;;  %9526 = vmatmul.mubr.bf16.gmra.mxu0 %v22837_v37  ;;  %9570 = vmatprep.subr.bf16.mxu1 %v24682_v38  ;;  %v17418_v37 = vld [vmem:[%s24489_s3 + $0xa28] ss:$12 sps:$4 sm:$0xff]  }
 0x529   :  { %9533 = vmatprep.mubr.bf16.mxu0 %v22848_v41  ;;  %v7885_v48 = vadd.f32 %v15945_v13, %v22646_v51  ;;  %10052 = vmatpush1.bf16.msra.mxu0 %v17425_v12  ;;  %v17433_v41 = vld [vmem:[%s24490_s4 + $0x1b4] ss:$8 sps:$4 sm:$0xff]   ;;  %v17431_v51 = vld [vmem:[%s24490_s4 + $0x1b0] ss:$8 sps:$4 sm:$0xff]  }
 0x52a   :  { %v15947_v39 = vpop.f32.mrf.mxu0  ;;  %10053 = vmatprep.subr.bf16.mxu0 %v17430_v44 }
 0x52b   :  { %9571 = vmatpush2.bf16.msra.mxu1 %v17417_v7  ;;  %v15948_v33 = vadd.f32 %v15947_v39, %v15946_v56  ;;  %v17446_v56 = vld [vmem:[%s24490_s4 + $0x260] ss:$8 sps:$4 sm:$0xff]  }
 0x52c   :  { %v15949_v27 = vpop.f32.mrf.mxu0  ;;  %9572 = vmatprep.subr.bf16.mxu1 %v24682_v38 }
 0x52d   :  { %v7890_v0 = vadd.f32 %v15948_v33, %v22660_v5  ;;  %10054 = vmatpush1.bf16.msra.mxu0 %v17428_v31  ;;  %v17439_v5 = vld [vmem:[%s24490_s4 + $0x194] ss:$8 sps:$4 sm:$0xff]   ;;  %v17449_v31 = vld [vmem:[%s24490_s4 + $0x250] ss:$8 sps:$4 sm:$0xff]   ;;  %v17454_v33 = vld [vmem:[%s24490_s4 + $0x244] ss:$8 sps:$4 sm:$0xff]  }
 0x52e   :  { %v15950_v4 = vpop.f32.mrf.mxu0  ;;  %10055 = vmatprep.subr.bf16.mxu0 %v17433_v41  ;;  %v17457_v41 = vld [vmem:[%s24490_s4 + $0x234] ss:$8 sps:$4 sm:$0xff]  }
 0x52f   :  { %9573 = vmatpush2.bf16.msra.mxu1 %v17418_v37  ;;  %v15951_v47 = vadd.f32 %v15950_v4, %v15949_v27  ;;  %v17452_v37 = vld [vmem:[%s24490_s4 + $0x240] ss:$8 sps:$4 sm:$0xff]   ;;  %v17455_v27 = vld [vmem:[%s24490_s4 + $0x230] ss:$8 sps:$4 sm:$0xff]  }
 0x530   :  { %v15952_v28 = vpop.f32.mrf.mxu0  ;;  %9534 = vmatmul.mubr.bf16.gmra.mxu0 %v22887_v20  ;;  %v17461_v4 = vld [vmem:[%s24490_s4 + $0x210] ss:$8 sps:$4 sm:$0xff]  }
 0x531   :  { %v7938_v40 = vpop.f32.mrf.mxu1  ;;  %v7893_v8 = vadd.f32 %v15951_v47, %v22677_v63  ;;  %10056 = vmatpush1.bf16.msra.mxu0 %v17431_v51  ;;  %v17437_v63 = vld [vmem:[%s24490_s4 + $0x190] ss:$8 sps:$4 sm:$0xff]   ;;  %v17460_v51 = vld [vmem:[%s24490_s4 + $0x224] ss:$8 sps:$4 sm:$0xff]  }
 0x532   :  { %v23009_v34 = vadd.f32 %v7938_v40, %v7882_v35  ;;  %9575 = vmatmul.mubr.bf16.vlgmr.msra.gmra.mxu1 %v21865_v10  ;;  %v15953_v43 = vpop.f32.mrf.mxu0  ;;  %10057 = vmatprep.subr.bf16.mxu0 %v17436_v9  ;;  %v17442_v10 = vld [vmem:[%s24490_s4 + $0x184] ss:$8 sps:$4 sm:$0xff]   ;;  %v17443_v35 = vld [vmem:[%s24490_s4 + $0x270] ss:$8 sps:$4 sm:$0xff]   ;;  %v17463_v9 = vld [vmem:[%s24490_s4 + $0x214] ss:$8 sps:$4 sm:$0xff]  }
 0x533   :  { %15166 = vmatprep.mubr.msk.bf16.mxu1 %vm7014_vm1, %v22808_v49  ;;  %v15954_v20 = vadd.f32 %v15953_v43, %v15952_v28  ;;  %v7940_v19 = vpop.f32.mrf.mxu1  ;;  %v17466_v47 = vld [vmem:[%s24490_s4 + $0x204] ss:$8 sps:$4 sm:$0xff]   ;;  %v17464_v28 = vld [vmem:[%s24490_s4 + $0x200] ss:$8 sps:$4 sm:$0xff]  }
 0x534   :  { %v15955_v29 = vpop.f32.mrf.mxu0 }
 0x535   :  { %v7941_v23 = vpop.f32.mrf.mxu1  ;;  %v7898_v14 = vadd.f32 %v15954_v20, %v22695_v52  ;;  %10058 = vmatpush1.bf16.msra.mxu0 %v17434_v57  ;;  %v17445_v52 = vld [vmem:[%s24490_s4 + $0x274] ss:$8 sps:$4 sm:$0xff]  }
 0x536   :  { %v23021_v55 = vadd.f32 %v7941_v23, %v7885_v48  ;;  %v15956_v30 = vpop.f32.mrf.mxu0  ;;  %10059 = vmatprep.subr.bf16.mxu0 %v17439_v5  ;;  %v17469_v57 = vld [vmem:[%s24490_s4 + $0x174] ss:$8 sps:$4 sm:$0xff]  }
 0x537   :  { %v15957_v49 = vadd.f32 %v15956_v30, %v15955_v29  ;;  %v7943_v22 = vpop.f32.mrf.mxu1 }
 0x539   :  { %v7946_v24 = vpop.f32.mrf.mxu1  ;;  %v7901_v3 = vadd.f32 %v15957_v49, %v22712_v32  ;;  %10060 = vmatpush1.bf16.msra.mxu0 %v17437_v63 }
 0x53a   :  { %v23030_v21 = vadd.f32 %v7946_v24, %v7890_v0  ;;  %9583 = vmatmul.mubr.bf16.gmra.mxu1 %v21902_v45  ;;  %10061 = vmatprep.subr.bf16.mxu0 %v17442_v10  ;;  %v17448_v45 = vld [vmem:[%s24490_s4 + $0x264] ss:$8 sps:$4 sm:$0xff]   ;;  %v17458_v0 = vld [vmem:[%s24490_s4 + $0x220] ss:$8 sps:$4 sm:$0xff]  }
 0x53b   :  { %15167 = vmatprep.mubr.msk.bf16.mxu1 %vm7014_vm1, %v22858_v18  ;;  %v7948_v7 = vpop.f32.mrf.mxu1 }
 0x53d   :  { %v7949_v59 = vpop.f32.mrf.mxu1  ;;  %10062 = vmatpush1.bf16.msra.mxu0 %v17440_v17 }
 0x53e   :  { %v23038_v32 = vadd.f32 %v7949_v59, %v7893_v8  ;;  %10063 = vmatprep.subr.bf16.mxu0 %v17445_v52 }
 0x53f   :  { %v7951_v58 = vpop.f32.mrf.mxu1 }
 0x541   :  { %v7954_v13 = vpop.f32.mrf.mxu1  ;;  %10064 = vmatpush2.bf16.msra.mxu0 %v17443_v35 }
 0x542   :  { %v23040_v12 = vadd.f32 %v7954_v13, %v7898_v14  ;;  %9591 = vmatmul.mubr.bf16.gmra.mxu1 %v21941_v53  ;;  %10065 = vmatprep.subr.bf16.mxu0 %v17448_v45  ;;  %v17451_v53 = vld [vmem:[%s24490_s4 + $0x254] ss:$8 sps:$4 sm:$0xff]   ;;  %v17482_v13 = vld [vmem:[%s24490_s4 + $0x2e0] ss:$8 sps:$4 sm:$0xff]   ;;  %v17484_v45 = vld [vmem:[%s24490_s4 + $0x2e4] ss:$8 sps:$4 sm:$0xff]  }
 0x543   :  { %v7956_v18 = vpop.f32.mrf.mxu1  ;;  %10132 = vmatprep.mubr.bf16.mxu1 %v24682_v38 }
 0x545   :  { %v7957_v44 = vpop.f32.mrf.mxu1  ;;  %10066 = vmatpush2.bf16.msra.mxu0 %v17446_v56 }
 0x546   :  { %v23050_v48 = vadd.f32 %v7957_v44, %v7901_v3  ;;  %10067 = vmatprep.subr.bf16.mxu0 %v17451_v53  ;;  %v17478_v3 = vld [vmem:[%s24490_s4 + $0x2f4] ss:$8 sps:$4 sm:$0xff]  }
 0x547   :  { %v7959_v39 = vpop.f32.mrf.mxu1  ;;  %10100 = vmatprep.subr.bf16.mxu1 %v17478_v3 }
 0x549   :  { %10068 = vmatpush2.bf16.msra.mxu0 %v17449_v31 }
 0x54a   :  { %10069 = vmatprep.subr.bf16.mxu0 %v17454_v33 }
 0x54d   :  { %10070 = vmatpush2.bf16.msra.mxu0 %v17452_v37 }
 0x54e   :  { %10071 = vmatprep.subr.bf16.mxu0 %v17457_v41 }
 0x551   :  { %10072 = vmatpush2.bf16.msra.mxu0 %v17455_v27 }
 0x552   :  { %10073 = vmatprep.subr.bf16.mxu0 %v17460_v51 }
 0x555   :  { %10074 = vmatpush2.bf16.msra.mxu0 %v17458_v0  ;;  %v17488_v0 = vld [vmem:[%s24490_s4 + $0x2d0] ss:$8 sps:$4 sm:$0xff]  }
 0x556   :  { %10075 = vmatprep.subr.bf16.mxu0 %v17463_v9 }
 0x559   :  { %10076 = vmatpush2.bf16.msra.mxu0 %v17461_v4 }
 0x55a   :  { %10077 = vmatprep.subr.bf16.mxu0 %v17466_v47 }
 0x55d   :  { %10078 = vmatpush2.bf16.msra.mxu0 %v17464_v28 }
 0x55e   :  { %10446 = vmatprep.subr.bf16.mxu0 %v17469_v57 }
 0x560   :  { %v8565_v40 = vpop.f32.mrf.mxu0 }
 0x561   :  { %v8628_v8 = vpop.f32.mrf.mxu1 }
 0x562   :  { %v8629_v5 = vadd.f32 %v8628_v8, %v8565_v40  ;;  %v8567_v43 = vpop.f32.mrf.mxu0  ;;  %v17496_v40 = vld [vmem:[%s24490_s4 + $0x2c4] ss:$8 sps:$4 sm:$0xff]  }
 0x563   :  { %v8630_v20 = vpop.f32.mrf.mxu1 }
 0x564   :  { %v23092_v19 = vadd.f32 %v8629_v5, %v22814_v15  ;;  %v8631_v29 = vadd.f32 %v8630_v20, %v8567_v43  ;;  %v8569_v63 = vpop.f32.mrf.mxu0  ;;  %v17476_v15 = vld [vmem:[%s24490_s4 + $0x2f0] ss:$8 sps:$4 sm:$0xff]   ;;  %v17502_v20 = vld [vmem:[%s24490_s4 + $0x2b4] ss:$8 sps:$4 sm:$0xff]  }
 0x565   :  { %v8632_v23 = vpop.f32.mrf.mxu1  ;;  %10101 = vmatpush1.bf16.msra.mxu1 %v17476_v15 }
 0x566   :  { %v23095_v14 = vadd.f32 %v8631_v29, %v22826_v1  ;;  %v8633_v10 = vadd.f32 %v8632_v23, %v8569_v63  ;;  %v23097_v30 = vpop.f32.mrf.mxu0  ;;  %10102 = vmatprep.subr.bf16.mxu1 %v17484_v45  ;;  %v17500_v29 = vld [vmem:[%s24490_s4 + $0x2b0] ss:$8 sps:$4 sm:$0xff]   ;;  %v17506_v63 = vld [vmem:[%s24490_s4 + $0x2a0] ss:$8 sps:$4 sm:$0xff]  }
 0x567   :  { %v23099_v49 = vpop.f32.mrf.mxu1 }
 0x568   :  { %v23102_v22 = vadd.f32 %v8633_v10, %v22839_v36  ;;  %v8575_v17 = vpop.f32.mrf.mxu0  ;;  %v17514_v10 = vld [vmem:[%s24490_s4 + $0x294] ss:$8 sps:$4 sm:$0xff]  }
 0x569   :  { %v8638_v24 = vpop.f32.mrf.mxu1  ;;  %10103 = vmatpush1.bf16.msra.mxu1 %v17482_v13 }
 0x56a   :  { %v8639_v1 = vadd.f32 %v8638_v24, %v8575_v17  ;;  %v8577_v52 = vpop.f32.mrf.mxu0  ;;  %v17512_v24 = vld [vmem:[%s24490_s4 + $0x290] ss:$8 sps:$4 sm:$0xff]  }
 0x56b   :  { %v8640_v7 = vpop.f32.mrf.mxu1 }
 0x56c   :  { %v23111_v35 = vadd.f32 %v8639_v1, %v22864_v62  ;;  %v8641_v59 = vadd.f32 %v8640_v7, %v8577_v52  ;;  %v8579_v36 = vpop.f32.mrf.mxu0  ;;  %v17520_v1 = vld [vmem:[%s24490_s4 + $0x284] ss:$8 sps:$4 sm:$0xff]   ;;  %v17518_v7 = vld [vmem:[%s24490_s4 + $0x280] ss:$8 sps:$4 sm:$0xff]  }
 0x56d   :  { %v8642_v58 = vpop.f32.mrf.mxu1 }
 0x56e   :  { %v23120_v18 = vadd.f32 %v8641_v59, %v22878_v26  ;;  %v8643_v56 = vadd.f32 %v8642_v58, %v8579_v36  ;;  %v8581_v44 = vpop.f32.mrf.mxu0  ;;  %v17490_v26 = vld [vmem:[%s24490_s4 + $0x2d4] ss:$8 sps:$4 sm:$0xff]  }
 0x56f   :  { %v8644_v53 = vpop.f32.mrf.mxu1  ;;  %10104 = vmatprep.subr.bf16.mxu1 %v17490_v26  ;;  %v17526_v58 = vld [vmem:[%s24490_s4 + $0x74] ss:$8 sps:$4 sm:$0xff]  }
 0x570   :  { %v23123_v62 = vadd.f32 %v8643_v56, %v22889_v42  ;;  %v8645_v39 = vadd.f32 %v8644_v53, %v8581_v44  ;;  %v8585_v31 = vpop.f32.mrf.mxu0  ;;  %10105 = vmatpush1.bf16.msra.mxu1 %v17488_v0 }
 0x571   :  { %v8648_v33 = vpop.f32.mrf.mxu1  ;;  %10106 = vmatprep.subr.bf16.mxu1 %v17496_v40 }
 0x572   :  { %v23126_v37 = vadd.f32 %v8645_v39, %v22897_v6  ;;  %v8649_v41 = vadd.f32 %v8648_v33, %v8585_v31  ;;  %v8587_v27 = vpop.f32.mrf.mxu0 }
 0x573   :  { %v8650_v51 = vpop.f32.mrf.mxu1 }
 0x574   :  { %v23135_v42 = vadd.f32 %v8649_v41, %v22906_v60  ;;  %v8651_v9 = vadd.f32 %v8650_v51, %v8587_v27  ;;  %v8589_v4 = vpop.f32.mrf.mxu0  ;;  %v17494_v60 = vld [vmem:[%s24490_s4 + $0x2c0] ss:$8 sps:$4 sm:$0xff]  }
 0x575   :  { %v8652_v47 = vpop.f32.mrf.mxu1  ;;  %10107 = vmatpush1.bf16.msra.mxu1 %v17494_v60 }
 0x576   :  { %v23138_v6 = vadd.f32 %v8651_v9, %v22920_v54  ;;  %v8653_v28 = vadd.f32 %v8652_v47, %v8589_v4  ;;  %v8591_v57 = vpop.f32.mrf.mxu0  ;;  %10108 = vmatprep.subr.bf16.mxu1 %v17502_v20 }
 0x577   :  { %v8654_v8 = vpop.f32.mrf.mxu1 }
 0x578   :  { %v23147_v5 = vadd.f32 %v8653_v28, %v22927_v16  ;;  %v8655_v43 = vadd.f32 %v8654_v8, %v8591_v57  ;;  %v17508_v16 = vld [vmem:[%s24490_s4 + $0x2a4] ss:$8 sps:$4 sm:$0xff]  }
 0x579   :  { %10109 = vmatpush1.bf16.msra.mxu1 %v17500_v29 }
 0x57a   :  { %v23150_v54 = vadd.f32 %v8655_v43, %v22935_v25  ;;  %10110 = vmatprep.subr.bf16.mxu1 %v17508_v16 }
 0x57d   :  { %10111 = vmatpush1.bf16.msra.mxu1 %v17506_v63 }
 0x57e   :  { %10112 = vmatprep.subr.bf16.mxu1 %v17514_v10 }
 0x580   :  { %v15974_v25 = vpop.f32.mrf.mxu0 }
 0x581   :  { %10113 = vmatpush1.bf16.msra.mxu1 %v17512_v24 }
 0x582   :  { %v15975_v23 = vpop.f32.mrf.mxu0  ;;  %10114 = vmatprep.subr.bf16.mxu1 %v17520_v1 }
 0x583   :  { %v15976_v17 = vadd.f32 %v15975_v23, %v15974_v25 }
 0x584   :  { %v15977_v15 = vpop.f32.mrf.mxu0 }
 0x585   :  { %10115 = vmatpush1.bf16.msra.mxu1 %v17518_v7 }
 0x586   :  { %v15978_v3 = vpop.f32.mrf.mxu0  ;;  %10393 = vmatprep.subr.bf16.mxu1 %v17526_v58 }
 0x587   :  { %v15979_v52 = vadd.f32 %v15978_v3, %v15977_v15  ;;  %v7128_v3 = vadd.f32 %v22454_v46, %v22452_v11 }
 0x588   :  { %v15980_v59 = vpop.f32.mrf.mxu0 }
 0x58a   :  { %v15981_v36 = vpop.f32.mrf.mxu0 }
 0x58b   :  { %v15982_v13 = vadd.f32 %v15981_v36, %v15980_v59 }
 0x58c   :  { %v15983_v45 = vpop.f32.mrf.mxu0 }
 0x58e   :  { %v15984_v56 = vpop.f32.mrf.mxu0 }
 0x58f   :  { %v15985_v44 = vadd.f32 %v15984_v56, %v15983_v45 }
 0x590   :  { %v15986_v53 = vpop.f32.mrf.mxu0 }
 0x591   :  { %v8748_v39 = vpop.f32.mrf.mxu1 }
 0x592   :  { %v8749_v31 = vadd.f32 %v15976_v17, %v8748_v39  ;;  %v15987_v33 = vpop.f32.mrf.mxu0 }
 0x593   :  { %v15988_v41 = vadd.f32 %v15987_v33, %v15986_v53  ;;  %v8750_v27 = vpop.f32.mrf.mxu1 }
 0x594   :  { %v23180_v26 = vadd.f32 %v8749_v31, %v23009_v34  ;;  %v15989_v51 = vpop.f32.mrf.mxu0 }
 0x595   :  { %v8751_v0 = vpop.f32.mrf.mxu1 }
 0x596   :  { %v8752_v9 = vadd.f32 %v15979_v52, %v8751_v0  ;;  %v15990_v4 = vpop.f32.mrf.mxu0 }
 0x597   :  { %v15991_v47 = vadd.f32 %v15990_v4, %v15989_v51  ;;  %v8753_v28 = vpop.f32.mrf.mxu1 }
 0x598   :  { %v23183_v57 = vadd.f32 %v8752_v9, %v23021_v55 }
 0x599   :  { %v8756_v40 = vpop.f32.mrf.mxu1 }
 0x59a   :  { %v8757_v8 = vadd.f32 %v15982_v13, %v8756_v40  ;;  %v24683_v13 = vld [vmem:[#allocation67_spill] sm:$0xff] }
 0x59b   :  { %v8758_v60 = vpop.f32.mrf.mxu1 }
 0x59c   :  { %v23186_v43 = vadd.f32 %v8757_v8, %v23030_v21 }
 0x59d   :  { %v8759_v20 = vpop.f32.mrf.mxu1 }
 0x59e   :  { %v8760_v29 = vadd.f32 %v15985_v44, %v8759_v20 }
 0x59f   :  { %v8761_v16 = vpop.f32.mrf.mxu1 }
 0x5a0   :  { %v23189_v34 = vadd.f32 %v8760_v29, %v23038_v32  ;;  %v23202_v32 = vld [vmem:[%s24491_s8] sm:$0x7] }
 0x5a1   :  { %v8764_v63 = vpop.f32.mrf.mxu1  ;;  %v23210_v11 = vrot.slane %v23202_v32, %v24683_v13 }
 0x5a2   :  { %v8765_v25 = vadd.f32 %v15988_v41, %v8764_v63 }
 0x5a3   :  { %v8766_v23 = vpop.f32.mrf.mxu1 }
 0x5a4   :  { %v23192_v10 = vadd.f32 %v8765_v25, %v23040_v12  ;;  %v7762_v12 = vadd.f32 %v22830_v61, %v7128_v3  ;;  %v23216_v61 = vrot.slane %v23202_v32, %v21102_v2 }
 0x5a5   :  { %v8767_v55 = vpop.f32.mrf.mxu1 }
 0x5a6   :  { %v8768_v17 = vadd.f32 %v15991_v47, %v8767_v55  ;;  %v7825_v44 = vadd.f32 %v22841_v50, %v7762_v12 }
 0x5a7   :  { %v8769_v24 = vpop.f32.mrf.mxu1 }
 0x5a8   :  { %v23195_v15 = vadd.f32 %v8768_v17, %v23050_v48  ;;  %v8635_v48 = vadd.f32 %v23099_v49, %v23097_v30 }
 0x5aa   :  { %v8775_v49 = vadd.f32 %v8635_v48, %v7825_v44 }
 0x5c0   :  { %v9393_v21 = vpop.f32.mrf.mxu0 }
 0x5c2   :  { %v9456_v1 = vpop.f32.mrf.mxu1  ;;  %v9395_v52 = vpop.f32.mrf.mxu0 }
 0x5c3   :  { %v9457_v7 = vadd.f32 %v9456_v1, %v9393_v21 }
 0x5c4   :  { %v9458_v59 = vpop.f32.mrf.mxu1  ;;  %v9397_v36 = vpop.f32.mrf.mxu0 }
 0x5c5   :  { %v9599_v58 = vadd.f32 %v9457_v7, %v23092_v19  ;;  %v9459_v46 = vadd.f32 %v9458_v59, %v9395_v52 }
 0x5c6   :  { %v9460_v45 = vpop.f32.mrf.mxu1  ;;  %v9399_v56 = vpop.f32.mrf.mxu0 }
 0x5c7   :  { %v9600_v53 = vadd.f32 %v9459_v46, %v23095_v14  ;;  %v9461_v39 = vadd.f32 %v9460_v45, %v9397_v36  ;;  %v9634_v19 = vadd.f32 %v23210_v11, %v9599_v58 }
 0x5c8   :  { %v9462_v31 = vpop.f32.mrf.mxu1  ;;  %v9403_v30 = vpop.f32.mrf.mxu0 }
 0x5c9   :  { %v9602_v33 = vadd.f32 %v9461_v39, %v23102_v22  ;;  %v9463_v41 = vadd.f32 %v9462_v31, %v9399_v56  ;;  %v9635_v0 = vadd.f32 %v23216_v61, %v9600_v53  ;;  %v9652_v28 = vmax.f32 %v9634_v19, 0.0 }
 0x5ca   :  { %v9466_v27 = vpop.f32.mrf.mxu1  ;;  %v9405_v51 = vpop.f32.mrf.mxu0 }
 0x5cb   :  { %v9637_v50 = vadd.f32 %v23210_v11, %v9602_v33  ;;  %v9603_v14 = vadd.f32 %v9463_v41, %v8775_v49  ;;  %v9467_v9 = vadd.f32 %v9466_v27, %v9403_v30  ;;  %v9653_v16 = vmax.f32 %v9635_v0, 0.0 }
 0x5cc   :  { %v9468_v4 = vpop.f32.mrf.mxu1  ;;  %v9407_v47 = vpop.f32.mrf.mxu0 }
 0x5cd   :  { %v9655_v40 = vmax.f32 %v9637_v50, 0.0  ;;  %v9638_v8 = vadd.f32 %v23216_v61, %v9603_v14  ;;  %v9469_v60 = vadd.f32 %v9468_v4, %v9405_v51  ;;  %v9605_v20 = vadd.f32 %v9467_v9, %v23111_v35 }
 0x5ce   :  { %v9470_v29 = vpop.f32.mrf.mxu1  ;;  %v9409_v22 = vpop.f32.mrf.mxu0 }
 0x5cf   :  { %v23224_v63 = vpack.c.bf16 %v9655_v40, %v9652_v28  ;;  %v9656_v25 = vmax.f32 %v9638_v8, 0.0  ;;  %v9606_v23 = vadd.f32 %v9469_v60, %v23120_v18  ;;  %v9471_v55 = vadd.f32 %v9470_v29, %v9407_v47  ;;  %v17467_v8 = vld [vmem:[%s24490_s4 + $0x170] ss:$8 sps:$4 sm:$0xff]  }
 0x5d0   :  { %v9472_v17 = vpop.f32.mrf.mxu1  ;;  %v9413_v24 = vpop.f32.mrf.mxu0  ;;  %v9640_v3 = vadd.f32 %v23210_v11, %v9605_v20 }
 0x5d1   :  { %v23227_v21 = vpack.c.bf16 %v9656_v25, %v9653_v16  ;;  %v9608_v1 = vadd.f32 %v9471_v55, %v23123_v62  ;;  %v9473_v52 = vadd.f32 %v9472_v17, %v9409_v22  ;;  %v9641_v59 = vadd.f32 %v23216_v61, %v9606_v23  ;;  %v17470_v25 = vld [vmem:[%s24490_s4 + $0x160] ss:$8 sps:$4 sm:$0xff]   ;;  %v17475_v55 = vld [vmem:[%s24490_s4 + $0x154] ss:$8 sps:$4 sm:$0xff]  }
 0x5d2   :  { %v9476_v12 = vpop.f32.mrf.mxu1  ;;  %v9415_v35 = vpop.f32.mrf.mxu0  ;;  %v9658_v56 = vmax.f32 %v9640_v3, 0.0  ;;  %v9786_v47 = vrot.slane %v23224_v63, 4 }
 0x5d3   :  { %v9477_v7 = vadd.f32 %v9476_v12, %v9413_v24  ;;  %v9643_v36 = vadd.f32 %v23210_v11, %v9608_v1  ;;  %v9609_v48 = vadd.f32 %v9473_v52, %v23126_v37  ;;  %v9659_v49 = vmax.f32 %v9641_v59, 0.0  ;;  %v17473_v52 = vld [vmem:[%s24490_s4 + $0x150] ss:$8 sps:$4 sm:$0xff]  }
 0x5d4   :  { %v9478_v18 = vpop.f32.mrf.mxu1  ;;  %v9417_v58 = vpop.f32.mrf.mxu0  ;;  %v9789_v9 = vrot.slane %v23227_v21, 4 }
 0x5d5   :  { %v9611_v46 = vadd.f32 %v9477_v7, %v23135_v42  ;;  %v9479_v45 = vadd.f32 %v9478_v18, %v9415_v35  ;;  %v9661_v44 = vmax.f32 %v9643_v36, 0.0  ;;  %v9644_v53 = vadd.f32 %v23216_v61, %v9609_v48  ;;  %v17481_v35 = vld [vmem:[%s24490_s4 + $0x144] ss:$8 sps:$4 sm:$0xff]   ;;  %v17479_v36 = vld [vmem:[%s24490_s4 + $0x140] ss:$8 sps:$4 sm:$0xff]  }
 0x5d6   :  { %v9480_v62 = vpop.f32.mrf.mxu1  ;;  %v9419_v39 = vpop.f32.mrf.mxu0  ;;  %v17487_v18 = vld [vmem:[%s24490_s4 + $0x134] ss:$8 sps:$4 sm:$0xff]  }
 0x5d7   :  { %v9612_v31 = vadd.f32 %v9479_v45, %v23138_v6  ;;  %v9481_v30 = vadd.f32 %v9480_v62, %v9417_v58  ;;  %v23237_v19 = vpack.c.bf16 %v9661_v44, %v9658_v56  ;;  %v9662_v33 = vmax.f32 %v9644_v53, 0.0  ;;  %v17485_v58 = vld [vmem:[%s24490_s4 + $0x130] ss:$8 sps:$4 sm:$0xff]   ;;  %v17493_v45 = vld [vmem:[%s24490_s4 + $0x124] ss:$8 sps:$4 sm:$0xff]  }
 0x5d8   :  { %v9482_v41 = vpop.f32.mrf.mxu1  ;;  %v9646_v37 = vadd.f32 %v23210_v11, %v9611_v46  ;;  %v17491_v44 = vld [vmem:[%s24490_s4 + $0x120] ss:$8 sps:$4 sm:$0xff]  }
 0x5d9   :  { %v9614_v27 = vadd.f32 %v9481_v30, %v23147_v5  ;;  %v9483_v42 = vadd.f32 %v9482_v41, %v9419_v39  ;;  %v23241_v51 = vpack.c.bf16 %v9662_v33, %v9659_v49  ;;  %v9787_v0 = vrot.slane %v23237_v19, 4  ;;  %v17499_v39 = vld [vmem:[%s24490_s4 + $0x114] ss:$8 sps:$4 sm:$0xff]  }
 0x5da   :  { %v9647_v50 = vadd.f32 %v23216_v61, %v9612_v31  ;;  %v9664_v28 = vmax.f32 %v9646_v37, 0.0  ;;  %v24684_v41 = vld [vmem:[#allocation68_spill] sm:$0xff] }
 0x5db   :  { %v9649_v14 = vadd.f32 %v23210_v11, %v9614_v27  ;;  %v9615_v6 = vadd.f32 %v9483_v42, %v23150_v54  ;;  %v9790_v4 = vrot.slane %v23241_v51, 4  ;;  %v17472_v54 = vld [vmem:[%s24490_s4 + $0x164] ss:$8 sps:$4 sm:$0xff]   ;;  %v9788_v22 = vsel %vm9785_vm2, %v9786_v47, %v9787_v0  ;;  %v17497_v27 = vld [vmem:[%s24490_s4 + $0x110] ss:$8 sps:$4 sm:$0xff]  }
 0x5dc   :  { %v9665_v11 = vmax.f32 %v9647_v50, 0.0  ;;  %v23301_v37 = vrot.slane %v23202_v32, %v24684_v41  ;;  %v17505_v50 = vld [vmem:[%s24490_s4 + $0x104] ss:$8 sps:$4 sm:$0xff]  }
 0x5dd   :  { %v9667_v5 = vmax.f32 %v9649_v14, 0.0  ;;  %v9650_v40 = vadd.f32 %v23216_v61, %v9615_v6  ;;  %v9791_v60 = vsel %vm9785_vm2, %v9789_v9, %v9790_v4 }
 0x5de   :  { %10079 = vmatprep.mubr.bf16.mxu0 %v9791_v60 }
 0x5df   :  { %v23258_v20 = vpack.c.bf16 %v9667_v5, %v9664_v28  ;;  %v9668_v29 = vmax.f32 %v9650_v40, 0.0  ;;  %10080 = vmatmul.mubr.bf16.vlgmr.msra.gmra.mxu0 %v9788_v22  ;;  %v17511_v5 = vld [vmem:[%s24490_s4 + $0x374] ss:$8 sps:$4 sm:$0xff]  }
 0x5e0   :  { %v16008_v16 = vpop.f32.mrf.mxu0  ;;  %10447 = vmatpush1.bf16.msra.mxu0 %v17467_v8 }
 0x5e1   :  { %v23261_v61 = vpack.c.bf16 %v9668_v29, %v9665_v11  ;;  %10448 = vmatprep.subr.bf16.mxu0 %v17472_v54  ;;  %v9795_v24 = vrot.slane %v23258_v20, 4 }
 0x5e2   :  { %v16009_v23 = vpop.f32.mrf.mxu0 }
 0x5e3   :  { %v9797_v17 = vrot.slane %v23261_v61, 4  ;;  %v9796_v7 = vsel %vm9785_vm2, %v9787_v0, %v9795_v24  ;;  %v16010_v56 = vadd.f32 %v16009_v23, %v16008_v16 }
 0x5e4   :  { %v16011_v3 = vpop.f32.mrf.mxu0  ;;  %10449 = vmatpush1.bf16.msra.mxu0 %v17470_v25  ;;  %v17509_v25 = vld [vmem:[%s24490_s4 + $0x370] ss:$8 sps:$4 sm:$0xff]  }
 0x5e5   :  { %v9798_v1 = vsel %vm9785_vm2, %v9790_v4, %v9797_v17  ;;  %10450 = vmatprep.subr.bf16.mxu0 %v17475_v55  ;;  %v17503_v4 = vld [vmem:[%s24490_s4 + $0x100] ss:$8 sps:$4 sm:$0xff]   ;;  %v17517_v17 = vld [vmem:[%s24490_s4 + $0x364] ss:$8 sps:$4 sm:$0xff]  }
 0x5e6   :  { %10089 = vmatprep.mubr.bf16.mxu0 %v9798_v1  ;;  %v16012_v12 = vpop.f32.mrf.mxu0 }
 0x5e7   :  { %10090 = vmatmul.mubr.bf16.gmra.mxu0 %v9796_v7  ;;  %v16013_v49 = vadd.f32 %v16012_v12, %v16011_v3 }
 0x5e8   :  { %v16014_v59 = vpop.f32.mrf.mxu0  ;;  %10451 = vmatpush1.bf16.msra.mxu0 %v17473_v52  ;;  %10478 = vmatprep.mubr.bf16.mxu0 %v24682_v38 }
 0x5e9   :  { %10452 = vmatprep.subr.bf16.mxu0 %v17481_v35  ;;  %v17515_v35 = vld [vmem:[%s24490_s4 + $0x360] ss:$8 sps:$4 sm:$0xff]  }
 0x5ea   :  { %v16015_v48 = vpop.f32.mrf.mxu0 }
 0x5eb   :  { %v16016_v9 = vadd.f32 %v16015_v48, %v16014_v59 }
 0x5ec   :  { %10453 = vmatpush1.bf16.msra.mxu0 %v17479_v36  ;;  %v16017_v46 = vpop.f32.mrf.mxu0  ;;  %v17523_v36 = vld [vmem:[%s24490_s4 + $0x354] ss:$8 sps:$4 sm:$0xff]  }
 0x5ed   :  { %10454 = vmatprep.subr.bf16.mxu0 %v17487_v18 }
 0x5ee   :  { %v16018_v53 = vpop.f32.mrf.mxu0 }
 0x5ef   :  { %v16019_v54 = vadd.f32 %v16018_v53, %v16017_v46 }
 0x5f0   :  { %10455 = vmatpush1.bf16.msra.mxu0 %v17485_v58  ;;  %v16020_v42 = vpop.f32.mrf.mxu0 }
 0x5f1   :  { %10456 = vmatprep.subr.bf16.mxu0 %v17493_v45 }
 0x5f2   :  { %v9576_v62 = vpop.f32.mrf.mxu1  ;;  %v16021_v47 = vpop.f32.mrf.mxu0 }
 0x5f3   :  { %v9577_v31 = vadd.f32 %v16010_v56, %v9576_v62  ;;  %v16022_v3 = vadd.f32 %v16021_v47, %v16020_v42  ;;  %v17521_v56 = vld [vmem:[%s24490_s4 + $0x350] ss:$8 sps:$4 sm:$0xff]   ;;  %v17529_v62 = vld [vmem:[%s24490_s4 + $0x344] ss:$8 sps:$4 sm:$0xff]  }
 0x5f4   :  { %v9578_v30 = vpop.f32.mrf.mxu1  ;;  %10457 = vmatpush1.bf16.msra.mxu0 %v17491_v44  ;;  %v16023_v22 = vpop.f32.mrf.mxu0  ;;  %v17532_v42 = vld [vmem:[%s24490_s4 + $0x64] ss:$8 sps:$4 sm:$0xff]   ;;  %v17536_v47 = vld [vmem:[%s24490_s4 + $0x50] ss:$8 sps:$4 sm:$0xff]  }
 0x5f5   :  { %v9601_v33 = vadd.f32 %v9577_v31, %v23180_v26  ;;  %10458 = vmatprep.subr.bf16.mxu0 %v17499_v39 }
 0x5f6   :  { %v9579_v0 = vpop.f32.mrf.mxu1  ;;  %v16024_v52 = vpop.f32.mrf.mxu0 }
 0x5f7   :  { %v9580_v14 = vadd.f32 %v16013_v49, %v9579_v0  ;;  %v9636_v26 = vadd.f32 %v23301_v37, %v9601_v33  ;;  %v17524_v33 = vld [vmem:[%s24490_s4 + $0x70] ss:$8 sps:$4 sm:$0xff]  }
 0x5f8   :  { %v9581_v6 = vpop.f32.mrf.mxu1  ;;  %10459 = vmatpush1.bf16.msra.mxu0 %v17497_v27  ;;  %v17527_v27 = vld [vmem:[%s24490_s4 + $0x340] ss:$8 sps:$4 sm:$0xff]  }
 0x5f9   :  { %v9604_v32 = vadd.f32 %v9580_v14, %v23183_v57  ;;  %10460 = vmatprep.subr.bf16.mxu0 %v17505_v50  ;;  %v9654_v11 = vmax.f32 %v9636_v26, 0.0  ;;  %v17535_v50 = vld [vmem:[%s24490_s4 + $0x334] ss:$8 sps:$4 sm:$0xff]  }
 0x5fa   :  { %v9584_v28 = vpop.f32.mrf.mxu1  ;;  %v17538_v26 = vld [vmem:[%s24490_s4 + $0x54] ss:$8 sps:$4 sm:$0xff]  }
 0x5fb   :  { %v9639_v40 = vadd.f32 %v23301_v37, %v9604_v32  ;;  %v9585_v8 = vadd.f32 %v16016_v9, %v9584_v28  ;;  %v17530_v9 = vld [vmem:[%s24490_s4 + $0x60] ss:$8 sps:$4 sm:$0xff]  }
 0x5fc   :  { %v9586_v60 = vpop.f32.mrf.mxu1  ;;  %10461 = vmatpush1.bf16.msra.mxu0 %v17503_v4  ;;  %v17541_v4 = vld [vmem:[%s24490_s4 + $0x324] ss:$8 sps:$4 sm:$0xff]  }
 0x5fd   :  { %v9657_v29 = vmax.f32 %v9639_v40, 0.0  ;;  %v9607_v57 = vadd.f32 %v9585_v8, %v23186_v43  ;;  %10788 = vmatprep.subr.bf16.mxu0 %v17511_v5  ;;  %v17539_v5 = vld [vmem:[%s24490_s4 + $0x320] ss:$8 sps:$4 sm:$0xff]   ;;  %v17544_v40 = vld [vmem:[%s24490_s4 + $0x44] ss:$8 sps:$4 sm:$0xff]  }
 0x5fe   :  { %v9587_v16 = vpop.f32.mrf.mxu1  ;;  %v17547_v60 = vld [vmem:[%s24490_s4 + $0x314] ss:$8 sps:$4 sm:$0xff]  }
 0x5ff   :  { %v9672_v23 = vpack.c.bf16 %v9657_v29, %v9654_v11  ;;  %v9588_v55 = vadd.f32 %v16019_v54, %v9587_v16  ;;  %v9642_v1 = vadd.f32 %v23301_v37, %v9607_v57  ;;  %v17542_v54 = vld [vmem:[%s24490_s4 + $0x40] ss:$8 sps:$4 sm:$0xff]   ;;  %v17545_v11 = vld [vmem:[%s24490_s4 + $0x310] ss:$8 sps:$4 sm:$0xff]   ;;  %v17550_v29 = vld [vmem:[%s24490_s4 + $0x34] ss:$8 sps:$4 sm:$0xff]  }
 0x600   :  { %v9589_v24 = vpop.f32.mrf.mxu1  ;;  %v17553_v57 = vld [vmem:[%s24490_s4 + $0x304] ss:$8 sps:$4 sm:$0xff]  }
 0x601   :  { %v9610_v43 = vadd.f32 %v9588_v55, %v23189_v34  ;;  %10479 = vmatmul.mubr.bf16.vlgmr.msra.gmra.mxu0 %v9672_v23  ;;  %v16025_v34 = vadd.f32 %v16024_v52, %v16023_v22  ;;  %v9660_v18 = vmax.f32 %v9642_v1, 0.0  ;;  %v9792_v31 = vrot.slane %v9672_v23, 4  ;;  %v17551_v22 = vld [vmem:[%s24490_s4 + $0x300] ss:$8 sps:$4 sm:$0xff]   ;;  %v17556_v16 = vld [vmem:[%s24490_s4 + $0x24] ss:$8 sps:$4 sm:$0xff]  }
 0x602   :  { %10789 = vmatpush1.bf16.msra.mxu0 %v17509_v25  ;;  %v9592_v12 = vpop.f32.mrf.mxu1  ;;  %10488 = vmatprep.mubr.bf16.mxu0 %v24682_v38  ;;  %v17559_v25 = vld [vmem:[%s24490_s4 + $0x3f4] ss:$8 sps:$4 sm:$0xff]   ;;  %v17554_v23 = vld [vmem:[%s24490_s4 + $0x20] ss:$8 sps:$4 sm:$0xff]   ;;  %v17557_v55 = vld [vmem:[%s24490_s4 + $0x3f0] ss:$8 sps:$4 sm:$0xff]  }
 0x603   :  { %v9645_v7 = vadd.f32 %v23301_v37, %v9610_v43  ;;  %v9593_v59 = vadd.f32 %v16022_v3, %v9592_v12  ;;  %10790 = vmatprep.subr.bf16.mxu0 %v17517_v17  ;;  %v17562_v17 = vld [vmem:[%s24490_s4 + $0x14] ss:$8 sps:$4 sm:$0xff]   ;;  %v17565_v24 = vld [vmem:[%s24490_s4 + $0x3e4] ss:$8 sps:$4 sm:$0xff]   ;;  %v17560_v3 = vld [vmem:[%s24490_s4 + $0x10] ss:$8 sps:$4 sm:$0xff]  }
 0x604   :  { %v9594_v48 = vpop.f32.mrf.mxu1  ;;  %v17563_v1 = vld [vmem:[%s24490_s4 + $0x3e0] ss:$8 sps:$4 sm:$0xff]   ;;  %v17568_v43 = vld [vmem:[%s24490_s4 + $0x4] ss:$8 sps:$4 sm:$0xff]   ;;  %v17571_v52 = vld [vmem:[%s24490_s4 + $0x3d4] ss:$8 sps:$4 sm:$0xff]  }
 0x605   :  { %v9663_v58 = vmax.f32 %v9645_v7, 0.0  ;;  %v9613_v46 = vadd.f32 %v9593_v59, %v23192_v10  ;;  %v17566_v12 = vld [vmem:[%s24490_s4] ss:$8 sps:$4 sm:$0xff]   ;;  %v17574_v7 = vld [vmem:[%s24490_s4 + $0xf4] ss:$8 sps:$4 sm:$0xff]  }
 0x606   :  { %10791 = vmatpush1.bf16.msra.mxu0 %v17515_v35  ;;  %v9595_v45 = vpop.f32.mrf.mxu1  ;;  %v17569_v35 = vld [vmem:[%s24490_s4 + $0x3d0] ss:$8 sps:$4 sm:$0xff]   ;;  %v17577_v59 = vld [vmem:[%s24490_s4 + $0x3c4] ss:$8 sps:$4 sm:$0xff]   ;;  %v17575_v48 = vld [vmem:[%s24490_s4 + $0x3c0] ss:$8 sps:$4 sm:$0xff]  }
 0x607   :  { %v23339_v44 = vpack.c.bf16 %v9663_v58, %v9660_v18  ;;  %v9596_v53 = vadd.f32 %v16025_v34, %v9595_v45  ;;  %10792 = vmatprep.subr.bf16.mxu0 %v17523_v36  ;;  %v9648_v10 = vadd.f32 %v23301_v37, %v9613_v46  ;;  %v17572_v36 = vld [vmem:[%s24490_s4 + $0xf0] ss:$8 sps:$4 sm:$0xff]   ;;  %v17580_v34 = vld [vmem:[%s24490_s4 + $0xe4] ss:$8 sps:$4 sm:$0xff]   ;;  %v17583_v18 = vld [vmem:[%s24490_s4 + $0x3b4] ss:$8 sps:$4 sm:$0xff]  }
 0x608   :  { %v9597_v39 = vpop.f32.mrf.mxu1  ;;  %v17578_v58 = vld [vmem:[%s24490_s4 + $0xe0] ss:$8 sps:$4 sm:$0xff]   ;;  %v17581_v46 = vld [vmem:[%s24490_s4 + $0x3b0] ss:$8 sps:$4 sm:$0xff]   ;;  %v17586_v45 = vld [vmem:[%s24490_s4 + $0xd4] ss:$8 sps:$4 sm:$0xff]  }
 0x609   :  { %v9793_v30 = vrot.slane %v23339_v44, 4  ;;  %v9616_v49 = vadd.f32 %v9596_v53, %v23195_v15  ;;  %10489 = vmatmul.mubr.bf16.gmra.mxu0 %v23339_v44  ;;  %v9666_v14 = vmax.f32 %v9648_v10, 0.0  ;;  %v17584_v53 = vld [vmem:[%s24490_s4 + $0xd0] ss:$8 sps:$4 sm:$0xff]   ;;  %v17592_v39 = vld [vmem:[%s24490_s4 + $0xc4] ss:$8 sps:$4 sm:$0xff]  }
 0x60a   :  { %10793 = vmatpush1.bf16.msra.mxu0 %v17521_v56  ;;  %10820 = vmatprep.mubr.bf16.mxu0 %v23241_v51  ;;  %v17589_v56 = vld [vmem:[%s24490_s4 + $0x3a4] ss:$8 sps:$4 sm:$0xff]   ;;  %v17593_v10 = vld [vmem:[%s24490_s4 + $0x390] ss:$8 sps:$4 sm:$0xff]  }
 0x60b   :  { %v9651_v0 = vadd.f32 %v23301_v37, %v9616_v49  ;;  %v9794_v15 = vsel %vm9785_vm2, %v9792_v31, %v9793_v30  ;;  %10794 = vmatprep.subr.bf16.mxu0 %v17529_v62  ;;  %v17533_v37 = vld [vmem:[%s24490_s4 + $0x330] ss:$8 sps:$4 sm:$0xff]   ;;  %v17587_v62 = vld [vmem:[%s24490_s4 + $0x3a0] ss:$8 sps:$4 sm:$0xff]   ;;  %v17595_v31 = vld [vmem:[%s24490_s4 + $0x394] ss:$8 sps:$4 sm:$0xff]  }
 0x60c   :  { %10133 = vmatmul.mubr.bf16.vlgmr.msra.gmra.mxu1 %v9794_v15  ;;  %v17598_v49 = vld [vmem:[%s24490_s4 + $0xb4] ss:$8 sps:$4 sm:$0xff]   ;;  %v17602_v15 = vld [vmem:[%s24490_s4 + $0xa0] ss:$8 sps:$4 sm:$0xff]  }
 0x60d   :  { %v9669_v6 = vmax.f32 %v9651_v0, 0.0  ;;  %10394 = vmatpush1.bf16.msra.mxu1 %v17524_v33  ;;  %10142 = vmatprep.mubr.bf16.mxu1 %v24682_v38  ;;  %v17601_v33 = vld [vmem:[%s24490_s4 + $0x384] ss:$8 sps:$4 sm:$0xff]  }
 0x60e   :  { %10795 = vmatpush1.bf16.msra.mxu0 %v17527_v27  ;;  %10395 = vmatprep.subr.bf16.mxu1 %v17532_v42  ;;  %v17596_v27 = vld [vmem:[%s24490_s4 + $0xb0] ss:$8 sps:$4 sm:$0xff]   ;;  %v17599_v42 = vld [vmem:[%s24490_s4 + $0x380] ss:$8 sps:$4 sm:$0xff]   ;;  %v17604_v0 = vld [vmem:[%s24490_s4 + $0xa4] ss:$8 sps:$4 sm:$0xff]  }
 0x60f   :  { %v23373_v32 = vpack.c.bf16 %v9669_v6, %v9666_v14  ;;  %10796 = vmatprep.subr.bf16.mxu0 %v17535_v50  ;;  %v17607_v50 = vld [vmem:[%s24490_s4 + $0x94] ss:$8 sps:$4 sm:$0xff]   ;;  %v17605_v14 = vld [vmem:[%s24490_s4 + $0x90] ss:$8 sps:$4 sm:$0xff]   ;;  %v17610_v6 = vld [vmem:[%s24490_s4 + $0x84] ss:$8 sps:$4 sm:$0xff]  }
 0x611   :  { %10396 = vmatpush1.bf16.msra.mxu1 %v17530_v9  ;;  %v9799_v28 = vrot.slane %v23373_v32, 4  ;;  %v17608_v9 = vld [vmem:[%s24490_s4 + $0x80] ss:$8 sps:$4 sm:$0xff]  }
 0x612   :  { %10797 = vmatpush1.bf16.msra.mxu0 %v17533_v37  ;;  %10397 = vmatprep.subr.bf16.mxu1 %v17538_v26  ;;  %v17613_v37 = vld [vmem:[%s24490_s4 + $0x474] ss:$8 sps:$4 sm:$0xff]   ;;  %v17616_v26 = vld [vmem:[%s24490_s4 + $0x464] ss:$8 sps:$4 sm:$0xff]  }
 0x613   :  { %v9800_v8 = vsel %vm9785_vm2, %v9793_v30, %v9799_v28  ;;  %10798 = vmatprep.subr.bf16.mxu0 %v17541_v4  ;;  %v17590_v30 = vld [vmem:[%s24490_s4 + $0xc0] ss:$8 sps:$4 sm:$0xff]   ;;  %v17625_v28 = vld [vmem:[%s24490_s4 + $0x434] ss:$8 sps:$4 sm:$0xff]  }
 0x614   :  { %10143 = vmatmul.mubr.bf16.gmra.mxu1 %v9800_v8  ;;  %v17614_v4 = vld [vmem:[%s24490_s4 + $0x460] ss:$8 sps:$4 sm:$0xff]   ;;  %v17631_v8 = vld [vmem:[%s24490_s4 + $0x414] ss:$8 sps:$4 sm:$0xff]  }
 0x615   :  { %10398 = vmatpush1.bf16.msra.mxu1 %v17536_v47  ;;  %10425 = vmatprep.mubr.bf16.mxu1 %v23227_v21  ;;  %v17548_v21 = vld [vmem:[%s24490_s4 + $0x30] ss:$8 sps:$4 sm:$0xff]  }
 0x616   :  { %10799 = vmatpush1.bf16.msra.mxu0 %v17539_v5  ;;  %10399 = vmatprep.subr.bf16.mxu1 %v17544_v40  ;;  %v17617_v47 = vld [vmem:[%s24490_s4 + $0x450] ss:$8 sps:$4 sm:$0xff]   ;;  %v17626_v40 = vld [vmem:[%s24490_s4 + $0x420] ss:$8 sps:$4 sm:$0xff]  }
 0x617   :  { %10800 = vmatprep.subr.bf16.mxu0 %v17547_v60  ;;  %v17623_v5 = vld [vmem:[%s24490_s4 + $0x430] ss:$8 sps:$4 sm:$0xff]  }
 0x618   :  { %v17638_v60 = vld [vmem:[%s24492_s5 + $0x2e8] ss:$16 sps:$4 sm:$0xff]  }
 0x619   :  { %10400 = vmatpush1.bf16.msra.mxu1 %v17542_v54  ;;  %v17640_v54 = vld [vmem:[%s24492_s5 + $0x2ec] ss:$16 sps:$4 sm:$0xff]  }
 0x61a   :  { %10801 = vmatpush1.bf16.msra.mxu0 %v17545_v11  ;;  %10401 = vmatprep.subr.bf16.mxu1 %v17550_v29  ;;  %v17629_v11 = vld [vmem:[%s24490_s4 + $0x410] ss:$8 sps:$4 sm:$0xff]   ;;  %v17634_v29 = vld [vmem:[%s24490_s4 + $0x404] ss:$8 sps:$4 sm:$0xff]  }
 0x61b   :  { %10802 = vmatprep.subr.bf16.mxu0 %v17553_v57  ;;  %v17632_v57 = vld [vmem:[%s24490_s4 + $0x400] ss:$8 sps:$4 sm:$0xff]  }
 0x61d   :  { %10402 = vmatpush1.bf16.msra.mxu1 %v17548_v21  ;;  %v17637_v21 = vld [vmem:[%s24492_s5 + $0x2e4] ss:$16 sps:$4 sm:$0xff]  }
 0x61e   :  { %10803 = vmatpush1.bf16.msra.mxu0 %v17551_v22  ;;  %10403 = vmatprep.subr.bf16.mxu1 %v17556_v16  ;;  %v17635_v22 = vld [vmem:[%s24492_s5 + $0x2e0] ss:$16 sps:$4 sm:$0xff]   ;;  %v17643_v16 = vld [vmem:[%s24492_s5 + $0x2c4] ss:$16 sps:$4 sm:$0xff]  }
 0x61f   :  { %10804 = vmatprep.subr.bf16.mxu0 %v17559_v25  ;;  %v17646_v25 = vld [vmem:[%s24492_s5 + $0x2cc] ss:$16 sps:$4 sm:$0xff]  }
 0x621   :  { %10404 = vmatpush1.bf16.msra.mxu1 %v17554_v23  ;;  %v17641_v23 = vld [vmem:[%s24492_s5 + $0x2c0] ss:$16 sps:$4 sm:$0xff]  }
 0x622   :  { %10805 = vmatpush2.bf16.msra.mxu0 %v17557_v55  ;;  %10405 = vmatprep.subr.bf16.mxu1 %v17562_v17  ;;  %v17647_v55 = vld [vmem:[%s24492_s5 + $0x2a0] ss:$16 sps:$4 sm:$0xff]   ;;  %v17650_v17 = vld [vmem:[%s24492_s5 + $0x2a8] ss:$16 sps:$4 sm:$0xff]  }
 0x623   :  { %10806 = vmatprep.subr.bf16.mxu0 %v17565_v24  ;;  %v17655_v24 = vld [vmem:[%s24492_s5 + $0x284] ss:$16 sps:$4 sm:$0xff]  }
 0x625   :  { %10406 = vmatpush1.bf16.msra.mxu1 %v17560_v3  ;;  %v17658_v3 = vld [vmem:[%s24492_s5 + $0x28c] ss:$16 sps:$4 sm:$0xff]  }
 0x626   :  { %10807 = vmatpush2.bf16.msra.mxu0 %v17563_v1  ;;  %10407 = vmatprep.subr.bf16.mxu1 %v17568_v43  ;;  %v17653_v1 = vld [vmem:[%s24492_s5 + $0x280] ss:$16 sps:$4 sm:$0xff]   ;;  %v17656_v43 = vld [vmem:[%s24492_s5 + $0x288] ss:$16 sps:$4 sm:$0xff]  }
 0x627   :  { %10808 = vmatprep.subr.bf16.mxu0 %v17571_v52  ;;  %v17661_v52 = vld [vmem:[%s24492_s5 + $0x264] ss:$16 sps:$4 sm:$0xff]  }
 0x629   :  { %10408 = vmatpush1.bf16.msra.mxu1 %v17566_v12  ;;  %v17664_v12 = vld [vmem:[%s24492_s5 + $0x26c] ss:$16 sps:$4 sm:$0xff]  }
 0x62a   :  { %10809 = vmatpush2.bf16.msra.mxu0 %v17569_v35  ;;  %10409 = vmatprep.subr.bf16.mxu1 %v17574_v7  ;;  %v17659_v35 = vld [vmem:[%s24492_s5 + $0x260] ss:$16 sps:$4 sm:$0xff]   ;;  %v17662_v7 = vld [vmem:[%s24492_s5 + $0x268] ss:$16 sps:$4 sm:$0xff]  }
 0x62b   :  { %10810 = vmatprep.subr.bf16.mxu0 %v17577_v59  ;;  %v17667_v59 = vld [vmem:[%s24492_s5 + $0x244] ss:$16 sps:$4 sm:$0xff]  }
 0x62d   :  { %10410 = vmatpush2.bf16.msra.mxu1 %v17572_v36  ;;  %v17670_v36 = vld [vmem:[%s24492_s5 + $0x24c] ss:$16 sps:$4 sm:$0xff]  }
 0x62e   :  { %10811 = vmatpush2.bf16.msra.mxu0 %v17575_v48  ;;  %10411 = vmatprep.subr.bf16.mxu1 %v17580_v34  ;;  %v17665_v48 = vld [vmem:[%s24492_s5 + $0x240] ss:$16 sps:$4 sm:$0xff]   ;;  %v17668_v34 = vld [vmem:[%s24492_s5 + $0x248] ss:$16 sps:$4 sm:$0xff]  }
 0x62f   :  { %10812 = vmatprep.subr.bf16.mxu0 %v17583_v18  ;;  %v17673_v18 = vld [vmem:[%s24492_s5 + $0x224] ss:$16 sps:$4 sm:$0xff]  }
 0x631   :  { %10412 = vmatpush2.bf16.msra.mxu1 %v17578_v58  ;;  %v17676_v58 = vld [vmem:[%s24492_s5 + $0x22c] ss:$16 sps:$4 sm:$0xff]  }
 0x632   :  { %10813 = vmatpush2.bf16.msra.mxu0 %v17581_v46  ;;  %10413 = vmatprep.subr.bf16.mxu1 %v17586_v45  ;;  %v17671_v46 = vld [vmem:[%s24492_s5 + $0x220] ss:$16 sps:$4 sm:$0xff]   ;;  %v17674_v45 = vld [vmem:[%s24492_s5 + $0x228] ss:$16 sps:$4 sm:$0xff]  }
 0x633   :  { %10814 = vmatprep.subr.bf16.mxu0 %v17589_v56  ;;  %v17679_v56 = vld [vmem:[%s24492_s5 + $0x204] ss:$16 sps:$4 sm:$0xff]  }
 0x635   :  { %10414 = vmatpush2.bf16.msra.mxu1 %v17584_v53  ;;  %v17682_v53 = vld [vmem:[%s24492_s5 + $0x20c] ss:$16 sps:$4 sm:$0xff]  }
 0x636   :  { %10815 = vmatpush2.bf16.msra.mxu0 %v17587_v62  ;;  %10415 = vmatprep.subr.bf16.mxu1 %v17592_v39  ;;  %v17677_v62 = vld [vmem:[%s24492_s5 + $0x200] ss:$16 sps:$4 sm:$0xff]   ;;  %v17680_v39 = vld [vmem:[%s24492_s5 + $0x208] ss:$16 sps:$4 sm:$0xff]  }
 0x637   :  { %10816 = vmatprep.subr.bf16.mxu0 %v17595_v31  ;;  %v17683_v31 = vld [vmem:[%s24492_s5 + $0x3e0] ss:$16 sps:$4 sm:$0xff]  }
 0x639   :  { %10416 = vmatpush2.bf16.msra.mxu1 %v17590_v30  ;;  %v17685_v30 = vld [vmem:[%s24492_s5 + $0x3e4] ss:$16 sps:$4 sm:$0xff]  }
 0x63a   :  { %10817 = vmatpush2.bf16.msra.mxu0 %v17593_v10  ;;  %10417 = vmatprep.subr.bf16.mxu1 %v17598_v49  ;;  %v17686_v10 = vld [vmem:[%s24492_s5 + $0x3e8] ss:$16 sps:$4 sm:$0xff]   ;;  %v17688_v49 = vld [vmem:[%s24492_s5 + $0x3ec] ss:$16 sps:$4 sm:$0xff]  }
 0x63b   :  { %10818 = vmatprep.subr.bf16.mxu0 %v17601_v33  ;;  %v17691_v33 = vld [vmem:[%s24492_s5 + $0x3c4] ss:$16 sps:$4 sm:$0xff]  }
 0x63d   :  { %10418 = vmatpush2.bf16.msra.mxu1 %v17596_v27  ;;  %v17694_v27 = vld [vmem:[%s24492_s5 + $0x3cc] ss:$16 sps:$4 sm:$0xff]  }
 0x63e   :  { %10819 = vmatpush2.bf16.msra.mxu0 %v17599_v42  ;;  %10419 = vmatprep.subr.bf16.mxu1 %v17604_v0  ;;  %v17689_v42 = vld [vmem:[%s24492_s5 + $0x3c0] ss:$16 sps:$4 sm:$0xff]   ;;  %v17692_v0 = vld [vmem:[%s24492_s5 + $0x3c8] ss:$16 sps:$4 sm:$0xff]  }
 0x63f   :  { %11430 = vmatprep.subr.bf16.mxu0 %v17640_v54  ;;  %v17722_v54 = vld [vmem:[%s24492_s5 + $0x328] ss:$16 sps:$4 sm:$0xff]  }
 0x641   :  { %10420 = vmatpush2.bf16.msra.mxu1 %v17602_v15  ;;  %10821 = vmatmul.mubr.bf16.vlgmr.msra.gmra.mxu0 %v23237_v19  ;;  %v17697_v15 = vld [vmem:[%s24492_s5 + $0x3a4] ss:$16 sps:$4 sm:$0xff]  }
 0x642   :  { %10830 = vmatprep.mubr.bf16.mxu0 %v23261_v61  ;;  %10421 = vmatprep.subr.bf16.mxu1 %v17607_v50  ;;  %v17611_v61 = vld [vmem:[%s24490_s4 + $0x470] ss:$8 sps:$4 sm:$0xff]  }
 0x643   :  { %11431 = vmatpush1.bf16.msra.mxu0 %v17638_v60  ;;  %v17695_v50 = vld [vmem:[%s24492_s5 + $0x3a0] ss:$16 sps:$4 sm:$0xff]  }
 0x644   :  { %11432 = vmatprep.subr.bf16.mxu0 %v17646_v25  ;;  %v17719_v60 = vld [vmem:[%s24492_s5 + $0x320] ss:$16 sps:$4 sm:$0xff]   ;;  %v17736_v25 = vld [vmem:[%s24492_s5 + $0xec] ss:$16 sps:$4 sm:$0xff]  }
 0x645   :  { %10422 = vmatpush2.bf16.msra.mxu1 %v17605_v14  ;;  %v17700_v14 = vld [vmem:[%s24492_s5 + $0x3ac] ss:$16 sps:$4 sm:$0xff]  }
 0x646   :  { %10423 = vmatprep.subr.bf16.mxu1 %v17610_v6  ;;  %v17698_v6 = vld [vmem:[%s24492_s5 + $0x3a8] ss:$16 sps:$4 sm:$0xff]  }
 0x649   :  { %10424 = vmatpush2.bf16.msra.mxu1 %v17608_v9  ;;  %10831 = vmatmul.mubr.bf16.gmra.mxu0 %v23258_v20  ;;  %v17619_v20 = vld [vmem:[%s24490_s4 + $0x454] ss:$8 sps:$4 sm:$0xff]  }
 0x64a   :  { %10841 = vmatprep.subr.bf16.mxu1 %v17613_v37  ;;  %v17703_v9 = vld [vmem:[%s24492_s5 + $0x384] ss:$16 sps:$4 sm:$0xff]   ;;  %v17706_v37 = vld [vmem:[%s24492_s5 + $0x38c] ss:$16 sps:$4 sm:$0xff]  }
 0x64c   :  { %10426 = vmatmul.mubr.bf16.vlgmr.msra.gmra.mxu1 %v23224_v63  ;;  %v17622_v63 = vld [vmem:[%s24490_s4 + $0x444] ss:$8 sps:$4 sm:$0xff]  }
 0x64d   :  { %10435 = vmatprep.mubr.bf16.mxu1 %v23241_v51  ;;  %10842 = vmatpush1.bf16.msra.mxu1 %v17611_v61  ;;  %v17620_v51 = vld [vmem:[%s24490_s4 + $0x440] ss:$8 sps:$4 sm:$0xff]  }
 0x64e   :  { %10843 = vmatprep.subr.bf16.mxu1 %v17616_v26  ;;  %v17701_v61 = vld [vmem:[%s24492_s5 + $0x380] ss:$16 sps:$4 sm:$0xff]   ;;  %v17704_v26 = vld [vmem:[%s24492_s5 + $0x388] ss:$16 sps:$4 sm:$0xff]  }
 0x651   :  { %10844 = vmatpush1.bf16.msra.mxu1 %v17614_v4  ;;  %v17709_v4 = vld [vmem:[%s24492_s5 + $0x364] ss:$16 sps:$4 sm:$0xff]  }
 0x652   :  { %10845 = vmatprep.subr.bf16.mxu1 %v17619_v20  ;;  %v17712_v20 = vld [vmem:[%s24492_s5 + $0x36c] ss:$16 sps:$4 sm:$0xff]  }
 0x654   :  { %10436 = vmatmul.mubr.bf16.gmra.mxu1 %v23237_v19  ;;  %v17628_v19 = vld [vmem:[%s24490_s4 + $0x424] ss:$8 sps:$4 sm:$0xff]  }
 0x655   :  { %10846 = vmatpush1.bf16.msra.mxu1 %v17617_v47  ;;  %10873 = vmatprep.mubr.bf16.mxu1 %v24682_v38  ;;  %v17707_v47 = vld [vmem:[%s24492_s5 + $0x360] ss:$16 sps:$4 sm:$0xff]  }
 0x656   :  { %10847 = vmatprep.subr.bf16.mxu1 %v17622_v63  ;;  %v17710_v63 = vld [vmem:[%s24492_s5 + $0x368] ss:$16 sps:$4 sm:$0xff]  }
 0x659   :  { %10848 = vmatpush1.bf16.msra.mxu1 %v17620_v51  ;;  %v17715_v51 = vld [vmem:[%s24492_s5 + $0x344] ss:$16 sps:$4 sm:$0xff]  }
 0x65a   :  { %10849 = vmatprep.subr.bf16.mxu1 %v17625_v28  ;;  %v17718_v28 = vld [vmem:[%s24492_s5 + $0x34c] ss:$16 sps:$4 sm:$0xff]  }
 0x65d   :  { %10850 = vmatpush1.bf16.msra.mxu1 %v17623_v5  ;;  %v17713_v5 = vld [vmem:[%s24492_s5 + $0x340] ss:$16 sps:$4 sm:$0xff]  }
 0x65e   :  { %10851 = vmatprep.subr.bf16.mxu1 %v17628_v19  ;;  %v17716_v19 = vld [vmem:[%s24492_s5 + $0x348] ss:$16 sps:$4 sm:$0xff]  }
 0x661   :  { %10852 = vmatpush1.bf16.msra.mxu1 %v17626_v40  ;;  %v17721_v40 = vld [vmem:[%s24492_s5 + $0x324] ss:$16 sps:$4 sm:$0xff]  }
 0x662   :  { %10853 = vmatprep.subr.bf16.mxu1 %v17631_v8  ;;  %v17724_v8 = vld [vmem:[%s24492_s5 + $0x32c] ss:$16 sps:$4 sm:$0xff]  }
 0x665   :  { %10854 = vmatpush1.bf16.msra.mxu1 %v17629_v11  ;;  %v17727_v11 = vld [vmem:[%s24492_s5 + $0x304] ss:$16 sps:$4 sm:$0xff]  }
 0x666   :  { %10855 = vmatprep.subr.bf16.mxu1 %v17634_v29  ;;  %v17730_v29 = vld [vmem:[%s24492_s5 + $0x30c] ss:$16 sps:$4 sm:$0xff]  }
 0x669   :  { %10856 = vmatpush1.bf16.msra.mxu1 %v17632_v57  ;;  %v17725_v57 = vld [vmem:[%s24492_s5 + $0x300] ss:$16 sps:$4 sm:$0xff]  }
 0x66a   :  { %11389 = vmatprep.subr.bf16.mxu1 %v17637_v21  ;;  %v17728_v21 = vld [vmem:[%s24492_s5 + $0x308] ss:$16 sps:$4 sm:$0xff]  }
 0x66c   :  { %10874 = vmatmul.mubr.bf16.vlgmr.msra.gmra.mxu1 %v23339_v44  ;;  %v17644_v44 = vld [vmem:[%s24492_s5 + $0x2c8] ss:$16 sps:$4 sm:$0xff]  }
 0x66d   :  { %10883 = vmatprep.mubr.bf16.mxu1 %v24682_v38  ;;  %11390 = vmatpush1.bf16.msra.mxu1 %v17635_v22  ;;  %v17649_v38 = vld [vmem:[%s24492_s5 + $0x2a4] ss:$16 sps:$4 sm:$0xff]  }
 0x66e   :  { %11391 = vmatprep.subr.bf16.mxu1 %v17643_v16  ;;  %11433 = vmatpush1.bf16.msra.mxu0 %v17644_v44  ;;  %v17733_v16 = vld [vmem:[%s24492_s5 + $0xe4] ss:$16 sps:$4 sm:$0xff]  }
 0x671   :  { %11392 = vmatpush1.bf16.msra.mxu1 %v17641_v23 }
 0x672   :  { %11393 = vmatprep.subr.bf16.mxu1 %v17649_v38 }
 0x674   :  { %10884 = vmatmul.mubr.bf16.gmra.mxu1 %v23373_v32  ;;  %v17652_v32 = vld [vmem:[%s24492_s5 + $0x2ac] ss:$16 sps:$4 sm:$0xff]  }
 0x675   :  { %11434 = vmatprep.subr.bf16.mxu0 %v17652_v32  ;;  %11394 = vmatpush1.bf16.msra.mxu1 %v17647_v55 }
 0x676   :  { %11435 = vmatpush1.bf16.msra.mxu0 %v17650_v17  ;;  %11395 = vmatprep.subr.bf16.mxu1 %v17655_v24 }
 0x677   :  { %11436 = vmatprep.subr.bf16.mxu0 %v17658_v3 }
 0x679   :  { %11396 = vmatpush1.bf16.msra.mxu1 %v17653_v1 }
 0x67a   :  { %11437 = vmatpush1.bf16.msra.mxu0 %v17656_v43  ;;  %11397 = vmatprep.subr.bf16.mxu1 %v17661_v52 }
 0x67b   :  { %11438 = vmatprep.subr.bf16.mxu0 %v17664_v12 }
 0x67d   :  { %11398 = vmatpush1.bf16.msra.mxu1 %v17659_v35 }
 0x67e   :  { %11439 = vmatpush1.bf16.msra.mxu0 %v17662_v7  ;;  %11399 = vmatprep.subr.bf16.mxu1 %v17667_v59 }
 0x67f   :  { %11440 = vmatprep.subr.bf16.mxu0 %v17670_v36 }
 0x681   :  { %11400 = vmatpush1.bf16.msra.mxu1 %v17665_v48 }
 0x682   :  { %11441 = vmatpush1.bf16.msra.mxu0 %v17668_v34  ;;  %11401 = vmatprep.subr.bf16.mxu1 %v17673_v18 }
 0x683   :  { %11442 = vmatprep.subr.bf16.mxu0 %v17676_v58 }
 0x685   :  { %11402 = vmatpush1.bf16.msra.mxu1 %v17671_v46 }
 0x686   :  { %11443 = vmatpush1.bf16.msra.mxu0 %v17674_v45  ;;  %11403 = vmatprep.subr.bf16.mxu1 %v17679_v56 }
 0x687   :  { %11444 = vmatprep.subr.bf16.mxu0 %v17682_v53 }
 0x689   :  { %11404 = vmatpush1.bf16.msra.mxu1 %v17677_v62 }
 0x68a   :  { %11445 = vmatpush1.bf16.msra.mxu0 %v17680_v39  ;;  %11405 = vmatprep.subr.bf16.mxu1 %v17685_v30 }
 0x68b   :  { %11446 = vmatprep.subr.bf16.mxu0 %v17688_v49 }
 0x68d   :  { %11406 = vmatpush2.bf16.msra.mxu1 %v17683_v31 }
 0x68e   :  { %11447 = vmatpush2.bf16.msra.mxu0 %v17686_v10  ;;  %11407 = vmatprep.subr.bf16.mxu1 %v17691_v33 }
 0x68f   :  { %11448 = vmatprep.subr.bf16.mxu0 %v17694_v27 }
 0x691   :  { %11408 = vmatpush2.bf16.msra.mxu1 %v17689_v42 }
 0x692   :  { %11449 = vmatpush2.bf16.msra.mxu0 %v17692_v0  ;;  %11409 = vmatprep.subr.bf16.mxu1 %v17697_v15 }
 0x693   :  { %11450 = vmatprep.subr.bf16.mxu0 %v17700_v14 }
 0x695   :  { %11410 = vmatpush2.bf16.msra.mxu1 %v17695_v50 }
 0x696   :  { %11451 = vmatpush2.bf16.msra.mxu0 %v17698_v6  ;;  %11411 = vmatprep.subr.bf16.mxu1 %v17703_v9 }
 0x697   :  { %11452 = vmatprep.subr.bf16.mxu0 %v17706_v37 }
 0x699   :  { %11412 = vmatpush2.bf16.msra.mxu1 %v17701_v61 }
 0x69a   :  { %11453 = vmatpush2.bf16.msra.mxu0 %v17704_v26  ;;  %11413 = vmatprep.subr.bf16.mxu1 %v17709_v4 }
 0x69b   :  { %11454 = vmatprep.subr.bf16.mxu0 %v17712_v20 }
 0x69d   :  { %11414 = vmatpush2.bf16.msra.mxu1 %v17707_v47 }
 0x69e   :  { %11455 = vmatpush2.bf16.msra.mxu0 %v17710_v63  ;;  %11415 = vmatprep.subr.bf16.mxu1 %v17715_v51 }
 0x69f   :  { %11456 = vmatprep.subr.bf16.mxu0 %v17718_v28  ;;  %v10081_v22 = vpop.f32.mrf.mxu0 }
 0x6a1   :  { %11416 = vmatpush2.bf16.msra.mxu1 %v17713_v5  ;;  %v10083_v23 = vpop.f32.mrf.mxu0 }
 0x6a2   :  { %11457 = vmatpush2.bf16.msra.mxu0 %v17716_v19  ;;  %11417 = vmatprep.subr.bf16.mxu1 %v17721_v40 }
 0x6a3   :  { %11458 = vmatprep.subr.bf16.mxu0 %v17724_v8  ;;  %v10085_v44 = vpop.f32.mrf.mxu0 }
 0x6a5   :  { %11418 = vmatpush2.bf16.msra.mxu1 %v17719_v60  ;;  %v10087_v38 = vpop.f32.mrf.mxu0 }
 0x6a6   :  { %11459 = vmatpush2.bf16.msra.mxu0 %v17722_v54  ;;  %11419 = vmatprep.subr.bf16.mxu1 %v17727_v11  ;;  %v10902_v54 = vld [vmem:[%s24493_s9] sm:$0x3] }
 0x6a7   :  { %11460 = vmatprep.subr.bf16.mxu0 %v17730_v29  ;;  %v10091_v55 = vpop.f32.mrf.mxu0 }
 0x6a9   :  { %11420 = vmatpush2.bf16.msra.mxu1 %v17725_v57  ;;  %v10093_v3 = vpop.f32.mrf.mxu0 }
 0x6aa   :  { %11461 = vmatpush2.bf16.msra.mxu0 %v17728_v21  ;;  %11791 = vmatprep.subr.bf16.mxu1 %v17733_v16 }
 0x6ab   :  { %11832 = vmatprep.subr.bf16.mxu0 %v17736_v25  ;;  %v10095_v12 = vpop.f32.mrf.mxu0 }
 0x6ad   :  { %v10097_v48 = vpop.f32.mrf.mxu0 }
 0x6c1   :  { %v10480_v58 = vpop.f32.mrf.mxu0 }
 0x6c3   :  { %v10482_v46 = vpop.f32.mrf.mxu0 }
 0x6c5   :  { %v10484_v45 = vpop.f32.mrf.mxu0 }
 0x6c7   :  { %v10486_v56 = vpop.f32.mrf.mxu0 }
 0x6c9   :  { %v10490_v39 = vpop.f32.mrf.mxu0 }
 0x6cb   :  { %v10492_v10 = vpop.f32.mrf.mxu0 }
 0x6cc   :  { %v10134_v32 = vpop.f32.mrf.mxu1 }
 0x6cd   :  { %v10494_v0 = vpop.f32.mrf.mxu0  ;;  %v10135_v20 = vadd.f32 %v10134_v32, %v10081_v22 }
 0x6ce   :  { %v10136_v17 = vpop.f32.mrf.mxu1 }
 0x6cf   :  { %v10496_v9 = vpop.f32.mrf.mxu0  ;;  %v10137_v47 = vadd.f32 %v10136_v17, %v10083_v23  ;;  %v10907_v23 = vrot.slane %v10902_v54, %v24683_v13 }
 0x6d0   :  { %v10138_v24 = vpop.f32.mrf.mxu1 }
 0x6d1   :  { %v10139_v51 = vadd.f32 %v10138_v24, %v10085_v44 }
 0x6d2   :  { %v10140_v1 = vpop.f32.mrf.mxu1 }
 0x6d3   :  { %v10141_v40 = vadd.f32 %v10140_v1, %v10087_v38  ;;  %v10911_v38 = vrot.slane %v10902_v54, %v21102_v2 }
 0x6d4   :  { %v10144_v43 = vpop.f32.mrf.mxu1 }
 0x6d5   :  { %v10145_v52 = vadd.f32 %v10144_v43, %v10091_v55 }
 0x6d6   :  { %v10146_v35 = vpop.f32.mrf.mxu1 }
 0x6d7   :  { %v10147_v7 = vadd.f32 %v10146_v35, %v10093_v3 }
 0x6d8   :  { %v10148_v59 = vpop.f32.mrf.mxu1 }
 0x6d9   :  { %v10149_v36 = vadd.f32 %v10148_v59, %v10095_v12 }
 0x6da   :  { %v10150_v34 = vpop.f32.mrf.mxu1 }
 0x6db   :  { %v10151_v18 = vadd.f32 %v10150_v34, %v10097_v48 }
 0x701   :  { %v10822_v61 = vpop.f32.mrf.mxu0 }
 0x703   :  { %v10824_v26 = vpop.f32.mrf.mxu0 }
 0x705   :  { %v10826_v4 = vpop.f32.mrf.mxu0 }
 0x707   :  { %v10828_v28 = vpop.f32.mrf.mxu0 }
 0x709   :  { %v10832_v57 = vpop.f32.mrf.mxu0 }
 0x70b   :  { %v10834_v3 = vpop.f32.mrf.mxu0 }
 0x70c   :  { %v10427_v53 = vpop.f32.mrf.mxu1 }
 0x70d   :  { %v10428_v63 = vadd.f32 %v10427_v53, %v10135_v20 }
 0x70e   :  { %v10429_v62 = vpop.f32.mrf.mxu1 }
 0x70f   :  { %v10430_v5 = vadd.f32 %v10429_v62, %v10137_v47  ;;  %v10481_v11 = vadd.f32 %v10480_v58, %v10428_v63  ;;  %v17731_v47 = vld [vmem:[%s24492_s5 + $0xe0] ss:$16 sps:$4 sm:$0xff]   ;;  %v17734_v63 = vld [vmem:[%s24492_s5 + $0xe8] ss:$16 sps:$4 sm:$0xff]  }
 0x710   :  { %v10431_v31 = vpop.f32.mrf.mxu1 }
 0x711   :  { %v10432_v8 = vadd.f32 %v10431_v31, %v10139_v51  ;;  %v10483_v21 = vadd.f32 %v10482_v46, %v10430_v5  ;;  %v10836_v46 = vpop.f32.mrf.mxu0  ;;  %v17742_v5 = vld [vmem:[%s24492_s5 + $0xcc] ss:$16 sps:$4 sm:$0xff]  }
 0x712   :  { %v10433_v30 = vpop.f32.mrf.mxu1 }
 0x713   :  { %v10434_v16 = vadd.f32 %v10433_v30, %v10141_v40  ;;  %v10485_v32 = vadd.f32 %v10484_v45, %v10432_v8 }
 0x714   :  { %v10437_v49 = vpop.f32.mrf.mxu1 }
 0x715   :  { %v10438_v33 = vadd.f32 %v10437_v49, %v10145_v52  ;;  %v10487_v1 = vadd.f32 %v10486_v56, %v10434_v16 }
 0x716   :  { %v10439_v27 = vpop.f32.mrf.mxu1 }
 0x717   :  { %v10440_v42 = vadd.f32 %v10439_v27, %v10147_v7  ;;  %v10491_v12 = vadd.f32 %v10490_v39, %v10438_v33 }
 0x718   :  { %v10441_v15 = vpop.f32.mrf.mxu1 }
 0x719   :  { %v10442_v50 = vadd.f32 %v10441_v15, %v10149_v36 }
 0x71a   :  { %v10443_v14 = vpop.f32.mrf.mxu1 }
 0x71b   :  { %v10444_v6 = vadd.f32 %v10443_v14, %v10151_v18  ;;  %v10493_v18 = vadd.f32 %v10492_v10, %v10440_v42  ;;  %v10495_v39 = vadd.f32 %v10494_v0, %v10442_v50 }
 0x71d   :  { %v23781_v37 = vadd.f32 %v10496_v9, %v10444_v6 }
 0x72c   :  { %v10875_v19 = vpop.f32.mrf.mxu1 }
 0x72d   :  { %v10876_v60 = vadd.f32 %v10875_v19, %v10822_v61  ;;  %v10838_v61 = vpop.f32.mrf.mxu0 }
 0x72e   :  { %v10877_v29 = vpop.f32.mrf.mxu1 }
 0x72f   :  { %v10878_v25 = vadd.f32 %v10877_v29, %v10824_v26  ;;  %v10894_v22 = vadd.f32 %v10876_v60, %v10481_v11  ;;  %v17740_v60 = vld [vmem:[%s24492_s5 + $0xc8] ss:$16 sps:$4 sm:$0xff]  }
 0x730   :  { %v10879_v44 = vpop.f32.mrf.mxu1 }
 0x731   :  { %v10895_v55 = vadd.f32 %v10878_v25, %v10483_v21  ;;  %v10880_v17 = vadd.f32 %v10879_v44, %v10826_v4  ;;  %v10914_v35 = vadd.f32 %v10907_v23, %v10894_v22  ;;  %v17748_v21 = vld [vmem:[%s24492_s5 + $0xac] ss:$16 sps:$4 sm:$0xff]   ;;  %v17743_v25 = vld [vmem:[%s24492_s5 + $0xa0] ss:$16 sps:$4 sm:$0xff]   ;;  %v17746_v22 = vld [vmem:[%s24492_s5 + $0xa8] ss:$16 sps:$4 sm:$0xff]  }
 0x732   :  { %v10881_v24 = vpop.f32.mrf.mxu1  ;;  %v17754_v44 = vld [vmem:[%s24492_s5 + $0x8c] ss:$16 sps:$4 sm:$0xff]  }
 0x733   :  { %v10896_v43 = vadd.f32 %v10880_v17, %v10485_v32  ;;  %v10882_v52 = vadd.f32 %v10881_v24, %v10828_v28  ;;  %v10915_v59 = vadd.f32 %v10911_v38, %v10895_v55  ;;  %v10922_v30 = vmax.f32 %v10914_v35, 0.0  ;;  %v17739_v28 = vld [vmem:[%s24492_s5 + $0xc4] ss:$16 sps:$4 sm:$0xff]   ;;  %v17749_v32 = vld [vmem:[%s24492_s5 + $0x80] ss:$16 sps:$4 sm:$0xff]  }
 0x734   :  { %v10885_v7 = vpop.f32.mrf.mxu1  ;;  %v17752_v55 = vld [vmem:[%s24492_s5 + $0x88] ss:$16 sps:$4 sm:$0xff]   ;;  %v17760_v17 = vld [vmem:[%s24492_s5 + $0x6c] ss:$16 sps:$4 sm:$0xff]   ;;  %v17755_v24 = vld [vmem:[%s24492_s5 + $0x60] ss:$16 sps:$4 sm:$0xff]  }
 0x735   :  { %v10916_v36 = vadd.f32 %v10907_v23, %v10896_v43  ;;  %v10897_v48 = vadd.f32 %v10882_v52, %v10487_v1  ;;  %v10886_v34 = vadd.f32 %v10885_v7, %v10832_v57  ;;  %v10923_v27 = vmax.f32 %v10915_v59, 0.0  ;;  %v17745_v57 = vld [vmem:[%s24492_s5 + $0xa4] ss:$16 sps:$4 sm:$0xff]   ;;  %v17766_v43 = vld [vmem:[%s24492_s5 + $0x4c] ss:$16 sps:$4 sm:$0xff]  }
 0x736   :  { %v10887_v58 = vpop.f32.mrf.mxu1  ;;  %v17763_v1 = vld [vmem:[%s24492_s5 + $0x44] ss:$16 sps:$4 sm:$0xff]   ;;  %v17761_v52 = vld [vmem:[%s24492_s5 + $0x40] ss:$16 sps:$4 sm:$0xff]   ;;  %v17772_v7 = vld [vmem:[%s24492_s5 + $0x2c] ss:$16 sps:$4 sm:$0xff]  }
 0x737   :  { %v10924_v45 = vmax.f32 %v10916_v36, 0.0  ;;  %v10917_v53 = vadd.f32 %v10911_v38, %v10897_v48  ;;  %v10898_v62 = vadd.f32 %v10886_v34, %v10491_v12  ;;  %v10888_v31 = vadd.f32 %v10887_v58, %v10834_v3  ;;  %v17758_v3 = vld [vmem:[%s24492_s5 + $0x68] ss:$16 sps:$4 sm:$0xff]   ;;  %v17769_v35 = vld [vmem:[%s24492_s5 + $0x24] ss:$16 sps:$4 sm:$0xff]  }
 0x738   :  { %v10889_v49 = vpop.f32.mrf.mxu1  ;;  %v17764_v12 = vld [vmem:[%s24492_s5 + $0x48] ss:$16 sps:$4 sm:$0xff]   ;;  %v17767_v59 = vld [vmem:[%s24492_s5 + $0x20] ss:$16 sps:$4 sm:$0xff]   ;;  %v17775_v48 = vld [vmem:[%s24492_s5 + $0x4] ss:$16 sps:$4 sm:$0xff]  }
 0x739   :  { %v10925_v56 = vmax.f32 %v10917_v53, 0.0  ;;  %v10918_v15 = vadd.f32 %v10907_v23, %v10898_v62  ;;  %v10899_v14 = vadd.f32 %v10888_v31, %v10493_v18  ;;  %v23788_v33 = vpack.c.bf16 %v10924_v45, %v10922_v30  ;;  %v17770_v36 = vld [vmem:[%s24492_s5 + $0x28] ss:$16 sps:$4 sm:$0xff]   ;;  %v17778_v34 = vld [vmem:[%s24492_s5 + $0xc] ss:$16 sps:$4 sm:$0xff]  }
 0x73a   :  { %v10890_v6 = vadd.f32 %v10889_v49, %v10836_v46  ;;  %v10891_v9 = vpop.f32.mrf.mxu1  ;;  %v17773_v18 = vld [vmem:[%s24492_s5] ss:$16 sps:$4 sm:$0xff]   ;;  %v17776_v58 = vld [vmem:[%s24492_s5 + $0x8] ss:$16 sps:$4 sm:$0xff]   ;;  %v17781_v46 = vld [vmem:[%s24492_s5 + $0x1e4] ss:$16 sps:$4 sm:$0xff]  }
 0x73b   :  { %v10931_v26 = vpack.c.bf16 %v10925_v56, %v10923_v27  ;;  %v10919_v10 = vadd.f32 %v10911_v38, %v10899_v14  ;;  %v10892_v4 = vadd.f32 %v10891_v9, %v10838_v61  ;;  %v11065_v0 = vrot.slane %v23788_v33, 4  ;;  %v17784_v45 = vld [vmem:[%s24492_s5 + $0x1ec] ss:$16 sps:$4 sm:$0xff]   ;;  %v17779_v53 = vld [vmem:[%s24492_s5 + $0x1e0] ss:$16 sps:$4 sm:$0xff]  }
 0x73c   :  { %v10900_v42 = vadd.f32 %v10890_v6, %v10495_v39  ;;  %v10926_v19 = vmax.f32 %v10918_v15, 0.0  ;;  %v17782_v62 = vld [vmem:[%s24492_s5 + $0x1e8] ss:$16 sps:$4 sm:$0xff]   ;;  %v17787_v31 = vld [vmem:[%s24492_s5 + $0x1c4] ss:$16 sps:$4 sm:$0xff]  }
 0x73d   :  { %v11066_v20 = vrot.slane %v10931_v26, 4  ;;  %v10901_v51 = vadd.f32 %v10892_v4, %v23781_v37  ;;  %v17737_v37 = vld [vmem:[%s24492_s5 + $0xc0] ss:$16 sps:$4 sm:$0xff]   ;;  %v10927_v54 = vmax.f32 %v10919_v10, 0.0  ;;  %v17790_v30 = vld [vmem:[%s24492_s5 + $0x1cc] ss:$16 sps:$4 sm:$0xff]  }
 0x73e   :  { %v10920_v50 = vadd.f32 %v10907_v23, %v10900_v42  ;;  %v17751_v23 = vld [vmem:[%s24492_s5 + $0x84] ss:$16 sps:$4 sm:$0xff]   ;;  %v17785_v49 = vld [vmem:[%s24492_s5 + $0x1c0] ss:$16 sps:$4 sm:$0xff]   ;;  %v17788_v27 = vld [vmem:[%s24492_s5 + $0x1c8] ss:$16 sps:$4 sm:$0xff]  }
 0x73f   :  { %11421 = vmatprep.mubr.bf16.mxu1 %v11066_v20  ;;  %11462 = vmatprep.mubr.bf16.mxu0 %v11066_v20  ;;  %v10921_v8 = vadd.f32 %v10911_v38, %v10901_v51  ;;  %v17757_v38 = vld [vmem:[%s24492_s5 + $0x64] ss:$16 sps:$4 sm:$0xff]   ;;  %v17796_v15 = vld [vmem:[%s24492_s5 + $0x1ac] ss:$16 sps:$4 sm:$0xff]   ;;  %v17791_v14 = vld [vmem:[%s24492_s5 + $0x1a0] ss:$16 sps:$4 sm:$0xff]  }
 0x740   :  { %v10928_v40 = vmax.f32 %v10920_v50, 0.0  ;;  %11422 = vmatmul.mubr.bf16.vlgmr.msra.gmra.mxu1 %v11065_v0  ;;  %11463 = vmatmul.mubr.bf16.vlgmr.msra.gmra.mxu0 %v11065_v0  ;;  %v17793_v56 = vld [vmem:[%s24492_s5 + $0x1a4] ss:$16 sps:$4 sm:$0xff]   ;;  %v17794_v39 = vld [vmem:[%s24492_s5 + $0x1a8] ss:$16 sps:$4 sm:$0xff]  }
 0x741   :  { %11792 = vmatpush1.bf16.msra.mxu1 %v17731_v47  ;;  %11833 = vmatpush1.bf16.msra.mxu0 %v17734_v63  ;;  %v10929_v29 = vmax.f32 %v10921_v8, 0.0  ;;  %v17799_v6 = vld [vmem:[%s24492_s5 + $0x184] ss:$16 sps:$4 sm:$0xff]   ;;  %v17802_v9 = vld [vmem:[%s24492_s5 + $0x18c] ss:$16 sps:$4 sm:$0xff]  }
 0x742   :  { %v23810_v11 = vpack.c.bf16 %v10928_v40, %v10926_v19  ;;  %11823 = vmatprep.mubr.bf16.mxu1 %v10931_v26  ;;  %11864 = vmatprep.mubr.bf16.mxu0 %v10931_v26  ;;  %v17797_v61 = vld [vmem:[%s24492_s5 + $0x180] ss:$16 sps:$4 sm:$0xff]   ;;  %v17800_v26 = vld [vmem:[%s24492_s5 + $0x188] ss:$16 sps:$4 sm:$0xff]   ;;  %v17805_v10 = vld [vmem:[%s24492_s5 + $0x164] ss:$16 sps:$4 sm:$0xff]  }
 0x743   :  { %11793 = vmatprep.subr.bf16.mxu1 %v17739_v28  ;;  %11834 = vmatprep.subr.bf16.mxu0 %v17742_v5  ;;  %v23818_v16 = vpack.c.bf16 %v10929_v29, %v10927_v54  ;;  %v17808_v42 = vld [vmem:[%s24492_s5 + $0x16c] ss:$16 sps:$4 sm:$0xff]   ;;  %v17803_v4 = vld [vmem:[%s24492_s5 + $0x160] ss:$16 sps:$4 sm:$0xff]   ;;  %v17806_v20 = vld [vmem:[%s24492_s5 + $0x168] ss:$16 sps:$4 sm:$0xff]  }
 0x744   :  { %v17811_v47 = vld [vmem:[%s24492_s5 + $0x144] ss:$16 sps:$4 sm:$0xff]   ;;  %v17814_v63 = vld [vmem:[%s24492_s5 + $0x14c] ss:$16 sps:$4 sm:$0xff]   ;;  %v17809_v0 = vld [vmem:[%s24492_s5 + $0x140] ss:$16 sps:$4 sm:$0xff]  }
 0x745   :  { %11794 = vmatpush1.bf16.msra.mxu1 %v17737_v37  ;;  %11835 = vmatpush1.bf16.msra.mxu0 %v17740_v60  ;;  %v17812_v50 = vld [vmem:[%s24492_s5 + $0x148] ss:$16 sps:$4 sm:$0xff]   ;;  %v17817_v51 = vld [vmem:[%s24492_s5 + $0x124] ss:$16 sps:$4 sm:$0xff]   ;;  %v17820_v28 = vld [vmem:[%s24492_s5 + $0x12c] ss:$16 sps:$4 sm:$0xff]  }
 0x746   :  { %11795 = vmatprep.subr.bf16.mxu1 %v17745_v57  ;;  %11836 = vmatprep.subr.bf16.mxu0 %v17748_v21  ;;  %v17815_v5 = vld [vmem:[%s24492_s5 + $0x120] ss:$16 sps:$4 sm:$0xff]   ;;  %v17818_v19 = vld [vmem:[%s24492_s5 + $0x128] ss:$16 sps:$4 sm:$0xff]   ;;  %v17823_v40 = vld [vmem:[%s24492_s5 + $0x104] ss:$16 sps:$4 sm:$0xff]  }
 0x747   :  { %v17826_v8 = vld [vmem:[%s24492_s5 + $0x10c] ss:$16 sps:$4 sm:$0xff]   ;;  %v17821_v37 = vld [vmem:[%s24492_s5 + $0x100] ss:$16 sps:$4 sm:$0xff]   ;;  %v17824_v60 = vld [vmem:[%s24492_s5 + $0x108] ss:$16 sps:$4 sm:$0xff]  }
 0x748   :  { %v17829_v54 = vld [vmem:[%s24492_s5 + $0x4e4] ss:$16 sps:$4 sm:$0xff]   ;;  %v17832_v29 = vld [vmem:[%s24492_s5 + $0x4ec] ss:$16 sps:$4 sm:$0xff]   ;;  %v17827_v57 = vld [vmem:[%s24492_s5 + $0x4e0] ss:$16 sps:$4 sm:$0xff]  }
 0x749   :  { %11796 = vmatpush1.bf16.msra.mxu1 %v17743_v25  ;;  %11837 = vmatpush1.bf16.msra.mxu0 %v17746_v22  ;;  %v17830_v21 = vld [vmem:[%s24492_s5 + $0x4e8] ss:$16 sps:$4 sm:$0xff]   ;;  %v17835_v25 = vld [vmem:[%s24492_s5 + $0x4c4] ss:$16 sps:$4 sm:$0xff]   ;;  %v17838_v22 = vld [vmem:[%s24492_s5 + $0x4cc] ss:$16 sps:$4 sm:$0xff]  }
 0x74a   :  { %11797 = vmatprep.subr.bf16.mxu1 %v17751_v23  ;;  %11838 = vmatprep.subr.bf16.mxu0 %v17754_v44  ;;  %v17833_v23 = vld [vmem:[%s24492_s5 + $0x4c0] ss:$16 sps:$4 sm:$0xff]   ;;  %v17836_v44 = vld [vmem:[%s24492_s5 + $0x4c8] ss:$16 sps:$4 sm:$0xff]  }
 0x74d   :  { %11798 = vmatpush1.bf16.msra.mxu1 %v17749_v32  ;;  %11839 = vmatpush1.bf16.msra.mxu0 %v17752_v55  ;;  %v17841_v32 = vld [vmem:[%s24492_s5 + $0x4a4] ss:$16 sps:$4 sm:$0xff]   ;;  %v17839_v55 = vld [vmem:[%s24492_s5 + $0x4a0] ss:$16 sps:$4 sm:$0xff]  }
 0x74e   :  { %11799 = vmatprep.subr.bf16.mxu1 %v17757_v38  ;;  %11840 = vmatprep.subr.bf16.mxu0 %v17760_v17  ;;  %v17842_v38 = vld [vmem:[%s24492_s5 + $0x4a8] ss:$16 sps:$4 sm:$0xff]   ;;  %v17847_v17 = vld [vmem:[%s24492_s5 + $0x484] ss:$16 sps:$4 sm:$0xff]  }
 0x751   :  { %11800 = vmatpush1.bf16.msra.mxu1 %v17755_v24  ;;  %11841 = vmatpush1.bf16.msra.mxu0 %v17758_v3  ;;  %v17850_v24 = vld [vmem:[%s24492_s5 + $0x48c] ss:$16 sps:$4 sm:$0xff]   ;;  %v17845_v3 = vld [vmem:[%s24492_s5 + $0x480] ss:$16 sps:$4 sm:$0xff]  }
 0x752   :  { %11801 = vmatprep.subr.bf16.mxu1 %v17763_v1  ;;  %11842 = vmatprep.subr.bf16.mxu0 %v17766_v43  ;;  %v17848_v1 = vld [vmem:[%s24492_s5 + $0x488] ss:$16 sps:$4 sm:$0xff]   ;;  %v17853_v43 = vld [vmem:[%s24492_s5 + $0x464] ss:$16 sps:$4 sm:$0xff]  }
 0x755   :  { %11802 = vmatpush1.bf16.msra.mxu1 %v17761_v52  ;;  %11843 = vmatpush1.bf16.msra.mxu0 %v17764_v12  ;;  %v17856_v52 = vld [vmem:[%s24492_s5 + $0x46c] ss:$16 sps:$4 sm:$0xff]   ;;  %v17851_v12 = vld [vmem:[%s24492_s5 + $0x460] ss:$16 sps:$4 sm:$0xff]  }
 0x756   :  { %11803 = vmatprep.subr.bf16.mxu1 %v17769_v35  ;;  %11844 = vmatprep.subr.bf16.mxu0 %v17772_v7  ;;  %v17854_v35 = vld [vmem:[%s24492_s5 + $0x468] ss:$16 sps:$4 sm:$0xff]   ;;  %v17859_v7 = vld [vmem:[%s24492_s5 + $0x444] ss:$16 sps:$4 sm:$0xff]  }
 0x759   :  { %11804 = vmatpush1.bf16.msra.mxu1 %v17767_v59  ;;  %11845 = vmatpush1.bf16.msra.mxu0 %v17770_v36  ;;  %v17862_v59 = vld [vmem:[%s24492_s5 + $0x44c] ss:$16 sps:$4 sm:$0xff]   ;;  %v17857_v36 = vld [vmem:[%s24492_s5 + $0x440] ss:$16 sps:$4 sm:$0xff]  }
 0x75a   :  { %11805 = vmatprep.subr.bf16.mxu1 %v17775_v48  ;;  %11846 = vmatprep.subr.bf16.mxu0 %v17778_v34  ;;  %v17860_v48 = vld [vmem:[%s24492_s5 + $0x448] ss:$16 sps:$4 sm:$0xff]   ;;  %v17865_v34 = vld [vmem:[%s24492_s5 + $0x424] ss:$16 sps:$4 sm:$0xff]  }
 0x75d   :  { %11806 = vmatpush1.bf16.msra.mxu1 %v17773_v18  ;;  %11847 = vmatpush1.bf16.msra.mxu0 %v17776_v58  ;;  %v17868_v18 = vld [vmem:[%s24492_s5 + $0x42c] ss:$16 sps:$4 sm:$0xff]   ;;  %v17863_v58 = vld [vmem:[%s24492_s5 + $0x420] ss:$16 sps:$4 sm:$0xff]  }
 0x75e   :  { %11807 = vmatprep.subr.bf16.mxu1 %v17781_v46  ;;  %11848 = vmatprep.subr.bf16.mxu0 %v17784_v45  ;;  %v17866_v46 = vld [vmem:[%s24492_s5 + $0x428] ss:$16 sps:$4 sm:$0xff]   ;;  %v17871_v45 = vld [vmem:[%s24492_s5 + $0x404] ss:$16 sps:$4 sm:$0xff]  }
 0x761   :  { %11808 = vmatpush2.bf16.msra.mxu1 %v17779_v53  ;;  %11849 = vmatpush2.bf16.msra.mxu0 %v17782_v62  ;;  %v17874_v53 = vld [vmem:[%s24492_s5 + $0x40c] ss:$16 sps:$4 sm:$0xff]   ;;  %v17869_v62 = vld [vmem:[%s24492_s5 + $0x400] ss:$16 sps:$4 sm:$0xff]  }
 0x762   :  { %11809 = vmatprep.subr.bf16.mxu1 %v17787_v31  ;;  %11850 = vmatprep.subr.bf16.mxu0 %v17790_v30  ;;  %v17872_v31 = vld [vmem:[%s24492_s5 + $0x408] ss:$16 sps:$4 sm:$0xff]   ;;  %v17877_v30 = vld [vmem:[%s24492_s5 + $0x5e4] ss:$16 sps:$4 sm:$0xff]  }
 0x765   :  { %11810 = vmatpush2.bf16.msra.mxu1 %v17785_v49  ;;  %11851 = vmatpush2.bf16.msra.mxu0 %v17788_v27  ;;  %v17880_v49 = vld [vmem:[%s24492_s5 + $0x5ec] ss:$16 sps:$4 sm:$0xff]   ;;  %v17875_v27 = vld [vmem:[%s24492_s5 + $0x5e0] ss:$16 sps:$4 sm:$0xff]  }
 0x766   :  { %11811 = vmatprep.subr.bf16.mxu1 %v17793_v56  ;;  %11852 = vmatprep.subr.bf16.mxu0 %v17796_v15  ;;  %v17878_v56 = vld [vmem:[%s24492_s5 + $0x5e8] ss:$16 sps:$4 sm:$0xff]   ;;  %v17883_v15 = vld [vmem:[%s24492_s5 + $0x5c4] ss:$16 sps:$4 sm:$0xff]  }
 0x769   :  { %11812 = vmatpush2.bf16.msra.mxu1 %v17791_v14  ;;  %11853 = vmatpush2.bf16.msra.mxu0 %v17794_v39  ;;  %v17886_v14 = vld [vmem:[%s24492_s5 + $0x5cc] ss:$16 sps:$4 sm:$0xff]   ;;  %v17881_v39 = vld [vmem:[%s24492_s5 + $0x5c0] ss:$16 sps:$4 sm:$0xff]  }
 0x76a   :  { %11813 = vmatprep.subr.bf16.mxu1 %v17799_v6  ;;  %11854 = vmatprep.subr.bf16.mxu0 %v17802_v9  ;;  %v17884_v6 = vld [vmem:[%s24492_s5 + $0x5c8] ss:$16 sps:$4 sm:$0xff]   ;;  %v17889_v9 = vld [vmem:[%s24492_s5 + $0x5a4] ss:$16 sps:$4 sm:$0xff]  }
 0x76d   :  { %11814 = vmatpush2.bf16.msra.mxu1 %v17797_v61  ;;  %11855 = vmatpush2.bf16.msra.mxu0 %v17800_v26  ;;  %v17892_v61 = vld [vmem:[%s24492_s5 + $0x5ac] ss:$16 sps:$4 sm:$0xff]   ;;  %v17887_v26 = vld [vmem:[%s24492_s5 + $0x5a0] ss:$16 sps:$4 sm:$0xff]  }
 0x76e   :  { %11815 = vmatprep.subr.bf16.mxu1 %v17805_v10  ;;  %11856 = vmatprep.subr.bf16.mxu0 %v17808_v42  ;;  %v17890_v10 = vld [vmem:[%s24492_s5 + $0x5a8] ss:$16 sps:$4 sm:$0xff]   ;;  %v17895_v42 = vld [vmem:[%s24492_s5 + $0x584] ss:$16 sps:$4 sm:$0xff]  }
 0x771   :  { %11816 = vmatpush2.bf16.msra.mxu1 %v17803_v4  ;;  %11857 = vmatpush2.bf16.msra.mxu0 %v17806_v20  ;;  %v17898_v4 = vld [vmem:[%s24492_s5 + $0x58c] ss:$16 sps:$4 sm:$0xff]   ;;  %v17893_v20 = vld [vmem:[%s24492_s5 + $0x580] ss:$16 sps:$4 sm:$0xff]  }
 0x772   :  { %11817 = vmatprep.subr.bf16.mxu1 %v17811_v47  ;;  %11858 = vmatprep.subr.bf16.mxu0 %v17814_v63  ;;  %v17896_v47 = vld [vmem:[%s24492_s5 + $0x588] ss:$16 sps:$4 sm:$0xff]   ;;  %v17901_v63 = vld [vmem:[%s24492_s5 + $0x564] ss:$16 sps:$4 sm:$0xff]  }
 0x775   :  { %11818 = vmatpush2.bf16.msra.mxu1 %v17809_v0  ;;  %11859 = vmatpush2.bf16.msra.mxu0 %v17812_v50  ;;  %v17904_v0 = vld [vmem:[%s24492_s5 + $0x56c] ss:$16 sps:$4 sm:$0xff]   ;;  %v17899_v50 = vld [vmem:[%s24492_s5 + $0x560] ss:$16 sps:$4 sm:$0xff]  }
 0x776   :  { %11819 = vmatprep.subr.bf16.mxu1 %v17817_v51  ;;  %11860 = vmatprep.subr.bf16.mxu0 %v17820_v28  ;;  %v17902_v51 = vld [vmem:[%s24492_s5 + $0x568] ss:$16 sps:$4 sm:$0xff]   ;;  %v17907_v28 = vld [vmem:[%s24492_s5 + $0x544] ss:$16 sps:$4 sm:$0xff]  }
 0x779   :  { %11820 = vmatpush2.bf16.msra.mxu1 %v17815_v5  ;;  %11861 = vmatpush2.bf16.msra.mxu0 %v17818_v19  ;;  %v17910_v5 = vld [vmem:[%s24492_s5 + $0x54c] ss:$16 sps:$4 sm:$0xff]   ;;  %v17905_v19 = vld [vmem:[%s24492_s5 + $0x540] ss:$16 sps:$4 sm:$0xff]  }
 0x77a   :  { %11821 = vmatprep.subr.bf16.mxu1 %v17823_v40  ;;  %11862 = vmatprep.subr.bf16.mxu0 %v17826_v8  ;;  %v17908_v40 = vld [vmem:[%s24492_s5 + $0x548] ss:$16 sps:$4 sm:$0xff]   ;;  %v17913_v8 = vld [vmem:[%s24492_s5 + $0x524] ss:$16 sps:$4 sm:$0xff]  }
 0x77d   :  { %11822 = vmatpush2.bf16.msra.mxu1 %v17821_v37  ;;  %11863 = vmatpush2.bf16.msra.mxu0 %v17824_v60  ;;  %v17916_v37 = vld [vmem:[%s24492_s5 + $0x52c] ss:$16 sps:$4 sm:$0xff]   ;;  %v17911_v60 = vld [vmem:[%s24492_s5 + $0x520] ss:$16 sps:$4 sm:$0xff]  }
 0x77e   :  { %12258 = vmatprep.subr.bf16.mxu1 %v17829_v54  ;;  %12299 = vmatprep.subr.bf16.mxu0 %v17832_v29  ;;  %v17914_v54 = vld [vmem:[%s24492_s5 + $0x528] ss:$16 sps:$4 sm:$0xff]   ;;  %v17919_v29 = vld [vmem:[%s24492_s5 + $0x504] ss:$16 sps:$4 sm:$0xff]  }
 0x780   :  { %11824 = vmatmul.mubr.bf16.vlgmr.msra.gmra.mxu1 %v23788_v33  ;;  %11865 = vmatmul.mubr.bf16.vlgmr.msra.gmra.mxu0 %v23788_v33  ;;  %v17844_v33 = vld [vmem:[%s24492_s5 + $0x4ac] ss:$16 sps:$4 sm:$0xff]  }
 0x781   :  { %12259 = vmatpush1.bf16.msra.mxu1 %v17827_v57  ;;  %12290 = vmatprep.mubr.bf16.mxu1 %v23818_v16  ;;  %v17922_v57 = vld [vmem:[%s24492_s5 + $0x50c] ss:$16 sps:$4 sm:$0xff]  }
 0x782   :  { %12300 = vmatpush1.bf16.msra.mxu0 %v17830_v21  ;;  %12331 = vmatprep.mubr.bf16.mxu0 %v23818_v16  ;;  %v17917_v21 = vld [vmem:[%s24492_s5 + $0x500] ss:$16 sps:$4 sm:$0xff]  }
 0x783   :  { %12260 = vmatprep.subr.bf16.mxu1 %v17835_v25  ;;  %12301 = vmatprep.subr.bf16.mxu0 %v17838_v22  ;;  %v17920_v25 = vld [vmem:[%s24492_s5 + $0x508] ss:$16 sps:$4 sm:$0xff]   ;;  %v17925_v22 = vld [vmem:[%s24492_s5 + $0x6e4] ss:$16 sps:$4 sm:$0xff]  }
 0x785   :  { %12261 = vmatpush1.bf16.msra.mxu1 %v17833_v23  ;;  %v17928_v23 = vld [vmem:[%s24492_s5 + $0x6ec] ss:$16 sps:$4 sm:$0xff]  }
 0x786   :  { %12302 = vmatpush1.bf16.msra.mxu0 %v17836_v44  ;;  %12262 = vmatprep.subr.bf16.mxu1 %v17841_v32  ;;  %v17923_v44 = vld [vmem:[%s24492_s5 + $0x6e0] ss:$16 sps:$4 sm:$0xff]   ;;  %v17926_v32 = vld [vmem:[%s24492_s5 + $0x6e8] ss:$16 sps:$4 sm:$0xff]  }
 0x787   :  { %12303 = vmatprep.subr.bf16.mxu0 %v17844_v33  ;;  %v17931_v33 = vld [vmem:[%s24492_s5 + $0x6c4] ss:$16 sps:$4 sm:$0xff]  }
 0x789   :  { %12263 = vmatpush1.bf16.msra.mxu1 %v17839_v55  ;;  %v12412_v55 = vrot.slane %v23818_v16, 4  ;;  %v17937_v16 = vld [vmem:[%s24492_s5 + $0x6a4] ss:$16 sps:$4 sm:$0xff]  }
 0x78a   :  { %12304 = vmatpush1.bf16.msra.mxu0 %v17842_v38  ;;  %12264 = vmatprep.subr.bf16.mxu1 %v17847_v17  ;;  %v17934_v38 = vld [vmem:[%s24492_s5 + $0x6cc] ss:$16 sps:$4 sm:$0xff]   ;;  %v17929_v17 = vld [vmem:[%s24492_s5 + $0x6c0] ss:$16 sps:$4 sm:$0xff]  }
 0x78b   :  { %12305 = vmatprep.subr.bf16.mxu0 %v17850_v24  ;;  %v17932_v24 = vld [vmem:[%s24492_s5 + $0x6c8] ss:$16 sps:$4 sm:$0xff]  }
 0x78d   :  { %12265 = vmatpush1.bf16.msra.mxu1 %v17845_v3  ;;  %v17940_v3 = vld [vmem:[%s24492_s5 + $0x6ac] ss:$16 sps:$4 sm:$0xff]  }
 0x78e   :  { %12306 = vmatpush1.bf16.msra.mxu0 %v17848_v1  ;;  %12266 = vmatprep.subr.bf16.mxu1 %v17853_v43  ;;  %v17935_v1 = vld [vmem:[%s24492_s5 + $0x6a0] ss:$16 sps:$4 sm:$0xff]   ;;  %v17938_v43 = vld [vmem:[%s24492_s5 + $0x6a8] ss:$16 sps:$4 sm:$0xff]  }
 0x78f   :  { %12307 = vmatprep.subr.bf16.mxu0 %v17856_v52  ;;  %v17943_v52 = vld [vmem:[%s24492_s5 + $0x684] ss:$16 sps:$4 sm:$0xff]  }
 0x791   :  { %12267 = vmatpush1.bf16.msra.mxu1 %v17851_v12  ;;  %v17946_v12 = vld [vmem:[%s24492_s5 + $0x68c] ss:$16 sps:$4 sm:$0xff]  }
 0x792   :  { %12308 = vmatpush1.bf16.msra.mxu0 %v17854_v35  ;;  %12268 = vmatprep.subr.bf16.mxu1 %v17859_v7  ;;  %v17941_v35 = vld [vmem:[%s24492_s5 + $0x680] ss:$16 sps:$4 sm:$0xff]   ;;  %v17944_v7 = vld [vmem:[%s24492_s5 + $0x688] ss:$16 sps:$4 sm:$0xff]  }
 0x793   :  { %12309 = vmatprep.subr.bf16.mxu0 %v17862_v59  ;;  %v17949_v59 = vld [vmem:[%s24492_s5 + $0x664] ss:$16 sps:$4 sm:$0xff]  }
 0x795   :  { %12269 = vmatpush1.bf16.msra.mxu1 %v17857_v36  ;;  %v17952_v36 = vld [vmem:[%s24492_s5 + $0x66c] ss:$16 sps:$4 sm:$0xff]  }
 0x796   :  { %12310 = vmatpush1.bf16.msra.mxu0 %v17860_v48  ;;  %12270 = vmatprep.subr.bf16.mxu1 %v17865_v34  ;;  %v17947_v48 = vld [vmem:[%s24492_s5 + $0x660] ss:$16 sps:$4 sm:$0xff]   ;;  %v17950_v34 = vld [vmem:[%s24492_s5 + $0x668] ss:$16 sps:$4 sm:$0xff]  }
 0x797   :  { %12311 = vmatprep.subr.bf16.mxu0 %v17868_v18  ;;  %v17955_v18 = vld [vmem:[%s24492_s5 + $0x644] ss:$16 sps:$4 sm:$0xff]  }
 0x799   :  { %12271 = vmatpush1.bf16.msra.mxu1 %v17863_v58  ;;  %v17958_v58 = vld [vmem:[%s24492_s5 + $0x64c] ss:$16 sps:$4 sm:$0xff]  }
 0x79a   :  { %12312 = vmatpush1.bf16.msra.mxu0 %v17866_v46  ;;  %12272 = vmatprep.subr.bf16.mxu1 %v17871_v45  ;;  %v17953_v46 = vld [vmem:[%s24492_s5 + $0x640] ss:$16 sps:$4 sm:$0xff]   ;;  %v17956_v45 = vld [vmem:[%s24492_s5 + $0x648] ss:$16 sps:$4 sm:$0xff]  }
 0x79b   :  { %12313 = vmatprep.subr.bf16.mxu0 %v17874_v53  ;;  %v17961_v53 = vld [vmem:[%s24492_s5 + $0x624] ss:$16 sps:$4 sm:$0xff]  }
 0x79d   :  { %12273 = vmatpush1.bf16.msra.mxu1 %v17869_v62  ;;  %v17964_v62 = vld [vmem:[%s24492_s5 + $0x62c] ss:$16 sps:$4 sm:$0xff]  }
 0x79e   :  { %12314 = vmatpush1.bf16.msra.mxu0 %v17872_v31  ;;  %12274 = vmatprep.subr.bf16.mxu1 %v17877_v30  ;;  %v17959_v31 = vld [vmem:[%s24492_s5 + $0x620] ss:$16 sps:$4 sm:$0xff]   ;;  %v17962_v30 = vld [vmem:[%s24492_s5 + $0x628] ss:$16 sps:$4 sm:$0xff]  }
 0x79f   :  { %12315 = vmatprep.subr.bf16.mxu0 %v17880_v49  ;;  %v17967_v49 = vld [vmem:[%s24492_s5 + $0x604] ss:$16 sps:$4 sm:$0xff]  }
 0x7a1   :  { %12275 = vmatpush2.bf16.msra.mxu1 %v17875_v27  ;;  %v17970_v27 = vld [vmem:[%s24492_s5 + $0x60c] ss:$16 sps:$4 sm:$0xff]  }
 0x7a2   :  { %12316 = vmatpush2.bf16.msra.mxu0 %v17878_v56  ;;  %12276 = vmatprep.subr.bf16.mxu1 %v17883_v15  ;;  %v17965_v56 = vld [vmem:[%s24492_s5 + $0x600] ss:$16 sps:$4 sm:$0xff]   ;;  %v17968_v15 = vld [vmem:[%s24492_s5 + $0x608] ss:$16 sps:$4 sm:$0xff]  }
 0x7a3   :  { %12317 = vmatprep.subr.bf16.mxu0 %v17886_v14  ;;  %v17973_v14 = vld [vmem:[%s24492_s5 + $0x7e4] ss:$16 sps:$4 sm:$0xff]  }
 0x7a5   :  { %12277 = vmatpush2.bf16.msra.mxu1 %v17881_v39  ;;  %v17976_v39 = vld [vmem:[%s24492_s5 + $0x7ec] ss:$16 sps:$4 sm:$0xff]  }
 0x7a6   :  { %12318 = vmatpush2.bf16.msra.mxu0 %v17884_v6  ;;  %12278 = vmatprep.subr.bf16.mxu1 %v17889_v9  ;;  %v17971_v6 = vld [vmem:[%s24492_s5 + $0x7e0] ss:$16 sps:$4 sm:$0xff]   ;;  %v17974_v9 = vld [vmem:[%s24492_s5 + $0x7e8] ss:$16 sps:$4 sm:$0xff]  }
 0x7a7   :  { %12319 = vmatprep.subr.bf16.mxu0 %v17892_v61  ;;  %v17979_v61 = vld [vmem:[%s24492_s5 + $0x7c4] ss:$16 sps:$4 sm:$0xff]  }
 0x7a9   :  { %12279 = vmatpush2.bf16.msra.mxu1 %v17887_v26  ;;  %v17982_v26 = vld [vmem:[%s24492_s5 + $0x7cc] ss:$16 sps:$4 sm:$0xff]  }
 0x7aa   :  { %12320 = vmatpush2.bf16.msra.mxu0 %v17890_v10  ;;  %12280 = vmatprep.subr.bf16.mxu1 %v17895_v42  ;;  %v17977_v10 = vld [vmem:[%s24492_s5 + $0x7c0] ss:$16 sps:$4 sm:$0xff]   ;;  %v17980_v42 = vld [vmem:[%s24492_s5 + $0x7c8] ss:$16 sps:$4 sm:$0xff]  }
 0x7ab   :  { %12321 = vmatprep.subr.bf16.mxu0 %v17898_v4  ;;  %v17985_v4 = vld [vmem:[%s24492_s5 + $0x7a4] ss:$16 sps:$4 sm:$0xff]  }
 0x7ad   :  { %12281 = vmatpush2.bf16.msra.mxu1 %v17893_v20  ;;  %v17988_v20 = vld [vmem:[%s24492_s5 + $0x7ac] ss:$16 sps:$4 sm:$0xff]  }
 0x7ae   :  { %12322 = vmatpush2.bf16.msra.mxu0 %v17896_v47  ;;  %12282 = vmatprep.subr.bf16.mxu1 %v17901_v63  ;;  %v17983_v47 = vld [vmem:[%s24492_s5 + $0x7a0] ss:$16 sps:$4 sm:$0xff]   ;;  %v17986_v63 = vld [vmem:[%s24492_s5 + $0x7a8] ss:$16 sps:$4 sm:$0xff]  }
 0x7af   :  { %12323 = vmatprep.subr.bf16.mxu0 %v17904_v0  ;;  %v17991_v0 = vld [vmem:[%s24492_s5 + $0x784] ss:$16 sps:$4 sm:$0xff]  }
 0x7b1   :  { %12283 = vmatpush2.bf16.msra.mxu1 %v17899_v50  ;;  %v17994_v50 = vld [vmem:[%s24492_s5 + $0x78c] ss:$16 sps:$4 sm:$0xff]  }
 0x7b2   :  { %12324 = vmatpush2.bf16.msra.mxu0 %v17902_v51  ;;  %12284 = vmatprep.subr.bf16.mxu1 %v17907_v28  ;;  %v17989_v51 = vld [vmem:[%s24492_s5 + $0x780] ss:$16 sps:$4 sm:$0xff]   ;;  %v17992_v28 = vld [vmem:[%s24492_s5 + $0x788] ss:$16 sps:$4 sm:$0xff]  }
 0x7b3   :  { %12325 = vmatprep.subr.bf16.mxu0 %v17910_v5  ;;  %v17997_v5 = vld [vmem:[%s24492_s5 + $0x764] ss:$16 sps:$4 sm:$0xff]  }
 0x7b5   :  { %12285 = vmatpush2.bf16.msra.mxu1 %v17905_v19  ;;  %v18000_v19 = vld [vmem:[%s24492_s5 + $0x76c] ss:$16 sps:$4 sm:$0xff]  }
 0x7b6   :  { %12326 = vmatpush2.bf16.msra.mxu0 %v17908_v40  ;;  %12286 = vmatprep.subr.bf16.mxu1 %v17913_v8  ;;  %v17995_v40 = vld [vmem:[%s24492_s5 + $0x760] ss:$16 sps:$4 sm:$0xff]   ;;  %v17998_v8 = vld [vmem:[%s24492_s5 + $0x768] ss:$16 sps:$4 sm:$0xff]  }
 0x7b7   :  { %12327 = vmatprep.subr.bf16.mxu0 %v17916_v37  ;;  %v18003_v37 = vld [vmem:[%s24492_s5 + $0x744] ss:$16 sps:$4 sm:$0xff]  }
 0x7b9   :  { %12287 = vmatpush2.bf16.msra.mxu1 %v17911_v60  ;;  %v18006_v60 = vld [vmem:[%s24492_s5 + $0x74c] ss:$16 sps:$4 sm:$0xff]  }
 0x7ba   :  { %12328 = vmatpush2.bf16.msra.mxu0 %v17914_v54  ;;  %12288 = vmatprep.subr.bf16.mxu1 %v17919_v29  ;;  %v18001_v54 = vld [vmem:[%s24492_s5 + $0x740] ss:$16 sps:$4 sm:$0xff]   ;;  %v18004_v29 = vld [vmem:[%s24492_s5 + $0x748] ss:$16 sps:$4 sm:$0xff]  }
 0x7bb   :  { %12329 = vmatprep.subr.bf16.mxu0 %v17922_v57  ;;  %v18009_v57 = vld [vmem:[%s24492_s5 + $0x724] ss:$16 sps:$4 sm:$0xff]  }
 0x7bd   :  { %12289 = vmatpush2.bf16.msra.mxu1 %v17917_v21  ;;  %v18012_v21 = vld [vmem:[%s24492_s5 + $0x72c] ss:$16 sps:$4 sm:$0xff]  }
 0x7be   :  { %12330 = vmatpush2.bf16.msra.mxu0 %v17920_v25  ;;  %12735 = vmatprep.subr.bf16.mxu1 %v17925_v22  ;;  %v18007_v25 = vld [vmem:[%s24492_s5 + $0x720] ss:$16 sps:$4 sm:$0xff]   ;;  %v18010_v22 = vld [vmem:[%s24492_s5 + $0x728] ss:$16 sps:$4 sm:$0xff]  }
 0x7bf   :  { %12776 = vmatprep.subr.bf16.mxu0 %v17928_v23  ;;  %v18015_v23 = vld [vmem:[%s24492_s5 + $0x704] ss:$16 sps:$4 sm:$0xff]  }
 0x7c0   :  { %12291 = vmatmul.mubr.bf16.vlgmr.msra.gmra.mxu1 %v23810_v11 }
 0x7c1   :  { %12332 = vmatmul.mubr.bf16.vlgmr.msra.gmra.mxu0 %v23810_v11  ;;  %12736 = vmatpush1.bf16.msra.mxu1 %v17923_v44  ;;  %v18018_v44 = vld [vmem:[%s24492_s5 + $0x70c] ss:$16 sps:$4 sm:$0xff]  }
 0x7c2   :  { %12767 = vmatprep.mubr.bf16.mxu1 %v12412_v55  ;;  %12777 = vmatpush1.bf16.msra.mxu0 %v17926_v32  ;;  %v18013_v32 = vld [vmem:[%s24492_s5 + $0x700] ss:$16 sps:$4 sm:$0xff]  }
 0x7c3   :  { %12808 = vmatprep.mubr.bf16.mxu0 %v12412_v55  ;;  %12737 = vmatprep.subr.bf16.mxu1 %v17931_v33  ;;  %v18016_v33 = vld [vmem:[%s24492_s5 + $0x708] ss:$16 sps:$4 sm:$0xff]   ;;  %v12411_v55 = vrot.slane %v23810_v11, 4 }
 0x7c4   :  { %12778 = vmatprep.subr.bf16.mxu0 %v17934_v38  ;;  %v18021_v11 = vld [vmem:[%s24494_s6 + $0x38] sm:$0xff]  }
 0x7c5   :  { %12738 = vmatpush1.bf16.msra.mxu1 %v17929_v17 }
 0x7c6   :  { %12779 = vmatpush1.bf16.msra.mxu0 %v17932_v24  ;;  %12739 = vmatprep.subr.bf16.mxu1 %v17937_v16 }
 0x7c7   :  { %12780 = vmatprep.subr.bf16.mxu0 %v17940_v3 }
 0x7c9   :  { %12740 = vmatpush1.bf16.msra.mxu1 %v17935_v1 }
 0x7ca   :  { %12781 = vmatpush1.bf16.msra.mxu0 %v17938_v43  ;;  %12741 = vmatprep.subr.bf16.mxu1 %v17943_v52 }
 0x7cb   :  { %12782 = vmatprep.subr.bf16.mxu0 %v17946_v12  ;;  %v18019_v12 = vld [vmem:[%s24494_s6 + $0x78] sm:$0xff]  }
 0x7cd   :  { %12742 = vmatpush1.bf16.msra.mxu1 %v17941_v35  ;;  %v18020_v35 = vld [vmem:[%s24494_s6 + $0xf8] sm:$0xff]  }
 0x7ce   :  { %12783 = vmatpush1.bf16.msra.mxu0 %v17944_v7  ;;  %12743 = vmatprep.subr.bf16.mxu1 %v17949_v59  ;;  %v18022_v7 = vld [vmem:[%s24494_s6 + $0xb8] sm:$0xff]   ;;  %v18023_v59 = vld [vmem:[%s24494_s6 + $0x70] sm:$0xff]  }
 0x7cf   :  { %12784 = vmatprep.subr.bf16.mxu0 %v17952_v36  ;;  %v18024_v36 = vld [vmem:[%s24494_s6 + $0xf0] sm:$0xff]  }
 0x7d1   :  { %12744 = vmatpush1.bf16.msra.mxu1 %v17947_v48  ;;  %v18025_v48 = vld [vmem:[%s24494_s6 + $0x30] sm:$0xff]  }
 0x7d2   :  { %12785 = vmatpush1.bf16.msra.mxu0 %v17950_v34  ;;  %12745 = vmatprep.subr.bf16.mxu1 %v17955_v18  ;;  %v18026_v34 = vld [vmem:[%s24494_s6 + $0xb0] sm:$0xff]   ;;  %v18027_v18 = vld [vmem:[%s24494_s6 + $0x68] sm:$0xff]  }
 0x7d3   :  { %12786 = vmatprep.subr.bf16.mxu0 %v17958_v58  ;;  %v18028_v58 = vld [vmem:[%s24494_s6 + $0xe8] sm:$0xff]  }
 0x7d5   :  { %12746 = vmatpush1.bf16.msra.mxu1 %v17953_v46  ;;  %v18029_v46 = vld [vmem:[%s24494_s6 + $0x28] sm:$0xff]  }
 0x7d6   :  { %12787 = vmatpush1.bf16.msra.mxu0 %v17956_v45  ;;  %12747 = vmatprep.subr.bf16.mxu1 %v17961_v53  ;;  %v18030_v45 = vld [vmem:[%s24494_s6 + $0xa8] sm:$0xff]   ;;  %v18031_v53 = vld [vmem:[%s24494_s6 + $0x60] sm:$0xff]  }
 0x7d7   :  { %12788 = vmatprep.subr.bf16.mxu0 %v17964_v62  ;;  %v18032_v62 = vld [vmem:[%s24494_s6 + $0xe0] sm:$0xff]  }
 0x7d9   :  { %12748 = vmatpush1.bf16.msra.mxu1 %v17959_v31  ;;  %v18033_v31 = vld [vmem:[%s24494_s6 + $0x20] sm:$0xff]  }
 0x7da   :  { %12789 = vmatpush1.bf16.msra.mxu0 %v17962_v30  ;;  %12749 = vmatprep.subr.bf16.mxu1 %v17967_v49  ;;  %v18034_v30 = vld [vmem:[%s24494_s6 + $0xa0] sm:$0xff]   ;;  %v18035_v49 = vld [vmem:[%s24494_s6 + $0x58] sm:$0xff]  }
 0x7db   :  { %12790 = vmatprep.subr.bf16.mxu0 %v17970_v27  ;;  %v18036_v27 = vld [vmem:[%s24494_s6 + $0xd8] sm:$0xff]  }
 0x7dd   :  { %12750 = vmatpush1.bf16.msra.mxu1 %v17965_v56  ;;  %v18037_v56 = vld [vmem:[%s24494_s6 + $0x18] sm:$0xff]  }
 0x7de   :  { %12791 = vmatpush1.bf16.msra.mxu0 %v17968_v15  ;;  %12751 = vmatprep.subr.bf16.mxu1 %v17973_v14  ;;  %v18038_v15 = vld [vmem:[%s24494_s6 + $0x98] sm:$0xff]  }
 0x7df   :  { %12792 = vmatprep.subr.bf16.mxu0 %v17976_v39 }
 0x7e1   :  { %12752 = vmatpush2.bf16.msra.mxu1 %v17971_v6  ;;  %v18039_v6 = vld [vmem:[%s24494_s6 + $0x50] sm:$0xff]  }
 0x7e2   :  { %12793 = vmatpush2.bf16.msra.mxu0 %v17974_v9  ;;  %12753 = vmatprep.subr.bf16.mxu1 %v17979_v61  ;;  %v18040_v9 = vld [vmem:[%s24494_s6 + $0xd0] sm:$0xff]  }
 0x7e3   :  { %12794 = vmatprep.subr.bf16.mxu0 %v17982_v26 }
 0x7e5   :  { %12754 = vmatpush2.bf16.msra.mxu1 %v17977_v10  ;;  %v18041_v10 = vld [vmem:[%s24494_s6 + $0x10] sm:$0xff]  }
 0x7e6   :  { %12795 = vmatpush2.bf16.msra.mxu0 %v17980_v42  ;;  %12755 = vmatprep.subr.bf16.mxu1 %v17985_v4  ;;  %v18042_v42 = vld [vmem:[%s24494_s6 + $0x90] sm:$0xff]  }
 0x7e7   :  { %12796 = vmatprep.subr.bf16.mxu0 %v17988_v20 }
 0x7e9   :  { %12756 = vmatpush2.bf16.msra.mxu1 %v17983_v47 }
 0x7ea   :  { %12797 = vmatpush2.bf16.msra.mxu0 %v17986_v63  ;;  %12757 = vmatprep.subr.bf16.mxu1 %v17991_v0 }
 0x7eb   :  { %12798 = vmatprep.subr.bf16.mxu0 %v17994_v50 }
 0x7ed   :  { %12758 = vmatpush2.bf16.msra.mxu1 %v17989_v51  ;;  %v18043_v51 = vld [vmem:[%s24494_s6 + $0x48] sm:$0xff]  }
 0x7ee   :  { %12799 = vmatpush2.bf16.msra.mxu0 %v17992_v28  ;;  %12759 = vmatprep.subr.bf16.mxu1 %v17997_v5  ;;  %v18044_v28 = vld [vmem:[%s24494_s6 + $0xc8] sm:$0xff]  }
 0x7ef   :  { %12800 = vmatprep.subr.bf16.mxu0 %v18000_v19  ;;  %v18045_v5 = vld [vmem:[%s24494_s6 + $0x8] sm:$0xff]  }
 0x7f0   :  { %v18046_v19 = vld [vmem:[%s24494_s6 + $0x88] sm:$0xff]  }
 0x7f1   :  { %12760 = vmatpush2.bf16.msra.mxu1 %v17995_v40 }
 0x7f2   :  { %12801 = vmatpush2.bf16.msra.mxu0 %v17998_v8  ;;  %12761 = vmatprep.subr.bf16.mxu1 %v18003_v37  ;;  %v18047_v37 = vld [vmem:[%s24494_s6 + $0x40] sm:$0xff]  }
 0x7f3   :  { %12802 = vmatprep.subr.bf16.mxu0 %v18006_v60  ;;  %v18048_v60 = vld [vmem:[%s24494_s6 + $0xc0] sm:$0xff]  }
 0x7f5   :  { %12762 = vmatpush2.bf16.msra.mxu1 %v18001_v54  ;;  %v18049_v54 = vld [vmem:[%s24494_s6] sm:$0xff]  }
 0x7f6   :  { %12803 = vmatpush2.bf16.msra.mxu0 %v18004_v29  ;;  %12763 = vmatprep.subr.bf16.mxu1 %v18009_v57  ;;  %v18050_v29 = vld [vmem:[%s24494_s6 + $0x80] sm:$0xff]  }
 0x7f7   :  { %12804 = vmatprep.subr.bf16.mxu0 %v18012_v21 }
 0x7f9   :  { %12764 = vmatpush2.bf16.msra.mxu1 %v18007_v25 }
 0x7fa   :  { %12805 = vmatpush2.bf16.msra.mxu0 %v18010_v22  ;;  %12765 = vmatprep.subr.bf16.mxu1 %v18015_v23 }
 0x7fb   :  { %12806 = vmatprep.subr.bf16.mxu0 %v18018_v44 }
 0x7fd   :  { %12766 = vmatpush2.bf16.msra.mxu1 %v18013_v32 }
 0x7fe   :  { %12807 = vmatpush2.bf16.msra.mxu0 %v18016_v33  ;;  %16026 = vmatprep.subr.bf16.mxu1 %v18019_v12 }
 0x7ff   :  { %16048 = vmatprep.subr.bf16.mxu0 %v18020_v35 }
 0x800   :  { %12768 = vmatmul.mubr.bf16.vlgmr.msra.gmra.mxu1 %v12411_v55  ;;  %v11423_v38 = vpop.f32.mrf.mxu1  ;;  %v11464_v17 = vpop.f32.mrf.mxu0 }
 0x801   :  { %12809 = vmatmul.mubr.bf16.vlgmr.msra.gmra.mxu0 %v12411_v55  ;;  %16027 = vmatpush3.bf16.msra.mxu1 %v18021_v11 }
 0x802   :  { %v11425_v24 = vpop.f32.mrf.mxu1  ;;  %v11466_v16 = vpop.f32.mrf.mxu0  ;;  %16049 = vmatpush3.bf16.msra.mxu0 %v18022_v7  ;;  %16028 = vmatprep.subr.bf16.mxu1 %v18023_v59  ;;  %v24685_v59 = vld [vmem:[#allocation64_spill] sm:$0xff] }
 0x803   :  { %16050 = vmatprep.subr.bf16.mxu0 %v18024_v36  ;;  %v24686_v36 = vsub.s32 3, %v24685_v59 }
 0x804   :  { %v11427_v3 = vpop.f32.mrf.mxu1  ;;  %v11468_v1 = vpop.f32.mrf.mxu0 }
 0x805   :  { %16029 = vmatpush3.bf16.msra.mxu1 %v18025_v48 }
 0x806   :  { %v11428_v43 = vpop.f32.mrf.mxu1  ;;  %v11469_v52 = vpop.f32.mrf.mxu0  ;;  %16051 = vmatpush3.bf16.msra.mxu0 %v18026_v34  ;;  %16030 = vmatprep.subr.bf16.mxu1 %v18027_v18 }
 0x807   :  { %16052 = vmatprep.subr.bf16.mxu0 %v18028_v58 }
 0x809   :  { %16031 = vmatpush3.bf16.msra.mxu1 %v18029_v46 }
 0x80a   :  { %16053 = vmatpush3.bf16.msra.mxu0 %v18030_v45  ;;  %16032 = vmatprep.subr.bf16.mxu1 %v18031_v53 }
 0x80b   :  { %16054 = vmatprep.subr.bf16.mxu0 %v18032_v62 }
 0x80d   :  { %16033 = vmatpush3.bf16.msra.mxu1 %v18033_v31 }
 0x80e   :  { %16055 = vmatpush3.bf16.msra.mxu0 %v18034_v30  ;;  %16034 = vmatprep.subr.bf16.mxu1 %v18035_v49 }
 0x80f   :  { %16056 = vmatprep.subr.bf16.mxu0 %v18036_v27 }
 0x811   :  { %16035 = vmatpush3.bf16.msra.mxu1 %v18037_v56 }
 0x812   :  { %16057 = vmatpush3.bf16.msra.mxu0 %v18038_v15  ;;  %16036 = vmatprep.subr.bf16.mxu1 %v18039_v6 }
 0x813   :  { %16058 = vmatprep.subr.bf16.mxu0 %v18040_v9 }
 0x815   :  { %16037 = vmatpush3.bf16.msra.mxu1 %v18041_v10 }
 0x816   :  { %16059 = vmatpush3.bf16.msra.mxu0 %v18042_v42  ;;  %16038 = vmatprep.subr.bf16.mxu1 %v18043_v51 }
 0x817   :  { %16060 = vmatprep.subr.bf16.mxu0 %v18044_v28 }
 0x819   :  { %16039 = vmatpush3.bf16.msra.mxu1 %v18045_v5 }
 0x81a   :  { %16061 = vmatpush3.bf16.msra.mxu0 %v18046_v19  ;;  %16040 = vmatprep.subr.bf16.mxu1 %v18047_v37 }
 0x81b   :  { %16062 = vmatprep.subr.bf16.mxu0 %v18048_v60 }
 0x81d   :  { %16041 = vmatpush3.bf16.msra.mxu1 %v18049_v54 }
 0x81e   :  { %16063 = vmatpush3.bf16.msra.mxu0 %v18050_v29 }
 0x840   :  { %v11825_v14 = vpop.f32.mrf.mxu1  ;;  %v11866_v39 = vpop.f32.mrf.mxu0 }
 0x841   :  { %v11826_v61 = vadd.f32 %v11825_v14, %v11423_v38  ;;  %v11867_v26 = vadd.f32 %v11866_v39, %v11464_v17  ;;  %v12821_v17 = vld [vmem:[%s24495_s10] sm:$0xf] }
 0x842   :  { %v11827_v4 = vpop.f32.mrf.mxu1  ;;  %v11868_v20 = vpop.f32.mrf.mxu0  ;;  %v12834_v3 = vrot.slane %v12821_v17, %v24684_v41  ;;  %v12830_v12 = vrot.slane %v12821_v17, %v21102_v2  ;;  %v12838_v48 = vrot.slane %v12821_v17, %v24686_v36 }
 0x843   :  { %v11828_v47 = vadd.f32 %v11827_v4, %v11425_v24  ;;  %v11869_v63 = vadd.f32 %v11868_v20, %v11466_v16  ;;  %v12826_v24 = vrot.slane %v12821_v17, %v24683_v13 }
 0x844   :  { %v11829_v0 = vpop.f32.mrf.mxu1  ;;  %v11870_v50 = vpop.f32.mrf.mxu0 }
 0x846   :  { %v11830_v40 = vpop.f32.mrf.mxu1  ;;  %v11871_v8 = vpop.f32.mrf.mxu0 }
 0x847   :  { %v24687_v8 = vlaneseq }
 0x849   :  { %v13199_v37 = vand.u32 127, %v24687_v8 }
 0x84b   :  { %vm13200_vm3 = vcmp.eq.s32.totalorder %v13199_v37, 0 }
 0x880   :  { %v12292_v57 = vpop.f32.mrf.mxu1 }
 0x881   :  { %v12340_v21 = vadd.f32 %v12292_v57, %v11826_v61  ;;  %v12333_v25 = vpop.f32.mrf.mxu0 }
 0x882   :  { %v12342_v22 = vadd.f32 %v12333_v25, %v11867_v26  ;;  %v12294_v23 = vpop.f32.mrf.mxu1  ;;  %v15856_v26 = vld [vmem:[%s24496_s11] ss:$0 sm:$0xff] }
 0x883   :  { %v12335_v44 = vpop.f32.mrf.mxu0  ;;  %v12341_v1 = vadd.f32 %v12294_v23, %v11828_v47 }
 0x884   :  { %v12296_v32 = vpop.f32.mrf.mxu1  ;;  %v12343_v35 = vadd.f32 %v12335_v44, %v11869_v63 }
 0x885   :  { %v12337_v33 = vpop.f32.mrf.mxu0 }
 0x886   :  { %v12297_v55 = vpop.f32.mrf.mxu1 }
 0x887   :  { %v12338_v38 = vpop.f32.mrf.mxu0 }
 0x8c0   :  { %v12769_v16 = vpop.f32.mrf.mxu1 }
 0x8c1   :  { %v12817_v43 = vadd.f32 %v12769_v16, %v12340_v21  ;;  %v12810_v52 = vpop.f32.mrf.mxu0 }
 0x8c2   :  { %v12819_v11 = vadd.f32 %v12810_v52, %v12342_v22  ;;  %v12771_v7 = vpop.f32.mrf.mxu1 }
 0x8c3   :  { %v12843_v34 = vadd.f32 %v12826_v24, %v12817_v43  ;;  %v12818_v18 = vadd.f32 %v12771_v7, %v12341_v1  ;;  %v12812_v58 = vpop.f32.mrf.mxu0 }
 0x8c4   :  { %v12845_v46 = vadd.f32 %v12834_v3, %v12819_v11  ;;  %v12820_v45 = vadd.f32 %v12812_v58, %v12343_v35  ;;  %v12773_v13 = vpop.f32.mrf.mxu1 }
 0x8c5   :  { %v12844_v53 = vadd.f32 %v12830_v12, %v12818_v18  ;;  %v12814_v62 = vpop.f32.mrf.mxu0  ;;  %v12847_v41 = vmax.f32 %v12843_v34, 0.0 }
 0x8c6   :  { %v12846_v31 = vadd.f32 %v12838_v48, %v12820_v45  ;;  %v12774_v30 = vpop.f32.mrf.mxu1  ;;  %v12849_v49 = vmax.f32 %v12845_v46, 0.0 }
 0x8c7   :  { %v12848_v27 = vmax.f32 %v12844_v53, 0.0  ;;  %v12815_v2 = vpop.f32.mrf.mxu0  ;;  %v12851_v14 = vpack.c.bf16 %v12847_v41, %v12847_v41 }
 0x8c8   :  { %v12850_v56 = vmax.f32 %v12846_v31, 0.0  ;;  %v12853_v6 = vpack.c.bf16 %v12849_v49, %v12849_v49 }
 0x8c9   :  { %v12852_v15 = vpack.c.bf16 %v12848_v27, %v12848_v27 }
 0x8ca   :  { %v12854_v39 = vpack.c.bf16 %v12850_v56, %v12850_v56 }
 0x8cb   :  { %13150 = vmatprep.mubr.bf16.mxu1 %v12852_v15 }
 0x8cc   :  { %13190 = vmatprep.mubr.bf16.mxu0 %v12854_v39  ;;  %13151 = vmatmul.mubr.bf16.vlgmr.msra.gmra.mxu1 %v12851_v14 }
 0x8cd   :  { %13191 = vmatmul.mubr.bf16.vlgmr.msra.gmra.mxu0 %v12853_v6 }
 0x98c   :  { %v16042_v9 = vpop.f32.mrf.mxu1 }
 0x98d   :  { %v16064_v61 = vpop.f32.mrf.mxu0 }
 0x98e   :  { %v16043_v10 = vpop.f32.mrf.mxu1 }
 0x98f   :  { %v16044_v42 = vadd.f32 %v16043_v10, %v16042_v9  ;;  %v16065_v4 = vpop.f32.mrf.mxu0 }
 0x990   :  { %v16045_v20 = vpop.f32.mrf.mxu1  ;;  %v16066_v63 = vadd.f32 %v16065_v4, %v16064_v61 }
 0x991   :  { %v13153_v47 = vadd.f32 %v16044_v42, %v15856_v26  ;;  %v16067_v0 = vpop.f32.mrf.mxu0 }
 0x992   :  { %v16046_v50 = vpop.f32.mrf.mxu1 }
 0x993   :  { %v13193_v51 = vadd.f32 %v16066_v63, %v13153_v47  ;;  %v16068_v28 = vpop.f32.mrf.mxu0 }
 0x995   :  { %v15889_v5 = vmul.f32 -1.442695, %v13193_v51 }
 0x997   :  { %18051 = vpow2.f32 %v15889_v5 }
 0x998   :  { %18053 = vtanh.f32 %v13193_v51 }
 0x9a4   :  { %v18052_v19 = vpop.eup %18051 }
 0x9a5   :  { %v13205_v40 = vadd.f32 1.0, %v18052_v19  ;;  %v18054_v60 = vpop.eup %18053 }
 0x9a7   :  { %18055 = vrcp.f32 %v13205_v40 }
 0x9b4   :  { %v18056_v54 = vpop.eup %18055 }
 0x9b5   :  { %v13208_v29 = vsel %vm13200_vm3, %v18054_v60, %v18056_v54 }
 0x9b6   :  { %13209 = vst [vmem:[%s24497_s12] sm:$0xff] %v13208_v29 }

</bundles_post_ra>
